<compile_context>
chip_gen: v6e
topology: v6e:2x2x1
jax: 0.10.0
libtpu: 0.0.40
codegen_flags: <defaults>
</compile_context>

<pallas_src>
import jax
import jax.numpy as jnp
import numpy as np
from jax import lax
from jax.experimental import pallas as pl
from jax.experimental.pallas import tpu as pltpu

_MAX_D = 18            # largest dilation -> vertical halo size
_DILS = (6, 12, 18)    # dilations of conv2 / conv3 / conv4


# ------------------------------------------------------------------ helpers

def _round_up(x, m):
    return (x + m - 1) // m * m


def _rows_per_tile(H, W, target=512):
    """Rows of output per grid step: divisor of H, (rows*W) % 8 == 0."""
    cands = [t for t in range(1, H + 1) if H % t == 0 and (t * W) % 8 == 0]
    under = [t for t in cands if t * W <= target]
    if under:
        return max(under)
    return min(cands) if cands else H


def _fold_bn_into_conv(p, cp, eps=1e-5):
    """Fold BN scale into the HWIO conv weight, BN shift + bias into a shift.

    Returns (w, shift): w is (kh*kw, Cin, cp) bf16, shift is (cp,) f32, with
    the Cout axis zero-padded to cp lanes.
    """
    s = p["gamma"] / jnp.sqrt(p["var"] + eps)
    shift = p["beta"] - p["mean"] * s + p["b"] * s
    kh, kw, cin, cout = p["w"].shape
    w = (p["w"] * s).reshape(kh * kw, cin, cout)
    w = jnp.pad(w, ((0, 0), (0, 0), (0, cp - cout)))
    shift = jnp.pad(shift, (0, cp - cout))
    return w.astype(jnp.bfloat16), shift.astype(jnp.float32)


def _fold_final_conv(p, cout_branch, cp, pooled, eps=1e-5):
    """Final 1x1 conv: per-branch weight blocks with BN scale folded in, and
    a per-batch shift that absorbs conv bias, BN shift and the pooled branch."""
    s = p["gamma"] / jnp.sqrt(p["var"] + eps)                   # (256,)
    base = p["beta"] - p["mean"] * s + p["b"] * s               # (256,)
    w = p["w"].reshape(-1, p["w"].shape[-1]) * s                # (Cin+4*Cout, 256)
    blocks = []
    for b in range(4):
        wb = w[b * cout_branch:(b + 1) * cout_branch]           # (Cout, 256)
        blocks.append(jnp.pad(wb, ((0, cp - cout_branch), (0, 0))))
    wf = jnp.stack(blocks).astype(jnp.bfloat16)                 # (4, cp, 256)
    w5 = w[4 * cout_branch:]                                    # (Cin, 256)
    shift = base[None, :] + pooled @ w5                         # (N, 256)
    return wf, shift.astype(jnp.float32)


# ------------------------------------------------------------------ kernel

def _make_aspp_kernel(*, H, W, D, G, dils, M):
    taps = [(ky, kx) for ky in (-1, 0, 1) for kx in (-1, 0, 1)]

    def kernel(xf_ref, col_ref, w1_ref, w2_ref, w3_ref, w4_ref,
               shb_ref, wf_ref, shf_ref, o_ref, accb_ref, accf_ref):
        i = pl.program_id(1)
        p0 = pl.multiple_of(i * M, M)          # first output pixel of the tile
        base = G + D * W + p0                  # flat index of the (0, 0) tap
        cin = xf_ref.shape[-1]

        shb = shb_ref[...]                                    # (4, Cp)  f32
        colx = jnp.broadcast_to(col_ref[...], (M, cin))       # (M, Cin) int32

        lhs_cache = {}                         # trace-time reuse of shared taps

        def tap_lhs(dy, dx):
            key = (dy, dx)
            if key in lhs_cache:
                return lhs_cache[key]
            xs = xf_ref[0, pl.ds(base + dy * W + dx, M), :]   # (M, Cin) f32
            if dx != 0:   # zero taps whose column falls outside the image
                keep = (colx + dx >= 0) & (colx + dx < W)
                xs = jnp.where(keep, xs, 0.0)
            xs = xs.astype(jnp.bfloat16)
            lhs_cache[key] = xs
            return xs

        # ---- branch 1: 1x1 conv + BN + ReLU, fused with final-conv block 0 --
        h = jnp.dot(tap_lhs(0, 0), w1_ref[...],
                    preferred_element_type=jnp.float32)
        h = jnp.maximum(h + shb[0:1, :], 0.0).astype(jnp.bfloat16)
        accf_ref[...] = jnp.dot(h, wf_ref[0],
                                preferred_element_type=jnp.float32)

        # ---- branches 2-4: dilated 3x3 conv + BN + ReLU + final-conv block --
        for b, (w_ref, d) in enumerate(zip((w2_ref, w3_ref, w4_ref), dils)):
            first = True
            for t, (ky, kx) in enumerate(taps):
                if (ky != 0 and d >= H) or (kx != 0 and d >= W):
                    continue                    # tap can only read zero padding
                part = jnp.dot(tap_lhs(ky * d, kx * d), w_ref[t],
                               preferred_element_type=jnp.float32)
                if first:
                    accb_ref[...] = part
                    first = False
                else:
                    accb_ref[...] += part
            h = jnp.maximum(accb_ref[...] + shb[b + 1:b + 2, :], 0.0)
            accf_ref[...] += jnp.dot(h.astype(jnp.bfloat16), wf_ref[b + 1],
                                     preferred_element_type=jnp.float32)

        # ---- pooled branch is pre-folded into shf; final bias + ReLU --------
        o_ref[0] = jnp.maximum(accf_ref[...] + shf_ref[0], 0.0)

    return kernel


# ------------------------------------------------------------------ wrapper

def aspp_forward(x_nchw, params):
    x = jnp.transpose(x_nchw, (0, 2, 3, 1)).astype(jnp.float32)   # NCHW -> NHWC
    N, H, W, Cin = x.shape
    Cout = params["conv1"]["w"].shape[-1]
    Cf = params["conv_1x2"]["w"].shape[-1]          # 256
    Cp = _round_up(Cout, 128)                       # lane-dense branch width
    D = _MAX_D

    # --- fold BN into weights / shifts (done once, in XLA) -------------------
    w1, sh1 = _fold_bn_into_conv(params["conv1"], Cp)
    w2, sh2 = _fold_bn_into_conv(params["conv2"], Cp)
    w3, sh3 = _fold_bn_into_conv(params["conv3"], Cp)
    w4, sh4 = _fold_bn_into_conv(params["conv4"], Cp)
    w1 = w1[0]                                      # (Cin, Cp)
    shb = jnp.stack([sh1, sh2, sh3, sh4])           # (4, Cp) f32

    # AdaptiveAvgPool2d(1) + align_corners bilinear upsample of a 1x1 map is a
    # per-batch mean broadcast -> fold it into the final-conv shift (XLA glue).
    pooled = jnp.mean(x, axis=(1, 2))               # (N, Cin) f32
    wf, shf = _fold_final_conv(params["conv_1x2"], Cout, Cp, pooled)
    shf = shf.reshape(N, 1, Cf)

    # --- input prep: vertical halo pad, flatten spatial, flat zero guard -----
    th = _rows_per_tile(H, W)
    M = th * W                                      # output pixels per grid step
    G = _round_up(D, 8)                             # flat guard >= max |dx|
    xp = jnp.pad(x, ((0, 0), (D, D), (0, 0), (0, 0)))
    xf = xp.reshape(N, (H + 2 * D) * W, Cin)
    L = _round_up(G + (H + 2 * D) * W + G, 8)
    xf = jnp.pad(xf, ((0, 0), (G, L - G - (H + 2 * D) * W), (0, 0)))

    colmap = jnp.arange(M, dtype=jnp.int32).reshape(M, 1) % W

    grid = (N, H // th)
    kernel = _make_aspp_kernel(H=H, W=W, D=D, G=G, dils=_DILS, M=M)
    out = pl.pallas_call(
        kernel,
        out_shape=jax.ShapeDtypeStruct((N, H * W, Cf), jnp.float32),
        grid_spec=pltpu.PrefetchScalarGridSpec(
            num_scalar_prefetch=0,
            grid=grid,
            in_specs=[
                # padded + flattened input: block index is constant over the
                # inner row-tile axis -> DMA'd once per image, stays in VMEM
                pl.BlockSpec((1, L, Cin), lambda n, i: (n, 0, 0)),
                pl.BlockSpec((M, 1), lambda n, i: (0, 0)),
                pl.BlockSpec((Cin, Cp), lambda n, i: (0, 0)),
                pl.BlockSpec((9, Cin, Cp), lambda n, i: (0, 0, 0)),
                pl.BlockSpec((9, Cin, Cp), lambda n, i: (0, 0, 0)),
                pl.BlockSpec((9, Cin, Cp), lambda n, i: (0, 0, 0)),
                pl.BlockSpec((4, Cp), lambda n, i: (0, 0)),
                pl.BlockSpec((4, Cp, Cf), lambda n, i: (0, 0, 0)),
                pl.BlockSpec((1, 1, Cf), lambda n, i: (n, 0, 0)),
            ],
            out_specs=pl.BlockSpec((1, M, Cf), lambda n, i: (n, i, 0)),
            scratch_shapes=[
                pltpu.VMEM((M, Cp), jnp.float32),   # per-branch accumulator
                pltpu.VMEM((M, Cf), jnp.float32),   # fused final-conv accumulator
            ],
        ),
        compiler_params=pltpu.CompilerParams(
            dimension_semantics=("parallel", "parallel"),
            vmem_limit_bytes=32 * 1024 * 1024),
    )(xf, colmap, w1, w2, w3, w4, shb, wf, shf)

    out = out.reshape(N, H, W, Cf)
    return jnp.transpose(out, (0, 3, 1, 2))         # NHWC -> NCHW


# ------------------------------------------------------------------ params

def make_conv_params(key, kh, kw, cin, cout):
    k = jax.random.split(key, 6)
    scale = 1.0 / np.sqrt(kh * kw * cin)
    return dict(
        w=jax.random.normal(k[0], (kh, kw, cin, cout), jnp.float32) * scale,
        b=jax.random.normal(k[1], (cout,), jnp.float32) * scale,
        gamma=jax.random.uniform(k[2], (cout,), jnp.float32, 0.8, 1.2),
        beta=jax.random.normal(k[3], (cout,), jnp.float32) * 0.1,
        mean=jax.random.normal(k[4], (cout,), jnp.float32) * 0.1,
        var=jax.random.uniform(k[5], (cout,), jnp.float32, 0.5, 1.5),
    )


def init_params(key, cin, cout):
    ks = jax.random.split(key, 5)
    return {
        "conv1": make_conv_params(ks[0], 1, 1, cin, cout),
        "conv2": make_conv_params(ks[1], 3, 3, cin, cout),
        "conv3": make_conv_params(ks[2], 3, 3, cin, cout),
        "conv4": make_conv_params(ks[3], 3, 3, cin, cout),
        "conv_1x2": make_conv_params(ks[4], 1, 1, cin + 4 * cout, 256),
    }


# ------------------------------------------------------------------ reference

def _ref_conv_bn_relu(x_nhwc, p, dilation):
    kh = p["w"].shape[0]
    pad = dilation if kh == 3 else 0
    y = lax.conv_general_dilated(
        x_nhwc, p["w"], window_strides=(1, 1),
        padding=((pad, pad), (pad, pad)),
        rhs_dilation=(dilation, dilation),
        dimension_numbers=("NHWC", "HWIO", "NHWC"),
        precision=lax.Precision.HIGHEST)
    y = y + p["b"]
    s = p["gamma"] / jnp.sqrt(p["var"] + 1e-5)
    y = (y - p["mean"]) * s + p["beta"]
    return jnp.maximum(y, 0.0)


def aspp_reference(x_nchw, params):
    x = jnp.transpose(x_nchw, (0, 2, 3, 1)).astype(jnp.float32)
    x1 = _ref_conv_bn_relu(x, params["conv1"], 1)
    x2 = _ref_conv_bn_relu(x, params["conv2"], 6)
    x3 = _ref_conv_bn_relu(x, params["conv3"], 12)
    x4 = _ref_conv_bn_relu(x, params["conv4"], 18)
    x5 = jnp.broadcast_to(jnp.mean(x, axis=(1, 2), keepdims=True), x.shape)
    cat = jnp.concatenate([x1, x2, x3, x4, x5], axis=-1)
    out = _ref_conv_bn_relu(cat, params["conv_1x2"], 1)
    return jnp.transpose(out, (0, 3, 1, 2))


# ------------------------------------------------------------------ main

if __name__ == "__main__":
    key = jax.random.PRNGKey(0)
    N, Cin, H, W = 2, 4, 16, 16
    Cout = 4

    key_x, key_p = jax.random.split(key)
    x = jax.random.normal(key_x, (N, Cin, H, W), dtype=jnp.float32)
    params = init_params(key_p, Cin, Cout)

    fwd = jax.jit(aspp_forward)
    out = jax.block_until_ready(fwd(x, params))
    assert out.shape == (N, 256, H, W), out.shape
    assert out.dtype == jnp.float32

    ref = jax.block_until_ready(aspp_reference(x, params))
    np.testing.assert_allclose(np.asarray(out), np.asarray(ref),
                               rtol=5e-2, atol=5e-2)

    print("KERNEL_OK")
</pallas_src>

<mosaic_0001>
module attributes {stable_mosaic.version = 11 : i64} {
  func.func @kernel(%arg0: i32, %arg1: i32, %arg2: memref<1x880x4xf32, #tpu.memory_space<vmem>>, %arg3: memref<256x1xi32, #tpu.memory_space<vmem>>, %arg4: memref<4x128xbf16, #tpu.memory_space<vmem>>, %arg5: memref<9x4x128xbf16, #tpu.memory_space<vmem>>, %arg6: memref<9x4x128xbf16, #tpu.memory_space<vmem>>, %arg7: memref<9x4x128xbf16, #tpu.memory_space<vmem>>, %arg8: memref<4x128xf32, #tpu.memory_space<vmem>>, %arg9: memref<4x128x256xbf16, #tpu.memory_space<vmem>>, %arg10: memref<1x1x256xf32, #tpu.memory_space<vmem>>, %arg11: memref<1x256x256xf32, #tpu.memory_space<vmem>>, %arg12: memref<256x128xf32, #tpu.memory_space<vmem>>, %arg13: memref<256x256xf32, #tpu.memory_space<vmem>>) attributes {dimension_semantics = [#tpu.dimension_semantics<parallel>, #tpu.dimension_semantics<parallel>], iteration_bounds = array<i64: 2, 1>, scalar_prefetch = 0 : i64, scratch_operands = 2 : i64, tpu.core_type = #tpu.core_type<tc>, window_params = [{transform_indices = @transform_0, window_bounds = array<i64: 1, 880, 4>}, {pipeline_mode = #tpu.pipeline_mode<synchronous>, transform_indices = @transform_1, window_bounds = array<i64: 256, 1>}, {pipeline_mode = #tpu.pipeline_mode<synchronous>, transform_indices = @transform_2, window_bounds = array<i64: 4, 128>}, {pipeline_mode = #tpu.pipeline_mode<synchronous>, transform_indices = @transform_3, window_bounds = array<i64: 9, 4, 128>}, {pipeline_mode = #tpu.pipeline_mode<synchronous>, transform_indices = @transform_4, window_bounds = array<i64: 9, 4, 128>}, {pipeline_mode = #tpu.pipeline_mode<synchronous>, transform_indices = @transform_5, window_bounds = array<i64: 9, 4, 128>}, {pipeline_mode = #tpu.pipeline_mode<synchronous>, transform_indices = @transform_6, window_bounds = array<i64: 4, 128>}, {pipeline_mode = #tpu.pipeline_mode<synchronous>, transform_indices = @transform_7, window_bounds = array<i64: 4, 128, 256>}, {transform_indices = @transform_8, window_bounds = array<i64: 1, 1, 256>}, {transform_indices = @transform_9, window_bounds = array<i64: 1, 256, 256>}]} {
    %c256_i32 = arith.constant 256 : i32
    %0 = arith.muli %arg1, %c256_i32 : i32
    %1 = tpu.assume_multiple %0, 256 : i32
    %c312_i32 = arith.constant 312 : i32
    %2 = arith.addi %c312_i32, %1 : i32
    %c0 = arith.constant 0 : index
    %c0_0 = arith.constant 0 : index
    %3 = vector.load %arg8[%c0, %c0_0] : memref<4x128xf32, #tpu.memory_space<vmem>>, vector<4x128xf32>
    %c0_1 = arith.constant 0 : index
    %c0_2 = arith.constant 0 : index
    %4 = vector.load %arg3[%c0_1, %c0_2] : memref<256x1xi32, #tpu.memory_space<vmem>>, vector<256x1xi32>
    %5 = vector.shape_cast %4 : vector<256x1xi32> to vector<256x1xi32>
    %6 = vector.broadcast %5 : vector<256x1xi32> to vector<256x4xi32>
    %c0_i32 = arith.constant 0 : i32
    %7 = arith.addi %2, %c0_i32 : i32
    %c0_i32_3 = arith.constant 0 : i32
    %8 = arith.addi %7, %c0_i32_3 : i32
    %c0_4 = arith.constant 0 : index
    %9 = arith.index_cast %8 : i32 to index
    %c0_5 = arith.constant 0 : index
    %10 = vector.load %arg2[%c0_4, %9, %c0_5] : memref<1x880x4xf32, #tpu.memory_space<vmem>>, vector<1x256x4xf32>
    %11 = vector.shape_cast %10 : vector<1x256x4xf32> to vector<256x4xf32>
    %12 = arith.truncf %11 : vector<256x4xf32> to vector<256x4xbf16>
    %c0_6 = arith.constant 0 : index
    %c0_7 = arith.constant 0 : index
    %13 = vector.load %arg4[%c0_6, %c0_7] : memref<4x128xbf16, #tpu.memory_space<vmem>>, vector<4x128xbf16>
    %cst = arith.constant dense<0.000000e+00> : vector<256x128xf32>
    %14 = tpu.matmul %12, %13, %cst {dimension_numbers = #tpu.dot_dimension_numbers<[1], [0], [0], [1], [0, 0, 1, 1], [], []>} : vector<256x4xbf16>, vector<4x128xbf16>, vector<256x128xf32> -> vector<256x128xf32>
    %15 = vector.extract_strided_slice %3 {offsets = [0, 0], sizes = [1, 128], strides = [1, 1]} : vector<4x128xf32> to vector<1x128xf32>
    %16 = vector.broadcast %15 : vector<1x128xf32> to vector<256x128xf32>
    %17 = arith.addf %14, %16 : vector<256x128xf32>
    %cst_8 = arith.constant 0.000000e+00 : f32
    %18 = vector.broadcast %cst_8 : f32 to vector<256x128xf32>
    %19 = arith.maximumf %17, %18 : vector<256x128xf32>
    %20 = arith.truncf %19 : vector<256x128xf32> to vector<256x128xbf16>
    %c0_9 = arith.constant 0 : index
    %c0_10 = arith.constant 0 : index
    %c0_11 = arith.constant 0 : index
    %21 = vector.load %arg9[%c0_9, %c0_10, %c0_11] : memref<4x128x256xbf16, #tpu.memory_space<vmem>>, vector<1x128x256xbf16>
    %22 = vector.shape_cast %21 : vector<1x128x256xbf16> to vector<128x256xbf16>
    %cst_12 = arith.constant dense<0.000000e+00> : vector<256x256xf32>
    %23 = tpu.matmul %20, %22, %cst_12 {dimension_numbers = #tpu.dot_dimension_numbers<[1], [0], [0], [1], [0, 0, 1, 1], [], []>} : vector<256x128xbf16>, vector<128x256xbf16>, vector<256x256xf32> -> vector<256x256xf32>
    %c0_13 = arith.constant 0 : index
    %c0_14 = arith.constant 0 : index
    %24 = vector.load %arg13[%c0_13, %c0_14] : memref<256x256xf32, #tpu.memory_space<vmem>>, vector<256x256xf32>
    tpu.vector_store %arg13[%c0_13, %c0_14], %23 {strides = array<i32>} : memref<256x256xf32, #tpu.memory_space<vmem>>, vector<256x256xf32>,
    %c-96_i32 = arith.constant -96 : i32
    %25 = arith.addi %2, %c-96_i32 : i32
    %c-6_i32 = arith.constant -6 : i32
    %26 = arith.addi %25, %c-6_i32 : i32
    %c0_15 = arith.constant 0 : index
    %27 = arith.index_cast %26 : i32 to index
    %c0_16 = arith.constant 0 : index
    %28 = vector.load %arg2[%c0_15, %27, %c0_16] : memref<1x880x4xf32, #tpu.memory_space<vmem>>, vector<1x256x4xf32>
    %29 = vector.shape_cast %28 : vector<1x256x4xf32> to vector<256x4xf32>
    %c-6_i32_17 = arith.constant -6 : i32
    %30 = vector.broadcast %c-6_i32_17 : i32 to vector<256x4xi32>
    %31 = arith.addi %6, %30 : vector<256x4xi32>
    %c0_i32_18 = arith.constant 0 : i32
    %32 = vector.broadcast %c0_i32_18 : i32 to vector<256x4xi32>
    %33 = arith.cmpi sge, %31, %32 : vector<256x4xi32>
    %c-6_i32_19 = arith.constant -6 : i32
    %34 = vector.broadcast %c-6_i32_19 : i32 to vector<256x4xi32>
    %35 = arith.addi %6, %34 : vector<256x4xi32>
    %c16_i32 = arith.constant 16 : i32
    %36 = vector.broadcast %c16_i32 : i32 to vector<256x4xi32>
    %37 = arith.cmpi slt, %35, %36 : vector<256x4xi32>
    %38 = arith.andi %33, %37 : vector<256x4xi1>
    %cst_20 = arith.constant 0.000000e+00 : f32
    %39 = vector.broadcast %cst_20 : f32 to vector<256x4xf32>
    %40 = arith.select %38, %29, %39 : vector<256x4xi1>, vector<256x4xf32>
    %41 = arith.truncf %40 : vector<256x4xf32> to vector<256x4xbf16>
    %c0_21 = arith.constant 0 : index
    %c0_22 = arith.constant 0 : index
    %c0_23 = arith.constant 0 : index
    %42 = vector.load %arg5[%c0_21, %c0_22, %c0_23] : memref<9x4x128xbf16, #tpu.memory_space<vmem>>, vector<1x4x128xbf16>
    %43 = vector.shape_cast %42 : vector<1x4x128xbf16> to vector<4x128xbf16>
    %cst_24 = arith.constant dense<0.000000e+00> : vector<256x128xf32>
    %44 = tpu.matmul %41, %43, %cst_24 {dimension_numbers = #tpu.dot_dimension_numbers<[1], [0], [0], [1], [0, 0, 1, 1], [], []>} : vector<256x4xbf16>, vector<4x128xbf16>, vector<256x128xf32> -> vector<256x128xf32>
    %c0_25 = arith.constant 0 : index
    %c0_26 = arith.constant 0 : index
    %45 = vector.load %arg12[%c0_25, %c0_26] : memref<256x128xf32, #tpu.memory_space<vmem>>, vector<256x128xf32>
    tpu.vector_store %arg12[%c0_25, %c0_26], %44 {strides = array<i32>} : memref<256x128xf32, #tpu.memory_space<vmem>>, vector<256x128xf32>,
    %c-96_i32_27 = arith.constant -96 : i32
    %46 = arith.addi %2, %c-96_i32_27 : i32
    %c0_i32_28 = arith.constant 0 : i32
    %47 = arith.addi %46, %c0_i32_28 : i32
    %c0_29 = arith.constant 0 : index
    %48 = arith.index_cast %47 : i32 to index
    %c0_30 = arith.constant 0 : index
    %49 = vector.load %arg2[%c0_29, %48, %c0_30] : memref<1x880x4xf32, #tpu.memory_space<vmem>>, vector<1x256x4xf32>
    %50 = vector.shape_cast %49 : vector<1x256x4xf32> to vector<256x4xf32>
    %51 = arith.truncf %50 : vector<256x4xf32> to vector<256x4xbf16>
    %c1 = arith.constant 1 : index
    %c0_31 = arith.constant 0 : index
    %c0_32 = arith.constant 0 : index
    %52 = vector.load %arg5[%c1, %c0_31, %c0_32] : memref<9x4x128xbf16, #tpu.memory_space<vmem>>, vector<1x4x128xbf16>
    %53 = vector.shape_cast %52 : vector<1x4x128xbf16> to vector<4x128xbf16>
    %cst_33 = arith.constant dense<0.000000e+00> : vector<256x128xf32>
    %54 = tpu.matmul %51, %53, %cst_33 {dimension_numbers = #tpu.dot_dimension_numbers<[1], [0], [0], [1], [0, 0, 1, 1], [], []>} : vector<256x4xbf16>, vector<4x128xbf16>, vector<256x128xf32> -> vector<256x128xf32>
    %c0_34 = arith.constant 0 : index
    %c0_35 = arith.constant 0 : index
    %55 = vector.load %arg12[%c0_34, %c0_35] : memref<256x128xf32, #tpu.memory_space<vmem>>, vector<256x128xf32>
    %56 = arith.addf %55, %54 : vector<256x128xf32>
    %c0_36 = arith.constant 0 : index
    %c0_37 = arith.constant 0 : index
    %57 = vector.load %arg12[%c0_36, %c0_37] : memref<256x128xf32, #tpu.memory_space<vmem>>, vector<256x128xf32>
    tpu.vector_store %arg12[%c0_36, %c0_37], %56 {strides = array<i32>} : memref<256x128xf32, #tpu.memory_space<vmem>>, vector<256x128xf32>,
    %c-96_i32_38 = arith.constant -96 : i32
    %58 = arith.addi %2, %c-96_i32_38 : i32
    %c6_i32 = arith.constant 6 : i32
    %59 = arith.addi %58, %c6_i32 : i32
    %c0_39 = arith.constant 0 : index
    %60 = arith.index_cast %59 : i32 to index
    %c0_40 = arith.constant 0 : index
    %61 = vector.load %arg2[%c0_39, %60, %c0_40] : memref<1x880x4xf32, #tpu.memory_space<vmem>>, vector<1x256x4xf32>
    %62 = vector.shape_cast %61 : vector<1x256x4xf32> to vector<256x4xf32>
    %c6_i32_41 = arith.constant 6 : i32
    %63 = vector.broadcast %c6_i32_41 : i32 to vector<256x4xi32>
    %64 = arith.addi %6, %63 : vector<256x4xi32>
    %c0_i32_42 = arith.constant 0 : i32
    %65 = vector.broadcast %c0_i32_42 : i32 to vector<256x4xi32>
    %66 = arith.cmpi sge, %64, %65 : vector<256x4xi32>
    %c6_i32_43 = arith.constant 6 : i32
    %67 = vector.broadcast %c6_i32_43 : i32 to vector<256x4xi32>
    %68 = arith.addi %6, %67 : vector<256x4xi32>
    %c16_i32_44 = arith.constant 16 : i32
    %69 = vector.broadcast %c16_i32_44 : i32 to vector<256x4xi32>
    %70 = arith.cmpi slt, %68, %69 : vector<256x4xi32>
    %71 = arith.andi %66, %70 : vector<256x4xi1>
    %cst_45 = arith.constant 0.000000e+00 : f32
    %72 = vector.broadcast %cst_45 : f32 to vector<256x4xf32>
    %73 = arith.select %71, %62, %72 : vector<256x4xi1>, vector<256x4xf32>
    %74 = arith.truncf %73 : vector<256x4xf32> to vector<256x4xbf16>
    %c2 = arith.constant 2 : index
    %c0_46 = arith.constant 0 : index
    %c0_47 = arith.constant 0 : index
    %75 = vector.load %arg5[%c2, %c0_46, %c0_47] : memref<9x4x128xbf16, #tpu.memory_space<vmem>>, vector<1x4x128xbf16>
    %76 = vector.shape_cast %75 : vector<1x4x128xbf16> to vector<4x128xbf16>
    %cst_48 = arith.constant dense<0.000000e+00> : vector<256x128xf32>
    %77 = tpu.matmul %74, %76, %cst_48 {dimension_numbers = #tpu.dot_dimension_numbers<[1], [0], [0], [1], [0, 0, 1, 1], [], []>} : vector<256x4xbf16>, vector<4x128xbf16>, vector<256x128xf32> -> vector<256x128xf32>
    %c0_49 = arith.constant 0 : index
    %c0_50 = arith.constant 0 : index
    %78 = vector.load %arg12[%c0_49, %c0_50] : memref<256x128xf32, #tpu.memory_space<vmem>>, vector<256x128xf32>
    %79 = arith.addf %78, %77 : vector<256x128xf32>
    %c0_51 = arith.constant 0 : index
    %c0_52 = arith.constant 0 : index
    %80 = vector.load %arg12[%c0_51, %c0_52] : memref<256x128xf32, #tpu.memory_space<vmem>>, vector<256x128xf32>
    tpu.vector_store %arg12[%c0_51, %c0_52], %79 {strides = array<i32>} : memref<256x128xf32, #tpu.memory_space<vmem>>, vector<256x128xf32>,
    %c0_i32_53 = arith.constant 0 : i32
    %81 = arith.addi %2, %c0_i32_53 : i32
    %c-6_i32_54 = arith.constant -6 : i32
    %82 = arith.addi %81, %c-6_i32_54 : i32
    %c0_55 = arith.constant 0 : index
    %83 = arith.index_cast %82 : i32 to index
    %c0_56 = arith.constant 0 : index
    %84 = vector.load %arg2[%c0_55, %83, %c0_56] : memref<1x880x4xf32, #tpu.memory_space<vmem>>, vector<1x256x4xf32>
    %85 = vector.shape_cast %84 : vector<1x256x4xf32> to vector<256x4xf32>
    %c-6_i32_57 = arith.constant -6 : i32
    %86 = vector.broadcast %c-6_i32_57 : i32 to vector<256x4xi32>
    %87 = arith.addi %6, %86 : vector<256x4xi32>
    %c0_i32_58 = arith.constant 0 : i32
    %88 = vector.broadcast %c0_i32_58 : i32 to vector<256x4xi32>
    %89 = arith.cmpi sge, %87, %88 : vector<256x4xi32>
    %c-6_i32_59 = arith.constant -6 : i32
    %90 = vector.broadcast %c-6_i32_59 : i32 to vector<256x4xi32>
    %91 = arith.addi %6, %90 : vector<256x4xi32>
    %c16_i32_60 = arith.constant 16 : i32
    %92 = vector.broadcast %c16_i32_60 : i32 to vector<256x4xi32>
    %93 = arith.cmpi slt, %91, %92 : vector<256x4xi32>
    %94 = arith.andi %89, %93 : vector<256x4xi1>
    %cst_61 = arith.constant 0.000000e+00 : f32
    %95 = vector.broadcast %cst_61 : f32 to vector<256x4xf32>
    %96 = arith.select %94, %85, %95 : vector<256x4xi1>, vector<256x4xf32>
    %97 = arith.truncf %96 : vector<256x4xf32> to vector<256x4xbf16>
    %c3 = arith.constant 3 : index
    %c0_62 = arith.constant 0 : index
    %c0_63 = arith.constant 0 : index
    %98 = vector.load %arg5[%c3, %c0_62, %c0_63] : memref<9x4x128xbf16, #tpu.memory_space<vmem>>, vector<1x4x128xbf16>
    %99 = vector.shape_cast %98 : vector<1x4x128xbf16> to vector<4x128xbf16>
    %cst_64 = arith.constant dense<0.000000e+00> : vector<256x128xf32>
    %100 = tpu.matmul %97, %99, %cst_64 {dimension_numbers = #tpu.dot_dimension_numbers<[1], [0], [0], [1], [0, 0, 1, 1], [], []>} : vector<256x4xbf16>, vector<4x128xbf16>, vector<256x128xf32> -> vector<256x128xf32>
    %c0_65 = arith.constant 0 : index
    %c0_66 = arith.constant 0 : index
    %101 = vector.load %arg12[%c0_65, %c0_66] : memref<256x128xf32, #tpu.memory_space<vmem>>, vector<256x128xf32>
    %102 = arith.addf %101, %100 : vector<256x128xf32>
    %c0_67 = arith.constant 0 : index
    %c0_68 = arith.constant 0 : index
    %103 = vector.load %arg12[%c0_67, %c0_68] : memref<256x128xf32, #tpu.memory_space<vmem>>, vector<256x128xf32>
    tpu.vector_store %arg12[%c0_67, %c0_68], %102 {strides = array<i32>} : memref<256x128xf32, #tpu.memory_space<vmem>>, vector<256x128xf32>,
    %c4 = arith.constant 4 : index
    %c0_69 = arith.constant 0 : index
    %c0_70 = arith.constant 0 : index
    %104 = vector.load %arg5[%c4, %c0_69, %c0_70] : memref<9x4x128xbf16, #tpu.memory_space<vmem>>, vector<1x4x128xbf16>
    %105 = vector.shape_cast %104 : vector<1x4x128xbf16> to vector<4x128xbf16>
    %cst_71 = arith.constant dense<0.000000e+00> : vector<256x128xf32>
    %106 = tpu.matmul %12, %105, %cst_71 {dimension_numbers = #tpu.dot_dimension_numbers<[1], [0], [0], [1], [0, 0, 1, 1], [], []>} : vector<256x4xbf16>, vector<4x128xbf16>, vector<256x128xf32> -> vector<256x128xf32>
    %c0_72 = arith.constant 0 : index
    %c0_73 = arith.constant 0 : index
    %107 = vector.load %arg12[%c0_72, %c0_73] : memref<256x128xf32, #tpu.memory_space<vmem>>, vector<256x128xf32>
    %108 = arith.addf %107, %106 : vector<256x128xf32>
    %c0_74 = arith.constant 0 : index
    %c0_75 = arith.constant 0 : index
    %109 = vector.load %arg12[%c0_74, %c0_75] : memref<256x128xf32, #tpu.memory_space<vmem>>, vector<256x128xf32>
    tpu.vector_store %arg12[%c0_74, %c0_75], %108 {strides = array<i32>} : memref<256x128xf32, #tpu.memory_space<vmem>>, vector<256x128xf32>,
    %c0_i32_76 = arith.constant 0 : i32
    %110 = arith.addi %2, %c0_i32_76 : i32
    %c6_i32_77 = arith.constant 6 : i32
    %111 = arith.addi %110, %c6_i32_77 : i32
    %c0_78 = arith.constant 0 : index
    %112 = arith.index_cast %111 : i32 to index
    %c0_79 = arith.constant 0 : index
    %113 = vector.load %arg2[%c0_78, %112, %c0_79] : memref<1x880x4xf32, #tpu.memory_space<vmem>>, vector<1x256x4xf32>
    %114 = vector.shape_cast %113 : vector<1x256x4xf32> to vector<256x4xf32>
    %c6_i32_80 = arith.constant 6 : i32
    %115 = vector.broadcast %c6_i32_80 : i32 to vector<256x4xi32>
    %116 = arith.addi %6, %115 : vector<256x4xi32>
    %c0_i32_81 = arith.constant 0 : i32
    %117 = vector.broadcast %c0_i32_81 : i32 to vector<256x4xi32>
    %118 = arith.cmpi sge, %116, %117 : vector<256x4xi32>
    %c6_i32_82 = arith.constant 6 : i32
    %119 = vector.broadcast %c6_i32_82 : i32 to vector<256x4xi32>
    %120 = arith.addi %6, %119 : vector<256x4xi32>
    %c16_i32_83 = arith.constant 16 : i32
    %121 = vector.broadcast %c16_i32_83 : i32 to vector<256x4xi32>
    %122 = arith.cmpi slt, %120, %121 : vector<256x4xi32>
    %123 = arith.andi %118, %122 : vector<256x4xi1>
    %cst_84 = arith.constant 0.000000e+00 : f32
    %124 = vector.broadcast %cst_84 : f32 to vector<256x4xf32>
    %125 = arith.select %123, %114, %124 : vector<256x4xi1>, vector<256x4xf32>
    %126 = arith.truncf %125 : vector<256x4xf32> to vector<256x4xbf16>
    %c5 = arith.constant 5 : index
    %c0_85 = arith.constant 0 : index
    %c0_86 = arith.constant 0 : index
    %127 = vector.load %arg5[%c5, %c0_85, %c0_86] : memref<9x4x128xbf16, #tpu.memory_space<vmem>>, vector<1x4x128xbf16>
    %128 = vector.shape_cast %127 : vector<1x4x128xbf16> to vector<4x128xbf16>
    %cst_87 = arith.constant dense<0.000000e+00> : vector<256x128xf32>
    %129 = tpu.matmul %126, %128, %cst_87 {dimension_numbers = #tpu.dot_dimension_numbers<[1], [0], [0], [1], [0, 0, 1, 1], [], []>} : vector<256x4xbf16>, vector<4x128xbf16>, vector<256x128xf32> -> vector<256x128xf32>
    %c0_88 = arith.constant 0 : index
    %c0_89 = arith.constant 0 : index
    %130 = vector.load %arg12[%c0_88, %c0_89] : memref<256x128xf32, #tpu.memory_space<vmem>>, vector<256x128xf32>
    %131 = arith.addf %130, %129 : vector<256x128xf32>
    %c0_90 = arith.constant 0 : index
    %c0_91 = arith.constant 0 : index
    %132 = vector.load %arg12[%c0_90, %c0_91] : memref<256x128xf32, #tpu.memory_space<vmem>>, vector<256x128xf32>
    tpu.vector_store %arg12[%c0_90, %c0_91], %131 {strides = array<i32>} : memref<256x128xf32, #tpu.memory_space<vmem>>, vector<256x128xf32>,
    %c96_i32 = arith.constant 96 : i32
    %133 = arith.addi %2, %c96_i32 : i32
    %c-6_i32_92 = arith.constant -6 : i32
    %134 = arith.addi %133, %c-6_i32_92 : i32
    %c0_93 = arith.constant 0 : index
    %135 = arith.index_cast %134 : i32 to index
    %c0_94 = arith.constant 0 : index
    %136 = vector.load %arg2[%c0_93, %135, %c0_94] : memref<1x880x4xf32, #tpu.memory_space<vmem>>, vector<1x256x4xf32>
    %137 = vector.shape_cast %136 : vector<1x256x4xf32> to vector<256x4xf32>
    %c-6_i32_95 = arith.constant -6 : i32
    %138 = vector.broadcast %c-6_i32_95 : i32 to vector<256x4xi32>
    %139 = arith.addi %6, %138 : vector<256x4xi32>
    %c0_i32_96 = arith.constant 0 : i32
    %140 = vector.broadcast %c0_i32_96 : i32 to vector<256x4xi32>
    %141 = arith.cmpi sge, %139, %140 : vector<256x4xi32>
    %c-6_i32_97 = arith.constant -6 : i32
    %142 = vector.broadcast %c-6_i32_97 : i32 to vector<256x4xi32>
    %143 = arith.addi %6, %142 : vector<256x4xi32>
    %c16_i32_98 = arith.constant 16 : i32
    %144 = vector.broadcast %c16_i32_98 : i32 to vector<256x4xi32>
    %145 = arith.cmpi slt, %143, %144 : vector<256x4xi32>
    %146 = arith.andi %141, %145 : vector<256x4xi1>
    %cst_99 = arith.constant 0.000000e+00 : f32
    %147 = vector.broadcast %cst_99 : f32 to vector<256x4xf32>
    %148 = arith.select %146, %137, %147 : vector<256x4xi1>, vector<256x4xf32>
    %149 = arith.truncf %148 : vector<256x4xf32> to vector<256x4xbf16>
    %c6 = arith.constant 6 : index
    %c0_100 = arith.constant 0 : index
    %c0_101 = arith.constant 0 : index
    %150 = vector.load %arg5[%c6, %c0_100, %c0_101] : memref<9x4x128xbf16, #tpu.memory_space<vmem>>, vector<1x4x128xbf16>
    %151 = vector.shape_cast %150 : vector<1x4x128xbf16> to vector<4x128xbf16>
    %cst_102 = arith.constant dense<0.000000e+00> : vector<256x128xf32>
    %152 = tpu.matmul %149, %151, %cst_102 {dimension_numbers = #tpu.dot_dimension_numbers<[1], [0], [0], [1], [0, 0, 1, 1], [], []>} : vector<256x4xbf16>, vector<4x128xbf16>, vector<256x128xf32> -> vector<256x128xf32>
    %c0_103 = arith.constant 0 : index
    %c0_104 = arith.constant 0 : index
    %153 = vector.load %arg12[%c0_103, %c0_104] : memref<256x128xf32, #tpu.memory_space<vmem>>, vector<256x128xf32>
    %154 = arith.addf %153, %152 : vector<256x128xf32>
    %c0_105 = arith.constant 0 : index
    %c0_106 = arith.constant 0 : index
    %155 = vector.load %arg12[%c0_105, %c0_106] : memref<256x128xf32, #tpu.memory_space<vmem>>, vector<256x128xf32>
    tpu.vector_store %arg12[%c0_105, %c0_106], %154 {strides = array<i32>} : memref<256x128xf32, #tpu.memory_space<vmem>>, vector<256x128xf32>,
    %c96_i32_107 = arith.constant 96 : i32
    %156 = arith.addi %2, %c96_i32_107 : i32
    %c0_i32_108 = arith.constant 0 : i32
    %157 = arith.addi %156, %c0_i32_108 : i32
    %c0_109 = arith.constant 0 : index
    %158 = arith.index_cast %157 : i32 to index
    %c0_110 = arith.constant 0 : index
    %159 = vector.load %arg2[%c0_109, %158, %c0_110] : memref<1x880x4xf32, #tpu.memory_space<vmem>>, vector<1x256x4xf32>
    %160 = vector.shape_cast %159 : vector<1x256x4xf32> to vector<256x4xf32>
    %161 = arith.truncf %160 : vector<256x4xf32> to vector<256x4xbf16>
    %c7 = arith.constant 7 : index
    %c0_111 = arith.constant 0 : index
    %c0_112 = arith.constant 0 : index
    %162 = vector.load %arg5[%c7, %c0_111, %c0_112] : memref<9x4x128xbf16, #tpu.memory_space<vmem>>, vector<1x4x128xbf16>
    %163 = vector.shape_cast %162 : vector<1x4x128xbf16> to vector<4x128xbf16>
    %cst_113 = arith.constant dense<0.000000e+00> : vector<256x128xf32>
    %164 = tpu.matmul %161, %163, %cst_113 {dimension_numbers = #tpu.dot_dimension_numbers<[1], [0], [0], [1], [0, 0, 1, 1], [], []>} : vector<256x4xbf16>, vector<4x128xbf16>, vector<256x128xf32> -> vector<256x128xf32>
    %c0_114 = arith.constant 0 : index
    %c0_115 = arith.constant 0 : index
    %165 = vector.load %arg12[%c0_114, %c0_115] : memref<256x128xf32, #tpu.memory_space<vmem>>, vector<256x128xf32>
    %166 = arith.addf %165, %164 : vector<256x128xf32>
    %c0_116 = arith.constant 0 : index
    %c0_117 = arith.constant 0 : index
    %167 = vector.load %arg12[%c0_116, %c0_117] : memref<256x128xf32, #tpu.memory_space<vmem>>, vector<256x128xf32>
    tpu.vector_store %arg12[%c0_116, %c0_117], %166 {strides = array<i32>} : memref<256x128xf32, #tpu.memory_space<vmem>>, vector<256x128xf32>,
    %c96_i32_118 = arith.constant 96 : i32
    %168 = arith.addi %2, %c96_i32_118 : i32
    %c6_i32_119 = arith.constant 6 : i32
    %169 = arith.addi %168, %c6_i32_119 : i32
    %c0_120 = arith.constant 0 : index
    %170 = arith.index_cast %169 : i32 to index
    %c0_121 = arith.constant 0 : index
    %171 = vector.load %arg2[%c0_120, %170, %c0_121] : memref<1x880x4xf32, #tpu.memory_space<vmem>>, vector<1x256x4xf32>
    %172 = vector.shape_cast %171 : vector<1x256x4xf32> to vector<256x4xf32>
    %c6_i32_122 = arith.constant 6 : i32
    %173 = vector.broadcast %c6_i32_122 : i32 to vector<256x4xi32>
    %174 = arith.addi %6, %173 : vector<256x4xi32>
    %c0_i32_123 = arith.constant 0 : i32
    %175 = vector.broadcast %c0_i32_123 : i32 to vector<256x4xi32>
    %176 = arith.cmpi sge, %174, %175 : vector<256x4xi32>
    %c6_i32_124 = arith.constant 6 : i32
    %177 = vector.broadcast %c6_i32_124 : i32 to vector<256x4xi32>
    %178 = arith.addi %6, %177 : vector<256x4xi32>
    %c16_i32_125 = arith.constant 16 : i32
    %179 = vector.broadcast %c16_i32_125 : i32 to vector<256x4xi32>
    %180 = arith.cmpi slt, %178, %179 : vector<256x4xi32>
    %181 = arith.andi %176, %180 : vector<256x4xi1>
    %cst_126 = arith.constant 0.000000e+00 : f32
    %182 = vector.broadcast %cst_126 : f32 to vector<256x4xf32>
    %183 = arith.select %181, %172, %182 : vector<256x4xi1>, vector<256x4xf32>
    %184 = arith.truncf %183 : vector<256x4xf32> to vector<256x4xbf16>
    %c8 = arith.constant 8 : index
    %c0_127 = arith.constant 0 : index
    %c0_128 = arith.constant 0 : index
    %185 = vector.load %arg5[%c8, %c0_127, %c0_128] : memref<9x4x128xbf16, #tpu.memory_space<vmem>>, vector<1x4x128xbf16>
    %186 = vector.shape_cast %185 : vector<1x4x128xbf16> to vector<4x128xbf16>
    %cst_129 = arith.constant dense<0.000000e+00> : vector<256x128xf32>
    %187 = tpu.matmul %184, %186, %cst_129 {dimension_numbers = #tpu.dot_dimension_numbers<[1], [0], [0], [1], [0, 0, 1, 1], [], []>} : vector<256x4xbf16>, vector<4x128xbf16>, vector<256x128xf32> -> vector<256x128xf32>
    %c0_130 = arith.constant 0 : index
    %c0_131 = arith.constant 0 : index
    %188 = vector.load %arg12[%c0_130, %c0_131] : memref<256x128xf32, #tpu.memory_space<vmem>>, vector<256x128xf32>
    %189 = arith.addf %188, %187 : vector<256x128xf32>
    %c0_132 = arith.constant 0 : index
    %c0_133 = arith.constant 0 : index
    %190 = vector.load %arg12[%c0_132, %c0_133] : memref<256x128xf32, #tpu.memory_space<vmem>>, vector<256x128xf32>
    tpu.vector_store %arg12[%c0_132, %c0_133], %189 {strides = array<i32>} : memref<256x128xf32, #tpu.memory_space<vmem>>, vector<256x128xf32>,
    %c0_134 = arith.constant 0 : index
    %c0_135 = arith.constant 0 : index
    %191 = vector.load %arg12[%c0_134, %c0_135] : memref<256x128xf32, #tpu.memory_space<vmem>>, vector<256x128xf32>
    %192 = vector.extract_strided_slice %3 {offsets = [1, 0], sizes = [1, 128], strides = [1, 1]} : vector<4x128xf32> to vector<1x128xf32>
    %193 = vector.broadcast %192 : vector<1x128xf32> to vector<256x128xf32>
    %194 = arith.addf %191, %193 : vector<256x128xf32>
    %cst_136 = arith.constant 0.000000e+00 : f32
    %195 = vector.broadcast %cst_136 : f32 to vector<256x128xf32>
    %196 = arith.maximumf %194, %195 : vector<256x128xf32>
    %c0_137 = arith.constant 0 : index
    %c0_138 = arith.constant 0 : index
    %197 = vector.load %arg13[%c0_137, %c0_138] : memref<256x256xf32, #tpu.memory_space<vmem>>, vector<256x256xf32>
    %198 = arith.truncf %196 : vector<256x128xf32> to vector<256x128xbf16>
    %c1_139 = arith.constant 1 : index
    %c0_140 = arith.constant 0 : index
    %c0_141 = arith.constant 0 : index
    %199 = vector.load %arg9[%c1_139, %c0_140, %c0_141] : memref<4x128x256xbf16, #tpu.memory_space<vmem>>, vector<1x128x256xbf16>
    %200 = vector.shape_cast %199 : vector<1x128x256xbf16> to vector<128x256xbf16>
    %cst_142 = arith.constant dense<0.000000e+00> : vector<256x256xf32>
    %201 = tpu.matmul %198, %200, %cst_142 {dimension_numbers = #tpu.dot_dimension_numbers<[1], [0], [0], [1], [0, 0, 1, 1], [], []>} : vector<256x128xbf16>, vector<128x256xbf16>, vector<256x256xf32> -> vector<256x256xf32>
    %202 = arith.addf %197, %201 : vector<256x256xf32>
    %c0_143 = arith.constant 0 : index
    %c0_144 = arith.constant 0 : index
    %203 = vector.load %arg13[%c0_143, %c0_144] : memref<256x256xf32, #tpu.memory_space<vmem>>, vector<256x256xf32>
    tpu.vector_store %arg13[%c0_143, %c0_144], %202 {strides = array<i32>} : memref<256x256xf32, #tpu.memory_space<vmem>>, vector<256x256xf32>,
    %c-192_i32 = arith.constant -192 : i32
    %204 = arith.addi %2, %c-192_i32 : i32
    %c-12_i32 = arith.constant -12 : i32
    %205 = arith.addi %204, %c-12_i32 : i32
    %c0_145 = arith.constant 0 : index
    %206 = arith.index_cast %205 : i32 to index
    %c0_146 = arith.constant 0 : index
    %207 = vector.load %arg2[%c0_145, %206, %c0_146] : memref<1x880x4xf32, #tpu.memory_space<vmem>>, vector<1x256x4xf32>
    %208 = vector.shape_cast %207 : vector<1x256x4xf32> to vector<256x4xf32>
    %c-12_i32_147 = arith.constant -12 : i32
    %209 = vector.broadcast %c-12_i32_147 : i32 to vector<256x4xi32>
    %210 = arith.addi %6, %209 : vector<256x4xi32>
    %c0_i32_148 = arith.constant 0 : i32
    %211 = vector.broadcast %c0_i32_148 : i32 to vector<256x4xi32>
    %212 = arith.cmpi sge, %210, %211 : vector<256x4xi32>
    %c-12_i32_149 = arith.constant -12 : i32
    %213 = vector.broadcast %c-12_i32_149 : i32 to vector<256x4xi32>
    %214 = arith.addi %6, %213 : vector<256x4xi32>
    %c16_i32_150 = arith.constant 16 : i32
    %215 = vector.broadcast %c16_i32_150 : i32 to vector<256x4xi32>
    %216 = arith.cmpi slt, %214, %215 : vector<256x4xi32>
    %217 = arith.andi %212, %216 : vector<256x4xi1>
    %cst_151 = arith.constant 0.000000e+00 : f32
    %218 = vector.broadcast %cst_151 : f32 to vector<256x4xf32>
    %219 = arith.select %217, %208, %218 : vector<256x4xi1>, vector<256x4xf32>
    %220 = arith.truncf %219 : vector<256x4xf32> to vector<256x4xbf16>
    %c0_152 = arith.constant 0 : index
    %c0_153 = arith.constant 0 : index
    %c0_154 = arith.constant 0 : index
    %221 = vector.load %arg6[%c0_152, %c0_153, %c0_154] : memref<9x4x128xbf16, #tpu.memory_space<vmem>>, vector<1x4x128xbf16>
    %222 = vector.shape_cast %221 : vector<1x4x128xbf16> to vector<4x128xbf16>
    %cst_155 = arith.constant dense<0.000000e+00> : vector<256x128xf32>
    %223 = tpu.matmul %220, %222, %cst_155 {dimension_numbers = #tpu.dot_dimension_numbers<[1], [0], [0], [1], [0, 0, 1, 1], [], []>} : vector<256x4xbf16>, vector<4x128xbf16>, vector<256x128xf32> -> vector<256x128xf32>
    %c0_156 = arith.constant 0 : index
    %c0_157 = arith.constant 0 : index
    %224 = vector.load %arg12[%c0_156, %c0_157] : memref<256x128xf32, #tpu.memory_space<vmem>>, vector<256x128xf32>
    tpu.vector_store %arg12[%c0_156, %c0_157], %223 {strides = array<i32>} : memref<256x128xf32, #tpu.memory_space<vmem>>, vector<256x128xf32>,
    %c-192_i32_158 = arith.constant -192 : i32
    %225 = arith.addi %2, %c-192_i32_158 : i32
    %c0_i32_159 = arith.constant 0 : i32
    %226 = arith.addi %225, %c0_i32_159 : i32
    %c0_160 = arith.constant 0 : index
    %227 = arith.index_cast %226 : i32 to index
    %c0_161 = arith.constant 0 : index
    %228 = vector.load %arg2[%c0_160, %227, %c0_161] : memref<1x880x4xf32, #tpu.memory_space<vmem>>, vector<1x256x4xf32>
    %229 = vector.shape_cast %228 : vector<1x256x4xf32> to vector<256x4xf32>
    %230 = arith.truncf %229 : vector<256x4xf32> to vector<256x4xbf16>
    %c1_162 = arith.constant 1 : index
    %c0_163 = arith.constant 0 : index
    %c0_164 = arith.constant 0 : index
    %231 = vector.load %arg6[%c1_162, %c0_163, %c0_164] : memref<9x4x128xbf16, #tpu.memory_space<vmem>>, vector<1x4x128xbf16>
    %232 = vector.shape_cast %231 : vector<1x4x128xbf16> to vector<4x128xbf16>
    %cst_165 = arith.constant dense<0.000000e+00> : vector<256x128xf32>
    %233 = tpu.matmul %230, %232, %cst_165 {dimension_numbers = #tpu.dot_dimension_numbers<[1], [0], [0], [1], [0, 0, 1, 1], [], []>} : vector<256x4xbf16>, vector<4x128xbf16>, vector<256x128xf32> -> vector<256x128xf32>
    %c0_166 = arith.constant 0 : index
    %c0_167 = arith.constant 0 : index
    %234 = vector.load %arg12[%c0_166, %c0_167] : memref<256x128xf32, #tpu.memory_space<vmem>>, vector<256x128xf32>
    %235 = arith.addf %234, %233 : vector<256x128xf32>
    %c0_168 = arith.constant 0 : index
    %c0_169 = arith.constant 0 : index
    %236 = vector.load %arg12[%c0_168, %c0_169] : memref<256x128xf32, #tpu.memory_space<vmem>>, vector<256x128xf32>
    tpu.vector_store %arg12[%c0_168, %c0_169], %235 {strides = array<i32>} : memref<256x128xf32, #tpu.memory_space<vmem>>, vector<256x128xf32>,
    %c-192_i32_170 = arith.constant -192 : i32
    %237 = arith.addi %2, %c-192_i32_170 : i32
    %c12_i32 = arith.constant 12 : i32
    %238 = arith.addi %237, %c12_i32 : i32
    %c0_171 = arith.constant 0 : index
    %239 = arith.index_cast %238 : i32 to index
    %c0_172 = arith.constant 0 : index
    %240 = vector.load %arg2[%c0_171, %239, %c0_172] : memref<1x880x4xf32, #tpu.memory_space<vmem>>, vector<1x256x4xf32>
    %241 = vector.shape_cast %240 : vector<1x256x4xf32> to vector<256x4xf32>
    %c12_i32_173 = arith.constant 12 : i32
    %242 = vector.broadcast %c12_i32_173 : i32 to vector<256x4xi32>
    %243 = arith.addi %6, %242 : vector<256x4xi32>
    %c0_i32_174 = arith.constant 0 : i32
    %244 = vector.broadcast %c0_i32_174 : i32 to vector<256x4xi32>
    %245 = arith.cmpi sge, %243, %244 : vector<256x4xi32>
    %c12_i32_175 = arith.constant 12 : i32
    %246 = vector.broadcast %c12_i32_175 : i32 to vector<256x4xi32>
    %247 = arith.addi %6, %246 : vector<256x4xi32>
    %c16_i32_176 = arith.constant 16 : i32
    %248 = vector.broadcast %c16_i32_176 : i32 to vector<256x4xi32>
    %249 = arith.cmpi slt, %247, %248 : vector<256x4xi32>
    %250 = arith.andi %245, %249 : vector<256x4xi1>
    %cst_177 = arith.constant 0.000000e+00 : f32
    %251 = vector.broadcast %cst_177 : f32 to vector<256x4xf32>
    %252 = arith.select %250, %241, %251 : vector<256x4xi1>, vector<256x4xf32>
    %253 = arith.truncf %252 : vector<256x4xf32> to vector<256x4xbf16>
    %c2_178 = arith.constant 2 : index
    %c0_179 = arith.constant 0 : index
    %c0_180 = arith.constant 0 : index
    %254 = vector.load %arg6[%c2_178, %c0_179, %c0_180] : memref<9x4x128xbf16, #tpu.memory_space<vmem>>, vector<1x4x128xbf16>
    %255 = vector.shape_cast %254 : vector<1x4x128xbf16> to vector<4x128xbf16>
    %cst_181 = arith.constant dense<0.000000e+00> : vector<256x128xf32>
    %256 = tpu.matmul %253, %255, %cst_181 {dimension_numbers = #tpu.dot_dimension_numbers<[1], [0], [0], [1], [0, 0, 1, 1], [], []>} : vector<256x4xbf16>, vector<4x128xbf16>, vector<256x128xf32> -> vector<256x128xf32>
    %c0_182 = arith.constant 0 : index
    %c0_183 = arith.constant 0 : index
    %257 = vector.load %arg12[%c0_182, %c0_183] : memref<256x128xf32, #tpu.memory_space<vmem>>, vector<256x128xf32>
    %258 = arith.addf %257, %256 : vector<256x128xf32>
    %c0_184 = arith.constant 0 : index
    %c0_185 = arith.constant 0 : index
    %259 = vector.load %arg12[%c0_184, %c0_185] : memref<256x128xf32, #tpu.memory_space<vmem>>, vector<256x128xf32>
    tpu.vector_store %arg12[%c0_184, %c0_185], %258 {strides = array<i32>} : memref<256x128xf32, #tpu.memory_space<vmem>>, vector<256x128xf32>,
    %c0_i32_186 = arith.constant 0 : i32
    %260 = arith.addi %2, %c0_i32_186 : i32
    %c-12_i32_187 = arith.constant -12 : i32
    %261 = arith.addi %260, %c-12_i32_187 : i32
    %c0_188 = arith.constant 0 : index
    %262 = arith.index_cast %261 : i32 to index
    %c0_189 = arith.constant 0 : index
    %263 = vector.load %arg2[%c0_188, %262, %c0_189] : memref<1x880x4xf32, #tpu.memory_space<vmem>>, vector<1x256x4xf32>
    %264 = vector.shape_cast %263 : vector<1x256x4xf32> to vector<256x4xf32>
    %c-12_i32_190 = arith.constant -12 : i32
    %265 = vector.broadcast %c-12_i32_190 : i32 to vector<256x4xi32>
    %266 = arith.addi %6, %265 : vector<256x4xi32>
    %c0_i32_191 = arith.constant 0 : i32
    %267 = vector.broadcast %c0_i32_191 : i32 to vector<256x4xi32>
    %268 = arith.cmpi sge, %266, %267 : vector<256x4xi32>
    %c-12_i32_192 = arith.constant -12 : i32
    %269 = vector.broadcast %c-12_i32_192 : i32 to vector<256x4xi32>
    %270 = arith.addi %6, %269 : vector<256x4xi32>
    %c16_i32_193 = arith.constant 16 : i32
    %271 = vector.broadcast %c16_i32_193 : i32 to vector<256x4xi32>
    %272 = arith.cmpi slt, %270, %271 : vector<256x4xi32>
    %273 = arith.andi %268, %272 : vector<256x4xi1>
    %cst_194 = arith.constant 0.000000e+00 : f32
    %274 = vector.broadcast %cst_194 : f32 to vector<256x4xf32>
    %275 = arith.select %273, %264, %274 : vector<256x4xi1>, vector<256x4xf32>
    %276 = arith.truncf %275 : vector<256x4xf32> to vector<256x4xbf16>
    %c3_195 = arith.constant 3 : index
    %c0_196 = arith.constant 0 : index
    %c0_197 = arith.constant 0 : index
    %277 = vector.load %arg6[%c3_195, %c0_196, %c0_197] : memref<9x4x128xbf16, #tpu.memory_space<vmem>>, vector<1x4x128xbf16>
    %278 = vector.shape_cast %277 : vector<1x4x128xbf16> to vector<4x128xbf16>
    %cst_198 = arith.constant dense<0.000000e+00> : vector<256x128xf32>
    %279 = tpu.matmul %276, %278, %cst_198 {dimension_numbers = #tpu.dot_dimension_numbers<[1], [0], [0], [1], [0, 0, 1, 1], [], []>} : vector<256x4xbf16>, vector<4x128xbf16>, vector<256x128xf32> -> vector<256x128xf32>
    %c0_199 = arith.constant 0 : index
    %c0_200 = arith.constant 0 : index
    %280 = vector.load %arg12[%c0_199, %c0_200] : memref<256x128xf32, #tpu.memory_space<vmem>>, vector<256x128xf32>
    %281 = arith.addf %280, %279 : vector<256x128xf32>
    %c0_201 = arith.constant 0 : index
    %c0_202 = arith.constant 0 : index
    %282 = vector.load %arg12[%c0_201, %c0_202] : memref<256x128xf32, #tpu.memory_space<vmem>>, vector<256x128xf32>
    tpu.vector_store %arg12[%c0_201, %c0_202], %281 {strides = array<i32>} : memref<256x128xf32, #tpu.memory_space<vmem>>, vector<256x128xf32>,
    %c4_203 = arith.constant 4 : index
    %c0_204 = arith.constant 0 : index
    %c0_205 = arith.constant 0 : index
    %283 = vector.load %arg6[%c4_203, %c0_204, %c0_205] : memref<9x4x128xbf16, #tpu.memory_space<vmem>>, vector<1x4x128xbf16>
    %284 = vector.shape_cast %283 : vector<1x4x128xbf16> to vector<4x128xbf16>
    %cst_206 = arith.constant dense<0.000000e+00> : vector<256x128xf32>
    %285 = tpu.matmul %12, %284, %cst_206 {dimension_numbers = #tpu.dot_dimension_numbers<[1], [0], [0], [1], [0, 0, 1, 1], [], []>} : vector<256x4xbf16>, vector<4x128xbf16>, vector<256x128xf32> -> vector<256x128xf32>
    %c0_207 = arith.constant 0 : index
    %c0_208 = arith.constant 0 : index
    %286 = vector.load %arg12[%c0_207, %c0_208] : memref<256x128xf32, #tpu.memory_space<vmem>>, vector<256x128xf32>
    %287 = arith.addf %286, %285 : vector<256x128xf32>
    %c0_209 = arith.constant 0 : index
    %c0_210 = arith.constant 0 : index
    %288 = vector.load %arg12[%c0_209, %c0_210] : memref<256x128xf32, #tpu.memory_space<vmem>>, vector<256x128xf32>
    tpu.vector_store %arg12[%c0_209, %c0_210], %287 {strides = array<i32>} : memref<256x128xf32, #tpu.memory_space<vmem>>, vector<256x128xf32>,
    %c0_i32_211 = arith.constant 0 : i32
    %289 = arith.addi %2, %c0_i32_211 : i32
    %c12_i32_212 = arith.constant 12 : i32
    %290 = arith.addi %289, %c12_i32_212 : i32
    %c0_213 = arith.constant 0 : index
    %291 = arith.index_cast %290 : i32 to index
    %c0_214 = arith.constant 0 : index
    %292 = vector.load %arg2[%c0_213, %291, %c0_214] : memref<1x880x4xf32, #tpu.memory_space<vmem>>, vector<1x256x4xf32>
    %293 = vector.shape_cast %292 : vector<1x256x4xf32> to vector<256x4xf32>
    %c12_i32_215 = arith.constant 12 : i32
    %294 = vector.broadcast %c12_i32_215 : i32 to vector<256x4xi32>
    %295 = arith.addi %6, %294 : vector<256x4xi32>
    %c0_i32_216 = arith.constant 0 : i32
    %296 = vector.broadcast %c0_i32_216 : i32 to vector<256x4xi32>
    %297 = arith.cmpi sge, %295, %296 : vector<256x4xi32>
    %c12_i32_217 = arith.constant 12 : i32
    %298 = vector.broadcast %c12_i32_217 : i32 to vector<256x4xi32>
    %299 = arith.addi %6, %298 : vector<256x4xi32>
    %c16_i32_218 = arith.constant 16 : i32
    %300 = vector.broadcast %c16_i32_218 : i32 to vector<256x4xi32>
    %301 = arith.cmpi slt, %299, %300 : vector<256x4xi32>
    %302 = arith.andi %297, %301 : vector<256x4xi1>
    %cst_219 = arith.constant 0.000000e+00 : f32
    %303 = vector.broadcast %cst_219 : f32 to vector<256x4xf32>
    %304 = arith.select %302, %293, %303 : vector<256x4xi1>, vector<256x4xf32>
    %305 = arith.truncf %304 : vector<256x4xf32> to vector<256x4xbf16>
    %c5_220 = arith.constant 5 : index
    %c0_221 = arith.constant 0 : index
    %c0_222 = arith.constant 0 : index
    %306 = vector.load %arg6[%c5_220, %c0_221, %c0_222] : memref<9x4x128xbf16, #tpu.memory_space<vmem>>, vector<1x4x128xbf16>
    %307 = vector.shape_cast %306 : vector<1x4x128xbf16> to vector<4x128xbf16>
    %cst_223 = arith.constant dense<0.000000e+00> : vector<256x128xf32>
    %308 = tpu.matmul %305, %307, %cst_223 {dimension_numbers = #tpu.dot_dimension_numbers<[1], [0], [0], [1], [0, 0, 1, 1], [], []>} : vector<256x4xbf16>, vector<4x128xbf16>, vector<256x128xf32> -> vector<256x128xf32>
    %c0_224 = arith.constant 0 : index
    %c0_225 = arith.constant 0 : index
    %309 = vector.load %arg12[%c0_224, %c0_225] : memref<256x128xf32, #tpu.memory_space<vmem>>, vector<256x128xf32>
    %310 = arith.addf %309, %308 : vector<256x128xf32>
    %c0_226 = arith.constant 0 : index
    %c0_227 = arith.constant 0 : index
    %311 = vector.load %arg12[%c0_226, %c0_227] : memref<256x128xf32, #tpu.memory_space<vmem>>, vector<256x128xf32>
    tpu.vector_store %arg12[%c0_226, %c0_227], %310 {strides = array<i32>} : memref<256x128xf32, #tpu.memory_space<vmem>>, vector<256x128xf32>,
    %c192_i32 = arith.constant 192 : i32
    %312 = arith.addi %2, %c192_i32 : i32
    %c-12_i32_228 = arith.constant -12 : i32
    %313 = arith.addi %312, %c-12_i32_228 : i32
    %c0_229 = arith.constant 0 : index
    %314 = arith.index_cast %313 : i32 to index
    %c0_230 = arith.constant 0 : index
    %315 = vector.load %arg2[%c0_229, %314, %c0_230] : memref<1x880x4xf32, #tpu.memory_space<vmem>>, vector<1x256x4xf32>
    %316 = vector.shape_cast %315 : vector<1x256x4xf32> to vector<256x4xf32>
    %c-12_i32_231 = arith.constant -12 : i32
    %317 = vector.broadcast %c-12_i32_231 : i32 to vector<256x4xi32>
    %318 = arith.addi %6, %317 : vector<256x4xi32>
    %c0_i32_232 = arith.constant 0 : i32
    %319 = vector.broadcast %c0_i32_232 : i32 to vector<256x4xi32>
    %320 = arith.cmpi sge, %318, %319 : vector<256x4xi32>
    %c-12_i32_233 = arith.constant -12 : i32
    %321 = vector.broadcast %c-12_i32_233 : i32 to vector<256x4xi32>
    %322 = arith.addi %6, %321 : vector<256x4xi32>
    %c16_i32_234 = arith.constant 16 : i32
    %323 = vector.broadcast %c16_i32_234 : i32 to vector<256x4xi32>
    %324 = arith.cmpi slt, %322, %323 : vector<256x4xi32>
    %325 = arith.andi %320, %324 : vector<256x4xi1>
    %cst_235 = arith.constant 0.000000e+00 : f32
    %326 = vector.broadcast %cst_235 : f32 to vector<256x4xf32>
    %327 = arith.select %325, %316, %326 : vector<256x4xi1>, vector<256x4xf32>
    %328 = arith.truncf %327 : vector<256x4xf32> to vector<256x4xbf16>
    %c6_236 = arith.constant 6 : index
    %c0_237 = arith.constant 0 : index
    %c0_238 = arith.constant 0 : index
    %329 = vector.load %arg6[%c6_236, %c0_237, %c0_238] : memref<9x4x128xbf16, #tpu.memory_space<vmem>>, vector<1x4x128xbf16>
    %330 = vector.shape_cast %329 : vector<1x4x128xbf16> to vector<4x128xbf16>
    %cst_239 = arith.constant dense<0.000000e+00> : vector<256x128xf32>
    %331 = tpu.matmul %328, %330, %cst_239 {dimension_numbers = #tpu.dot_dimension_numbers<[1], [0], [0], [1], [0, 0, 1, 1], [], []>} : vector<256x4xbf16>, vector<4x128xbf16>, vector<256x128xf32> -> vector<256x128xf32>
    %c0_240 = arith.constant 0 : index
    %c0_241 = arith.constant 0 : index
    %332 = vector.load %arg12[%c0_240, %c0_241] : memref<256x128xf32, #tpu.memory_space<vmem>>, vector<256x128xf32>
    %333 = arith.addf %332, %331 : vector<256x128xf32>
    %c0_242 = arith.constant 0 : index
    %c0_243 = arith.constant 0 : index
    %334 = vector.load %arg12[%c0_242, %c0_243] : memref<256x128xf32, #tpu.memory_space<vmem>>, vector<256x128xf32>
    tpu.vector_store %arg12[%c0_242, %c0_243], %333 {strides = array<i32>} : memref<256x128xf32, #tpu.memory_space<vmem>>, vector<256x128xf32>,
    %c192_i32_244 = arith.constant 192 : i32
    %335 = arith.addi %2, %c192_i32_244 : i32
    %c0_i32_245 = arith.constant 0 : i32
    %336 = arith.addi %335, %c0_i32_245 : i32
    %c0_246 = arith.constant 0 : index
    %337 = arith.index_cast %336 : i32 to index
    %c0_247 = arith.constant 0 : index
    %338 = vector.load %arg2[%c0_246, %337, %c0_247] : memref<1x880x4xf32, #tpu.memory_space<vmem>>, vector<1x256x4xf32>
    %339 = vector.shape_cast %338 : vector<1x256x4xf32> to vector<256x4xf32>
    %340 = arith.truncf %339 : vector<256x4xf32> to vector<256x4xbf16>
    %c7_248 = arith.constant 7 : index
    %c0_249 = arith.constant 0 : index
    %c0_250 = arith.constant 0 : index
    %341 = vector.load %arg6[%c7_248, %c0_249, %c0_250] : memref<9x4x128xbf16, #tpu.memory_space<vmem>>, vector<1x4x128xbf16>
    %342 = vector.shape_cast %341 : vector<1x4x128xbf16> to vector<4x128xbf16>
    %cst_251 = arith.constant dense<0.000000e+00> : vector<256x128xf32>
    %343 = tpu.matmul %340, %342, %cst_251 {dimension_numbers = #tpu.dot_dimension_numbers<[1], [0], [0], [1], [0, 0, 1, 1], [], []>} : vector<256x4xbf16>, vector<4x128xbf16>, vector<256x128xf32> -> vector<256x128xf32>
    %c0_252 = arith.constant 0 : index
    %c0_253 = arith.constant 0 : index
    %344 = vector.load %arg12[%c0_252, %c0_253] : memref<256x128xf32, #tpu.memory_space<vmem>>, vector<256x128xf32>
    %345 = arith.addf %344, %343 : vector<256x128xf32>
    %c0_254 = arith.constant 0 : index
    %c0_255 = arith.constant 0 : index
    %346 = vector.load %arg12[%c0_254, %c0_255] : memref<256x128xf32, #tpu.memory_space<vmem>>, vector<256x128xf32>
    tpu.vector_store %arg12[%c0_254, %c0_255], %345 {strides = array<i32>} : memref<256x128xf32, #tpu.memory_space<vmem>>, vector<256x128xf32>,
    %c192_i32_256 = arith.constant 192 : i32
    %347 = arith.addi %2, %c192_i32_256 : i32
    %c12_i32_257 = arith.constant 12 : i32
    %348 = arith.addi %347, %c12_i32_257 : i32
    %c0_258 = arith.constant 0 : index
    %349 = arith.index_cast %348 : i32 to index
    %c0_259 = arith.constant 0 : index
    %350 = vector.load %arg2[%c0_258, %349, %c0_259] : memref<1x880x4xf32, #tpu.memory_space<vmem>>, vector<1x256x4xf32>
    %351 = vector.shape_cast %350 : vector<1x256x4xf32> to vector<256x4xf32>
    %c12_i32_260 = arith.constant 12 : i32
    %352 = vector.broadcast %c12_i32_260 : i32 to vector<256x4xi32>
    %353 = arith.addi %6, %352 : vector<256x4xi32>
    %c0_i32_261 = arith.constant 0 : i32
    %354 = vector.broadcast %c0_i32_261 : i32 to vector<256x4xi32>
    %355 = arith.cmpi sge, %353, %354 : vector<256x4xi32>
    %c12_i32_262 = arith.constant 12 : i32
    %356 = vector.broadcast %c12_i32_262 : i32 to vector<256x4xi32>
    %357 = arith.addi %6, %356 : vector<256x4xi32>
    %c16_i32_263 = arith.constant 16 : i32
    %358 = vector.broadcast %c16_i32_263 : i32 to vector<256x4xi32>
    %359 = arith.cmpi slt, %357, %358 : vector<256x4xi32>
    %360 = arith.andi %355, %359 : vector<256x4xi1>
    %cst_264 = arith.constant 0.000000e+00 : f32
    %361 = vector.broadcast %cst_264 : f32 to vector<256x4xf32>
    %362 = arith.select %360, %351, %361 : vector<256x4xi1>, vector<256x4xf32>
    %363 = arith.truncf %362 : vector<256x4xf32> to vector<256x4xbf16>
    %c8_265 = arith.constant 8 : index
    %c0_266 = arith.constant 0 : index
    %c0_267 = arith.constant 0 : index
    %364 = vector.load %arg6[%c8_265, %c0_266, %c0_267] : memref<9x4x128xbf16, #tpu.memory_space<vmem>>, vector<1x4x128xbf16>
    %365 = vector.shape_cast %364 : vector<1x4x128xbf16> to vector<4x128xbf16>
    %cst_268 = arith.constant dense<0.000000e+00> : vector<256x128xf32>
    %366 = tpu.matmul %363, %365, %cst_268 {dimension_numbers = #tpu.dot_dimension_numbers<[1], [0], [0], [1], [0, 0, 1, 1], [], []>} : vector<256x4xbf16>, vector<4x128xbf16>, vector<256x128xf32> -> vector<256x128xf32>
    %c0_269 = arith.constant 0 : index
    %c0_270 = arith.constant 0 : index
    %367 = vector.load %arg12[%c0_269, %c0_270] : memref<256x128xf32, #tpu.memory_space<vmem>>, vector<256x128xf32>
    %368 = arith.addf %367, %366 : vector<256x128xf32>
    %c0_271 = arith.constant 0 : index
    %c0_272 = arith.constant 0 : index
    %369 = vector.load %arg12[%c0_271, %c0_272] : memref<256x128xf32, #tpu.memory_space<vmem>>, vector<256x128xf32>
    tpu.vector_store %arg12[%c0_271, %c0_272], %368 {strides = array<i32>} : memref<256x128xf32, #tpu.memory_space<vmem>>, vector<256x128xf32>,
    %c0_273 = arith.constant 0 : index
    %c0_274 = arith.constant 0 : index
    %370 = vector.load %arg12[%c0_273, %c0_274] : memref<256x128xf32, #tpu.memory_space<vmem>>, vector<256x128xf32>
    %371 = vector.extract_strided_slice %3 {offsets = [2, 0], sizes = [1, 128], strides = [1, 1]} : vector<4x128xf32> to vector<1x128xf32>
    %372 = vector.broadcast %371 : vector<1x128xf32> to vector<256x128xf32>
    %373 = arith.addf %370, %372 : vector<256x128xf32>
    %cst_275 = arith.constant 0.000000e+00 : f32
    %374 = vector.broadcast %cst_275 : f32 to vector<256x128xf32>
    %375 = arith.maximumf %373, %374 : vector<256x128xf32>
    %c0_276 = arith.constant 0 : index
    %c0_277 = arith.constant 0 : index
    %376 = vector.load %arg13[%c0_276, %c0_277] : memref<256x256xf32, #tpu.memory_space<vmem>>, vector<256x256xf32>
    %377 = arith.truncf %375 : vector<256x128xf32> to vector<256x128xbf16>
    %c2_278 = arith.constant 2 : index
    %c0_279 = arith.constant 0 : index
    %c0_280 = arith.constant 0 : index
    %378 = vector.load %arg9[%c2_278, %c0_279, %c0_280] : memref<4x128x256xbf16, #tpu.memory_space<vmem>>, vector<1x128x256xbf16>
    %379 = vector.shape_cast %378 : vector<1x128x256xbf16> to vector<128x256xbf16>
    %cst_281 = arith.constant dense<0.000000e+00> : vector<256x256xf32>
    %380 = tpu.matmul %377, %379, %cst_281 {dimension_numbers = #tpu.dot_dimension_numbers<[1], [0], [0], [1], [0, 0, 1, 1], [], []>} : vector<256x128xbf16>, vector<128x256xbf16>, vector<256x256xf32> -> vector<256x256xf32>
    %381 = arith.addf %376, %380 : vector<256x256xf32>
    %c0_282 = arith.constant 0 : index
    %c0_283 = arith.constant 0 : index
    %382 = vector.load %arg13[%c0_282, %c0_283] : memref<256x256xf32, #tpu.memory_space<vmem>>, vector<256x256xf32>
    tpu.vector_store %arg13[%c0_282, %c0_283], %381 {strides = array<i32>} : memref<256x256xf32, #tpu.memory_space<vmem>>, vector<256x256xf32>,
    %c4_284 = arith.constant 4 : index
    %c0_285 = arith.constant 0 : index
    %c0_286 = arith.constant 0 : index
    %383 = vector.load %arg7[%c4_284, %c0_285, %c0_286] : memref<9x4x128xbf16, #tpu.memory_space<vmem>>, vector<1x4x128xbf16>
    %384 = vector.shape_cast %383 : vector<1x4x128xbf16> to vector<4x128xbf16>
    %cst_287 = arith.constant dense<0.000000e+00> : vector<256x128xf32>
    %385 = tpu.matmul %12, %384, %cst_287 {dimension_numbers = #tpu.dot_dimension_numbers<[1], [0], [0], [1], [0, 0, 1, 1], [], []>} : vector<256x4xbf16>, vector<4x128xbf16>, vector<256x128xf32> -> vector<256x128xf32>
    %c0_288 = arith.constant 0 : index
    %c0_289 = arith.constant 0 : index
    %386 = vector.load %arg12[%c0_288, %c0_289] : memref<256x128xf32, #tpu.memory_space<vmem>>, vector<256x128xf32>
    tpu.vector_store %arg12[%c0_288, %c0_289], %385 {strides = array<i32>} : memref<256x128xf32, #tpu.memory_space<vmem>>, vector<256x128xf32>,
    %c0_290 = arith.constant 0 : index
    %c0_291 = arith.constant 0 : index
    %387 = vector.load %arg12[%c0_290, %c0_291] : memref<256x128xf32, #tpu.memory_space<vmem>>, vector<256x128xf32>
    %388 = vector.extract_strided_slice %3 {offsets = [3, 0], sizes = [1, 128], strides = [1, 1]} : vector<4x128xf32> to vector<1x128xf32>
    %389 = vector.broadcast %388 : vector<1x128xf32> to vector<256x128xf32>
    %390 = arith.addf %387, %389 : vector<256x128xf32>
    %cst_292 = arith.constant 0.000000e+00 : f32
    %391 = vector.broadcast %cst_292 : f32 to vector<256x128xf32>
    %392 = arith.maximumf %390, %391 : vector<256x128xf32>
    %c0_293 = arith.constant 0 : index
    %c0_294 = arith.constant 0 : index
    %393 = vector.load %arg13[%c0_293, %c0_294] : memref<256x256xf32, #tpu.memory_space<vmem>>, vector<256x256xf32>
    %394 = arith.truncf %392 : vector<256x128xf32> to vector<256x128xbf16>
    %c3_295 = arith.constant 3 : index
    %c0_296 = arith.constant 0 : index
    %c0_297 = arith.constant 0 : index
    %395 = vector.load %arg9[%c3_295, %c0_296, %c0_297] : memref<4x128x256xbf16, #tpu.memory_space<vmem>>, vector<1x128x256xbf16>
    %396 = vector.shape_cast %395 : vector<1x128x256xbf16> to vector<128x256xbf16>
    %cst_298 = arith.constant dense<0.000000e+00> : vector<256x256xf32>
    %397 = tpu.matmul %394, %396, %cst_298 {dimension_numbers = #tpu.dot_dimension_numbers<[1], [0], [0], [1], [0, 0, 1, 1], [], []>} : vector<256x128xbf16>, vector<128x256xbf16>, vector<256x256xf32> -> vector<256x256xf32>
    %398 = arith.addf %393, %397 : vector<256x256xf32>
    %c0_299 = arith.constant 0 : index
    %c0_300 = arith.constant 0 : index
    %399 = vector.load %arg13[%c0_299, %c0_300] : memref<256x256xf32, #tpu.memory_space<vmem>>, vector<256x256xf32>
    tpu.vector_store %arg13[%c0_299, %c0_300], %398 {strides = array<i32>} : memref<256x256xf32, #tpu.memory_space<vmem>>, vector<256x256xf32>,
    %c0_301 = arith.constant 0 : index
    %c0_302 = arith.constant 0 : index
    %400 = vector.load %arg13[%c0_301, %c0_302] : memref<256x256xf32, #tpu.memory_space<vmem>>, vector<256x256xf32>
    %c0_303 = arith.constant 0 : index
    %c0_304 = arith.constant 0 : index
    %c0_305 = arith.constant 0 : index
    %401 = vector.load %arg10[%c0_303, %c0_304, %c0_305] : memref<1x1x256xf32, #tpu.memory_space<vmem>>, vector<1x1x256xf32>
    %402 = vector.shape_cast %401 : vector<1x1x256xf32> to vector<1x256xf32>
    %403 = vector.broadcast %402 : vector<1x256xf32> to vector<256x256xf32>
    %404 = arith.addf %400, %403 : vector<256x256xf32>
    %cst_306 = arith.constant 0.000000e+00 : f32
    %405 = vector.broadcast %cst_306 : f32 to vector<256x256xf32>
    %406 = arith.maximumf %404, %405 : vector<256x256xf32>
    %c0_307 = arith.constant 0 : index
    %c0_308 = arith.constant 0 : index
    %c0_309 = arith.constant 0 : index
    %407 = vector.load %arg11[%c0_307, %c0_308, %c0_309] : memref<1x256x256xf32, #tpu.memory_space<vmem>>, vector<1x256x256xf32>
    %408 = vector.shape_cast %407 : vector<1x256x256xf32> to vector<256x256xf32>
    %409 = vector.shape_cast %406 : vector<256x256xf32> to vector<1x256x256xf32>
    tpu.vector_store %arg11[%c0_307, %c0_308, %c0_309], %409 {strides = array<i32>} : memref<1x256x256xf32, #tpu.memory_space<vmem>>, vector<1x256x256xf32>,
    return
  }
  func.func @transform_0(%arg0: i32, %arg1: i32) -> (i32, i32, i32) {
    %c0_i32 = arith.constant 0 : i32
    %c0_i32_0 = arith.constant 0 : i32
    %c0_i32_1 = arith.constant 0 : i32
    return %arg0, %c0_i32, %c0_i32_0 : i32, i32, i32
  }
  func.func @transform_1(%arg0: i32, %arg1: i32) -> (i32, i32) {
    %c0_i32 = arith.constant 0 : i32
    %c0_i32_0 = arith.constant 0 : i32
    %c0_i32_1 = arith.constant 0 : i32
    return %c0_i32, %c0_i32_0 : i32, i32
  }
  func.func @transform_2(%arg0: i32, %arg1: i32) -> (i32, i32) {
    %c0_i32 = arith.constant 0 : i32
    %c0_i32_0 = arith.constant 0 : i32
    %c0_i32_1 = arith.constant 0 : i32
    return %c0_i32, %c0_i32_0 : i32, i32
  }
  func.func @transform_3(%arg0: i32, %arg1: i32) -> (i32, i32, i32) {
    %c0_i32 = arith.constant 0 : i32
    %c0_i32_0 = arith.constant 0 : i32
    %c0_i32_1 = arith.constant 0 : i32
    %c0_i32_2 = arith.constant 0 : i32
    return %c0_i32, %c0_i32_0, %c0_i32_1 : i32, i32, i32
  }
  func.func @transform_4(%arg0: i32, %arg1: i32) -> (i32, i32, i32) {
    %c0_i32 = arith.constant 0 : i32
    %c0_i32_0 = arith.constant 0 : i32
    %c0_i32_1 = arith.constant 0 : i32
    %c0_i32_2 = arith.constant 0 : i32
    return %c0_i32, %c0_i32_0, %c0_i32_1 : i32, i32, i32
  }
  func.func @transform_5(%arg0: i32, %arg1: i32) -> (i32, i32, i32) {
    %c0_i32 = arith.constant 0 : i32
    %c0_i32_0 = arith.constant 0 : i32
    %c0_i32_1 = arith.constant 0 : i32
    %c0_i32_2 = arith.constant 0 : i32
    return %c0_i32, %c0_i32_0, %c0_i32_1 : i32, i32, i32
  }
  func.func @transform_6(%arg0: i32, %arg1: i32) -> (i32, i32) {
    %c0_i32 = arith.constant 0 : i32
    %c0_i32_0 = arith.constant 0 : i32
    %c0_i32_1 = arith.constant 0 : i32
    return %c0_i32, %c0_i32_0 : i32, i32
  }
  func.func @transform_7(%arg0: i32, %arg1: i32) -> (i32, i32, i32) {
    %c0_i32 = arith.constant 0 : i32
    %c0_i32_0 = arith.constant 0 : i32
    %c0_i32_1 = arith.constant 0 : i32
    %c0_i32_2 = arith.constant 0 : i32
    return %c0_i32, %c0_i32_0, %c0_i32_1 : i32, i32, i32
  }
  func.func @transform_8(%arg0: i32, %arg1: i32) -> (i32, i32, i32) {
    %c0_i32 = arith.constant 0 : i32
    %c0_i32_0 = arith.constant 0 : i32
    %c0_i32_1 = arith.constant 0 : i32
    return %arg0, %c0_i32, %c0_i32_0 : i32, i32, i32
  }
  func.func @transform_9(%arg0: i32, %arg1: i32) -> (i32, i32, i32) {
    %c0_i32 = arith.constant 0 : i32
    %c0_i32_0 = arith.constant 0 : i32
    return %arg0, %arg1, %c0_i32 : i32, i32, i32
  }
}

</mosaic_0001>

<bundles_post_ra>
// kernel: aspp_forward.1
= control target key start
LH: loop header
LB: loop body
LE: loop exit
PB: predicated region body
PF: predicated region fallthrough
CT: control target
= control target key end

     0   :  { %14 = vsyncpa [#allocation5], 0  ;;  %s20483_s0 = inlined_call_operand.vmem [shape: f32[2,880,4], index: 0, kind: input, shape index: {}]   ;;  %s20484_s1 = inlined_call_operand.vmem [shape: s32[256,1], index: 1, kind: input, shape index: {}]   ;;  %s20485_s2 = inlined_call_operand.vmem [shape: bf16[4,128], index: 2, kind: input, shape index: {}]   ;;  %s20486_s3 = inlined_call_operand.vmem [shape: bf16[9,4,128], index: 3, kind: input, shape index: {}]   ;;  %s20487_s4 = inlined_call_operand.vmem [shape: bf16[9,4,128], index: 4, kind: input, shape index: {}]   ;;  %s20488_s5 = inlined_call_operand.vmem [shape: bf16[9,4,128], index: 5, kind: input, shape index: {}]   ;;  %s20489_s6 = inlined_call_operand.vmem [shape: f32[4,128], index: 6, kind: input, shape index: {}]   ;;  %s20490_s7 = inlined_call_operand.vmem [shape: bf16[4,128,256], index: 7, kind: input, shape index: {}]   ;;  %s20491_s8 = inlined_call_operand.vmem [shape: f32[2,1,256], index: 8, kind: input, shape index: {}]   ;;  %s20492_s9 = inlined_call_operand.hbm [shape: f32[2,256,256], index: 9, kind: output, shape index: {}]  }
   0x1   :  { %16 = vsyncpa [#allocation5 + $0x1], 0  ;;  %s12978_s30 = smov 0   ;;  %s12980_s10 = smov 0  }
   0x2   :  { %s12982_s11 = smov 0   ;;  %s12984_s12 = smov 0  }
   0x3   :  { %s12986_s13 = smov 0   ;;  %s12988_s14 = smov 0  }
   0x4 LB: > { %s10627_s15 = sadd.s32 4294967295, %s12922_s14   ;;  %s10628_s16 = sadd.s32 4294967294, %s12922_s14   ;;  %s12922_s14 = sphi %s12988_s14, %s22_s14   ;;  %s12918_s13 = sphi %s12986_s13, %s23495_s13   ;;  %s12914_s12 = sphi %s12984_s12, %s23494_s12   ;;  %s12910_s11 = sphi %s12982_s11, %s23493_s11   ;;  %s12906_s10 = sphi %s12980_s10, %s23492_s10   ;;  %s12902_s30 = sphi %s12978_s30, %s23491_s30  }
   0x5   : > { %s34_s17 = sadd.s32 1, %s12918_s13  ;;  %s242_s18 = sadd.s32 1, %s12910_s11 }
   0x6   : > { %p36_p0 = scmp.ge.s32.totalorder %s34_s17, 2  ;;  %p252_p1 = scmp.ne.s32.totalorder %s12910_s11, %s12906_s10 }
   0x7   : > { %p253_p2 = scmp.eq.s32.totalorder %s10627_s15, 1  ;;  %p258_p3 = scmp.ne.s32.totalorder %s12906_s10, %s12902_s30 }
   0x8   : > { %s23497_s17 = smov (%p36_p0, %s34_s17), 0  ;;  %p259_p5 = scmp.eq.s32.totalorder %s10628_s16, 1 }
   0x9   : > { %p13018_p4 = por %p253_p2, %p252_p1  ;;  %s237_s20 = ssub.s32 %s12918_s13, %s23497_s17 }
   0xa   : > { %p10631_p6 = scmp.ge.s32.totalorder %s12922_s14, 1  ;;  %p240_p7 = scmp.eq.s32.totalorder %s237_s20, 0 }
   0xb   : > { %p13025_p8 = por %p259_p5, %p258_p3  ;;  %p313_p9 = scmp.lt.s32.totalorder %s12922_s14, 3 }
   0xc   : > { %s13031_s22 = scalar_select %p240_p7, %s12910_s11, %s242_s18  }
   0xd   : > { %p314_p10 = pnand %p10631_p6, %p313_p9 }
   0xf   : > { %317 = sbr.rel (%p314_p10) target bundleno = 1882 (0x75a), region = 56 }
  0x14   : > { %v367_v0 = vld [vmem:[%s20484_s1] sm:$0xff]  ;;  %v369_v1 = vld [vmem:[%s20484_s1 + $0x10] sm:$0xff]  ;;  %vm20495_vm0 = vcmask 1041408   ;;  %p353_p11 = scmp.lt.s32.totalorder %s12914_s12, 1  ;;  %v20493_v2 = vmov 0   ;;  %v368_v5 = vld [vmem:[%s20484_s1 + $0x8] sm:$0xff] }
  0x15   : > { %12733 = vset.pattern.permute.xlu0 %v20493_v2  ;;  %12734 = vset.pattern.permute.xlu1 %v20493_v2  ;;  %v544_v3 = vld [vmem:[%s20485_s2] sm:$0x3]  ;;  %v370_v6 = vld [vmem:[%s20484_s1 + $0x18] sm:$0xff]  ;;  %v372_v7 = vld [vmem:[%s20484_s1 + $0x28] sm:$0xff]  ;;  %vm20496_vm1 = vcmask 31744   ;;  %s350_s20 = sand.u32 1, %s12906_s10  }
  0x16   : > { %400 = vperm.xlu0 %12733, %v367_v0   ;;  %406 = vperm.xlu1 %12734, %v369_v1   ;;  %v600_v4 = vsel %vm20495_vm0, %v544_v3, 0  ;;  %s13047_s29 = scalar_select %p353_p11, %s12914_s12, 1  ;;  %v371_v8 = vld [vmem:[%s20484_s1 + $0x20] sm:$0xff]  ;;  %v374_v18 = vld [vmem:[%s20484_s1 + $0x38] sm:$0xff]  ;;  %v373_v19 = vld [vmem:[%s20484_s1 + $0x30] sm:$0xff] }
  0x17   : > { %12654 = vmatprep.subr.msk.bf16.mxu1 %vm20495_vm0, %v544_v3  ;;  %v376_v24 = vld [vmem:[%s20484_s1 + $0x48] sm:$0xff]  ;;  %v375_v26 = vld [vmem:[%s20484_s1 + $0x40] sm:$0xff]  ;;  %v378_v28 = vld [vmem:[%s20484_s1 + $0x58] sm:$0xff]  ;;  %s11633_s24 = sshll.u32 %s12914_s12, 13  ;;  %s20438_s12 = scalar_lea.sflag [#allocation5], %s350_s20 }
  0x18   : > { %11975 = vmatpush3.bf16.msra.mxu1 %v600_v4  ;;  %s12674_s23 = smul.u32 880, %s13047_s29  ;;  %v377_v29 = vld [vmem:[%s20484_s1 + $0x50] sm:$0xff]  ;;  %v380_v34 = vld [vmem:[%s20484_s1 + $0x68] sm:$0xff]  ;;  %v379_v36 = vld [vmem:[%s20484_s1 + $0x60] sm:$0xff]  ;;  %s10634_s15 = sshll.u32 %s13047_s29, 1 }
  0x19   : > { %v382_v38 = vld [vmem:[%s20484_s1 + $0x78] sm:$0xff]  ;;  %v381_v39 = vld [vmem:[%s20484_s1 + $0x70] sm:$0xff]  ;;  %v1374_v44 = vld [vmem:[%s20486_s3] sm:$0x3]  ;;  %s361_s18 = scalar_lea.vmem %s20491_s8, %s10634_s15  ;;  %s10632_s29 = sshll.u32 %s350_s20, 9 }
  0x1a   : > { %403 = vperm.xlu0 %12733, %v368_v5   ;;  %409 = vperm.xlu1 %12734, %v370_v6   ;;  %s13060_s26 = scalar_lea.vmem %s20483_s0, %s12674_s23  ;;  %v384_v45 = vld [vmem:[%s20484_s1 + $0x88] sm:$0xff]  ;;  %v1424_v46 = vsel %vm20495_vm0, %v1374_v44, 0  ;;  %v383_v48 = vld [vmem:[%s20484_s1 + $0x80] sm:$0xff]  ;;  %v386_v50 = vld [vmem:[%s20484_s1 + $0x98] sm:$0xff]  ;;  %s20090_s23 = scalar_lea.vmem [#allocation4], %s10632_s29 }
  0x1b   : > { %v10635_v9 = vld [vmem:[%s13060_s26 + $0x138] sm:$0xff]  ;;  %v10636_v10 = vld [vmem:[%s13060_s26 + $0x140] sm:$0xff]  ;;  %v10637_v11 = vld [vmem:[%s13060_s26 + $0x148] sm:$0xff]  ;;  %12655 = vmatprep.subr.msk.bf16.mxu0 %vm20495_vm0, %v1374_v44  ;;  %s10491_s25 = sshll.u32 %s20090_s23, 4  ;;  %s20430_s15 = scalar_lea.hbm %s20492_s9, %s11633_s24  ;;  %s20432_s25 = int_to_ptr.vmem [resolvable:$true] %s10491_s25 }
  0x1c   : > { %v13071_v12 = vpack.c.bf16 %v10636_v10, %v10635_v9  ;;  %v10638_v13 = vld [vmem:[%s13060_s26 + $0x150] sm:$0xff]  ;;  %v10639_v14 = vld [vmem:[%s13060_s26 + $0x158] sm:$0xff]  ;;  %v10640_v15 = vld [vmem:[%s13060_s26 + $0x160] sm:$0xff]  ;;  %12009 = vmatpush3.bf16.msra.mxu0 %v1424_v46  ;;  %s12846_s16 = scalar_lea.vmem %s20432_s25, 8192 }
  0x1d   : > { %v13076_v16 = vpack.c.bf16 %v10638_v13, %v10637_v11  ;;  %v13078_v17 = vpack.c.bf16 %v10640_v15, %v10639_v14  ;;  %v10641_v20 = vld [vmem:[%s13060_s26 + $0x168] sm:$0xff]  ;;  %v10642_v21 = vld [vmem:[%s13060_s26 + $0x170] sm:$0xff]  ;;  %v10643_v22 = vld [vmem:[%s13060_s26 + $0x178] sm:$0xff]  ;;  %p12847_p12 = scmp.ne.s32.totalorder %s20432_s25, %s12846_s16 }
  0x1e   : > { %21071 = vst [vmem:[#allocation7_spill] sm:$0xff] %v13071_v12  ;;  %11976 = vmatprep.mubr.msk.bf16.mxu1 %vm20496_vm1, %v13071_v12  ;;  %415 = vperm.xlu1 %12734, %v372_v7   ;;  %v10644_v23 = vld [vmem:[%s13060_s26 + $0x180] sm:$0xff]  ;;  %v13099_v25 = vpack.c.bf16 %v10642_v21, %v10641_v20  ;;  %v10645_v30 = vld [vmem:[%s13060_s26 + $0x188] sm:$0xff]  ;;  %v10646_v31 = vld [vmem:[%s13060_s26 + $0x190] sm:$0xff]  ;;  %v21198_v12 = vmov 0 }
  0x1f   : > { %21072 = vst [vmem:[#allocation8_spill] sm:$0xff] %v13076_v16  ;;  %21073 = vst [vmem:[#allocation9_spill] sm:$0xff] %v13078_v17  ;;  %412 = vperm.xlu0 %12733, %v371_v8   ;;  %11977 = vmatmul.mubr.msk.bf16.vlgmr.msra.gmra.mxu1 %vm20496_vm1, %v13076_v16  ;;  %v13104_v27 = vpack.c.bf16 %v10644_v23, %v10643_v22  ;;  %v10647_v32 = vld [vmem:[%s13060_s26 + $0x198] sm:$0xff]  ;;  %v10648_v33 = vld [vmem:[%s13060_s26 + $0x1a0] sm:$0xff]  ;;  %v13123_v35 = vpack.c.bf16 %v10646_v31, %v10645_v30  ;;  %p12848_p13 = pnand %p12847_p12, %p13018_p4 }
  0x20   : > { %11980 = vmatprep.mubr.msk.bf16.mxu1 %vm20496_vm1, %v13078_v17  ;;  %21074 = vst [vmem:[#allocation10_spill] sm:$0xff] %v13099_v25  ;;  %v13128_v37 = vpack.c.bf16 %v10648_v33, %v10647_v32  ;;  %v10649_v40 = vld [vmem:[%s13060_s26 + $0x1a8] sm:$0xff]  ;;  %v10650_v41 = vld [vmem:[%s13060_s26 + $0x1b0] sm:$0xff]  ;;  %v10651_v42 = vld [vmem:[%s13060_s26 + $0x1b8] sm:$0xff] }
  0x21   : > { %21075 = vst [vmem:[#allocation11_spill] sm:$0xff] %v13104_v27  ;;  %21076 = vst [vmem:[#allocation12_spill] sm:$0xff] %v13123_v35  ;;  %v10652_v43 = vld [vmem:[%s13060_s26 + $0x1c0] sm:$0xff]  ;;  %v13152_v47 = vpack.c.bf16 %v10650_v41, %v10649_v40  ;;  %v385_v51 = vld [vmem:[%s20484_s1 + $0x90] sm:$0xff]  ;;  %p12849_p0 = pneg %p12848_p13 }
  0x22   : > { %421 = vperm.xlu1 %12734, %v374_v18   ;;  %21077 = vst [vmem:[#allocation13_spill] sm:$0xff] %v13128_v37  ;;  %v13157_v49 = vpack.c.bf16 %v10652_v43, %v10651_v42  ;;  %v10653_v52 = vld [vmem:[%s13060_s26 + $0x1c8] sm:$0xff]  ;;  %v10654_v53 = vld [vmem:[%s13060_s26 + $0x1d0] sm:$0xff]  ;;  %v10655_v55 = vld [vmem:[%s13060_s26 + $0x1d8] sm:$0xff] }
  0x23   : > { %418 = vperm.xlu0 %12733, %v373_v19   ;;  %21078 = vst [vmem:[#allocation14_spill] sm:$0xff] %v13152_v47  ;;  %v388_v54 = vld [vmem:[%s20484_s1 + $0xa8] sm:$0xff]  ;;  %v10656_v56 = vld [vmem:[%s13060_s26 + $0x1e0] sm:$0xff]  ;;  %v13176_v57 = vpack.c.bf16 %v10654_v53, %v10653_v52  ;;  %v390_v60 = vld [vmem:[%s20484_s1 + $0xb8] sm:$0xff] }
  0x24   : > { %21079 = vst [vmem:[#allocation15_spill] sm:$0xff] %v13157_v49  ;;  %v387_v58 = vld [vmem:[%s20484_s1 + $0xa0] sm:$0xff]  ;;  %v13181_v59 = vpack.c.bf16 %v10656_v56, %v10655_v55  ;;  %v389_v61 = vld [vmem:[%s20484_s1 + $0xb0] sm:$0xff]  ;;  %v10657_v62 = vld [vmem:[%s13060_s26 + $0x1e8] sm:$0xff] }
  0x25   : > { %21080 = vst [vmem:[#allocation16_spill] sm:$0xff] %v13176_v57  ;;  %v10658_v63 = vld [vmem:[%s13060_s26 + $0x1f0] sm:$0xff]  ;;  %v10659_v0 = vld [vmem:[%s13060_s26 + $0x1f8] sm:$0xff]  ;;  %v10660_v1 = vld [vmem:[%s13060_s26 + $0x200] sm:$0xff] }
  0x26   : > { %427 = vperm.xlu1 %12734, %v376_v24   ;;  %21081 = vst [vmem:[#allocation17_spill] sm:$0xff] %v13181_v59  ;;  %v392_v3 = vld [vmem:[%s20484_s1 + $0xc8] sm:$0xff]  ;;  %v13200_v4 = vpack.c.bf16 %v10658_v63, %v10657_v62  ;;  %v391_v5 = vld [vmem:[%s20484_s1 + $0xc0] sm:$0xff]  ;;  %v13205_v6 = vpack.c.bf16 %v10660_v1, %v10659_v0  ;;  %v394_v7 = vld [vmem:[%s20484_s1 + $0xd8] sm:$0xff] }
  0x27   : > { %424 = vperm.xlu0 %12733, %v375_v26   ;;  %11981 = vmatmul.mubr.msk.bf16.gmra.mxu1 %vm20496_vm1, %v13099_v25  ;;  %v393_v8 = vld [vmem:[%s20484_s1 + $0xd0] sm:$0xff]  ;;  %v10661_v9 = vld [vmem:[%s13060_s26 + $0x208] sm:$0xff]  ;;  %v10663_v11 = vld [vmem:[%s13060_s26 + $0x218] sm:$0xff]  ;;  %v21183_v25 = vmov 0 }
  0x28   : > { %11984 = vmatprep.mubr.msk.bf16.mxu1 %vm20496_vm1, %v13104_v27  ;;  %21082 = vst [vmem:[#allocation18_spill] sm:$0xff] %v13200_v4  ;;  %21083 = vst [vmem:[#allocation19_spill] sm:$0xff] %v13205_v6  ;;  %v10662_v10 = vld [vmem:[%s13060_s26 + $0x210] sm:$0xff]  ;;  %v10664_v13 = vld [vmem:[%s13060_s26 + $0x220] sm:$0xff] }
  0x29   : > { %v396_v14 = vld [vmem:[%s20484_s1 + $0xe8] sm:$0xff]  ;;  %v395_v15 = vld [vmem:[%s20484_s1 + $0xe0] sm:$0xff]  ;;  %v13227_v18 = vpack.c.bf16 %v10662_v10, %v10661_v9  ;;  %v13229_v19 = vpack.c.bf16 %v10664_v13, %v10663_v11  ;;  %v398_v20 = vld [vmem:[%s20484_s1 + $0xf8] sm:$0xff] }
  0x2a   : > { %433 = vperm.xlu1 %12734, %v378_v28   ;;  %v397_v21 = vld [vmem:[%s20484_s1 + $0xf0] sm:$0xff]  ;;  %v10665_v22 = vld [vmem:[%s13060_s26 + $0x228] sm:$0xff]  ;;  %v13291_v56 = vld [vmem:[%s13060_s26 + $0x13c] sm:$0xff] }
  0x2b   : > { %430 = vperm.xlu0 %12733, %v377_v29   ;;  %21084 = vst [vmem:[#allocation20_spill] sm:$0xff] %v13227_v18  ;;  %21085 = vst [vmem:[#allocation21_spill] sm:$0xff] %v13229_v19  ;;  %v10666_v23 = vld [vmem:[%s13060_s26 + $0x230] sm:$0xff]  ;;  %v12738_v29 = vld [vmem:[%s20490_s7 + $0x60] ss:$8 sps:$4 sm:$0xff]  }
  0x2c   : > { %v13243_v24 = vpack.c.bf16 %v10666_v23, %v10665_v22  ;;  %v12735_v26 = vld [vmem:[%s20490_s7 + $0x70] ss:$8 sps:$4 sm:$0xff]   ;;  %v12737_v28 = vld [vmem:[%s20490_s7 + $0x74] ss:$8 sps:$4 sm:$0xff]   ;;  %v12740_v30 = vld [vmem:[%s20490_s7 + $0x64] ss:$8 sps:$4 sm:$0xff]  }
  0x2d   : > { %907 = vmatprep.subr.bf16.mxu1 %v12737_v28  ;;  %v12741_v31 = vld [vmem:[%s20490_s7 + $0x50] ss:$8 sps:$4 sm:$0xff]   ;;  %v12743_v32 = vld [vmem:[%s20490_s7 + $0x54] ss:$8 sps:$4 sm:$0xff]   ;;  %v12744_v33 = vld [vmem:[%s20490_s7 + $0x40] ss:$8 sps:$4 sm:$0xff]  }
  0x2e   : > { %439 = vperm.xlu1 %12734, %v380_v34   ;;  %21086 = vst [vmem:[#allocation22_spill] sm:$0xff] %v13243_v24  ;;  %908 = vmatpush1.bf16.msra.mxu1 %v12735_v26  ;;  %v12746_v34 = vld [vmem:[%s20490_s7 + $0x44] ss:$8 sps:$4 sm:$0xff]   ;;  %v13288_v55 = vld [vmem:[%s13060_s26 + $0x94] sm:$0xff] }
  0x2f   : > { %436 = vperm.xlu0 %12733, %v379_v36   ;;  %11985 = vmatmul.mubr.msk.bf16.gmra.mxu1 %vm20496_vm1, %v13123_v35  ;;  %v10798_v43 = vld [vmem:[%s13060_s26 + $0xee] sm:$0xff]  ;;  %v10847_v44 = vld [vmem:[%s13060_s26 + $0x142] sm:$0xff]  ;;  %v11061_v28 = vld [vmem:[%s13060_s26 + $0x1b6] sm:$0xff] }
  0x30   : > { %11988 = vmatprep.mubr.msk.bf16.mxu1 %vm20496_vm1, %v13128_v37  ;;  %909 = vmatprep.subr.bf16.mxu1 %v12740_v30  ;;  %v10962_v46 = vld [vmem:[%s13060_s26 + $0x1a2] sm:$0xff]  ;;  %v10848_v62 = vld [vmem:[%s13060_s26 + $0x14a] sm:$0xff]  ;;  %v13683_v17 = vld [vmem:[%s13060_s26 + $0x192] sm:$0xff] }
  0x31   : > { %v10963_v9 = vld [vmem:[%s13060_s26 + $0x1aa] sm:$0xff]  ;;  %21187 = vst [vmem:[#allocation68_spill] sm:$0xff] %v13683_v17 }
  0x32   : > { %445 = vperm.xlu1 %12734, %v382_v38   ;;  %910 = vmatpush1.bf16.msra.mxu1 %v12738_v29  ;;  %v12747_v11 = vld [vmem:[%s20490_s7 + $0x30] ss:$8 sps:$4 sm:$0xff]   ;;  %v11142_v29 = vld [vmem:[%s13060_s26 + $0x84] sm:$0xff] }
  0x33   : > { %442 = vperm.xlu0 %12733, %v381_v39   ;;  %911 = vmatprep.subr.bf16.mxu1 %v12743_v32  ;;  %v11500_v32 = vld [vmem:[%s13060_s26 + $0x214] sm:$0xff] }
  0x36   : > { %451 = vperm.xlu1 %12734, %v384_v45   ;;  %912 = vmatpush1.bf16.msra.mxu1 %v12741_v31  ;;  %v10913_v45 = vld [vmem:[%s13060_s26 + $0x14e] sm:$0xff] }
  0x37   : > { %448 = vperm.xlu0 %12733, %v383_v48   ;;  %11989 = vmatmul.mubr.msk.bf16.gmra.mxu1 %vm20496_vm1, %v13152_v47 }
  0x38   : > { %11992 = vmatprep.mubr.msk.bf16.mxu1 %vm20496_vm1, %v13157_v49  ;;  %913 = vmatprep.subr.bf16.mxu1 %v12746_v34 }
  0x3a   : > { %457 = vperm.xlu1 %12734, %v386_v50   ;;  %914 = vmatpush1.bf16.msra.mxu1 %v12744_v33  ;;  %v11060_v50 = vld [vmem:[%s13060_s26 + $0x1ae] sm:$0xff] }
  0x3b   : > { %454 = vperm.xlu0 %12733, %v385_v51   ;;  %v11141_v51 = vld [vmem:[%s13060_s26 + $0x7c] sm:$0xff] }
  0x3c   : > { %v12755_v33 = vld [vmem:[%s20490_s7 + $0x14] ss:$8 sps:$4 sm:$0xff]  }
  0x3e   : > { %463 = vperm.xlu1 %12734, %v388_v54   ;;  %v12758_v54 = vld [vmem:[%s20490_s7 + $0x4] ss:$8 sps:$4 sm:$0xff]  }
  0x3f   : > { %460 = vperm.xlu0 %12733, %v387_v58   ;;  %11993 = vmatmul.mubr.msk.bf16.gmra.mxu1 %vm20496_vm1, %v13176_v57  ;;  %v13294_v58 = vld [vmem:[%s13060_s26 + $0x154] sm:$0xff] }
  0x40   : > { %11996 = vmatprep.mubr.msk.bf16.mxu1 %vm20496_vm1, %v13181_v59 }
  0x42   : > { %469 = vperm.xlu1 %12734, %v390_v60  }
  0x43   : > { %466 = vperm.xlu0 %12733, %v389_v61   ;;  %v11402_v61 = vld [vmem:[%s13060_s26 + $0x1fc] sm:$0xff] }
  0x46   : > { %475 = vperm.xlu1 %12734, %v392_v3  }
  0x47   : > { %472 = vperm.xlu0 %12733, %v391_v5   ;;  %11997 = vmatmul.mubr.msk.bf16.gmra.mxu1 %vm20496_vm1, %v13200_v4 }
  0x48   : > { %12000 = vmatprep.mubr.msk.bf16.mxu1 %vm20496_vm1, %v13205_v6 }
  0x4a   : > { %481 = vperm.xlu1 %12734, %v394_v7   ;;  %v10799_v7 = vld [vmem:[%s13060_s26 + $0xf6] sm:$0xff] }
  0x4b   : > { %478 = vperm.xlu0 %12733, %v393_v8   ;;  %v10914_v8 = vld [vmem:[%s13060_s26 + $0x156] sm:$0xff] }
  0x4e   : > { %487 = vperm.xlu1 %12734, %v396_v14  }
  0x4f   : > { %484 = vperm.xlu0 %12733, %v395_v15   ;;  %12001 = vmatmul.mubr.msk.bf16.gmra.mxu1 %vm20496_vm1, %v13227_v18 }
  0x50   : > { %12004 = vmatprep.mubr.msk.bf16.mxu1 %vm20496_vm1, %v13229_v19 }
  0x52   : > { %493 = vperm.xlu1 %12734, %v398_v20   ;;  %v12749_v20 = vld [vmem:[%s20490_s7 + $0x34] ss:$8 sps:$4 sm:$0xff]  }
  0x53   : > { %490 = vperm.xlu0 %12733, %v397_v21   ;;  %915 = vmatprep.subr.bf16.mxu1 %v12749_v20 }
  0x54   : > { %916 = vmatpush1.bf16.msra.mxu1 %v12747_v11 }
  0x57   : > { %12005 = vmatmul.mubr.msk.bf16.gmra.mxu1 %vm20496_vm1, %v13243_v24 }
  0x58   : > { %939 = vmatprep.mubr.bf16.mxu1 %v20493_v2  ;;  %v10707_v2 = vld [vmem:[%s13060_s26 + $0x112] sm:$0xff] }
  0x91   : > { %v407_v36 = vpop.permute.xlu1 %406  ;;  %v13345_v31 = vpop.permute.xlu0 %400 }
  0x92   : > { %v1200_v38 = vadd.s32 4294967290, %v407_v36  ;;  %v2015_v39 = vadd.s32 6, %v407_v36  ;;  %v5323_v40 = vadd.s32 4294967284, %v407_v36  ;;  %v6138_v41 = vadd.s32 12, %v407_v36 }
  0x93   : > { %v1198_v11 = vadd.s32 4294967290, %v13345_v31  ;;  %v13629_v24 = vadd.s32 12, %v13345_v31 }
  0x94   : > { %vm2047_vm2 = vcmp.ge.s32.totalorder %v2015_v39, 0  ;;  %vm2079_vm3 = vcmp.lt.s32.totalorder %v2015_v39, 16  ;;  %vm1232_vm4 = vcmp.ge.s32.totalorder %v1200_v38, 0  ;;  %vm1264_vm5 = vcmp.lt.s32.totalorder %v1200_v38, 16 }
  0x95   : > { %v410_v42 = vpop.permute.xlu1 %409  ;;  %vm5355_vm6 = vcmp.ge.s32.totalorder %v5323_v40, 0  ;;  %vm5387_vm7 = vcmp.lt.s32.totalorder %v5323_v40, 16  ;;  %vm13276_vm8 = vmand %vm2047_vm2, %vm2079_vm3  ;;  %vm6170_vm9 = vcmp.ge.s32.totalorder %v6138_v41, 0  ;;  %vm6202_vm10 = vcmp.lt.s32.totalorder %v6138_v41, 16  ;;  %21166 = vst [vmem:[#allocation56_spill] sm:$0xff] %v13629_v24 }
  0x96   : > { %v1201_v52 = vadd.s32 4294967290, %v410_v42  ;;  %v2016_v53 = vadd.s32 6, %v410_v42  ;;  %vm13283_vm11 = vmand %vm1232_vm4, %vm1264_vm5  ;;  %v2143_v63 = vsel %vm13276_vm8, %v10798_v43, 0.0  ;;  %v3189_v1 = vsel %vm13276_vm8, %v10913_v45, 0.0  ;;  %v11288_v43 = vld [vmem:[%s13060_s26 + $0x144] sm:$0xff] }
  0x97   : > { %vm13296_vm12 = vmand %vm5355_vm6, %vm5387_vm7  ;;  %v2535_v0 = vsel %vm13283_vm11, %v10847_v44, 0.0  ;;  %v3581_v3 = vsel %vm13283_vm11, %v10962_v46, 0.0  ;;  %v4333_v10 = vsel %vm13276_vm8, %v11060_v50, 0.0  ;;  %v5324_v15 = vadd.s32 4294967284, %v410_v42  ;;  %v11403_v44 = vld [vmem:[%s13060_s26 + $0x204] sm:$0xff] }
  0x98   : > { %vm13311_vm13 = vmand %vm6170_vm9, %vm6202_vm10  ;;  %vm1233_vm14 = vcmp.ge.s32.totalorder %v1201_v52, 0  ;;  %vm1265_vm15 = vcmp.lt.s32.totalorder %v1201_v52, 16  ;;  %vm2048_vm2 = vcmp.ge.s32.totalorder %v2016_v53, 0  ;;  %v5451_v13 = vsel %vm13296_vm12, %v11141_v51, 0.0  ;;  %v13380_v51 = vld [vmem:[%s13060_s26 + $0x9c] sm:$0xff] }
  0x99   : > { %v6658_v14 = vsel %vm13296_vm12, %v13291_v56, 0.0  ;;  %vm2080_vm3 = vcmp.lt.s32.totalorder %v2016_v53, 16  ;;  %v6266_v21 = vsel %vm13311_vm13, %v13288_v55, 0.0  ;;  %v7312_v22 = vsel %vm13311_vm13, %v13294_v58, 0.0  ;;  %vm13339_vm4 = vmand %vm1233_vm14, %vm1265_vm15  ;;  %21105 = vst [vmem:[#allocation27_spill] sm:$0xff] %v13380_v51  ;;  %v13383_v52 = vld [vmem:[%s13060_s26 + $0x15c] sm:$0xff] }
  0x9a   : > { %v7704_v23 = vsel %vm13296_vm12, %v11402_v61, 0.0  ;;  %v6139_v30 = vadd.s32 12, %v410_v42  ;;  %vm13349_vm5 = vmand %vm2048_vm2, %vm2080_vm3  ;;  %v2536_v34 = vsel %vm13339_vm4, %v10848_v62, 0.0  ;;  %v3582_v36 = vsel %vm13339_vm4, %v10963_v9, 0.0  ;;  %21106 = vst [vmem:[#allocation28_spill] sm:$0xff] %v13383_v52  ;;  %v13390_v56 = vld [vmem:[%s13060_s26 + $0x21c] sm:$0xff]  ;;  %v13411_v9 = vpop.permute.xlu1 %415 }
  0x9b   : > { %vm5356_vm6 = vcmp.ge.s32.totalorder %v5324_v15, 0  ;;  %vm5388_vm7 = vcmp.lt.s32.totalorder %v5324_v15, 16  ;;  %v2144_v38 = vsel %vm13349_vm5, %v10799_v7, 0.0  ;;  %v13359_v39 = vpack.c.bf16 %v2536_v34, %v2535_v0  ;;  %21109 = vst [vmem:[#allocation31_spill] sm:$0xff] %v13390_v56  ;;  %v12752_v15 = vld [vmem:[%s20490_s7 + $0x24] ss:$8 sps:$4 sm:$0xff]  }
  0x9c   : > { %v3190_v40 = vsel %vm13349_vm5, %v10914_v8, 0.0  ;;  %v13363_v41 = vpack.c.bf16 %v3582_v36, %v3581_v3  ;;  %vm13365_vm8 = vmand %vm5356_vm6, %vm5388_vm7  ;;  %v13371_v45 = vpack.c.bf16 %v2144_v38, %v2143_v63  ;;  %v4334_v48 = vsel %vm13349_vm5, %v11061_v28, 0.0  ;;  %v13404_v3 = vpop.permute.xlu0 %403  ;;  %917 = vmatprep.subr.bf16.mxu1 %v12752_v15  ;;  %v10700_v28 = vld [vmem:[%s13060_s26 + $0xda] sm:$0xff] }
  0x9d   : > { %21099 = vst [vmem:[#allocation23_spill] sm:$0xff] %v13359_v39  ;;  %v13373_v46 = vpack.c.bf16 %v3190_v40, %v3189_v1  ;;  %v5452_v50 = vsel %vm13365_vm8, %v11142_v29, 0.0  ;;  %v13385_v53 = vpack.c.bf16 %v4334_v48, %v4333_v10  ;;  %vm6171_vm9 = vcmp.ge.s32.totalorder %v6139_v30, 0  ;;  %v12753_v29 = vld [vmem:[%s20490_s7 + $0x10] ss:$8 sps:$4 sm:$0xff]  }
  0x9e   : > { %21100 = vst [vmem:[#allocation24_spill] sm:$0xff] %v13363_v41  ;;  %21103 = vst [vmem:[#allocation25_spill] sm:$0xff] %v13371_v45  ;;  %v13387_v55 = vpack.c.bf16 %v5452_v50, %v5451_v13  ;;  %vm6203_vm10 = vcmp.lt.s32.totalorder %v6139_v30, 16  ;;  %v8456_v58 = vsel %vm13311_vm13, %v11500_v32, 0.0  ;;  %v6659_v60 = vsel %vm13365_vm8, %v11288_v43, 0.0  ;;  %v13423_v20 = vpop.permute.xlu1 %421  ;;  %v13440_v32 = vld [vmem:[%s13060_s26 + $0x132] sm:$0xff] }
  0x9f   : > { %21104 = vst [vmem:[#allocation26_spill] sm:$0xff] %v13373_v46  ;;  %21107 = vst [vmem:[#allocation29_spill] sm:$0xff] %v13385_v53  ;;  %v7705_v61 = vsel %vm13365_vm8, %v11403_v44, 0.0  ;;  %v13399_v63 = vpack.c.bf16 %v6659_v60, %v6658_v14  ;;  %v1199_v13 = vadd.s32 4294967290, %v13404_v3  ;;  %v12750_v14 = vld [vmem:[%s20490_s7 + $0x20] ss:$8 sps:$4 sm:$0xff]  }
  0xa0   : > { %21108 = vst [vmem:[#allocation30_spill] sm:$0xff] %v13387_v55  ;;  %vm6235_vm12 = vmand %vm6171_vm9, %vm6203_vm10  ;;  %v13402_v1 = vpack.c.bf16 %v7705_v61, %v7704_v23  ;;  %vm1230_vm13 = vcmp.ge.s32.totalorder %v1198_v11, 0  ;;  %vm1262_vm14 = vcmp.lt.s32.totalorder %v1198_v11, 16  ;;  %918 = vmatpush1.bf16.msra.mxu1 %v12750_v14  ;;  %v10779_v23 = vld [vmem:[%s20486_s3 + $0x2] sm:$0x3]  ;;  %v21115_v30 = vmov 0  ;;  %v13458_v43 = vpop.permute.xlu0 %412 }
  0xa1   : > { %v6267_v62 = vsel %vm6235_vm12, %v13380_v51, 0.0  ;;  %21110 = vst [vmem:[#allocation32_spill] sm:$0xff] %v13399_v63  ;;  %v7313_v0 = vsel %vm6235_vm12, %v13383_v52, 0.0  ;;  %v8457_v8 = vsel %vm6235_vm12, %v13390_v56, 0.0  ;;  %vm1231_vm15 = vcmp.ge.s32.totalorder %v1199_v13, 0  ;;  %12656 = vmatprep.subr.msk.bf16.mxu0 %vm20495_vm0, %v10779_v23  ;;  %vm13435_vm3 = vmand %vm1230_vm13, %vm1262_vm14  ;;  %v13453_v40 = vld [vmem:[%s13060_s26 + $0x13a] sm:$0xff]  ;;  %919 = vmatprep.subr.bf16.mxu1 %v12755_v33 }
  0xa2   : > { %21111 = vst [vmem:[#allocation33_spill] sm:$0xff] %v13402_v1  ;;  %v13406_v5 = vpack.c.bf16 %v6267_v62, %v6266_v21  ;;  %v13408_v7 = vpack.c.bf16 %v7313_v0, %v7312_v22  ;;  %v13413_v10 = vpack.c.bf16 %v8457_v8, %v8456_v58  ;;  %v10699_v21 = vld [vmem:[%s13060_s26 + $0xd2] sm:$0xff]  ;;  %vm1263_vm2 = vcmp.lt.s32.totalorder %v1199_v13, 16  ;;  %v10701_v50 = vld [vmem:[%s13060_s26 + $0xe2] sm:$0xff]  ;;  %v10702_v62 = vld [vmem:[%s13060_s26 + $0xea] sm:$0xff]  ;;  %v13500_v26 = vpop.permute.xlu1 %427 }
  0xa3   : > { %v6143_v22 = vadd.s32 12, %v13423_v20  ;;  %v21116_v30 = vsel %vm13435_vm3, 4294967295, %v21115_v30  ;;  %v1203_v34 = vadd.s32 4294967290, %v13411_v9  ;;  %vm13446_vm5 = vmand %vm1231_vm15, %vm1263_vm2  ;;  %v21118_v36 = vmov 0  ;;  %v13468_v61 = vld [vmem:[%s13060_s26 + $0xbc] sm:$0xff]  ;;  %v10714_v46 = vld [vmem:[%s13060_s26 + $0x14a] sm:$0xff] }
  0xa4   : > { %21112 = vst [vmem:[#allocation34_spill] sm:$0xff] %v13406_v5  ;;  %21113 = vst [vmem:[#allocation35_spill] sm:$0xff] %v13408_v7  ;;  %v21119_v36 = vsel %vm13446_vm5, 4294967295, %v21118_v36  ;;  %v1326_v38 = vsel %vm13435_vm3, %v10699_v21, 0.0  ;;  %v1327_v44 = vsel %vm13446_vm5, %v10700_v28, 0.0  ;;  %v1202_v58 = vadd.s32 4294967290, %v13458_v43  ;;  %920 = vmatpush1.bf16.msra.mxu1 %v12753_v29  ;;  %v13497_v23 = vpop.permute.xlu0 %418 }
  0xa5   : > { %21114 = vst [vmem:[#allocation36_spill] sm:$0xff] %v13413_v10  ;;  %21117 = vst [vmem:[#allocation37_spill] sm:$0xff] %v21116_v30  ;;  %vm6175_vm6 = vcmp.ge.s32.totalorder %v6143_v22, 0  ;;  %vm6207_vm7 = vcmp.lt.s32.totalorder %v6143_v22, 16  ;;  %v1358_v60 = vpack.c.bf16 %v1327_v44, %v1326_v38  ;;  %v21122_v0 = vmov 0  ;;  %v10703_v28 = vld [vmem:[%s13060_s26 + $0xf2] sm:$0xff]  ;;  %921 = vmatprep.subr.bf16.mxu1 %v12758_v54 }
  0xa6   : > { %21120 = vst [vmem:[#allocation38_spill] sm:$0xff] %v21119_v36  ;;  %21121 = vst [vmem:[#allocation39_spill] sm:$0xff] %v13468_v61  ;;  %v1328_v8 = vsel %vm13283_vm11, %v10701_v50, 0.0  ;;  %vm1235_vm9 = vcmp.ge.s32.totalorder %v1203_v34, 0  ;;  %vm1267_vm10 = vcmp.lt.s32.totalorder %v1203_v34, 16  ;;  %vm1234_vm12 = vcmp.ge.s32.totalorder %v1202_v58, 0 }
  0xa7   : > { %12010 = vmatprep.mubr.msk.bf16.mxu0 %vm20496_vm1, %v1358_v60  ;;  %vm13472_vm8 = vmand %vm6175_vm6, %vm6207_vm7  ;;  %vm1266_vm13 = vcmp.lt.s32.totalorder %v1202_v58, 16  ;;  %v1329_v13 = vsel %vm13339_vm4, %v10702_v62, 0.0  ;;  %v12756_v14 = vld [vmem:[%s20490_s7] ss:$8 sps:$4 sm:$0xff]   ;;  %v21125_v21 = vmov 0  ;;  %v21128_v22 = vmov 0  ;;  %v13514_v60 = vpop.permute.xlu1 %433 }
  0xa8   : > { %v21123_v0 = vsel %vm13472_vm8, 4294967295, %v21122_v0  ;;  %v1359_v15 = vpack.c.bf16 %v1329_v13, %v1328_v8  ;;  %vm13489_vm11 = vmand %vm1235_vm9, %vm1267_vm10  ;;  %v10704_v29 = vld [vmem:[%s13060_s26 + $0xfa] sm:$0xff]  ;;  %922 = vmatpush1.bf16.msra.mxu1 %v12756_v14  ;;  %v1204_v33 = vadd.s32 4294967290, %v13497_v23  ;;  %v1205_v44 = vadd.s32 4294967290, %v13423_v20  ;;  %v10828_v50 = vld [vmem:[%s20486_s3 + $0x4] sm:$0x3]  ;;  %v13522_v13 = vpop.permute.xlu0 %424 }
  0xa9   : > { %21124 = vst [vmem:[#allocation40_spill] sm:$0xff] %v21123_v0  ;;  %v21126_v21 = vsel %vm13489_vm11, 4294967295, %v21125_v21  ;;  %vm13493_vm14 = vmand %vm1234_vm12, %vm1266_vm13  ;;  %v1331_v38 = vsel %vm13489_vm11, %v10704_v29, 0.0  ;;  %12657 = vmatprep.subr.msk.bf16.mxu1 %vm20495_vm0, %v10828_v50  ;;  %v6147_v62 = vadd.s32 12, %v13514_v60  ;;  %v21131_v8 = vmov 0  ;;  %v10705_v14 = vld [vmem:[%s13060_s26 + $0x102] sm:$0xff] }
  0xaa   : > { %21127 = vst [vmem:[#allocation41_spill] sm:$0xff] %v21126_v21  ;;  %v21129_v22 = vsel %vm13493_vm14, 4294967295, %v21128_v22  ;;  %12011 = vmatmul.mubr.msk.bf16.vlgmr.msra.gmra.mxu0 %vm20496_vm1, %v1359_v15  ;;  %v1330_v34 = vsel %vm13493_vm14, %v10703_v28, 0.0  ;;  %vm1236_vm4 = vcmp.ge.s32.totalorder %v1204_v33, 0  ;;  %vm1268_vm15 = vcmp.lt.s32.totalorder %v1204_v33, 16  ;;  %v13531_v28 = vld [vmem:[%s13060_s26 + $0xdc] sm:$0xff] }
  0xab   : > { %21130 = vst [vmem:[#allocation42_spill] sm:$0xff] %v21129_v22  ;;  %v1360_v58 = vpack.c.bf16 %v1331_v38, %v1330_v34  ;;  %vm1237_vm2 = vcmp.ge.s32.totalorder %v1205_v44, 0  ;;  %vm1269_vm6 = vcmp.lt.s32.totalorder %v1205_v44, 16  ;;  %vm13518_vm7 = vmand %vm1236_vm4, %vm1268_vm15  ;;  %vm6179_vm9 = vcmp.ge.s32.totalorder %v6147_v62, 0  ;;  %v10706_v29 = vld [vmem:[%s13060_s26 + $0x10a] sm:$0xff]  ;;  %v13585_v5 = vld [vmem:[%s13060_s26 + $0xfc] sm:$0xff] }
  0xac   : > { %v21132_v8 = vsel %vm13518_vm7, 4294967295, %v21131_v8  ;;  %vm6211_vm10 = vcmp.lt.s32.totalorder %v6147_v62, 16  ;;  %vm13525_vm12 = vmand %vm1237_vm2, %vm1269_vm6  ;;  %v21134_v15 = vmov 0  ;;  %v1206_v54 = vadd.s32 4294967290, %v13522_v13  ;;  %21137 = vst [vmem:[#allocation45_spill] sm:$0xff] %v13531_v28  ;;  %v13546_v62 = vpop.permute.xlu0 %430  ;;  %v10713_v45 = vld [vmem:[%s13060_s26 + $0x142] sm:$0xff] }
  0xad   : > { %12014 = vmatprep.mubr.msk.bf16.mxu0 %vm20496_vm1, %v1360_v58  ;;  %21133 = vst [vmem:[#allocation43_spill] sm:$0xff] %v21132_v8  ;;  %v21135_v15 = vsel %vm13525_vm12, 4294967295, %v21134_v15  ;;  %v1207_v33 = vadd.s32 4294967290, %v13500_v26  ;;  %vm13535_vm13 = vmand %vm6179_vm9, %vm6211_vm10  ;;  %v21138_v34 = vmov 0  ;;  %v1332_v38 = vsel %vm13518_vm7, %v10705_v14, 0.0  ;;  %v13749_v22 = vld [vmem:[%s13060_s26 + $0x17c] sm:$0xff] }
  0xae   : > { %21136 = vst [vmem:[#allocation44_spill] sm:$0xff] %v21135_v15  ;;  %v21139_v34 = vsel %vm13535_vm13, 4294967295, %v21138_v34  ;;  %v1333_v50 = vsel %vm13525_vm12, %v10706_v29, 0.0  ;;  %vm1238_vm4 = vcmp.ge.s32.totalorder %v1206_v54, 0  ;;  %vm1270_vm15 = vcmp.lt.s32.totalorder %v1206_v54, 16  ;;  %v13560_v29 = vpop.permute.xlu1 %439  ;;  %21154 = vst [vmem:[#allocation51_spill] sm:$0xff] %v13585_v5 }
  0xaf   : > { %21140 = vst [vmem:[#allocation46_spill] sm:$0xff] %v21139_v34  ;;  %v1361_v58 = vpack.c.bf16 %v1333_v50, %v1332_v38  ;;  %vm1239_vm2 = vcmp.ge.s32.totalorder %v1207_v33, 0  ;;  %vm1271_vm6 = vcmp.lt.s32.totalorder %v1207_v33, 16  ;;  %vm13549_vm9 = vmand %vm1238_vm4, %vm1270_vm15  ;;  %v21141_v11 = vmov 0  ;;  %v10708_v33 = vld [vmem:[%s13060_s26 + $0x11a] sm:$0xff] }
  0xb0   : > { %v21142_v11 = vsel %vm13549_vm9, 4294967295, %v21141_v11  ;;  %v1209_v14 = vadd.s32 4294967290, %v13514_v60  ;;  %vm13555_vm10 = vmand %vm1239_vm2, %vm1271_vm6  ;;  %v21144_v44 = vmov 0  ;;  %v1208_v54 = vadd.s32 4294967290, %v13546_v62  ;;  %21213 = vst [vmem:[#allocation81_spill] sm:$0xff] %v13749_v22  ;;  %v13833_v0 = vld [vmem:[%s13060_s26 + $0xb4] sm:$0xff] }
  0xb1   : > { %21143 = vst [vmem:[#allocation47_spill] sm:$0xff] %v21142_v11  ;;  %v21145_v44 = vsel %vm13555_vm10, 4294967295, %v21144_v44  ;;  %v1334_v38 = vsel %vm13549_vm9, %v10707_v2, 0.0  ;;  %v1335_v50 = vsel %vm13555_vm10, %v10708_v33, 0.0  ;;  %v21147_v42 = vmov 0  ;;  %v10710_v33 = vld [vmem:[%s13060_s26 + $0x12a] sm:$0xff] }
  0xb2   : > { %12015 = vmatmul.mubr.msk.bf16.gmra.mxu0 %vm20496_vm1, %v1361_v58  ;;  %21146 = vst [vmem:[#allocation48_spill] sm:$0xff] %v21145_v44  ;;  %vm1241_vm4 = vcmp.ge.s32.totalorder %v1209_v14, 0  ;;  %vm1273_vm15 = vcmp.lt.s32.totalorder %v1209_v14, 16  ;;  %vm1240_vm2 = vcmp.ge.s32.totalorder %v1208_v54, 0  ;;  %vm1272_vm6 = vcmp.lt.s32.totalorder %v1208_v54, 16  ;;  %v13567_v58 = vpop.permute.xlu0 %436  ;;  %v13573_v10 = vpop.permute.xlu1 %445  ;;  %v10709_v14 = vld [vmem:[%s13060_s26 + $0x122] sm:$0xff] }
  0xb3   : > { %v1362_v48 = vpack.c.bf16 %v1335_v50, %v1334_v38  ;;  %vm13569_vm0 = vmand %vm1241_vm4, %vm1273_vm15  ;;  %v21150_v1 = vmov 0  ;;  %vm21153_vm11 = vcmask 31744   ;;  %v6151_v2 = vadd.s32 12, %v13573_v10  ;;  %21237 = vst [vmem:[#allocation91_spill] sm:$0xff] %v13833_v0  ;;  %v13865_v51 = vld [vmem:[%s13060_s26 + $0x1f6] sm:$0xff] }
  0xb4   : > { %v21148_v42 = vsel %vm13569_vm0, 4294967295, %v21147_v42  ;;  %vm13575_vm1 = vmand %vm1240_vm2, %vm1272_vm6  ;;  %v1210_v54 = vadd.s32 4294967290, %v13567_v58  ;;  %v1211_v38 = vadd.s32 4294967290, %v13560_v29  ;;  %v1337_v7 = vsel %vm13569_vm0, %v10710_v33, 0.0  ;;  %21247 = vst [vmem:[#allocation96_spill] sm:$0xff] %v13865_v51  ;;  %v13903_v0 = vld [vmem:[%s13060_s26 + $0x19c] sm:$0xff] }
  0xb5   : > { %21149 = vst [vmem:[#allocation49_spill] sm:$0xff] %v21148_v42  ;;  %v21151_v1 = vsel %vm13575_vm1, 4294967295, %v21150_v1  ;;  %12018 = vmatprep.mubr.msk.bf16.mxu0 %vm21153_vm11, %v1362_v48  ;;  %vm6183_vm4 = vcmp.ge.s32.totalorder %v6151_v2, 0  ;;  %vm6215_vm15 = vcmp.lt.s32.totalorder %v6151_v2, 16  ;;  %v1336_v50 = vsel %vm13575_vm1, %v10709_v14, 0.0  ;;  %21259 = vst [vmem:[#allocation104_spill] sm:$0xff] %v13903_v0 }
  0xb6   : > { %21152 = vst [vmem:[#allocation50_spill] sm:$0xff] %v21151_v1  ;;  %vm13592_vm2 = vmand %vm6183_vm4, %vm6215_vm15  ;;  %v21155_v48 = vmov 0  ;;  %v13596_v63 = vpop.permute.xlu0 %442  ;;  %vm1242_vm11 = vcmp.ge.s32.totalorder %v1210_v54, 0  ;;  %vm1274_vm6 = vcmp.lt.s32.totalorder %v1210_v54, 16  ;;  %v1363_v2 = vpack.c.bf16 %v1337_v7, %v1336_v50  ;;  %v13606_v33 = vpop.permute.xlu1 %451  ;;  %v14039_v61 = vld [vmem:[%s13060_s26 + $0x216] sm:$0xff]  ;;  %v15250_v51 = vld [vmem:[%s13060_s26 + $0x15e] sm:$0xff] }
  0xb7   : > { %v21156_v48 = vsel %vm13592_vm2, 4294967295, %v21155_v48  ;;  %vm1243_vm14 = vcmp.ge.s32.totalorder %v1211_v38, 0  ;;  %vm1275_vm10 = vcmp.lt.s32.totalorder %v1211_v38, 16  ;;  %vm21158_vm9 = vcmask 31744   ;;  %vm13602_vm1 = vmand %vm1242_vm11, %vm1274_vm6  ;;  %21300 = vst [vmem:[#allocation121_spill] sm:$0xff] %v14039_v61  ;;  %v14214_v28 = vld [vmem:[%s13060_s26 + $0x176] sm:$0xff] }
  0xb8   : > { %21157 = vst [vmem:[#allocation52_spill] sm:$0xff] %v21156_v48  ;;  %v21159_v14 = vmov 0  ;;  %vm13608_vm4 = vmand %vm1243_vm14, %vm1275_vm10  ;;  %v21162_v53 = vmov 0  ;;  %v2020_v55 = vadd.s32 6, %v13423_v20  ;;  %v1213_v7 = vadd.s32 4294967290, %v13573_v10 }
  0xb9   : > { %v21160_v14 = vsel %vm13602_vm1, 4294967295, %v21159_v14  ;;  %v21163_v53 = vsel %vm13608_vm4, 4294967295, %v21162_v53  ;;  %v1338_v54 = vsel %vm13602_vm1, %v13440_v32, 0.0  ;;  %v13620_v38 = vadd.s32 6, %v13345_v31  ;;  %21357 = vst [vmem:[#allocation149_spill] sm:$0xff] %v14214_v28 }
  0xba   : > { %12019 = vmatmul.mubr.msk.bf16.gmra.mxu0 %vm21158_vm9, %v1363_v2  ;;  %21161 = vst [vmem:[#allocation53_spill] sm:$0xff] %v21160_v14  ;;  %21164 = vst [vmem:[#allocation54_spill] sm:$0xff] %v21163_v53  ;;  %v13612_v41 = vpop.permute.xlu0 %448  ;;  %v1339_v50 = vsel %vm13608_vm4, %v13453_v40, 0.0  ;;  %v13626_v2 = vadd.s32 4294967284, %v13345_v31  ;;  %v13632_v19 = vadd.s32 6, %v13404_v3  ;;  %v1212_v18 = vadd.s32 4294967290, %v13596_v63  ;;  %v13636_v59 = vpop.permute.xlu1 %457 }
  0xbb   : > { %vm2052_vm14 = vcmp.ge.s32.totalorder %v2020_v55, 0  ;;  %vm2084_vm9 = vcmp.lt.s32.totalorder %v2020_v55, 16  ;;  %v5328_v6 = vadd.s32 4294967284, %v13423_v20  ;;  %v1364_v4 = vpack.c.bf16 %v1339_v50, %v1338_v54  ;;  %v13755_v53 = vld [vmem:[%s13060_s26 + $0x23c] sm:$0xff] }
  0xbc   : > { %21165 = vst [vmem:[#allocation55_spill] sm:$0xff] %v13626_v2  ;;  %21167 = vst [vmem:[#allocation57_spill] sm:$0xff] %v13632_v19  ;;  %v2032_v57 = vadd.s32 6, %v13636_v59  ;;  %v6155_v31 = vadd.s32 12, %v13636_v59  ;;  %v13643_v47 = vadd.s32 4294967284, %v13404_v3  ;;  %v13646_v37 = vadd.s32 12, %v13404_v3 }
  0xbd   : > { %v13649_v20 = vadd.s32 6, %v13411_v9  ;;  %vm21171_vm11 = vcmask 31744   ;;  %vm13654_vm6 = vmand %vm2052_vm14, %vm2084_vm9  ;;  %v21172_v50 = vmov 0  ;;  %v13659_v3 = vld [vmem:[%s13060_s26 + $0x236] sm:$0xff]  ;;  %v13662_v35 = vadd.s32 4294967284, %v13411_v9  ;;  %21215 = vst [vmem:[#allocation83_spill] sm:$0xff] %v13755_v53 }
  0xbe   : > { %v13640_v49 = vpop.permute.xlu0 %454  ;;  %21168 = vst [vmem:[#allocation58_spill] sm:$0xff] %v13643_v47  ;;  %21169 = vst [vmem:[#allocation59_spill] sm:$0xff] %v13646_v37  ;;  %12022 = vmatprep.mubr.msk.bf16.mxu0 %vm21171_vm11, %v1364_v4  ;;  %v21173_v50 = vsel %vm13654_vm6, 4294967295, %v21172_v50  ;;  %vm2064_vm4 = vcmp.ge.s32.totalorder %v2032_v57, 0  ;;  %vm2096_vm1 = vcmp.lt.s32.totalorder %v2032_v57, 16  ;;  %v2019_v4 = vadd.s32 6, %v13497_v23 }
  0xbf   : > { %21170 = vst [vmem:[#allocation60_spill] sm:$0xff] %v13649_v20  ;;  %v2031_v54 = vadd.s32 6, %v13640_v49  ;;  %21174 = vst [vmem:[#allocation61_spill] sm:$0xff] %v21173_v50  ;;  %vm21177_vm11 = vcmp.lt.s32.totalorder %v1213_v7, 16  ;;  %vm21178_vm0 = vcmp.ge.s32.totalorder %v1213_v7, 0  ;;  %v21179_v55 = vmov 0 }
  0xc0   : > { %21175 = vst [vmem:[#allocation62_spill] sm:$0xff] %v13659_v3  ;;  %21176 = vst [vmem:[#allocation63_spill] sm:$0xff] %v13662_v35  ;;  %vm6219_vm10 = vcmp.lt.s32.totalorder %v6155_v31, 16  ;;  %v13672_v27 = vadd.s32 12, %v13411_v9  ;;  %vm5360_vm15 = vcmp.ge.s32.totalorder %v5328_v6, 0  ;;  %vm5392_vm12 = vcmp.lt.s32.totalorder %v5328_v6, 16 }
  0xc1   : > { %vm13667_vm14 = vmand %vm21178_vm0, %vm21177_vm11  ;;  %v5327_v57 = vadd.s32 4294967284, %v13497_v23  ;;  %v13680_v7 = vld [vmem:[%s13060_s26 + $0x11c] sm:$0xff]  ;;  %vm21188_vm0 = vcmp.lt.s32.totalorder %v1212_v18, 16  ;;  %vm21189_vm11 = vcmp.ge.s32.totalorder %v1212_v18, 0  ;;  %v21190_v9 = vmov 0  ;;  %v13717_v35 = vld [vmem:[%s13060_s26 + $0x22e] sm:$0xff] }
  0xc2   : > { %v21180_v55 = vsel %vm13667_vm14, 4294967295, %v21179_v55  ;;  %21182 = vst [vmem:[#allocation65_spill] sm:$0xff] %v13672_v27  ;;  %vm13675_vm7 = vmand %vm2064_vm4, %vm2096_vm1  ;;  %v1214_v16 = vadd.s32 4294967290, %v13612_v41  ;;  %v13698_v39 = vadd.s32 6, %v13458_v43  ;;  %v13701_v18 = vadd.s32 4294967284, %v13458_v43  ;;  %v13707_v37 = vld [vmem:[%s13060_s26 + $0x19a] sm:$0xff] }
  0xc3   : > { %21181 = vst [vmem:[#allocation64_spill] sm:$0xff] %v21180_v55  ;;  %v21184_v25 = vsel %vm13675_vm7, 4294967295, %v21183_v25  ;;  %21186 = vst [vmem:[#allocation67_spill] sm:$0xff] %v13680_v7  ;;  %v13704_v27 = vadd.s32 12, %v13458_v43  ;;  %v6142_v24 = vadd.s32 12, %v13497_v23  ;;  %v13720_v47 = vld [vmem:[%s13060_s26 + $0x1d6] sm:$0xff] }
  0xc4   : > { %21185 = vst [vmem:[#allocation66_spill] sm:$0xff] %v21184_v25  ;;  %vm13687_vm9 = vmand %vm21189_vm11, %vm21188_vm0  ;;  %vm21197_vm0 = vcmp.ge.s32.totalorder %v6155_v31, 0  ;;  %v21204_v43 = vmov 0  ;;  %vm2051_vm4 = vcmp.ge.s32.totalorder %v2019_v4, 0  ;;  %vm2083_vm7 = vcmp.lt.s32.totalorder %v2019_v4, 16  ;;  %v13752_v31 = vld [vmem:[%s13060_s26 + $0x224] sm:$0xff]  ;;  %v13792_v4 = vpop.permute.xlu1 %463 }
  0xc5   : > { %v21191_v9 = vsel %vm13687_vm9, 4294967295, %v21190_v9  ;;  %21193 = vst [vmem:[#allocation70_spill] sm:$0xff] %v13698_v39  ;;  %21194 = vst [vmem:[#allocation71_spill] sm:$0xff] %v13701_v18  ;;  %v13723_v18 = vld [vmem:[%s13060_s26 + $0xa4] sm:$0xff]  ;;  %v1215_v23 = vadd.s32 4294967290, %v13606_v33  ;;  %vm21208_vm2 = vcmp.lt.s32.totalorder %v2031_v54, 16 }
  0xc6   : > { %21192 = vst [vmem:[#allocation69_spill] sm:$0xff] %v21191_v9  ;;  %21195 = vst [vmem:[#allocation72_spill] sm:$0xff] %v13704_v27  ;;  %v13736_v27 = vld [vmem:[%s13060_s26 + $0x164] sm:$0xff]  ;;  %vm21209_vm13 = vcmp.ge.s32.totalorder %v2031_v54, 0  ;;  %v21210_v6 = vmov 0  ;;  %v1340_v2 = vsel %vm13687_vm9, %v10713_v45, 0.0 }
  0xc7   : > { %21196 = vst [vmem:[#allocation73_spill] sm:$0xff] %v13707_v37  ;;  %vm13712_vm11 = vmand %vm21197_vm0, %vm6219_vm10  ;;  %vm5359_vm10 = vcmp.ge.s32.totalorder %v5327_v57, 0  ;;  %vm5391_vm0 = vcmp.lt.s32.totalorder %v5327_v57, 16  ;;  %v1341_v21 = vsel %vm13667_vm14, %v10714_v46, 0.0  ;;  %v21220_v55 = vmov 0  ;;  %v13851_v50 = vld [vmem:[%s13060_s26 + $0x234] sm:$0xff] }
  0xc8   : > { %v21199_v12 = vsel %vm13712_vm11, 4294967295, %v21198_v12  ;;  %21201 = vst [vmem:[#allocation75_spill] sm:$0xff] %v13717_v35  ;;  %21202 = vst [vmem:[#allocation76_spill] sm:$0xff] %v13720_v47  ;;  %v1365_v39 = vpack.c.bf16 %v1341_v21, %v1340_v2  ;;  %v21216_v21 = vmov 0  ;;  %v13779_v2 = vld [vmem:[%s13060_s26 + $0x1ce] sm:$0xff]  ;;  %v2024_v9 = vadd.s32 6, %v13514_v60 }
  0xc9   : > { %21200 = vst [vmem:[#allocation74_spill] sm:$0xff] %v21199_v12  ;;  %21203 = vst [vmem:[#allocation77_spill] sm:$0xff] %v13723_v18  ;;  %v5332_v45 = vadd.s32 4294967284, %v13514_v60  ;;  %v1217_v57 = vadd.s32 4294967290, %v13636_v59  ;;  %v13822_v54 = vadd.s32 4294967284, %v13500_v26  ;;  %v21234_v46 = vmov 0 }
  0xca   : > { %vm13727_vm1 = vmand %vm5360_vm15, %vm5392_vm12  ;;  %21207 = vst [vmem:[#allocation79_spill] sm:$0xff] %v13736_v27  ;;  %v10715_v27 = vld [vmem:[%s13060_s26 + $0x152] sm:$0xff]  ;;  %vm6174_vm12 = vcmp.ge.s32.totalorder %v6142_v24, 0  ;;  %vm6206_vm15 = vcmp.lt.s32.totalorder %v6142_v24, 16  ;;  %v1216_v24 = vadd.s32 4294967290, %v13640_v49  ;;  %vm2088_vm6 = vcmp.lt.s32.totalorder %v2024_v9, 16 }
  0xcb   : > { %v21205_v43 = vsel %vm13727_vm1, 4294967295, %v21204_v43  ;;  %vm13740_vm8 = vmand %vm21209_vm13, %vm21208_vm2  ;;  %21214 = vst [vmem:[#allocation82_spill] sm:$0xff] %v13752_v31  ;;  %v10716_v31 = vld [vmem:[%s13060_s26 + $0x15a] sm:$0xff]  ;;  %v2023_v60 = vadd.s32 6, %v13546_v62  ;;  %v5331_v52 = vadd.s32 4294967284, %v13546_v62  ;;  %vm1249_vm1 = vcmp.ge.s32.totalorder %v1217_v57, 0 }
  0xcc   : > { %21206 = vst [vmem:[#allocation78_spill] sm:$0xff] %v21205_v43  ;;  %v21211_v6 = vsel %vm13740_vm8, 4294967295, %v21210_v6  ;;  %vm13774_vm13 = vmand %vm2051_vm4, %vm2083_vm7  ;;  %vm21223_vm7 = vcmask 31744   ;;  %v13845_v43 = vld [vmem:[%s13060_s26 + $0x174] sm:$0xff]  ;;  %v13894_v17 = vadd.s32 4294967284, %v13522_v13  ;;  %vm21265_vm14 = vcmp.ge.s32.totalorder %v1216_v24, 0 }
  0xcd   : > { %21212 = vst [vmem:[#allocation80_spill] sm:$0xff] %v21211_v6  ;;  %v21217_v21 = vsel %vm13774_vm13, 4294967295, %v21216_v21  ;;  %21219 = vst [vmem:[#allocation85_spill] sm:$0xff] %v13779_v2  ;;  %12023 = vmatmul.mubr.msk.bf16.gmra.mxu0 %vm21223_vm7, %v1365_v39  ;;  %v21227_v39 = vmov 0  ;;  %v14058_v53 = vadd.s32 6, %v13567_v58  ;;  %v21310_v22 = vmov 0 }
  0xce   : > { %21218 = vst [vmem:[#allocation84_spill] sm:$0xff] %v21217_v21  ;;  %vm13786_vm2 = vmand %vm5359_vm10, %vm5391_vm0  ;;  %vm21225_vm10 = vcmp.lt.s32.totalorder %v1214_v16, 16  ;;  %vm21226_vm0 = vcmp.ge.s32.totalorder %v1214_v16, 0  ;;  %v13819_v16 = vadd.s32 6, %v13500_v26  ;;  %v13857_v21 = vpop.permute.xlu1 %469  ;;  %v14211_v0 = vadd.s32 12, %v13606_v33  ;;  %v14398_v6 = vld [vmem:[%s13060_s26 + $0x1a2] sm:$0xff] }
  0xcf   : > { %v21221_v55 = vsel %vm13786_vm2, 4294967295, %v21220_v55  ;;  %vm13806_vm7 = vmand %vm21226_vm0, %vm21225_vm10  ;;  %21231 = vst [vmem:[#allocation89_spill] sm:$0xff] %v13822_v54  ;;  %vm21232_vm10 = vcmp.lt.s32.totalorder %v1215_v23, 16  ;;  %vm21233_vm0 = vcmp.ge.s32.totalorder %v1215_v23, 0  ;;  %v21238_v23 = vmov 0  ;;  %v13878_v54 = vld [vmem:[%s13060_s26 + $0xc4] sm:$0xff] }
  0xd0   : > { %21222 = vst [vmem:[#allocation86_spill] sm:$0xff] %v21221_v55  ;;  %v21228_v39 = vsel %vm13806_vm7, 4294967295, %v21227_v39  ;;  %21230 = vst [vmem:[#allocation88_spill] sm:$0xff] %v13819_v16  ;;  %v1342_v18 = vsel %vm13806_vm7, %v10715_v27, 0.0  ;;  %v21244_v55 = vmov 0  ;;  %v6159_v37 = vadd.s32 12, %v13857_v21 }
  0xd1   : > { %21229 = vst [vmem:[#allocation87_spill] sm:$0xff] %v21228_v39  ;;  %vm13826_vm4 = vmand %vm21233_vm0, %vm21232_vm10  ;;  %vm2055_vm0 = vcmp.ge.s32.totalorder %v2023_v60, 0  ;;  %v21330_v16 = vmov 0  ;;  %v21359_v48 = vmov 0  ;;  %v14365_v47 = vadd.s32 6, %v13792_v4  ;;  %v14467_v20 = vld [vmem:[%s13060_s26 + $0x2fc] sm:$0xff] }
  0xd2   : > { %v21235_v46 = vsel %vm13826_vm4, 4294967295, %v21234_v46  ;;  %vm13840_vm13 = vmand %vm6174_vm12, %vm6206_vm15  ;;  %21241 = vst [vmem:[#allocation93_spill] sm:$0xff] %v13845_v43  ;;  %vm1281_vm12 = vcmp.lt.s32.totalorder %v1217_v57, 16  ;;  %v1343_v27 = vsel %vm13826_vm4, %v10716_v31, 0.0  ;;  %vm21243_vm15 = vcmp.ge.s32.totalorder %v2024_v9, 0  ;;  %v13922_v57 = vld [vmem:[%s13060_s26 + $0x162] sm:$0xff] }
  0xd3   : > { %21236 = vst [vmem:[#allocation90_spill] sm:$0xff] %v21235_v46  ;;  %v21239_v23 = vsel %vm13840_vm13, 4294967295, %v21238_v23  ;;  %21242 = vst [vmem:[#allocation94_spill] sm:$0xff] %v13851_v50  ;;  %v1366_v56 = vpack.c.bf16 %v1343_v27, %v1342_v18  ;;  %v21251_v18 = vmov 0  ;;  %v6146_v27 = vadd.s32 12, %v13546_v62  ;;  %v13900_v50 = vld [vmem:[%s13060_s26 + $0x184] sm:$0xff] }
  0xd4   : > { %21240 = vst [vmem:[#allocation92_spill] sm:$0xff] %v21239_v23  ;;  %vm13860_vm7 = vmand %vm21243_vm15, %vm2088_vm6  ;;  %vm21249_vm6 = vcmp.lt.s32.totalorder %v5332_v45, 16  ;;  %vm21250_vm15 = vcmp.ge.s32.totalorder %v5332_v45, 0  ;;  %v13888_v31 = vadd.s32 12, %v13500_v26  ;;  %v13891_v9 = vadd.s32 6, %v13522_v13  ;;  %v13925_v43 = vld [vmem:[%s13060_s26 + $0x16a] sm:$0xff] }
  0xd5   : > { %v21245_v55 = vsel %vm13860_vm7, 4294967295, %v21244_v55  ;;  %21248 = vst [vmem:[#allocation97_spill] sm:$0xff] %v13878_v54  ;;  %vm13882_vm10 = vmand %vm21250_vm15, %vm21249_vm6  ;;  %v13897_v45 = vadd.s32 12, %v13522_v13  ;;  %v21260_v62 = vmov 0  ;;  %vm21263_vm15 = vcmask 31744   ;;  %v13931_v23 = vld [vmem:[%s13060_s26 + $0x25c] sm:$0xff] }
  0xd6   : > { %21246 = vst [vmem:[#allocation95_spill] sm:$0xff] %v21245_v55  ;;  %v21252_v18 = vsel %vm13882_vm10, 4294967295, %v21251_v18  ;;  %21254 = vst [vmem:[#allocation99_spill] sm:$0xff] %v13888_v31  ;;  %12026 = vmatprep.mubr.msk.bf16.mxu0 %vm21263_vm15, %v1366_v56  ;;  %vm2087_vm13 = vcmp.lt.s32.totalorder %v2023_v60, 16  ;;  %vm21264_vm4 = vcmp.lt.s32.totalorder %v1216_v24, 16  ;;  %v21266_v13 = vmov 0  ;;  %v13938_v55 = vpop.permute.xlu0 %460 }
  0xd7   : > { %21253 = vst [vmem:[#allocation98_spill] sm:$0xff] %v21252_v18  ;;  %21255 = vst [vmem:[#allocation100_spill] sm:$0xff] %v13891_v9  ;;  %v13928_v56 = vld [vmem:[%s13060_s26 + $0x244] sm:$0xff]  ;;  %v2028_v26 = vadd.s32 6, %v13573_v10  ;;  %vm6223_vm15 = vcmp.lt.s32.totalorder %v6159_v37, 16  ;;  %v13941_v31 = vld [vmem:[%s13060_s26 + $0x13c] sm:$0xff] }
  0xd8   : > { %21256 = vst [vmem:[#allocation101_spill] sm:$0xff] %v13894_v17  ;;  %21257 = vst [vmem:[#allocation102_spill] sm:$0xff] %v13897_v45  ;;  %v5336_v45 = vadd.s32 4294967284, %v13573_v10  ;;  %v21272_v46 = vmov 0  ;;  %v13953_v24 = vld [vmem:[%s13060_s26 + $0x1ee] sm:$0xff]  ;;  %v1219_v54 = vadd.s32 4294967290, %v13792_v4 }
  0xd9   : > { %21258 = vst [vmem:[#allocation103_spill] sm:$0xff] %v13900_v50  ;;  %vm13907_vm6 = vmand %vm1249_vm1, %vm1281_vm12  ;;  %vm5395_vm1 = vcmp.lt.s32.totalorder %v5331_v52, 16  ;;  %vm6191_vm12 = vcmp.ge.s32.totalorder %v6159_v37, 0  ;;  %v21280_v60 = vmov 0  ;;  %v13985_v17 = vadd.s32 6, %v13560_v29  ;;  %v14003_v18 = vld [vmem:[%s13060_s26 + $0x194] sm:$0xff] }
  0xda   : > { %v21261_v62 = vsel %vm13907_vm6, 4294967295, %v21260_v62  ;;  %vm13917_vm9 = vmand %vm21265_vm14, %vm21264_vm4  ;;  %21269 = vst [vmem:[#allocation107_spill] sm:$0xff] %v13928_v56  ;;  %v1345_v9 = vsel %vm13907_vm6, %v13925_v43, 0.0  ;;  %v13994_v56 = vld [vmem:[%s13060_s26 + $0xd4] sm:$0xff]  ;;  %v14009_v50 = vadd.s32 4294967284, %v13560_v29  ;;  %v2027_v37 = vadd.s32 6, %v13596_v63 }
  0xdb   : > { %21262 = vst [vmem:[#allocation105_spill] sm:$0xff] %v21261_v62  ;;  %v21267_v13 = vsel %vm13917_vm9, 4294967295, %v21266_v13  ;;  %21270 = vst [vmem:[#allocation108_spill] sm:$0xff] %v13931_v23  ;;  %v1344_v10 = vsel %vm13917_vm9, %v13922_v57, 0.0  ;;  %v21276_v62 = vmov 0  ;;  %vm1283_vm7 = vcmp.lt.s32.totalorder %v1219_v54, 16 }
  0xdc   : > { %21268 = vst [vmem:[#allocation106_spill] sm:$0xff] %v21267_v13  ;;  %21271 = vst [vmem:[#allocation109_spill] sm:$0xff] %v13941_v31  ;;  %v1218_v13 = vadd.s32 4294967290, %v13938_v55  ;;  %v1367_v34 = vpack.c.bf16 %v1345_v9, %v1344_v10  ;;  %v14016_v31 = vadd.s32 12, %v13560_v29  ;;  %v21296_v9 = vmov 0  ;;  %v14024_v10 = vpop.permute.xlu0 %466  ;;  %v14237_v23 = vld [vmem:[%s13060_s26 + $0x1c4] sm:$0xff] }
  0xdd   : > { %vm13948_vm2 = vmand %vm2055_vm0, %vm2087_vm13  ;;  %vm21279_vm0 = vcmp.ge.s32.totalorder %v5331_v52, 0  ;;  %21283 = vst [vmem:[#allocation113_spill] sm:$0xff] %v13985_v17  ;;  %v21287_v52 = vmov 0  ;;  %v14006_v17 = vld [vmem:[%s13060_s26 + $0x254] sm:$0xff]  ;;  %vm21299_vm10 = vcmask 31744   ;;  %v5335_v29 = vadd.s32 4294967284, %v13596_v63 }
  0xde   : > { %v21273_v46 = vsel %vm13948_vm2, 4294967295, %v21272_v46  ;;  %vm13974_vm13 = vmand %vm6191_vm12, %vm6223_vm15  ;;  %21284 = vst [vmem:[#allocation114_spill] sm:$0xff] %v13994_v56  ;;  %vm21285_vm12 = vcmp.lt.s32.totalorder %v6146_v27, 16  ;;  %12027 = vmatmul.mubr.msk.bf16.gmra.mxu0 %vm21299_vm10, %v1367_v34  ;;  %vm21302_vm10 = vcmp.lt.s32.totalorder %v5336_v45, 16  ;;  %v21304_v34 = vmov 0  ;;  %v14061_v56 = vld [vmem:[%s13060_s26 + $0x1a4] sm:$0xff] }
  0xdf   : > { %21274 = vst [vmem:[#allocation110_spill] sm:$0xff] %v21273_v46  ;;  %v21277_v62 = vsel %vm13974_vm13, 4294967295, %v21276_v62  ;;  %vm13980_vm4 = vmand %vm21279_vm0, %vm5395_vm1  ;;  %vm21286_vm1 = vcmp.ge.s32.totalorder %v6146_v27, 0  ;;  %v14027_v46 = vpop.permute.xlu1 %475  ;;  %vm2059_vm14 = vcmp.ge.s32.totalorder %v2027_v37, 0  ;;  %vm2091_vm2 = vcmp.lt.s32.totalorder %v2027_v37, 16 }
  0xe0   : > { %21278 = vst [vmem:[#allocation111_spill] sm:$0xff] %v21277_v62  ;;  %v21281_v60 = vsel %vm13980_vm4, 4294967295, %v21280_v60  ;;  %vm13998_vm15 = vmand %vm21286_vm1, %vm21285_vm12  ;;  %vm21294_vm12 = vcmp.lt.s32.totalorder %v2028_v26, 16  ;;  %vm21295_vm1 = vcmp.ge.s32.totalorder %v2028_v26, 0  ;;  %v14071_v26 = vadd.s32 4294967284, %v13567_v58  ;;  %v14886_v62 = vld [vmem:[%s13060_s26 + $0x204] sm:$0xff] }
  0xe1   : > { %21282 = vst [vmem:[#allocation112_spill] sm:$0xff] %v21281_v60  ;;  %v21288_v52 = vsel %vm13998_vm15, 4294967295, %v21287_v52  ;;  %21290 = vst [vmem:[#allocation116_spill] sm:$0xff] %v14003_v18  ;;  %v5340_v27 = vadd.s32 4294967284, %v13636_v59  ;;  %vm21314_vm15 = vcmp.lt.s32.totalorder %v1218_v13, 16  ;;  %vm21315_vm4 = vcmp.ge.s32.totalorder %v1218_v13, 0  ;;  %v14086_v18 = vpop.f32.mrf.mxu1 }
  0xe2   : > { %21289 = vst [vmem:[#allocation115_spill] sm:$0xff] %v21288_v52  ;;  %21291 = vst [vmem:[#allocation117_spill] sm:$0xff] %v14006_v17  ;;  %v21316_v17 = vmov 0  ;;  %v14089_v52 = vadd.s32 12, %v13567_v58  ;;  %v1220_v60 = vadd.s32 4294967290, %v14024_v10  ;;  %v1221_v58 = vadd.s32 4294967290, %v13857_v21 }
  0xe3   : > { %21292 = vst [vmem:[#allocation118_spill] sm:$0xff] %v14009_v50  ;;  %21293 = vst [vmem:[#allocation119_spill] sm:$0xff] %v14016_v31  ;;  %v14042_v31 = vld [vmem:[%s13060_s26 + $0xe4] sm:$0xff]  ;;  %v14102_v50 = vld [vmem:[%s13060_s26 + $0x1bc] sm:$0xff]  ;;  %v21325_v13 = vmov 0  ;;  %v14128_v37 = vpop.permute.xlu1 %481  ;;  %v14131_v39 = vpop.f32.mrf.mxu1  ;;  %v1223_v14 = vadd.s32 4294967290, %v14027_v46 }
  0xe4   : > { %vm14020_vm0 = vmand %vm21295_vm1, %vm21294_vm12  ;;  %21301 = vst [vmem:[#allocation122_spill] sm:$0xff] %v14042_v31  ;;  %vm21303_vm12 = vcmp.ge.s32.totalorder %v5336_v45, 0  ;;  %v6150_v45 = vadd.s32 12, %v13596_v63  ;;  %v14081_v63 = vld [vmem:[%s13060_s26 + $0x172] sm:$0xff]  ;;  %v14371_v12 = vadd.s32 4294967284, %v13857_v21  ;;  %vm21518_vm13 = vcmask 31744  }
  0xe5   : > { %v21297_v9 = vsel %vm14020_vm0, 4294967295, %v21296_v9  ;;  %vm14046_vm1 = vmand %vm21303_vm12, %vm21302_vm10  ;;  %21307 = vst [vmem:[#allocation124_spill] sm:$0xff] %v14058_v53  ;;  %vm21309_vm10 = vcmp.ge.s32.totalorder %v1219_v54, 0  ;;  %v14084_v54 = vld [vmem:[%s13060_s26 + $0x17a] sm:$0xff]  ;;  %v14105_v53 = vld [vmem:[%s13060_s26 + $0x264] sm:$0xff]  ;;  %vm1287_vm11 = vcmp.lt.s32.totalorder %v1223_v14, 16 }
  0xe6   : > { %21298 = vst [vmem:[#allocation120_spill] sm:$0xff] %v21297_v9  ;;  %v21305_v34 = vsel %vm14046_vm1, 4294967295, %v21304_v34  ;;  %21308 = vst [vmem:[#allocation125_spill] sm:$0xff] %v14061_v56  ;;  %v14118_v59 = vld [vmem:[%s13060_s26 + $0x20e] sm:$0xff]  ;;  %v6163_v9 = vadd.s32 12, %v14128_v37  ;;  %vm21335_vm1 = vcmp.ge.s32.totalorder %v6150_v45, 0 }
  0xe7   : > { %21306 = vst [vmem:[#allocation123_spill] sm:$0xff] %v21305_v34  ;;  %vm14066_vm12 = vmand %vm21309_vm10, %vm1283_vm7  ;;  %vm5367_vm7 = vcmp.ge.s32.totalorder %v5335_v29, 0  ;;  %vm21344_vm10 = vcmp.ge.s32.totalorder %v5340_v27, 0  ;;  %v6154_v34 = vadd.s32 12, %v13640_v49 }
  0xe8   : > { %v21311_v22 = vsel %vm14066_vm12, 4294967295, %v21310_v22  ;;  %21313 = vst [vmem:[#allocation127_spill] sm:$0xff] %v14071_v26  ;;  %vm14076_vm6 = vmand %vm21315_vm4, %vm21314_vm15  ;;  %vm5399_vm4 = vcmp.lt.s32.totalorder %v5335_v29, 16  ;;  %v14120_v26 = vpop.permute.xlu0 %472  ;;  %v1347_v31 = vsel %vm14066_vm12, %v14084_v54, 0.0  ;;  %vm21334_vm12 = vcmp.lt.s32.totalorder %v6150_v45, 16 }
  0xe9   : > { %21312 = vst [vmem:[#allocation126_spill] sm:$0xff] %v21311_v22  ;;  %v21317_v17 = vsel %vm14076_vm6, 4294967295, %v21316_v17  ;;  %21319 = vst [vmem:[#allocation129_spill] sm:$0xff] %v14081_v63  ;;  %v1346_v56 = vsel %vm14076_vm6, %v14081_v63, 0.0  ;;  %v21336_v29 = vmov 0  ;;  %v14161_v22 = vld [vmem:[%s13060_s26 + $0x1b4] sm:$0xff] }
  0xea   : > { %21318 = vst [vmem:[#allocation128_spill] sm:$0xff] %v21317_v17  ;;  %21320 = vst [vmem:[#allocation130_spill] sm:$0xff] %v14084_v54  ;;  %v1368_v61 = vpack.c.bf16 %v1347_v31, %v1346_v56  ;;  %v14152_v17 = vld [vmem:[%s13060_s26 + $0xf4] sm:$0xff]  ;;  %v14168_v56 = vadd.s32 6, %v13606_v33  ;;  %v21345_v45 = vmov 0 }
  0xeb   : > { %21321 = vst [vmem:[#allocation131_spill] sm:$0xff] %v14089_v52  ;;  %21322 = vst [vmem:[#allocation132_spill] sm:$0xff] %v14102_v50  ;;  %v14109_v52 = vld [vmem:[%s13060_s26 + $0x27c] sm:$0xff]  ;;  %v14165_v31 = vld [vmem:[%s13060_s26 + $0x274] sm:$0xff] }
  0xec   : > { %21323 = vst [vmem:[#allocation133_spill] sm:$0xff] %v14105_v53  ;;  %21324 = vst [vmem:[#allocation134_spill] sm:$0xff] %v14109_v52  ;;  %v5339_v53 = vadd.s32 4294967284, %v13640_v49  ;;  %v14234_v49 = vadd.s32 4294967284, %v13612_v41  ;;  %v14380_v52 = vld [vmem:[%s13060_s26 + $0x19a] sm:$0xff] }
  0xed   : > { %vm14113_vm15 = vmand %vm2059_vm14, %vm2091_vm2  ;;  %21328 = vst [vmem:[#allocation136_spill] sm:$0xff] %v14118_v59  ;;  %vm21340_vm2 = vcmask 31744   ;;  %vm21343_vm14 = vcmp.lt.s32.totalorder %v5340_v27, 16  ;;  %v14184_v27 = vadd.s32 4294967284, %v13606_v33  ;;  %v21351_v59 = vmov 0 }
  0xee   : > { %v21326_v13 = vsel %vm14113_vm15, 4294967295, %v21325_v13  ;;  %vm14141_vm0 = vmand %vm5367_vm7, %vm5399_vm4  ;;  %21333 = vst [vmem:[#allocation138_spill] sm:$0xff] %v14152_v17  ;;  %vm1253_vm7 = vcmp.ge.s32.totalorder %v1221_v58, 0  ;;  %vm1285_vm4 = vcmp.lt.s32.totalorder %v1221_v58, 16  ;;  %12030 = vmatprep.mubr.msk.bf16.mxu0 %vm21340_vm2, %v1368_v61  ;;  %vm21350_vm2 = vcmp.ge.s32.totalorder %v1220_v60, 0  ;;  %v14199_v61 = vpop.f32.mrf.mxu1  ;;  %v14225_v17 = vpop.permute.xlu0 %478 }
  0xef   : > { %21327 = vst [vmem:[#allocation135_spill] sm:$0xff] %v21326_v13  ;;  %v21331_v16 = vsel %vm14141_vm0, 4294967295, %v21330_v16  ;;  %vm14156_vm6 = vmand %vm21335_vm1, %vm21334_vm12  ;;  %vm6195_vm1 = vcmp.ge.s32.totalorder %v6163_v9, 0  ;;  %vm6227_vm12 = vcmp.lt.s32.totalorder %v6163_v9, 16  ;;  %v14194_v13 = vld [vmem:[%s13060_s26 + $0x15c] sm:$0xff]  ;;  %v14231_v33 = vadd.s32 6, %v13612_v41 }
  0xf0   : > { %21332 = vst [vmem:[#allocation137_spill] sm:$0xff] %v21331_v16  ;;  %v21337_v29 = vsel %vm14156_vm6, 4294967295, %v21336_v29  ;;  %21339 = vst [vmem:[#allocation140_spill] sm:$0xff] %v14161_v22  ;;  %v1222_v58 = vadd.s32 4294967290, %v14120_v26  ;;  %v21365_v22 = vmov 0  ;;  %v14247_v16 = vld [vmem:[%s13060_s26 + $0x18a] sm:$0xff]  ;;  %v14271_v42 = vpop.f32.mrf.mxu1 }
  0xf1   : > { %21338 = vst [vmem:[#allocation139_spill] sm:$0xff] %v21337_v29  ;;  %21341 = vst [vmem:[#allocation141_spill] sm:$0xff] %v14165_v31  ;;  %v14250_v29 = vld [vmem:[%s13060_s26 + $0x1dc] sm:$0xff]  ;;  %v1225_v31 = vadd.s32 4294967290, %v14128_v37 }
  0xf2   : > { %21342 = vst [vmem:[#allocation142_spill] sm:$0xff] %v14168_v56  ;;  %vm14172_vm15 = vmand %vm21344_vm10, %vm21343_vm14  ;;  %vm21349_vm10 = vcmp.lt.s32.totalorder %v1220_v60, 16  ;;  %v14197_v56 = vld [vmem:[%s13060_s26 + $0x182] sm:$0xff]  ;;  %v14322_v28 = vpop.permute.xlu0 %484  ;;  %v21541_v7 = vld [vmem:[#allocation130_spill] sm:$0xff] }
  0xf3   : > { %v21346_v45 = vsel %vm14172_vm15, 4294967295, %v21345_v45  ;;  %21348 = vst [vmem:[#allocation144_spill] sm:$0xff] %v14184_v27  ;;  %vm14189_vm14 = vmand %vm21350_vm2, %vm21349_vm10  ;;  %v14217_v27 = vld [vmem:[%s13060_s26 + $0x104] sm:$0xff]  ;;  %vm5403_vm2 = vcmp.lt.s32.totalorder %v5339_v53, 16  ;;  %v1226_v50 = vadd.s32 4294967290, %v14322_v28 }
  0xf4   : > { %21347 = vst [vmem:[#allocation143_spill] sm:$0xff] %v21346_v45  ;;  %v21352_v59 = vsel %vm14189_vm14, 4294967295, %v21351_v59  ;;  %21354 = vst [vmem:[#allocation146_spill] sm:$0xff] %v14194_v13  ;;  %v14253_v60 = vld [vmem:[%s13060_s26 + $0x284] sm:$0xff]  ;;  %v1348_v9 = vsel %vm14189_vm14, %v14197_v56, 0.0  ;;  %vm1255_vm14 = vcmp.ge.s32.totalorder %v1223_v14, 0 }
  0xf5   : > { %21353 = vst [vmem:[#allocation145_spill] sm:$0xff] %v21352_v59  ;;  %21355 = vst [vmem:[#allocation147_spill] sm:$0xff] %v14197_v56  ;;  %vm1258_vm0 = vcmp.ge.s32.totalorder %v1226_v50, 0 }
  0xf6   : > { %21356 = vst [vmem:[#allocation148_spill] sm:$0xff] %v14211_v0  ;;  %21358 = vst [vmem:[#allocation150_spill] sm:$0xff] %v14217_v27  ;;  %v14262_v0 = vadd.s32 12, %v13612_v41  ;;  %v21377_v41 = vmov 0  ;;  %v14296_v27 = vpop.f32.mrf.mxu1  ;;  %v491_v14 = vpop.permute.xlu0 %490 }
  0xf7   : > { %vm14221_vm10 = vmand %vm1253_vm7, %vm1285_vm4  ;;  %21362 = vst [vmem:[#allocation152_spill] sm:$0xff] %v14231_v33  ;;  %v14268_v33 = vld [vmem:[%s13060_s26 + $0x16e] sm:$0xff]  ;;  %vm1290_vm4 = vcmp.lt.s32.totalorder %v1226_v50, 16  ;;  %v21419_v50 = vmov 0  ;;  %v5351_v1 = vadd.s32 4294967284, %v491_v14  ;;  %v6166_v56 = vadd.s32 12, %v491_v14 }
  0xf8   : > { %v21360_v48 = vsel %vm14221_vm10, 4294967295, %v21359_v48  ;;  %21363 = vst [vmem:[#allocation153_spill] sm:$0xff] %v14234_v49  ;;  %21364 = vst [vmem:[#allocation154_spill] sm:$0xff] %v14237_v23  ;;  %v14265_v49 = vld [vmem:[%s13060_s26 + $0x29c] sm:$0xff]  ;;  %v1224_v23 = vadd.s32 4294967290, %v14225_v17  ;;  %v14359_v5 = vpop.f32.mrf.mxu1 }
  0xf9   : > { %21361 = vst [vmem:[#allocation151_spill] sm:$0xff] %v21360_v48  ;;  %vm14242_vm7 = vmand %vm6195_vm1, %vm6227_vm12  ;;  %vm21376_vm1 = vcmp.ge.s32.totalorder %v5339_v53, 0  ;;  %v14320_v48 = vld [vmem:[%s13060_s26 + $0x1d4] sm:$0xff]  ;;  %v21393_v53 = vmov 0 }
  0xfa   : > { %v21366_v22 = vsel %vm14242_vm7, 4294967295, %v21365_v22  ;;  %21368 = vst [vmem:[#allocation156_spill] sm:$0xff] %v14247_v16  ;;  %21369 = vst [vmem:[#allocation157_spill] sm:$0xff] %v14250_v29  ;;  %v21643_v30 = vld [vmem:[#allocation142_spill] sm:$0xff] }
  0xfb   : > { %21367 = vst [vmem:[#allocation155_spill] sm:$0xff] %v21366_v22  ;;  %21370 = vst [vmem:[#allocation158_spill] sm:$0xff] %v14253_v60  ;;  %v14285_v22 = vpop.permute.xlu1 %487  ;;  %v14328_v60 = vld [vmem:[%s13060_s26 + $0x294] sm:$0xff] }
  0xfc   : > { %21371 = vst [vmem:[#allocation159_spill] sm:$0xff] %v14262_v0  ;;  %21372 = vst [vmem:[#allocation160_spill] sm:$0xff] %v14265_v49  ;;  %v1349_v0 = vsel %vm14221_vm10, %v14247_v16, 0.0  ;;  %vm21390_vm10 = vcmask 31744   ;;  %v1227_v45 = vadd.s32 4294967290, %v14285_v22  ;;  %v14452_v16 = vld [vmem:[%s13060_s26 + $0x2e4] sm:$0xff] }
  0xfd   : > { %21373 = vst [vmem:[#allocation161_spill] sm:$0xff] %v14268_v33  ;;  %21375 = vst [vmem:[#allocation162_spill] sm:$0xff] %v14285_v22  ;;  %v1369_v59 = vpack.c.bf16 %v1349_v0, %v1348_v9  ;;  %v14311_v0 = vld [vmem:[%s13060_s26 + $0x114] sm:$0xff]  ;;  %v21384_v9 = vmov 0  ;;  %v14383_v33 = vadd.s32 6, %v14024_v10  ;;  %v21412_v22 = vmov 0 }
  0xfe   : > { %vm14292_vm12 = vmand %vm21376_vm1, %vm5403_vm2  ;;  %21380 = vst [vmem:[#allocation164_spill] sm:$0xff] %v14296_v27  ;;  %vm21382_vm2 = vcmp.lt.s32.totalorder %v6154_v34, 16  ;;  %vm21383_vm1 = vcmp.ge.s32.totalorder %v6154_v34, 0  ;;  %v14368_v34 = vadd.s32 6, %v13857_v21  ;;  %vm21418_vm9 = vcmp.ge.s32.totalorder %v1227_v45, 0  ;;  %v14435_v27 = vld [vmem:[%s13060_s26 + $0x164] sm:$0xff] }
  0xff   : > { %v21378_v41 = vsel %vm14292_vm12, 4294967295, %v21377_v41  ;;  %21381 = vst [vmem:[#allocation165_spill] sm:$0xff] %v14311_v0  ;;  %vm14315_vm6 = vmand %vm21383_vm1, %vm21382_vm2  ;;  %12031 = vmatmul.mubr.msk.bf16.gmra.mxu0 %vm21390_vm10, %v1369_v59  ;;  %vm21391_vm2 = vcmp.lt.s32.totalorder %v1222_v58, 16  ;;  %vm21392_vm1 = vcmp.ge.s32.totalorder %v1222_v58, 0  ;;  %v14347_v59 = vld [vmem:[%s13060_s26 + $0x192] sm:$0xff]  ;;  %v21399_v58 = vmov 0  ;;  %v494_v0 = vpop.permute.xlu1 %493 }
 0x100   : > { %21379 = vst [vmem:[#allocation163_spill] sm:$0xff] %v21378_v41  ;;  %v21385_v9 = vsel %vm14315_vm6, 4294967295, %v21384_v9  ;;  %21387 = vst [vmem:[#allocation167_spill] sm:$0xff] %v14320_v48  ;;  %vm1256_vm6 = vcmp.ge.s32.totalorder %v1224_v23, 0  ;;  %vm1288_vm12 = vcmp.lt.s32.totalorder %v1224_v23, 16  ;;  %v14391_v48 = vpop.f32.mrf.mxu1  ;;  %v2044_v41 = vadd.s32 6, %v494_v0 }
 0x101   : > { %21386 = vst [vmem:[#allocation166_spill] sm:$0xff] %v21385_v9  ;;  %21388 = vst [vmem:[#allocation168_spill] sm:$0xff] %v14322_v28  ;;  %v5352_v25 = vadd.s32 4294967284, %v494_v0  ;;  %v6167_v2 = vadd.s32 12, %v494_v0  ;;  %v2043_v28 = vadd.s32 6, %v491_v14  ;;  %v14423_v23 = vld [vmem:[%s13060_s26 + $0x296] sm:$0xff] }
 0x102   : > { %21389 = vst [vmem:[#allocation169_spill] sm:$0xff] %v14328_v60  ;;  %vm14340_vm15 = vmand %vm21392_vm1, %vm21391_vm2  ;;  %vm1257_vm2 = vcmp.ge.s32.totalorder %v1225_v31, 0  ;;  %vm1289_vm1 = vcmp.lt.s32.totalorder %v1225_v31, 16  ;;  %v1229_v31 = vadd.s32 4294967290, %v494_v0  ;;  %v1228_v0 = vadd.s32 4294967290, %v491_v14 }
 0x103   : > { %v21394_v53 = vsel %vm14340_vm15, 4294967295, %v21393_v53  ;;  %21396 = vst [vmem:[#allocation171_spill] sm:$0xff] %v14347_v59  ;;  %21397 = vst [vmem:[#allocation172_spill] sm:$0xff] %v14359_v5  ;;  %v1350_v60 = vsel %vm14340_vm15, %v14347_v59, 0.0  ;;  %vm21417_vm15 = vcmp.lt.s32.totalorder %v1227_v45, 16  ;;  %v14449_v59 = vld [vmem:[%s13060_s26 + $0x224] sm:$0xff] }
 0x104   : > { %21395 = vst [vmem:[#allocation170_spill] sm:$0xff] %v21394_v53  ;;  %21398 = vst [vmem:[#allocation173_spill] sm:$0xff] %v14365_v47  ;;  %v21404_v53 = vmov 0  ;;  %v14401_v47 = vld [vmem:[%s13060_s26 + $0x1aa] sm:$0xff]  ;;  %v11382_v5 = vld [vmem:[%s13060_s26 + $0x23c] sm:$0xff]  ;;  %v2039_v49 = vadd.s32 6, %v14225_v17 }
 0x105   : > { %vm14375_vm10 = vmand %vm1255_vm14, %vm1287_vm11  ;;  %21402 = vst [vmem:[#allocation175_spill] sm:$0xff] %v14380_v52 }
 0x106   : > { %v21400_v58 = vsel %vm14375_vm10, 4294967295, %v21399_v58  ;;  %v1351_v21 = vsel %vm14375_vm10, %v14380_v52, 0.0  ;;  %21403 = vst [vmem:[#allocation176_spill] sm:$0xff] %v14391_v48  ;;  %vm14393_vm8 = vmand %vm1257_vm2, %vm1289_vm1  ;;  %v14426_v48 = vld [vmem:[%s13060_s26 + $0x1b2] sm:$0xff]  ;;  %v14438_v52 = vld [vmem:[%s13060_s26 + $0x17c] sm:$0xff]  ;;  %vm21423_vm1 = vcmp.lt.s32.totalorder %v1229_v31, 16 }
 0x107   : > { %21401 = vst [vmem:[#allocation174_spill] sm:$0xff] %v21400_v58  ;;  %v21405_v53 = vsel %vm14393_vm8, 4294967295, %v21404_v53  ;;  %v1370_v9 = vpack.c.bf16 %v1351_v21, %v1350_v60  ;;  %21407 = vst [vmem:[#allocation178_spill] sm:$0xff] %v14398_v6  ;;  %v21409_v58 = vmov 0  ;;  %v14410_v60 = vld [vmem:[%s13060_s26 + $0x1d6] sm:$0xff]  ;;  %v14413_v21 = vld [vmem:[%s13060_s26 + $0x28a] sm:$0xff] }
 0x108   : > { %21406 = vst [vmem:[#allocation177_spill] sm:$0xff] %v21405_v53  ;;  %21408 = vst [vmem:[#allocation179_spill] sm:$0xff] %v14401_v47  ;;  %vm21424_vm10 = vcmp.ge.s32.totalorder %v1229_v31, 0 }
 0x109   : > { %vm14405_vm11 = vmand %vm1256_vm6, %vm1288_vm12  ;;  %vm21415_vm6 = vcmask 31744   ;;  %21416 = vst [vmem:[#allocation182_spill] sm:$0xff] %v14426_v48  ;;  %vm21427_vm12 = vcmp.lt.s32.totalorder %v2044_v41, 16 }
 0x10a   : > { %v21410_v58 = vsel %vm14405_vm11, 4294967295, %v21409_v58  ;;  %vm14417_vm14 = vmand %vm1258_vm0, %vm1290_vm4  ;;  %12034 = vmatprep.mubr.msk.bf16.mxu0 %vm21415_vm6, %v1370_v9  ;;  %v14440_v9 = vpop.f32.mrf.mxu1  ;;  %vm21428_vm4 = vcmp.ge.s32.totalorder %v2044_v41, 0  ;;  %v1352_v14 = vsel %vm14405_vm11, %v14398_v6, 0.0  ;;  %v1353_v41 = vsel %vm14393_vm8, %v14401_v47, 0.0  ;;  %v14499_v6 = vld [vmem:[%s13060_s26 + $0x1ba] sm:$0xff]  ;;  %21535 = vst [vmem:[#allocation231_spill] sm:$0xff] %v14886_v62 }
 0x10b   : > { %21411 = vst [vmem:[#allocation180_spill] sm:$0xff] %v21410_v58  ;;  %v21413_v22 = vsel %vm14417_vm14, 4294967295, %v21412_v22  ;;  %vm14430_vm7 = vmand %vm21418_vm9, %vm21417_vm15  ;;  %vm2107_vm15 = vcmp.lt.s32.totalorder %v2043_v28, 16  ;;  %v1354_v44 = vsel %vm14417_vm14, %v14426_v48, 0.0  ;;  %v10990_v48 = vld [vmem:[%s13060_s26 + $0x282] sm:$0xff]  ;;  %vm21437_vm6 = vcmp.ge.s32.totalorder %v6167_v2, 0 }
 0x10c   : > { %21414 = vst [vmem:[#allocation181_spill] sm:$0xff] %v21413_v22  ;;  %v21420_v50 = vsel %vm14430_vm7, 4294967295, %v21419_v50  ;;  %21422 = vst [vmem:[#allocation184_spill] sm:$0xff] %v14440_v9  ;;  %v14478_v54 = vpop.f32.mrf.mxu1  ;;  %v11088_v58 = vld [vmem:[%s13060_s26 + $0x28e] sm:$0xff]  ;;  %v1371_v31 = vpack.c.bf16 %v1353_v41, %v1352_v14  ;;  %v5343_v41 = vadd.s32 4294967284, %v14024_v10  ;;  %vm21508_vm14 = vnez %v21135_v15 }
 0x10d   : > { %21421 = vst [vmem:[#allocation183_spill] sm:$0xff] %v21420_v50  ;;  %vm14444_vm2 = vmand %vm21424_vm10, %vm21423_vm1  ;;  %vm21436_vm1 = vcmp.lt.s32.totalorder %v6167_v2, 16  ;;  %v14851_v15 = vadd.s32 4294967284, %v14027_v46 }
 0x10e   : > { %vm14458_vm5 = vmand %vm21428_vm4, %vm21427_vm12  ;;  %v3610_v9 = vsel %vm14444_vm2, %v14413_v21, 0.0  ;;  %21431 = vst [vmem:[#allocation185_spill] sm:$0xff] %v14478_v54  ;;  %vm21432_vm12 = vcmp.lt.s32.totalorder %v5352_v25, 16  ;;  %vm21433_vm4 = vcmp.ge.s32.totalorder %v5352_v25, 0  ;;  %v14546_v11 = vpop.f32.mrf.mxu1  ;;  %v14595_v54 = vld [vmem:[%s13060_s26 + $0x1ca] sm:$0xff] }
 0x10f   : > { %v2172_v21 = vsel %vm14458_vm5, %v14410_v60, 0.0  ;;  %v3218_v47 = vsel %vm14458_vm5, %v13659_v3, 0.0  ;;  %v4362_v22 = vsel %vm14458_vm5, %v14423_v23, 0.0  ;;  %vm14493_vm0 = vmand %vm21433_vm4, %vm21432_vm12  ;;  %v10826_v3 = vld [vmem:[%s13060_s26 + $0x1ce] sm:$0xff]  ;;  %vm21444_vm4 = vcmp.ge.s32.totalorder %v2043_v28, 0  ;;  %21447 = vst [vmem:[#allocation186_spill] sm:$0xff] %v14546_v11 }
 0x110   : > { %v5480_v60 = vsel %vm14493_vm0, %v14435_v27, 0.0  ;;  %vm14506_vm9 = vmand %vm21437_vm6, %vm21436_vm1  ;;  %v6687_v25 = vsel %vm14493_vm0, %v14449_v59, 0.0  ;;  %v7733_v23 = vsel %vm14493_vm0, %v14452_v16, 0.0  ;;  %v11378_v27 = vld [vmem:[%s13060_s26 + $0x21c] sm:$0xff]  ;;  %vm21440_vm6 = vcmp.lt.s32.totalorder %v1228_v0, 16  ;;  %21522 = vst [vmem:[#allocation224_spill] sm:$0xff] %v14851_v15 }
 0x111   : > { %v6295_v2 = vsel %vm14506_vm9, %v14438_v52, 0.0  ;;  %v7341_v53 = vsel %vm14506_vm9, %v11382_v5, 0.0  ;;  %v8485_v59 = vsel %vm14506_vm9, %v14467_v20, 0.0  ;;  %vm21441_vm1 = vcmp.ge.s32.totalorder %v1228_v0, 0  ;;  %vm14535_vm10 = vmand %vm21444_vm4, %vm2107_vm15  ;;  %v11266_v52 = vld [vmem:[%s13060_s26 + $0x174] sm:$0xff]  ;;  %v14549_v28 = vld [vmem:[%s13060_s26 + $0x2dc] sm:$0xff] }
 0x112   : > { %vm14529_vm12 = vmand %vm21441_vm1, %vm21440_vm6  ;;  %vm6198_vm0 = vcmp.ge.s32.totalorder %v6166_v56, 0  ;;  %vm6230_vm5 = vcmp.lt.s32.totalorder %v6166_v56, 16  ;;  %v11381_v20 = vld [vmem:[%s13060_s26 + $0x234] sm:$0xff]  ;;  %v1355_v0 = vsel %vm14430_vm7, %v14499_v6, 0.0  ;;  %21448 = vst [vmem:[#allocation187_spill] sm:$0xff] %v14549_v28  ;;  %v2171_v63 = vsel %vm14535_vm10, %v10826_v3, 0.0 }
 0x113   : > { %v3609_v5 = vsel %vm14529_vm12, %v10990_v48, 0.0  ;;  %v3217_v48 = vsel %vm14535_vm10, %v13717_v35, 0.0  ;;  %v4361_v14 = vsel %vm14535_vm10, %v11088_v58, 0.0  ;;  %vm21450_vm9 = vcmp.lt.s32.totalorder %v5351_v1, 16  ;;  %vm14577_vm10 = vmand %vm6198_vm0, %vm6230_vm5  ;;  %v11528_v58 = vld [vmem:[%s13060_s26 + $0x2f4] sm:$0xff] }
 0x114   : > { %v14556_v19 = vpack.c.bf16 %v3610_v9, %v3609_v5  ;;  %vm21451_vm15 = vcmp.ge.s32.totalorder %v5351_v1, 0  ;;  %v14566_v50 = vpack.c.bf16 %v2172_v21, %v2171_v63  ;;  %v14568_v11 = vpack.c.bf16 %v3218_v47, %v3217_v48  ;;  %v14584_v63 = vld [vmem:[%s13060_s26 + $0x1c2] sm:$0xff]  ;;  %v21581_v15 = vld [vmem:[#allocation178_spill] sm:$0xff] }
 0x115   : > { %vm14562_vm6 = vmand %vm21451_vm15, %vm21450_vm9  ;;  %v14570_v3 = vpack.c.bf16 %v4362_v22, %v4361_v14  ;;  %vm21459_vm1 = vcmask 31744   ;;  %v6294_v22 = vsel %vm14577_vm10, %v11266_v52, 0.0  ;;  %v7340_v56 = vsel %vm14577_vm10, %v11381_v20, 0.0  ;;  %v10747_v52 = vld [vmem:[%s13060_s26 + $0xd8] sm:$0xff]  ;;  %v10748_v14 = vld [vmem:[%s13060_s26 + $0xe0] sm:$0xff] }
 0x116   : > { %21449 = vst [vmem:[#allocation188_spill] sm:$0xff] %v14556_v19  ;;  %21454 = vst [vmem:[#allocation189_spill] sm:$0xff] %v14566_v50  ;;  %v5479_v9 = vsel %vm14562_vm6, %v14194_v13, 0.0  ;;  %12035 = vmatmul.mubr.msk.bf16.gmra.mxu0 %vm21459_vm1, %v1371_v31  ;;  %v6686_v21 = vsel %vm14562_vm6, %v11378_v27, 0.0  ;;  %v14597_v5 = vpack.c.bf16 %v6295_v2, %v6294_v22  ;;  %v14601_v31 = vpack.c.bf16 %v7341_v53, %v7340_v56  ;;  %v14608_v27 = vpop.f32.mrf.mxu1  ;;  %v14746_v50 = vld [vmem:[%s13060_s26 + $0x18e] sm:$0xff] }
 0x117   : > { %21455 = vst [vmem:[#allocation190_spill] sm:$0xff] %v14568_v11  ;;  %21456 = vst [vmem:[#allocation191_spill] sm:$0xff] %v14570_v3  ;;  %v14586_v47 = vpack.c.bf16 %v5480_v60, %v5479_v9  ;;  %v14599_v48 = vpack.c.bf16 %v6687_v25, %v6686_v21  ;;  %v7732_v60 = vsel %vm14562_vm6, %v14549_v28, 0.0  ;;  %v8484_v2 = vsel %vm14577_vm10, %v11528_v58, 0.0  ;;  %v14620_v25 = vld [vmem:[%s20486_s3 + $0x6] sm:$0x3] }
 0x118   : > { %21461 = vst [vmem:[#allocation193_spill] sm:$0xff] %v14597_v5  ;;  %21463 = vst [vmem:[#allocation195_spill] sm:$0xff] %v14601_v31  ;;  %v14610_v9 = vpack.c.bf16 %v7733_v23, %v7732_v60  ;;  %v1372_v20 = vpack.c.bf16 %v1355_v0, %v1354_v44  ;;  %v1356_v53 = vsel %vm14529_vm12, %v14584_v63, 0.0  ;;  %v14623_v22 = vpack.c.bf16 %v8485_v59, %v8484_v2  ;;  %v12831_v44 = vld [vmem:[%s20486_s3 + $0x2] sm:$0x3]  ;;  %v14636_v58 = vld [vmem:[%s13060_s26 + $0x196] sm:$0xff] }
 0x119   : > { %21460 = vst [vmem:[#allocation192_spill] sm:$0xff] %v14586_v47  ;;  %21462 = vst [vmem:[#allocation194_spill] sm:$0xff] %v14599_v48  ;;  %v1357_v23 = vsel %vm14444_vm2, %v14595_v54, 0.0  ;;  %vm21466_vm5 = vcmask 1041408   ;;  %v14633_v1 = vadd.s32 4294967284, %v13792_v4  ;;  %vm21469_vm0 = vcmp.lt.s32.totalorder %v14368_v34, 16 }
 0x11a   : > { %21464 = vst [vmem:[#allocation196_spill] sm:$0xff] %v14610_v9  ;;  %21465 = vst [vmem:[#allocation197_spill] sm:$0xff] %v14623_v22  ;;  %v1720_v0 = vsel %vm21466_vm5, %v12831_v44, 0  ;;  %vm21470_vm4 = vcmp.ge.s32.totalorder %v14368_v34, 0  ;;  %v21471_v59 = vmov 0  ;;  %v14647_v21 = vld [vmem:[%s13060_s26 + $0x256] sm:$0xff]  ;;  %v1373_v56 = vpack.c.bf16 %v1357_v23, %v1356_v53 }
 0x11b   : > { %21467 = vst [vmem:[#allocation198_spill] sm:$0xff] %v14633_v1  ;;  %21468 = vst [vmem:[#allocation199_spill] sm:$0xff] %v14636_v58  ;;  %12043 = vmatpush3.bf16.msra.mxu0 %v1720_v0  ;;  %v1653_v60 = vpack.c.bf16 %v10748_v14, %v10747_v52  ;;  %v545_v2 = vlaneseq  ;;  %v14651_v44 = vadd.s32 12, %v13792_v4  ;;  %v14654_v22 = vadd.s32 6, %v13938_v55  ;;  %v14660_v9 = vld [vmem:[%s13060_s26 + $0x124] sm:$0xff]  ;;  %v14674_v14 = vpop.f32.mrf.mxu1  ;;  %v14682_v23 = vld [vmem:[%s13060_s26 + $0x1fc] sm:$0xff] }
 0x11c   : > { %vm14642_vm9 = vmand %vm21470_vm4, %vm21469_vm0  ;;  %21474 = vst [vmem:[#allocation201_spill] sm:$0xff] %v14647_v21  ;;  %v14657_v34 = vadd.s32 4294967284, %v13938_v55  ;;  %vm21479_vm6 = vcmp.lt.s32.totalorder %v14371_v12, 16  ;;  %vm21480_vm10 = vcmp.ge.s32.totalorder %v14371_v12, 0  ;;  %v14671_v52 = vld [vmem:[%s13060_s26 + $0x1e4] sm:$0xff]  ;;  %v6158_v4 = vadd.s32 12, %v14024_v10  ;;  %12658 = vmatprep.subr.msk.bf16.mxu0 %vm21466_vm5, %v14620_v25 }
 0x11d   : > { %v21472_v59 = vsel %vm14642_vm9, 4294967295, %v21471_v59  ;;  %vm21475_vm15 = vmmov %vm21459_vm1  ;;  %21476 = vst [vmem:[#allocation202_spill] sm:$0xff] %v14651_v44  ;;  %v14679_v53 = vadd.s32 12, %v13938_v55  ;;  %v14685_v0 = vld [vmem:[%s13060_s26 + $0x2a4] sm:$0xff]  ;;  %vm2067_vm0 = vcmp.ge.s32.totalorder %v14383_v33, 0  ;;  %vm2099_vm4 = vcmp.lt.s32.totalorder %v14383_v33, 16  ;;  %v14704_v31 = vpop.f32.mrf.mxu1 }
 0x11e   : > { %21473 = vst [vmem:[#allocation200_spill] sm:$0xff] %v21472_v59  ;;  %12038 = vmatprep.mubr.msk.bf16.mxu0 %vm21475_vm15, %v1372_v20  ;;  %21477 = vst [vmem:[#allocation203_spill] sm:$0xff] %v14657_v34  ;;  %v21481_v20 = vmov 0  ;;  %v14689_v12 = vshrl.u32 %v545_v2, 7  ;;  %v14698_v5 = vld [vmem:[%s13060_s26 + $0x2bc] sm:$0xff]  ;;  %v10749_v48 = vld [vmem:[%s13060_s26 + $0xe8] sm:$0xff]  ;;  %vm21507_vm7 = vnez %v21132_v8 }
 0x11f   : > { %21478 = vst [vmem:[#allocation204_spill] sm:$0xff] %v14660_v9  ;;  %vm14666_vm1 = vmand %vm21480_vm10, %vm21479_vm6  ;;  %vm5407_vm6 = vcmp.lt.s32.totalorder %v5343_v41, 16  ;;  %v366_v2 = vld [vmem:[%s20489_s6] sm:$0xf]  ;;  %v10750_v47 = vld [vmem:[%s13060_s26 + $0xf0] sm:$0xff]  ;;  %v21495_v3 = vsel %vm13435_vm3, %v13440_v32, 0.0 }
 0x120   : > { %v21482_v20 = vsel %vm14666_vm1, 4294967295, %v21481_v20  ;;  %21484 = vst [vmem:[#allocation206_spill] sm:$0xff] %v14671_v52  ;;  %21485 = vst [vmem:[#allocation207_spill] sm:$0xff] %v14679_v53  ;;  %v10752_v55 = vld [vmem:[%s13060_s26 + $0x100] sm:$0xff]  ;;  %v14749_v33 = vld [vmem:[%s13060_s26 + $0x24e] sm:$0xff]  ;;  %v21502_v11 = vmov 0  ;;  %v1654_v13 = vpack.c.bf16 %v10750_v47, %v10749_v48  ;;  %v14769_v52 = vpop.f32.mrf.mxu1 }
 0x121   : > { %21483 = vst [vmem:[#allocation205_spill] sm:$0xff] %v21482_v20  ;;  %21486 = vst [vmem:[#allocation208_spill] sm:$0xff] %v14682_v23  ;;  %v10756_v8 = vld [vmem:[%s13060_s26 + $0x120] sm:$0xff]  ;;  %v15070_v1 = vld [vmem:[%s13060_s26 + $0x168] sm:$0xff] }
 0x122   : > { %21487 = vst [vmem:[#allocation209_spill] sm:$0xff] %v14685_v0  ;;  %21488 = vst [vmem:[#allocation210_spill] sm:$0xff] %v14689_v12  ;;  %v21505_v0 = vsub.s32 0, %v14689_v12  ;;  %v21539_v9 = vld [vmem:[#allocation47_spill] sm:$0xff]  ;;  %v21778_v59 = vld [vmem:[#allocation73_spill] sm:$0xff] }
 0x123   : > { %21489 = vst [vmem:[#allocation211_spill] sm:$0xff] %v14698_v5  ;;  %vm21490_vm10 = vmmov %vm21475_vm15  ;;  %vm21496_vm15 = vnez %v21119_v36  ;;  %v21554_v21 = vld [vmem:[#allocation147_spill] sm:$0xff]  ;;  %v15134_v5 = vld [vmem:[%s13060_s26 + $0x1b0] sm:$0xff] }
 0x124   : > { %12039 = vmatmul.mubr.msk.bf16.gmra.mxu0 %vm21490_vm10, %v1373_v56  ;;  %vm21491_vm5 = vmmov %vm21490_vm10  ;;  %v21492_v56 = vmov 0  ;;  %v21497_v19 = vsel %vm21496_vm15, %v13453_v40, 0.0  ;;  %21499 = vst [vmem:[#allocation214_spill] sm:$0xff] %v14746_v50  ;;  %v14759_v32 = vrot.slane %v366_v2, %v21505_v0  ;;  %v2540_v40 = vsel %vm21508_vm14, %v13925_v43, 0.0  ;;  %v15180_v36 = vld [vmem:[%s13060_s26 + $0x1d0] sm:$0xff] }
 0x125   : > { %12044 = vmatprep.mubr.msk.bf16.mxu0 %vm21491_vm5, %v1653_v60  ;;  %vm14729_vm10 = vmand %vm2067_vm0, %vm2099_vm4  ;;  %v10751_v60 = vld [vmem:[%s13060_s26 + $0xf8] sm:$0xff]  ;;  %v14743_v10 = vpack.c.bf16 %v21497_v19, %v21495_v3  ;;  %21500 = vst [vmem:[#allocation215_spill] sm:$0xff] %v14749_v33  ;;  %vm21501_vm0 = vcmp.ge.s32.totalorder %v5343_v41, 0  ;;  %vm6222_vm5 = vcmp.lt.s32.totalorder %v6158_v4, 16  ;;  %v2539_v19 = vsel %vm21507_vm7, %v13922_v57, 0.0  ;;  %v10876_v50 = vld [vmem:[%s13060_s26 + $0x22a] sm:$0xff] }
 0x126   : > { %v21493_v56 = vsel %vm14729_vm10, 4294967295, %v21492_v56  ;;  %vm14753_vm4 = vmand %vm21501_vm0, %vm5407_vm6  ;;  %21506 = vst [vmem:[#allocation217_spill] sm:$0xff] %v14759_v32  ;;  %v2040_v3 = vadd.s32 6, %v14128_v37  ;;  %v5348_v41 = vadd.s32 4294967284, %v14128_v37  ;;  %v14771_v0 = vpack.c.bf16 %v2540_v40, %v2539_v19  ;;  %v14793_v19 = vld [vmem:[%s13060_s26 + $0x134] sm:$0xff] }
 0x127   : > { %21494 = vst [vmem:[#allocation212_spill] sm:$0xff] %v21493_v56  ;;  %21498 = vst [vmem:[#allocation213_spill] sm:$0xff] %v14743_v10  ;;  %v21503_v11 = vsel %vm14753_vm4, 4294967295, %v21502_v11  ;;  %v637_v57 = vadd.f32 %v14131_v39, %v14759_v32  ;;  %v640_v43 = vadd.f32 %v14271_v42, %v14759_v32  ;;  %v1655_v12 = vpack.c.bf16 %v10752_v55, %v10751_v60  ;;  %v14805_v60 = vld [vmem:[%s13060_s26 + $0x1f4] sm:$0xff]  ;;  %v14816_v55 = vpop.f32.mrf.mxu1  ;;  %v12832_v37 = vld [vmem:[%s20486_s3 + $0x4] sm:$0x3] }
 0x128   : > { %21504 = vst [vmem:[#allocation216_spill] sm:$0xff] %v21503_v11  ;;  %21509 = vst [vmem:[#allocation218_spill] sm:$0xff] %v14771_v0  ;;  %vm21511_vm6 = vcmp.ge.s32.totalorder %v6158_v4, 0  ;;  %v21512_v42 = vmov 0  ;;  %v14808_v40 = vld [vmem:[%s13060_s26 + $0x2b4] sm:$0xff]  ;;  %vm21517_vm7 = vcmask 1041408   ;;  %v15269_v16 = vadd.f32 %v14608_v27, %v14759_v32 }
 0x129   : > { %21510 = vst [vmem:[#allocation219_spill] sm:$0xff] %v14793_v19  ;;  %vm14797_vm0 = vmand %vm21511_vm6, %vm6222_vm5  ;;  %v763_v2 = vmax.f32 %v637_v57, 0.0  ;;  %v764_v39 = vmax.f32 %v640_v43, 0.0  ;;  %v2632_v48 = vsel %vm21517_vm7, %v14620_v25, 0  ;;  %vm2072_vm5 = vcmp.ge.s32.totalorder %v2040_v3, 0  ;;  %v10753_v4 = vld [vmem:[%s13060_s26 + $0x108] sm:$0xff] }
 0x12a   : > { %v21513_v42 = vsel %vm14797_vm0, 4294967295, %v21512_v42  ;;  %21515 = vst [vmem:[#allocation221_spill] sm:$0xff] %v14805_v60  ;;  %21516 = vst [vmem:[#allocation222_spill] sm:$0xff] %v14808_v40  ;;  %vm2104_vm6 = vcmp.lt.s32.totalorder %v2040_v3, 16  ;;  %v14821_v57 = vld [vmem:[%s20486_s3 + $0xa] sm:$0x3]  ;;  %v14825_v25 = vadd.f32 %v14199_v61, %v14759_v32  ;;  %v672_v45 = vadd.f32 %v14674_v14, %v14759_v32 }
 0x12b   : > { %21514 = vst [vmem:[#allocation220_spill] sm:$0xff] %v21513_v42  ;;  %21519 = vst [vmem:[#allocation223_spill] sm:$0xff] %v14821_v57  ;;  %v795_v43 = vpack.c.bf16 %v764_v39, %v763_v2  ;;  %v14846_v39 = vadd.s32 6, %v14027_v46  ;;  %v14854_v61 = vadd.s32 12, %v14027_v46  ;;  %v14863_v2 = vld [vmem:[%s13060_s26 + $0x26a] sm:$0xff]  ;;  %v14866_v40 = vld [vmem:[%s13060_s26 + $0x276] sm:$0xff]  ;;  %v14890_v42 = vpop.f32.mrf.mxu1 }
 0x12c   : > { %12045 = vmatmul.mubr.msk.bf16.vlgmr.msra.gmra.mxu0 %vm21518_vm13, %v1654_v13  ;;  %vm21520_vm7 = vmmov %vm21518_vm13  ;;  %v10754_v13 = vld [vmem:[%s13060_s26 + $0x110] sm:$0xff]  ;;  %vm21521_vm13 = vcmask 1041408   ;;  %21527 = vst [vmem:[#allocation227_spill] sm:$0xff] %v14863_v2  ;;  %v14874_v46 = vadd.s32 6, %v14120_v26  ;;  %v14877_v3 = vadd.s32 4294967284, %v14120_v26  ;;  %v21532_v19 = vmov 0 }
 0x12d   : > { %12048 = vmatprep.mubr.msk.bf16.mxu0 %vm21520_vm7, %v1655_v12  ;;  %v2240_v47 = vsel %vm21521_vm13, %v12832_v37, 0  ;;  %v10755_v37 = vld [vmem:[%s13060_s26 + $0x118] sm:$0xff]  ;;  %12111 = vmatpush3.bf16.msra.mxu0 %v2632_v48  ;;  %21523 = vst [vmem:[#allocation225_spill] sm:$0xff] %v14854_v61  ;;  %vm14858_vm7 = vmand %vm2072_vm5, %vm2104_vm6  ;;  %v21524_v12 = vmov 0  ;;  %v645_v48 = vadd.f32 %v14086_v18, %v14759_v32  ;;  %vm21530_vm5 = vcmp.lt.s32.totalorder %v5348_v41, 16  ;;  %v21537_v0 = vld [vmem:[#allocation57_spill] sm:$0xff] }
 0x12e   : > { %v21525_v12 = vsel %vm14858_vm7, 4294967295, %v21524_v12  ;;  %21528 = vst [vmem:[#allocation228_spill] sm:$0xff] %v14866_v40  ;;  %940 = vmatmul.mubr.bf16.vlgmr.msra.gmra.mxu1 %v795_v43  ;;  %12660 = vmatprep.subr.msk.bf16.mxu0 %vm21521_vm13, %v14821_v57  ;;  %21529 = vst [vmem:[#allocation229_spill] sm:$0xff] %v14877_v3  ;;  %vm21531_vm6 = vcmp.ge.s32.totalorder %v5348_v41, 0  ;;  %v5347_v18 = vadd.s32 4294967284, %v14225_v17  ;;  %v1656_v43 = vpack.c.bf16 %v10754_v13, %v10753_v4  ;;  %v21538_v61 = vld [vmem:[#allocation129_spill] sm:$0xff] }
 0x12f   : > { %21526 = vst [vmem:[#allocation226_spill] sm:$0xff] %v21525_v12  ;;  %vm14881_vm14 = vmand %vm21531_vm6, %vm21530_vm5  ;;  %12077 = vmatpush3.bf16.msra.mxu1 %v2240_v47  ;;  %v21536_v60 = vmov 0   ;;  %v766_v41 = vmax.f32 %v14825_v25, 0.0  ;;  %v1657_v29 = vpack.c.bf16 %v10756_v8, %v10755_v37  ;;  %vm21540_vm5 = vnez %v21539_v9  ;;  %v21542_v4 = vld [vmem:[#allocation48_spill] sm:$0xff]  ;;  %v14914_v37 = vpop.f32.mrf.mxu1  ;;  %v14933_v40 = vld [vmem:[%s13060_s26 + $0x130] sm:$0xff] }
 0x130   : > { %v21533_v19 = vsel %vm14881_vm14, 4294967295, %v21532_v19  ;;  %949 = vmatprep.mubr.bf16.mxu1 %v21536_v60  ;;  %v2541_v20 = vsel %vm21540_vm5, %v21538_v61, 0.0  ;;  %vm21543_vm6 = vnez %v21542_v4  ;;  %v14902_v13 = vadd.s32 12, %v14120_v26  ;;  %v14911_v25 = vld [vmem:[%s13060_s26 + $0x2c4] sm:$0xff]  ;;  %v14936_v12 = vld [vmem:[%s13060_s26 + $0x138] sm:$0xff]  ;;  %v21582_v2 = vld [vmem:[#allocation69_spill] sm:$0xff] }
 0x131   : > { %21534 = vst [vmem:[#allocation230_spill] sm:$0xff] %v21533_v19  ;;  %v2542_v47 = vsel %vm21543_vm6, %v21541_v7, 0.0  ;;  %21546 = vst [vmem:[#allocation129_spill] sm:$0xff] %v14911_v25  ;;  %v6162_v61 = vadd.s32 12, %v14225_v17  ;;  %v21547_v7 = vld [vmem:[#allocation60_spill] sm:$0xff]  ;;  %vm2071_vm0 = vcmp.ge.s32.totalorder %v2039_v49, 0 }
 0x132   : > { %21544 = vst [vmem:[#allocation57_spill] sm:$0xff] %v14902_v13  ;;  %vm2103_vm4 = vcmp.lt.s32.totalorder %v2039_v49, 16  ;;  %v14922_v8 = vld [vmem:[%s13060_s26 + $0x262] sm:$0xff]  ;;  %v765_v53 = vmax.f32 %v645_v48, 0.0  ;;  %vm21549_vm5 = vcmask 31744   ;;  %v14941_v62 = vpack.c.bf16 %v2542_v47, %v2541_v20  ;;  %v21555_v33 = vld [vmem:[#allocation50_spill] sm:$0xff] }
 0x133   : > { %21548 = vst [vmem:[#allocation130_spill] sm:$0xff] %v14922_v8  ;;  %v14925_v13 = vld [vmem:[%s13060_s26 + $0x128] sm:$0xff]  ;;  %v14939_v26 = vld [vmem:[%s13060_s26 + $0x140] sm:$0xff]  ;;  %vm21552_vm13 = vmmov %vm21549_vm5  ;;  %v21557_v47 = vmov 0  ;;  %vm21566_vm14 = vcmask 1041408   ;;  %vm21572_vm7 = vcmp.lt.s32.totalorder %v5347_v18, 16 }
 0x134   : > { %12049 = vmatmul.mubr.msk.bf16.gmra.mxu0 %vm21549_vm5, %v1656_v43  ;;  %v21550_v17 = vld [vmem:[#allocation172_spill] sm:$0xff]  ;;  %21551 = vst [vmem:[#allocation60_spill] sm:$0xff] %v14941_v62  ;;  %v796_v10 = vpack.c.bf16 %v766_v41, %v765_v53  ;;  %vm21556_vm5 = vnez %v21555_v33  ;;  %vm14959_vm1 = vmand %vm2071_vm0, %vm2103_vm4  ;;  %v21561_v41 = vld [vmem:[#allocation49_spill] sm:$0xff]  ;;  %v1659_v62 = vpack.c.bf16 %v14939_v26, %v14936_v12  ;;  %vm21585_vm15 = vcmp.ge.s32.totalorder %v13620_v38, 0 }
 0x135   : > { %v14930_v44 = vadd.f32 %v21550_v17, %v14759_v32  ;;  %12052 = vmatprep.mubr.msk.bf16.mxu0 %vm21552_vm13, %v1657_v29  ;;  %v21553_v43 = vld [vmem:[#allocation184_spill] sm:$0xff]  ;;  %v2543_v35 = vsel %vm21556_vm5, %v21554_v21, 0.0  ;;  %v21558_v47 = vsel %vm14959_vm1, 4294967295, %v21557_v47  ;;  %v14963_v29 = vpop.f32.mrf.mxu1  ;;  %vm21562_vm6 = vnez %v21561_v41  ;;  %v21563_v48 = vld [vmem:[#allocation171_spill] sm:$0xff]  ;;  %v21564_v21 = vld [vmem:[#allocation53_spill] sm:$0xff]  ;;  %21629 = vst [vmem:[#allocation232_spill] sm:$0xff] %v15134_v5 }
 0x136   : > { %v14949_v17 = vadd.f32 %v21553_v43, %v14759_v32  ;;  %v10894_v20 = vld [vmem:[%s20486_s3 + $0x8] sm:$0x3]  ;;  %21559 = vst [vmem:[#allocation172_spill] sm:$0xff] %v21558_v47  ;;  %vm21565_vm5 = vnez %v21564_v21  ;;  %v21567_v25 = vld [vmem:[#allocation70_spill] sm:$0xff]  ;;  %vm21573_vm13 = vcmp.ge.s32.totalorder %v5347_v18, 0  ;;  %950 = vmatmul.mubr.bf16.gmra.mxu1 %v796_v10  ;;  %v21578_v49 = vld [vmem:[#allocation175_spill] sm:$0xff] }
 0x137   : > { %v21560_v53 = vld [vmem:[#allocation156_spill] sm:$0xff]  ;;  %v2545_v33 = vsel %vm21565_vm5, %v21563_v48, 0.0  ;;  %12659 = vmatprep.subr.msk.bf16.mxu1 %vm21566_vm14, %v10894_v20  ;;  %v21574_v48 = vmov 0  ;;  %v1658_v20 = vpack.c.bf16 %v14933_v40, %v14925_v13  ;;  %v767_v28 = vmax.f32 %v14930_v44, 0.0  ;;  %959 = vmatprep.mubr.bf16.mxu1 %v21536_v60  ;;  %v21579_v57 = vld [vmem:[#allocation54_spill] sm:$0xff]  ;;  %v21597_v13 = vld [vmem:[#allocation179_spill] sm:$0xff] }
 0x138   : > { %v2544_v43 = vsel %vm21562_vm6, %v21560_v53, 0.0  ;;  %v14981_v53 = vld [vmem:[%s13060_s26 + $0x26e] sm:$0xff]  ;;  %vm14985_vm6 = vmand %vm21573_vm13, %vm21572_vm7  ;;  %vm21580_vm14 = vnez %v21579_v57  ;;  %vm21583_vm7 = vnez %v21582_v2  ;;  %vm21584_vm13 = vcmp.lt.s32.totalorder %v13620_v38, 16  ;;  %v21601_v2 = vld [vmem:[#allocation87_spill] sm:$0xff]  ;;  %21642 = vst [vmem:[#allocation237_spill] sm:$0xff] %v15180_v36 }
 0x139   : > { %21571 = vst [vmem:[#allocation184_spill] sm:$0xff] %v14981_v53  ;;  %v21575_v48 = vsel %vm14985_vm6, 4294967295, %v21574_v48  ;;  %v14995_v41 = vpack.c.bf16 %v2544_v43, %v2543_v35  ;;  %v2546_v18 = vsel %vm21580_vm14, %v21578_v49, 0.0  ;;  %v2547_v8 = vsel %vm21583_vm7, %v21581_v15, 0.0  ;;  %vm15007_vm4 = vmand %vm21585_vm15, %vm21584_vm13  ;;  %v21588_v35 = vld [vmem:[#allocation88_spill] sm:$0xff]  ;;  %v15014_v10 = vld [vmem:[%s13060_s26 + $0x154] sm:$0xff] }
 0x13a   : > { %21576 = vst [vmem:[#allocation147_spill] sm:$0xff] %v21575_v48  ;;  %v21586_v44 = vmov 0  ;;  %21589 = vst [vmem:[#allocation171_spill] sm:$0xff] %v15014_v10  ;;  %vm21590_vm5 = vcmp.lt.s32.totalorder %v6162_v61, 16  ;;  %vm21591_vm3 = vcmp.ge.s32.totalorder %v6162_v61, 0  ;;  %v21592_v15 = vmov 0 }
 0x13b   : > { %21577 = vst [vmem:[#allocation156_spill] sm:$0xff] %v14995_v41  ;;  %v21587_v44 = vsel %vm15007_vm4, 4294967295, %v21586_v44  ;;  %vm15018_vm7 = vmand %vm21591_vm3, %vm21590_vm5  ;;  %v15023_v38 = vld [vmem:[%s13060_s26 + $0x2d4] sm:$0xff]  ;;  %v768_v40 = vmax.f32 %v14949_v17, 0.0  ;;  %v15026_v12 = vpack.c.bf16 %v2546_v18, %v2545_v33  ;;  %v21598_v26 = vld [vmem:[#allocation64_spill] sm:$0xff]  ;;  %vm21602_vm13 = vnez %v21601_v2 }
 0x13c   : > { %v21593_v15 = vsel %vm15018_vm7, 4294967295, %v21592_v15  ;;  %21595 = vst [vmem:[#allocation175_spill] sm:$0xff] %v15023_v38  ;;  %vm21599_vm15 = vnez %v21598_v26  ;;  %v21600_v49 = vld [vmem:[#allocation182_spill] sm:$0xff]  ;;  %v21603_v41 = vld [vmem:[#allocation100_spill] sm:$0xff]  ;;  %v15052_v26 = vld [vmem:[%s13060_s26 + $0x160] sm:$0xff]  ;;  %vm21614_vm0 = vcmp.lt.s32.totalorder %v21537_v0, 16 }
 0x13d   : > { %21594 = vst [vmem:[#allocation70_spill] sm:$0xff] %v21593_v15  ;;  %21596 = vst [vmem:[#allocation178_spill] sm:$0xff] %v15026_v12  ;;  %v2548_v43 = vsel %vm21599_vm15, %v21597_v13, 0.0  ;;  %v2549_v61 = vsel %vm21602_vm13, %v21600_v49, 0.0  ;;  %v15043_v18 = vld [vmem:[%s13060_s26 + $0x148] sm:$0xff]  ;;  %v15046_v13 = vld [vmem:[%s13060_s26 + $0x150] sm:$0xff]  ;;  %v15054_v12 = vpop.f32.mrf.mxu1 }
 0x13e   : > { %v15049_v49 = vld [vmem:[%s13060_s26 + $0x158] sm:$0xff]  ;;  %v15056_v3 = vpack.c.bf16 %v2548_v43, %v2547_v8  ;;  %v21607_v53 = vld [vmem:[#allocation164_spill] sm:$0xff]  ;;  %v15073_v2 = vld [vmem:[%s13060_s26 + $0x170] sm:$0xff]  ;;  %vm21615_vm14 = vcmp.ge.s32.totalorder %v21537_v0, 0  ;;  %v21616_v57 = vmov 0  ;;  %vm21631_vm1 = vcmp.lt.s32.totalorder %v21547_v7, 16 }
 0x13f   : > { %v21605_v47 = vld [vmem:[#allocation90_spill] sm:$0xff]  ;;  %v15063_v34 = vadd.f32 %v21607_v53, %v14759_v32  ;;  %v21608_v17 = vld [vmem:[#allocation176_spill] sm:$0xff]  ;;  %v15079_v43 = vld [vmem:[%s13060_s26 + $0x180] sm:$0xff]  ;;  %v21633_v10 = vmov 0  ;;  %vm21657_vm7 = vcmp.ge.s32.totalorder %v21588_v35, 0  ;;  %v21663_v27 = vmov 0 }
 0x140   : > { %21604 = vst [vmem:[#allocation88_spill] sm:$0xff] %v15056_v3  ;;  %vm21606_vm3 = vnez %v21605_v47  ;;  %v15067_v23 = vadd.f32 %v21608_v17, %v14759_v32  ;;  %v15076_v8 = vld [vmem:[%s13060_s26 + $0x178] sm:$0xff]  ;;  %v15082_v3 = vld [vmem:[%s13060_s26 + $0x188] sm:$0xff]  ;;  %vm15096_vm15 = vmand %vm21615_vm14, %vm21614_vm0  ;;  %vm21619_vm0 = vcmask 31744  }
 0x141   : > { %v2550_v33 = vsel %vm21606_vm3, %v14499_v6, 0.0  ;;  %21609 = vst [vmem:[#allocation179_spill] sm:$0xff] %v15082_v3  ;;  %v15085_v6 = vld [vmem:[%s13060_s26 + $0x190] sm:$0xff]  ;;  %v21612_v47 = vld [vmem:[#allocation106_spill] sm:$0xff]  ;;  %v21617_v57 = vsel %vm15096_vm15, 4294967295, %v21616_v57  ;;  %v21618_v21 = vld [vmem:[#allocation124_spill] sm:$0xff]  ;;  %12053 = vmatmul.mubr.msk.bf16.gmra.mxu0 %vm21619_vm0, %v1658_v20  ;;  %v797_v20 = vpack.c.bf16 %v768_v40, %v767_v28 }
 0x142   : > { %21610 = vst [vmem:[#allocation182_spill] sm:$0xff] %v15085_v6  ;;  %v15087_v53 = vpack.c.bf16 %v2550_v33, %v2549_v61  ;;  %vm21613_vm5 = vnez %v21612_v47  ;;  %v15113_v33 = vld [vmem:[%s13060_s26 + $0x198] sm:$0xff]  ;;  %v15116_v47 = vld [vmem:[%s13060_s26 + $0x1a0] sm:$0xff]  ;;  %v21624_v9 = vld [vmem:[#allocation113_spill] sm:$0xff]  ;;  %12056 = vmatprep.mubr.msk.bf16.mxu0 %vm21619_vm0, %v1659_v62  ;;  %vm21632_vm3 = vcmp.ge.s32.totalorder %v21547_v7, 0  ;;  %v15161_v7 = vpop.f32.mrf.mxu1  ;;  %vm21646_vm0 = vcmp.lt.s32.totalorder %v21567_v25, 16 }
 0x143   : > { %v2551_v17 = vsel %vm21613_vm5, %v14584_v63, 0.0  ;;  %21620 = vst [vmem:[#allocation164_spill] sm:$0xff] %v15113_v33  ;;  %21621 = vst [vmem:[#allocation176_spill] sm:$0xff] %v15116_v47  ;;  %v21625_v63 = vld [vmem:[#allocation162_spill] sm:$0xff]  ;;  %v15131_v38 = vld [vmem:[%s13060_s26 + $0x1a8] sm:$0xff]  ;;  %960 = vmatmul.mubr.bf16.gmra.mxu1 %v797_v20 }
 0x144   : > { %21611 = vst [vmem:[#allocation100_spill] sm:$0xff] %v15087_v53  ;;  %v21622_v53 = vld [vmem:[#allocation105_spill] sm:$0xff]  ;;  %v15124_v61 = vadd.s32 6, %v21625_v63  ;;  %v15127_v0 = vadd.s32 4294967284, %v21625_v63  ;;  %21628 = vst [vmem:[#allocation162_spill] sm:$0xff] %v15131_v38  ;;  %v15150_v62 = vadd.s32 12, %v21625_v63  ;;  %969 = vmatprep.mubr.bf16.mxu1 %v21536_v60  ;;  %v15199_v20 = vpop.f32.mrf.mxu1 }
 0x145   : > { %vm21623_vm14 = vnez %v21622_v53  ;;  %vm15145_vm5 = vmand %vm21632_vm3, %vm21631_vm1  ;;  %v21636_v28 = vld [vmem:[#allocation168_spill] sm:$0xff]  ;;  %v769_v63 = vmax.f32 %v15063_v34, 0.0  ;;  %v15216_v33 = vld [vmem:[%s13060_s26 + $0x13e] sm:$0xff]  ;;  %vm21647_vm1 = vcmp.ge.s32.totalorder %v21567_v25, 0 }
 0x146   : > { %v2552_v4 = vsel %vm21623_vm14, %v14595_v54, 0.0  ;;  %21626 = vst [vmem:[#allocation124_spill] sm:$0xff] %v15124_v61  ;;  %21627 = vst [vmem:[#allocation113_spill] sm:$0xff] %v15127_v0  ;;  %v15137_v54 = vld [vmem:[%s13060_s26 + $0x1b8] sm:$0xff]  ;;  %v21634_v10 = vsel %vm15145_vm5, 4294967295, %v21633_v10  ;;  %v15153_v40 = vadd.s32 6, %v21636_v28 }
 0x147   : > { %v15139_v53 = vpack.c.bf16 %v2552_v4, %v2551_v17  ;;  %21635 = vst [vmem:[#allocation234_spill] sm:$0xff] %v15150_v62  ;;  %v15156_v4 = vadd.s32 4294967284, %v21636_v28  ;;  %v15159_v17 = vadd.s32 12, %v21636_v28  ;;  %v10872_v15 = vld [vmem:[%s13060_s26 + $0x20a] sm:$0xff]  ;;  %v770_v62 = vmax.f32 %v15067_v23, 0.0  ;;  %v10875_v34 = vld [vmem:[%s13060_s26 + $0x222] sm:$0xff]  ;;  %vm15225_vm3 = vmand %vm21647_vm1, %vm21646_vm0 }
 0x148   : > { %21637 = vst [vmem:[#allocation168_spill] sm:$0xff] %v15153_v40  ;;  %v21640_v48 = vld [vmem:[#allocation152_spill] sm:$0xff]  ;;  %v1661_v28 = vpack.c.bf16 %v15052_v26, %v15049_v49  ;;  %v15197_v49 = vld [vmem:[%s13060_s26 + $0x15a] sm:$0xff]  ;;  %v21644_v40 = vld [vmem:[#allocation173_spill] sm:$0xff]  ;;  %v2560_v58 = vsel %vm14393_vm8, %v10872_v15, 0.0  ;;  %vm21656_vm14 = vcmp.lt.s32.totalorder %v21588_v35, 16 }
 0x149   : > { %21630 = vst [vmem:[#allocation233_spill] sm:$0xff] %v15139_v53  ;;  %21638 = vst [vmem:[#allocation235_spill] sm:$0xff] %v15156_v4  ;;  %v10871_v53 = vld [vmem:[%s13060_s26 + $0x202] sm:$0xff]  ;;  %v1660_v4 = vpack.c.bf16 %v15046_v13, %v15043_v18  ;;  %v15194_v13 = vld [vmem:[%s13060_s26 + $0x152] sm:$0xff]  ;;  %v798_v25 = vpack.c.bf16 %v770_v62, %v769_v63  ;;  %vm21660_vm8 = vcmask 31744   ;;  %v15271_v62 = vpop.f32.mrf.mxu1  ;;  %v2564_v35 = vsel %vm14444_vm2, %v10876_v50, 0.0 }
 0x14a   : > { %21639 = vst [vmem:[#allocation236_spill] sm:$0xff] %v15159_v17  ;;  %v15174_v17 = vld [vmem:[%s13060_s26 + $0x1c0] sm:$0xff]  ;;  %v15177_v0 = vld [vmem:[%s13060_s26 + $0x1c8] sm:$0xff]  ;;  %v21645_v61 = vld [vmem:[#allocation185_spill] sm:$0xff]  ;;  %v2559_v18 = vsel %vm14405_vm11, %v10871_v53, 0.0  ;;  %v3187_v63 = vsel %vm15007_vm4, %v15216_v33, 0.0 }
 0x14b   : > { %21641 = vst [vmem:[#allocation152_spill] sm:$0xff] %v15177_v0  ;;  %v15206_v23 = vadd.f32 %v21645_v61, %v14759_v32  ;;  %v15219_v47 = vld [vmem:[%s13060_s26 + $0x146] sm:$0xff]  ;;  %v21648_v61 = vmov 0  ;;  %v21650_v15 = vld [vmem:[#allocation186_spill] sm:$0xff]  ;;  %v15239_v19 = vpack.c.bf16 %v2560_v58, %v2559_v18  ;;  %v21654_v3 = vld [vmem:[#allocation41_spill] sm:$0xff]  ;;  %v21658_v58 = vmov 0  ;;  %12057 = vmatmul.mubr.msk.bf16.gmra.mxu0 %vm21660_vm8, %v1660_v4  ;;  %970 = vmatmul.mubr.bf16.gmra.mxu1 %v798_v25  ;;  %v15350_v25 = vpop.f32.mrf.mxu1 }
 0x14c   : > { %v21649_v61 = vsel %vm15225_vm3, 4294967295, %v21648_v61  ;;  %v15233_v53 = vadd.f32 %v21650_v15, %v14759_v32  ;;  %v21652_v38 = vld [vmem:[#allocation42_spill] sm:$0xff]  ;;  %vm21655_vm0 = vnez %v21654_v3  ;;  %v2563_v15 = vsel %vm14529_vm12, %v10875_v34, 0.0  ;;  %v15253_v26 = vld [vmem:[%s13060_s26 + $0x166] sm:$0xff]  ;;  %vm15260_vm6 = vmand %vm21657_vm7, %vm21656_vm14  ;;  %979 = vmatprep.mubr.bf16.mxu1 %v21536_v60 }
 0x14d   : > { %21651 = vst [vmem:[#allocation142_spill] sm:$0xff] %v15239_v19  ;;  %vm21653_vm1 = vnez %v21652_v38  ;;  %v2538_v6 = vsel %vm21655_vm0, %v15197_v49, 0.0  ;;  %v10796_v11 = vld [vmem:[%s13060_s26 + $0xde] sm:$0xff]  ;;  %v21659_v58 = vsel %vm15260_vm6, 4294967295, %v21658_v58  ;;  %v3188_v34 = vsel %vm15096_vm15, %v15219_v47, 0.0  ;;  %v10797_v4 = vld [vmem:[%s13060_s26 + $0xe6] sm:$0xff] }
 0x14e   : > { %v2537_v5 = vsel %vm21653_vm1, %v15194_v13, 0.0  ;;  %vm21661_vm8 = vcmp.lt.s32.totalorder %v21603_v41, 16  ;;  %vm21662_vm12 = vcmp.ge.s32.totalorder %v21603_v41, 0  ;;  %v773_v50 = vmax.f32 %v15206_v23, 0.0  ;;  %v15301_v13 = vld [vmem:[%s13060_s26 + $0x17e] sm:$0xff]  ;;  %v15304_v49 = vld [vmem:[%s13060_s26 + $0x186] sm:$0xff] }
 0x14f   : > { %vm15286_vm7 = vmand %vm21662_vm12, %vm21661_vm8  ;;  %vm21665_vm1 = vcmask 31744   ;;  %v15296_v18 = vpack.c.bf16 %v2564_v35, %v2563_v15  ;;  %v15298_v41 = vpack.c.bf16 %v3188_v34, %v3187_v63  ;;  %v771_v3 = vmax.f32 %v15233_v53, 0.0  ;;  %v10800_v15 = vld [vmem:[%s13060_s26 + $0xfe] sm:$0xff]  ;;  %v10801_v35 = vld [vmem:[%s13060_s26 + $0x106] sm:$0xff] }
 0x150   : > { %v21664_v27 = vsel %vm15286_vm7, 4294967295, %v21663_v27  ;;  %12060 = vmatprep.mubr.msk.bf16.mxu0 %vm21665_vm1, %v1661_v28  ;;  %v3191_v23 = vsel %vm15225_vm3, %v15250_v51, 0.0  ;;  %v3192_v28 = vsel %vm15145_vm5, %v15253_v26, 0.0  ;;  %v2141_v14 = vsel %vm15007_vm4, %v10796_v11, 0.0  ;;  %v15338_v38 = vld [vmem:[%s13060_s26 + $0x19e] sm:$0xff]  ;;  %v21740_v36 = vld [vmem:[#allocation101_spill] sm:$0xff] }
 0x151   : > { %21666 = vst [vmem:[#allocation173_spill] sm:$0xff] %v15296_v18  ;;  %21667 = vst [vmem:[#allocation185_spill] sm:$0xff] %v15298_v41  ;;  %vm21668_vm1 = vcmp.lt.s32.totalorder %v21618_v21, 16  ;;  %vm21669_vm8 = vcmp.ge.s32.totalorder %v21618_v21, 0  ;;  %v21670_v53 = vmov 0  ;;  %v15327_v63 = vadd.f32 %v14704_v31, %v14759_v32 }
 0x152   : > { %vm15321_vm12 = vmand %vm21669_vm8, %vm21668_vm1  ;;  %v15331_v34 = vadd.f32 %v14769_v52, %v14759_v32  ;;  %v15333_v11 = vpack.c.bf16 %v3192_v28, %v3191_v23  ;;  %v2142_v21 = vsel %vm15096_vm15, %v10797_v4, 0.0  ;;  %vm21674_vm1 = vcmp.lt.s32.totalorder %v21624_v9, 16  ;;  %v15361_v28 = vld [vmem:[%s13060_s26 + $0x1a6] sm:$0xff] }
 0x153   : > { %v21671_v53 = vsel %vm15321_vm12, 4294967295, %v21670_v53  ;;  %vm21675_vm8 = vcmp.ge.s32.totalorder %v21624_v9, 0  ;;  %v21676_v31 = vmov 0  ;;  %v774_v52 = vmax.f32 %v15269_v16, 0.0 }
 0x154   : > { %21672 = vst [vmem:[#allocation186_spill] sm:$0xff] %v21671_v53  ;;  %21673 = vst [vmem:[#allocation238_spill] sm:$0xff] %v15333_v11  ;;  %v15352_v23 = vpack.c.bf16 %v2142_v21, %v2141_v14  ;;  %v3195_v4 = vsel %vm15286_vm7, %v15301_v13, 0.0  ;;  %v3196_v9 = vsel %vm15260_vm6, %v15304_v49, 0.0  ;;  %v772_v11 = vmax.f32 %v672_v45, 0.0  ;;  %v10804_v21 = vld [vmem:[%s13060_s26 + $0x11e] sm:$0xff] }
 0x155   : > { %vm15344_vm2 = vmand %vm21675_vm8, %vm21674_vm1  ;;  %v15363_v41 = vpack.c.bf16 %v3196_v9, %v3195_v4  ;;  %v2145_v16 = vsel %vm15225_vm3, %v10800_v15, 0.0  ;;  %v2146_v14 = vsel %vm15145_vm5, %v10801_v35, 0.0  ;;  %vm21681_vm1 = vcmp.lt.s32.totalorder %v21640_v48, 16  ;;  %v15393_v9 = vld [vmem:[%s13060_s26 + $0x1be] sm:$0xff] }
 0x156   : > { %v21677_v31 = vsel %vm15344_vm2, 4294967295, %v21676_v31  ;;  %21679 = vst [vmem:[#allocation240_spill] sm:$0xff] %v15352_v23  ;;  %v10805_v23 = vld [vmem:[%s13060_s26 + $0x126] sm:$0xff]  ;;  %vm21682_vm8 = vcmp.ge.s32.totalorder %v21640_v48, 0  ;;  %v21683_v18 = vmov 0  ;;  %v15381_v45 = vadd.f32 %v14816_v55, %v14759_v32 }
 0x157   : > { %21678 = vst [vmem:[#allocation239_spill] sm:$0xff] %v21677_v31  ;;  %21680 = vst [vmem:[#allocation241_spill] sm:$0xff] %v15363_v41  ;;  %v15385_v15 = vadd.f32 %v14890_v42, %v14759_v32  ;;  %v15387_v4 = vpack.c.bf16 %v2146_v14, %v2145_v16  ;;  %v3199_v35 = vsel %vm15321_vm12, %v15338_v38, 0.0  ;;  %v21689_v48 = vmov 0  ;;  %v15411_v41 = vld [vmem:[%s13060_s26 + $0x1c6] sm:$0xff]  ;;  %v719_v42 = vpop.f32.mrf.mxu1 }
 0x158   : > { %vm15375_vm14 = vmand %vm21682_vm8, %vm21681_vm1  ;;  %vm21687_vm1 = vcmp.lt.s32.totalorder %v21643_v30, 16  ;;  %vm21688_vm8 = vcmp.ge.s32.totalorder %v21643_v30, 0  ;;  %v15405_v16 = vpack.c.bf16 %v2538_v6, %v2537_v5  ;;  %v3200_v14 = vsel %vm15344_vm2, %v15361_v28, 0.0 }
 0x159   : > { %v21684_v18 = vsel %vm15375_vm14, 4294967295, %v21683_v18  ;;  %21686 = vst [vmem:[#allocation243_spill] sm:$0xff] %v15387_v4  ;;  %vm15399_vm0 = vmand %vm21688_vm8, %vm21687_vm1  ;;  %vm21693_vm5 = vcmp.lt.s32.totalorder %v21644_v40, 16  ;;  %vm21694_vm1 = vcmp.ge.s32.totalorder %v21644_v40, 0  ;;  %v21695_v30 = vmov 0 }
 0x15a   : > { %21685 = vst [vmem:[#allocation242_spill] sm:$0xff] %v21684_v18  ;;  %v21690_v48 = vsel %vm15399_vm0, 4294967295, %v21689_v48  ;;  %21692 = vst [vmem:[#allocation245_spill] sm:$0xff] %v15405_v16  ;;  %v21698_v5 = vpack.c.bf16 %v15073_v2, %v15070_v1  ;;  %vm21699_vm3 = vcmask 31744   ;;  %v15427_v6 = vadd.f32 %v14914_v37, %v14759_v32  ;;  %v21735_v16 = vld [vmem:[#allocation89_spill] sm:$0xff] }
 0x15b   : > { %21691 = vst [vmem:[#allocation244_spill] sm:$0xff] %v21690_v48  ;;  %vm15417_vm8 = vmand %vm21694_vm1, %vm21693_vm5  ;;  %v15429_v55 = vpack.c.bf16 %v3200_v14, %v3199_v35  ;;  %v2149_v4 = vsel %vm15286_vm7, %v10804_v21, 0.0  ;;  %v2150_v40 = vsel %vm15260_vm6, %v10805_v23, 0.0  ;;  %vm21701_vm5 = vcmp.lt.s32.totalorder %v14654_v22, 16  ;;  %v15457_v35 = vld [vmem:[%s13060_s26 + $0x1de] sm:$0xff]  ;;  %v15460_v14 = vld [vmem:[%s13060_s26 + $0x1e6] sm:$0xff] }
 0x15c   : > { %v21696_v30 = vsel %vm15417_vm8, 4294967295, %v21695_v30  ;;  %12061 = vmatmul.mubr.msk.bf16.gmra.mxu0 %vm21699_vm3, %v21698_v5  ;;  %vm21702_vm1 = vcmp.ge.s32.totalorder %v14654_v22, 0  ;;  %v21703_v1 = vmov 0  ;;  %v21706_v2 = vpack.c.bf16 %v15079_v43, %v15076_v8  ;;  %v15466_v43 = vpop.f32.mrf.mxu1  ;;  %v21742_v18 = vld [vmem:[#allocation161_spill] sm:$0xff] }
 0x15d   : > { %21697 = vst [vmem:[#allocation246_spill] sm:$0xff] %v21696_v30  ;;  %21700 = vst [vmem:[#allocation247_spill] sm:$0xff] %v15429_v55  ;;  %v799_v37 = vpack.c.bf16 %v772_v11, %v771_v3  ;;  %v15449_v21 = vadd.f32 %v14963_v29, %v14759_v32  ;;  %v15451_v23 = vpack.c.bf16 %v2150_v40, %v2149_v4  ;;  %v3203_v22 = vsel %vm15375_vm14, %v15393_v9, 0.0  ;;  %v15492_v4 = vld [vmem:[%s13060_s26 + $0x1fe] sm:$0xff]  ;;  %v21728_v3 = vld [vmem:[#allocation76_spill] sm:$0xff] }
 0x15e   : > { %vm15439_vm15 = vmand %vm21702_vm1, %vm21701_vm5  ;;  %12064 = vmatprep.mubr.msk.bf16.mxu0 %vm21699_vm3, %v21706_v2  ;;  %v15462_v5 = vpack.c.bf16 %v774_v52, %v773_v50  ;;  %v778_v8 = vmax.f32 %v15381_v45, 0.0  ;;  %v3204_v29 = vsel %vm15399_vm0, %v15411_v41, 0.0  ;;  %vm21708_vm5 = vcmp.lt.s32.totalorder %v14874_v46, 16  ;;  %v21714_v40 = vld [vmem:[#allocation55_spill] sm:$0xff]  ;;  %v21715_v2 = vld [vmem:[#allocation58_spill] sm:$0xff] }
 0x15f   : > { %v21704_v1 = vsel %vm15439_vm15, 4294967295, %v21703_v1  ;;  %21707 = vst [vmem:[#allocation249_spill] sm:$0xff] %v15451_v23  ;;  %vm21709_vm1 = vcmp.ge.s32.totalorder %v14874_v46, 0  ;;  %v21710_v11 = vmov 0  ;;  %980 = vmatmul.mubr.bf16.gmra.mxu1 %v799_v37  ;;  %v15481_v50 = vadd.f32 %v15054_v12, %v14759_v32  ;;  %v21724_v37 = vld [vmem:[#allocation85_spill] sm:$0xff] }
 0x160   : > { %21705 = vst [vmem:[#allocation248_spill] sm:$0xff] %v21704_v1  ;;  %vm15475_vm3 = vmand %vm21709_vm1, %vm21708_vm5  ;;  %v15483_v52 = vpack.c.bf16 %v3204_v29, %v3203_v22  ;;  %v2153_v45 = vsel %vm15321_vm12, %v15216_v33, 0.0  ;;  %v2154_v46 = vsel %vm15344_vm2, %v15219_v47, 0.0  ;;  %vm21716_vm4 = vcmp.lt.s32.totalorder %v14846_v39, 16  ;;  %989 = vmatprep.mubr.bf16.mxu1 %v21536_v60  ;;  %v21722_v33 = vld [vmem:[#allocation80_spill] sm:$0xff]  ;;  %v21726_v29 = vld [vmem:[#allocation66_spill] sm:$0xff] }
 0x161   : > { %v21711_v11 = vsel %vm15475_vm3, 4294967295, %v21710_v11  ;;  %vm21717_vm11 = vcmp.ge.s32.totalorder %v14846_v39, 0  ;;  %v21718_v12 = vmov 0  ;;  %v15507_v47 = vpack.c.bf16 %v2154_v46, %v2153_v45  ;;  %v15526_v45 = vld [vmem:[%s13060_s26 + $0x206] sm:$0xff] }
 0x162   : > { %21712 = vst [vmem:[#allocation250_spill] sm:$0xff] %v21711_v11  ;;  %21713 = vst [vmem:[#allocation251_spill] sm:$0xff] %v15483_v52  ;;  %vm21723_vm5 = vnez %v21722_v33  ;;  %vm21727_vm6 = vnez %v21726_v29  ;;  %v3207_v39 = vsel %vm15439_vm15, %v15457_v35, 0.0  ;;  %v3208_v23 = vsel %vm15417_vm8, %v15460_v14, 0.0  ;;  %v21732_v46 = vld [vmem:[#allocation63_spill] sm:$0xff]  ;;  %v21776_v11 = vld [vmem:[#allocation38_spill] sm:$0xff] }
 0x163   : > { %vm15502_vm13 = vmand %vm21717_vm11, %vm21716_vm4  ;;  %21721 = vst [vmem:[#allocation58_spill] sm:$0xff] %v15507_v47  ;;  %v21725_v22 = vsel %vm21723_vm5, %v21724_v37, 0.0  ;;  %v21729_v52 = vsel %vm21727_vm6, %v21728_v3, 0.0  ;;  %v21733_v47 = vld [vmem:[#allocation71_spill] sm:$0xff]  ;;  %v2157_v19 = vsel %vm15375_vm14, %v15250_v51, 0.0  ;;  %v15549_v0 = vadd.f32 %v15271_v62, %v14759_v32  ;;  %v21737_v51 = vld [vmem:[#allocation96_spill] sm:$0xff] }
 0x164   : > { %v21719_v12 = vsel %vm15502_vm13, 4294967295, %v21718_v12  ;;  %v15517_v55 = vpack.c.bf16 %v21729_v52, %v21725_v22  ;;  %21731 = vst [vmem:[#allocation85_spill] sm:$0xff] %v15526_v45  ;;  %v15534_v52 = vadd.f32 %v15161_v7, %v14759_v32  ;;  %v15538_v22 = vadd.f32 %v15199_v20, %v14759_v32  ;;  %v732_v7 = vpop.f32.mrf.mxu1  ;;  %v21938_v29 = vld [vmem:[#allocation237_spill] sm:$0xff] }
 0x165   : > { %21720 = vst [vmem:[#allocation55_spill] sm:$0xff] %v21719_v12  ;;  %v2158_v20 = vsel %vm15399_vm0, %v15253_v26, 0.0  ;;  %v3211_v62 = vsel %vm15475_vm3, %v15492_v4, 0.0  ;;  %v3212_v48 = vsel %vm15502_vm13, %v15526_v45, 0.0  ;;  %v2161_v53 = vsel %vm15439_vm15, %v15301_v13, 0.0 }
 0x166   : > { %21730 = vst [vmem:[#allocation80_spill] sm:$0xff] %v15517_v55  ;;  %v15540_v55 = vpack.c.bf16 %v3208_v23, %v3207_v39  ;;  %v21736_v23 = vsel %vm14729_vm10, %v13953_v24, 0.0  ;;  %v21738_v39 = vsel %vm14642_vm9, %v21737_v51, 0.0  ;;  %v15569_v26 = vpack.c.bf16 %v2158_v20, %v2157_v19  ;;  %v21747_v19 = vld [vmem:[#allocation118_spill] sm:$0xff] }
 0x167   : > { %v21748_v20 = vld [vmem:[#allocation182_spill] sm:$0xff]  ;;  %vm21751_vm1 = vcmask 31744   ;;  %v2162_v13 = vsel %vm15417_vm8, %v15304_v49, 0.0  ;;  %990 = vmatmul.mubr.bf16.gmra.mxu1 %v15462_v5  ;;  %v783_v5 = vmax.f32 %v15549_v0, 0.0  ;;  %v21787_v0 = vld [vmem:[#allocation48_spill] sm:$0xff]  ;;  %vm21825_vm8 = vcmask 31744  }
 0x168   : > { %21734 = vst [vmem:[#allocation66_spill] sm:$0xff] %v15540_v55  ;;  %v15562_v55 = vpack.c.bf16 %v21738_v39, %v21736_v23  ;;  %21741 = vst [vmem:[#allocation63_spill] sm:$0xff] %v15569_v26  ;;  %v21743_v23 = vsel %vm21723_vm5, %v21742_v18, 0.0  ;;  %v21744_v39 = vld [vmem:[#allocation149_spill] sm:$0xff]  ;;  %v21749_v26 = vld [vmem:[#allocation179_spill] sm:$0xff]  ;;  %v15595_v18 = vadd.f32 %v15350_v25, %v14759_v32  ;;  %v781_v25 = vmax.f32 %v15427_v6, 0.0  ;;  %999 = vmatprep.mubr.bf16.mxu1 %v21536_v60 }
 0x169   : > { %v21750_v45 = vpack.c.bf16 %v21748_v20, %v21749_v26  ;;  %v21755_v26 = vld [vmem:[#allocation164_spill] sm:$0xff]  ;;  %vm21788_vm4 = vnez %v21787_v0  ;;  %v21796_v0 = vld [vmem:[#allocation87_spill] sm:$0xff]  ;;  %v21935_v33 = vmov 0 }
 0x16a   : > { %21739 = vst [vmem:[#allocation76_spill] sm:$0xff] %v15562_v55  ;;  %v21745_v55 = vsel %vm21727_vm6, %v21744_v39, 0.0  ;;  %v21753_v39 = vld [vmem:[#allocation127_spill] sm:$0xff]  ;;  %v21763_v6 = vld [vmem:[#allocation124_spill] sm:$0xff] }
 0x16b   : > { %v15582_v31 = vpack.c.bf16 %v21745_v55, %v21743_v23  ;;  %12065 = vmatmul.mubr.msk.bf16.gmra.mxu0 %vm21751_vm1, %v21750_v45  ;;  %v15598_v55 = vadd.f32 %v719_v42, %v14759_v32  ;;  %v15600_v23 = vpack.c.bf16 %v3212_v48, %v3211_v62  ;;  %v21754_v45 = vld [vmem:[#allocation176_spill] sm:$0xff]  ;;  %v15613_v42 = vld [vmem:[%s13060_s26 + $0x1d2] sm:$0xff]  ;;  %v15615_v48 = vpack.c.bf16 %v2162_v13, %v2161_v53 }
 0x16c   : > { %v21756_v20 = vpack.c.bf16 %v21754_v45, %v21755_v26  ;;  %v21758_v62 = vld [vmem:[#allocation214_spill] sm:$0xff]  ;;  %v2165_v45 = vsel %vm15475_vm3, %v15338_v38, 0.0  ;;  %v21764_v53 = vmax.f32 %v15327_v63, 0.0  ;;  %v779_v26 = vmax.f32 %v15449_v21, 0.0 }
 0x16d   : > { %21746 = vst [vmem:[#allocation71_spill] sm:$0xff] %v15582_v31  ;;  %21752 = vst [vmem:[#allocation89_spill] sm:$0xff] %v15600_v23  ;;  %v21759_v49 = vsel %vm14729_vm10, %v21758_v62, 0.0  ;;  %v21760_v23 = vld [vmem:[#allocation199_spill] sm:$0xff]  ;;  %v15642_v62 = vld [vmem:[%s13060_s26 + $0x1f2] sm:$0xff]  ;;  %v780_v63 = vmax.f32 %v15534_v52, 0.0 }
 0x16e   : > { %12068 = vmatprep.mubr.msk.bf16.mxu0 %vm21751_vm1, %v21756_v20  ;;  %21757 = vst [vmem:[#allocation96_spill] sm:$0xff] %v15615_v48  ;;  %v21761_v31 = vsel %vm14642_vm9, %v21760_v23, 0.0  ;;  %v15634_v13 = vpack.c.bf16 %v778_v8, %v21764_v53  ;;  %v782_v23 = vmax.f32 %v15481_v50, 0.0  ;;  %v15639_v20 = vld [vmem:[%s13060_s26 + $0x1da] sm:$0xff]  ;;  %21767 = vst [vmem:[#allocation118_spill] sm:$0xff] %v15642_v62  ;;  %v785_v21 = vmax.f32 %v15538_v22, 0.0 }
 0x16f   : > { %v15625_v30 = vpack.c.bf16 %v21761_v31, %v21759_v49  ;;  %v12003_v31 = vpop.f32.mrf.mxu1  ;;  %21766 = vst [vmem:[#allocation149_spill] sm:$0xff] %v15639_v20  ;;  %v2166_v49 = vsel %vm15502_vm13, %v15361_v28, 0.0  ;;  %v15653_v8 = vld [vmem:[%s13060_s26 + $0x1fa] sm:$0xff]  ;;  %v15656_v50 = vld [vmem:[%s13060_s26 + $0x212] sm:$0xff]  ;;  %vm21777_vm1 = vnez %v21776_v11  ;;  %v786_v52 = vmax.f32 %v15595_v18, 0.0 }
 0x170   : > { %21765 = vst [vmem:[#allocation161_spill] sm:$0xff] %v15634_v13  ;;  %21769 = vst [vmem:[#allocation182_spill] sm:$0xff] %v15653_v8  ;;  %v15658_v53 = vpack.c.bf16 %v2166_v49, %v2165_v45  ;;  %v21772_v48 = vld [vmem:[#allocation37_spill] sm:$0xff]  ;;  %v21774_v13 = vld [vmem:[#allocation68_spill] sm:$0xff]  ;;  %v21779_v56 = vsel %vm21777_vm1, %v21778_v59, 0.0  ;;  %v784_v22 = vmax.f32 %v15598_v55, 0.0  ;;  %v15684_v59 = vadd.f32 %v15466_v43, %v14759_v32 }
 0x171   : > { %21762 = vst [vmem:[#allocation101_spill] sm:$0xff] %v15625_v30  ;;  %v21768_v30 = vld [vmem:[#allocation168_spill] sm:$0xff]  ;;  %21770 = vst [vmem:[#allocation179_spill] sm:$0xff] %v15656_v50  ;;  %vm21773_vm7 = vnez %v21772_v48  ;;  %v15675_v45 = vld [vmem:[%s13060_s26 + $0x21a] sm:$0xff]  ;;  %v3588_v11 = vsel %vm21788_vm4, %v15639_v20, 0.0  ;;  %v735_v43 = vpop.f32.mrf.mxu1  ;;  %vm21797_vm4 = vnez %v21796_v0  ;;  %vm21803_vm9 = vcmp.ge.s32.totalorder %v21715_v2, 0 }
 0x172   : > { %21771 = vst [vmem:[#allocation127_spill] sm:$0xff] %v15658_v53  ;;  %v21775_v12 = vsel %vm21773_vm7, %v21774_v13, 0.0  ;;  %21781 = vst [vmem:[#allocation164_spill] sm:$0xff] %v15675_v45  ;;  %v21782_v48 = vld [vmem:[#allocation47_spill] sm:$0xff]  ;;  %v21784_v49 = vld [vmem:[#allocation144_spill] sm:$0xff]  ;;  %v3595_v20 = vsel %vm21797_vm4, %v15656_v50, 0.0  ;;  %v15730_v0 = vpack.c.bf16 %v782_v23, %v781_v25 }
 0x173   : > { %v15668_v1 = vpack.c.bf16 %v21779_v56, %v21775_v12  ;;  %vm21783_vm11 = vnez %v21782_v48  ;;  %21785 = vst [vmem:[#allocation214_spill] sm:$0xff] %v15684_v59  ;;  %v15687_v56 = vadd.f32 %v732_v7, %v14759_v32  ;;  %v21789_v12 = vld [vmem:[#allocation53_spill] sm:$0xff]  ;;  %v15698_v48 = vadd.f32 %v12003_v31, %v14759_v32  ;;  %v21794_v7 = vld [vmem:[#allocation54_spill] sm:$0xff]  ;;  %v21822_v25 = vld [vmem:[#allocation232_spill] sm:$0xff] }
 0x174   : > { %v3587_v13 = vsel %vm21783_vm11, %v15613_v42, 0.0  ;;  %vm21790_vm13 = vnez %v21789_v12  ;;  %v21791_v55 = vld [vmem:[#allocation153_spill] sm:$0xff]  ;;  %vm21795_vm1 = vnez %v21794_v7  ;;  %vm21799_vm11 = vcmp.ge.s32.totalorder %v21714_v40, 0  ;;  %v21810_v50 = vld [vmem:[#allocation90_spill] sm:$0xff] }
 0x175   : > { %21780 = vst [vmem:[#allocation176_spill] sm:$0xff] %v15668_v1  ;;  %21786 = vst [vmem:[#allocation199_spill] sm:$0xff] %v15687_v56  ;;  %v3591_v18 = vsel %vm21790_vm13, %v15642_v62, 0.0  ;;  %v15700_v1 = vpack.c.bf16 %v3588_v11, %v3587_v13  ;;  %v3592_v53 = vsel %vm21795_vm1, %v15653_v8, 0.0  ;;  %vm21798_vm13 = vcmp.lt.s32.totalorder %v21714_v40, 16  ;;  %v21806_v13 = vld [vmem:[#allocation198_spill] sm:$0xff] }
 0x176   : > { %21792 = vst [vmem:[#allocation124_spill] sm:$0xff] %v15698_v48  ;;  %vm15712_vm3 = vmand %vm21799_vm11, %vm21798_vm13  ;;  %v21800_v12 = vmov 0  ;;  %vm21802_vm7 = vcmp.lt.s32.totalorder %v21715_v2, 16  ;;  %v21804_v31 = vmov 0  ;;  %v21807_v11 = vmax.f32 %v15331_v34, 0.0  ;;  %v21823_v23 = vld [vmem:[#allocation162_spill] sm:$0xff] }
 0x177   : > { %21793 = vst [vmem:[#allocation168_spill] sm:$0xff] %v15700_v1  ;;  %v21801_v12 = vsel %vm15712_vm3, 4294967295, %v21800_v12  ;;  %vm15720_vm10 = vmand %vm21803_vm9, %vm21802_vm7  ;;  %v21808_v40 = vmax.f32 %v15385_v15, 0.0  ;;  %v15732_v1 = vpack.c.bf16 %v3592_v53, %v3591_v18  ;;  %vm21811_vm11 = vnez %v21810_v50  ;;  %v21821_v15 = vld [vmem:[#allocation203_spill] sm:$0xff]  ;;  %v11168_v56 = vld [vmem:[%s13060_s26 + $0x154] sm:$0xff] }
 0x178   : > { %v21805_v31 = vsel %vm15720_vm10, 4294967295, %v21804_v31  ;;  %v3596_v2 = vsel %vm21811_vm11, %v15675_v45, 0.0  ;;  %vm21812_vm9 = vcmp.lt.s32.totalorder %v21732_v46, 16  ;;  %vm21813_vm7 = vcmp.ge.s32.totalorder %v21732_v46, 0  ;;  %vm21835_vm3 = vmmov %vm21825_vm8  ;;  %v11294_v62 = vld [vmem:[%s13060_s26 + $0x174] sm:$0xff] }
 0x179   : > { %v801_v7 = vpack.c.bf16 %v21808_v40, %v21807_v11  ;;  %21809 = vst [vmem:[#allocation37_spill] sm:$0xff] %v15732_v1  ;;  %vm15741_vm13 = vmand %vm21813_vm7, %vm21812_vm9  ;;  %v21814_v8 = vmov 0  ;;  %vm21817_vm1 = vcmp.lt.s32.totalorder %v21733_v47, 16  ;;  %vm21818_vm4 = vcmp.ge.s32.totalorder %v21733_v47, 0  ;;  %v21833_v40 = vld [vmem:[#allocation229_spill] sm:$0xff] }
 0x17a   : > { %v21815_v8 = vsel %vm15741_vm13, 4294967295, %v21814_v8  ;;  %vm15749_vm10 = vmand %vm21818_vm4, %vm21817_vm1  ;;  %v21819_v34 = vmov 0  ;;  %v21824_v50 = vpack.c.bf16 %v21822_v25, %v21823_v23  ;;  %v15759_v46 = vpack.c.bf16 %v780_v63, %v779_v26  ;;  %v21886_v63 = vld [vmem:[#allocation99_spill] sm:$0xff] }
 0x17b   : > { %21816 = vst [vmem:[#allocation68_spill] sm:$0xff] %v21815_v8  ;;  %v21820_v34 = vsel %vm15749_vm10, 4294967295, %v21819_v34  ;;  %v15761_v53 = vpack.c.bf16 %v786_v52, %v785_v21  ;;  %v15763_v18 = vpack.c.bf16 %v784_v22, %v783_v5  ;;  %v15765_v47 = vpack.c.bf16 %v3596_v2, %v3595_v20  ;;  %v21839_v5 = vld [vmem:[#allocation130_spill] sm:$0xff]  ;;  %v21841_v22 = vld [vmem:[#allocation177_spill] sm:$0xff]  ;;  %v21843_v2 = vld [vmem:[#allocation227_spill] sm:$0xff]  ;;  %1000 = vmatmul.mubr.bf16.gmra.mxu1 %v801_v7 }
 0x17c   : > { %12069 = vmatmul.mubr.msk.bf16.gmra.mxu0 %vm21825_vm8, %v21824_v50  ;;  %vm21829_vm1 = vcmp.lt.s32.totalorder %v21735_v16, 16  ;;  %vm21830_vm4 = vcmp.ge.s32.totalorder %v21735_v16, 0  ;;  %v21831_v11 = vmov 0  ;;  %v21834_v26 = vpack.c.bf16 %v15174_v17, %v15137_v54  ;;  %v21837_v16 = vld [vmem:[#allocation180_spill] sm:$0xff]  ;;  %v21870_v7 = vld [vmem:[#allocation65_spill] sm:$0xff]  ;;  %1009 = vmatprep.mubr.bf16.mxu1 %v21536_v60 }
 0x17d   : > { %21826 = vst [vmem:[#allocation38_spill] sm:$0xff] %v15761_v53  ;;  %21827 = vst [vmem:[#allocation73_spill] sm:$0xff] %v15763_v18  ;;  %v15784_v21 = vadd.f32 %v735_v43, %v14759_v32  ;;  %vm21846_vm7 = vcmp.lt.s32.totalorder %v21740_v36, 16  ;;  %v21848_v54 = vmov 0  ;;  %v21850_v17 = vld [vmem:[#allocation224_spill] sm:$0xff]  ;;  %vm21858_vm10 = vcmp.lt.s32.totalorder %v21747_v19, 16 }
 0x17e   : > { %21828 = vst [vmem:[#allocation47_spill] sm:$0xff] %v15765_v47  ;;  %vm15771_vm9 = vmand %vm21830_vm4, %vm21829_vm1  ;;  %12072 = vmatprep.mubr.msk.bf16.mxu0 %vm21835_vm3, %v21834_v26  ;;  %vm21838_vm1 = vnez %v21837_v16  ;;  %vm21842_vm4 = vnez %v21841_v22  ;;  %vm21847_vm3 = vcmp.ge.s32.totalorder %v21740_v36, 0  ;;  %v21851_v50 = vld [vmem:[#allocation128_spill] sm:$0xff]  ;;  %vm21868_vm13 = vnez %v21649_v61  ;;  %v21901_v26 = vld [vmem:[#allocation85_spill] sm:$0xff] }
 0x17f   : > { %v21832_v11 = vsel %vm15771_vm9, 4294967295, %v21831_v11  ;;  %21836 = vst [vmem:[#allocation144_spill] sm:$0xff] %v15784_v21  ;;  %v21840_v52 = vsel %vm21838_vm1, %v21839_v5, 0.0  ;;  %v21844_v25 = vsel %vm21842_vm4, %v21843_v2, 0.0  ;;  %vm15800_vm8 = vmand %vm21847_vm3, %vm21846_vm7  ;;  %vm21853_vm9 = vnez %v21587_v44  ;;  %v21855_v5 = vld [vmem:[#allocation56_spill] sm:$0xff]  ;;  %v11164_v32 = vld [vmem:[%s13060_s26 + $0x134] sm:$0xff] }
 0x180   : > { %v15794_v23 = vpack.c.bf16 %v21844_v25, %v21840_v52  ;;  %v21849_v54 = vsel %vm15800_vm8, 4294967295, %v21848_v54  ;;  %v4331_v36 = vsel %vm21853_vm9, %v15338_v38, 0.0  ;;  %vm21854_vm7 = vnez %v21617_v57  ;;  %v21856_v52 = vld [vmem:[#allocation59_spill] sm:$0xff]  ;;  %v21857_v22 = vld [vmem:[#allocation72_spill] sm:$0xff] }
 0x181   : > { %v4332_v16 = vsel %vm21854_vm7, %v15361_v28, 0.0  ;;  %vm21859_vm9 = vcmp.ge.s32.totalorder %v21747_v19, 0  ;;  %v21860_v44 = vmov 0  ;;  %v21863_v57 = vld [vmem:[#allocation223_spill] sm:$0xff]  ;;  %vm21864_vm7 = vcmask 1041408  }
 0x182   : > { %21845 = vst [vmem:[#allocation48_spill] sm:$0xff] %v15794_v23  ;;  %vm15826_vm15 = vmand %vm21859_vm9, %vm21858_vm10  ;;  %v15832_v38 = vsel %vm21864_vm7, %v21863_v57, 0  ;;  %v15835_v28 = vld [vmem:[%s13060_s26 + $0x21e] sm:$0xff]  ;;  %v15838_v2 = vld [vmem:[%s13060_s26 + $0x226] sm:$0xff]  ;;  %v15840_v25 = vpack.c.bf16 %v4332_v16, %v4331_v36  ;;  %v4335_v19 = vsel %vm21868_vm13, %v15393_v9, 0.0  ;;  %vm21869_vm10 = vnez %v21634_v10 }
 0x183   : > { %v21861_v44 = vsel %vm15826_vm15, 4294967295, %v21860_v44  ;;  %21865 = vst [vmem:[#allocation153_spill] sm:$0xff] %v15835_v28  ;;  %21866 = vst [vmem:[#allocation54_spill] sm:$0xff] %v15838_v2  ;;  %v4336_v43 = vsel %vm21869_vm10, %v15411_v41, 0.0  ;;  %vm21871_vm7 = vcmp.lt.s32.totalorder %v21753_v39, 16  ;;  %vm21872_vm1 = vcmp.ge.s32.totalorder %v21753_v39, 0 }
 0x184   : > { %21862 = vst [vmem:[#allocation53_spill] sm:$0xff] %v21861_v44  ;;  %21867 = vst [vmem:[#allocation87_spill] sm:$0xff] %v15840_v25  ;;  %v21873_v36 = vmov 0  ;;  %v15859_v61 = vpack.c.bf16 %v4336_v43, %v4335_v19  ;;  %v21877_v10 = vld [vmem:[#allocation84_spill] sm:$0xff]  ;;  %v21880_v9 = vld [vmem:[#allocation61_spill] sm:$0xff]  ;;  %vm21887_vm3 = vcmp.lt.s32.totalorder %v21763_v6, 16 }
 0x185   : > { %vm15854_vm8 = vmand %vm21872_vm1, %vm21871_vm7  ;;  %vm21878_vm13 = vnez %v21877_v10  ;;  %vm21881_vm10 = vnez %v21880_v9  ;;  %vm21884_vm1 = vnez %v21664_v27  ;;  %vm21885_vm7 = vnez %v21659_v58  ;;  %v11078_v43 = vld [vmem:[%s13060_s26 + $0x23e] sm:$0xff]  ;;  %v11079_v19 = vld [vmem:[%s13060_s26 + $0x246] sm:$0xff] }
 0x186   : > { %v21874_v36 = vsel %vm15854_vm8, 4294967295, %v21873_v36  ;;  %21876 = vst [vmem:[#allocation90_spill] sm:$0xff] %v15859_v61  ;;  %v21879_v41 = vsel %vm21878_vm13, %v21724_v37, 0.0  ;;  %v21882_v16 = vsel %vm21881_vm10, %v21728_v3, 0.0  ;;  %v4339_v39 = vsel %vm21884_vm1, %v15457_v35, 0.0  ;;  %v21893_v58 = vld [vmem:[#allocation110_spill] sm:$0xff] }
 0x187   : > { %21875 = vst [vmem:[#allocation198_spill] sm:$0xff] %v21874_v36  ;;  %v15869_v57 = vpack.c.bf16 %v21882_v16, %v21879_v41  ;;  %v4340_v20 = vsel %vm21885_vm7, %v15460_v14, 0.0  ;;  %vm21888_vm11 = vcmp.ge.s32.totalorder %v21763_v6, 0  ;;  %v21889_v3 = vmov 0  ;;  %v21896_v14 = vld [vmem:[#allocation95_spill] sm:$0xff]  ;;  %v21925_v25 = vld [vmem:[#allocation62_spill] sm:$0xff] }
 0x188   : > { %vm15885_vm10 = vmand %vm21888_vm11, %vm21887_vm3  ;;  %v15889_v27 = vpack.c.bf16 %v4340_v20, %v4339_v39  ;;  %vm21894_vm1 = vnez %v21893_v58  ;;  %vm21897_vm7 = vnez %v21896_v14  ;;  %v4343_v6 = vsel %vm15321_vm12, %v15492_v4, 0.0  ;;  %v11082_v20 = vld [vmem:[%s13060_s26 + $0x25e] sm:$0xff]  ;;  %v11083_v39 = vld [vmem:[%s13060_s26 + $0x266] sm:$0xff] }
 0x189   : > { %21883 = vst [vmem:[#allocation203_spill] sm:$0xff] %v15869_v57  ;;  %v21890_v3 = vsel %vm15885_vm10, 4294967295, %v21889_v3  ;;  %v21895_v35 = vsel %vm21894_vm1, %v13953_v24, 0.0  ;;  %v21898_v37 = vsel %vm21897_vm7, %v21737_v51, 0.0  ;;  %v4344_v61 = vsel %vm15344_vm2, %v21901_v26, 0.0  ;;  %v21910_v51 = vld [vmem:[#allocation135_spill] sm:$0xff] }
 0x18a   : > { %21891 = vst [vmem:[#allocation232_spill] sm:$0xff] %v21890_v3  ;;  %21892 = vst [vmem:[#allocation162_spill] sm:$0xff] %v15889_v27  ;;  %v15899_v41 = vpack.c.bf16 %v21898_v37, %v21895_v35  ;;  %v21903_v27 = vld [vmem:[#allocation102_spill] sm:$0xff]  ;;  %vm21904_vm9 = vcmp.lt.s32.totalorder %v21768_v30, 16  ;;  %vm21905_vm4 = vcmp.ge.s32.totalorder %v21768_v30, 0  ;;  %v21906_v24 = vmov 0 }
 0x18b   : > { %vm15915_vm7 = vmand %vm21905_vm4, %vm21904_vm9  ;;  %v15919_v4 = vpack.c.bf16 %v4344_v61, %v4343_v6  ;;  %vm21911_vm2 = vnez %v21910_v51  ;;  %v21912_v26 = vld [vmem:[#allocation136_spill] sm:$0xff]  ;;  %v21916_v37 = vld [vmem:[#allocation121_spill] sm:$0xff]  ;;  %v4347_v30 = vsel %vm15375_vm14, %v15835_v28, 0.0  ;;  %v4348_v47 = vsel %vm15399_vm0, %v15838_v2, 0.0 }
 0x18c   : > { %21899 = vst [vmem:[#allocation229_spill] sm:$0xff] %v15899_v41  ;;  %v21907_v24 = vsel %vm15915_vm7, 4294967295, %v21906_v24  ;;  %v21913_v57 = vsel %vm21911_vm2, %v21912_v26, 0.0  ;;  %v21914_v35 = vld [vmem:[#allocation120_spill] sm:$0xff]  ;;  %v11086_v61 = vld [vmem:[%s13060_s26 + $0x27e] sm:$0xff]  ;;  %v15941_v26 = vpack.c.bf16 %v4348_v47, %v4347_v30  ;;  %v11140_v47 = vld [vmem:[%s13060_s26 + $0x74] sm:$0xff] }
 0x18d   : > { %21908 = vst [vmem:[#allocation180_spill] sm:$0xff] %v21907_v24  ;;  %21909 = vst [vmem:[#allocation130_spill] sm:$0xff] %v15919_v4  ;;  %vm21915_vm12 = vnez %v21914_v35  ;;  %v11087_v6 = vld [vmem:[%s13060_s26 + $0x286] sm:$0xff]  ;;  %v21930_v2 = vld [vmem:[#allocation246_spill] sm:$0xff]  ;;  %vm21933_vm9 = vcmp.lt.s32.totalorder %v21784_v49, 16  ;;  %vm22003_vm13 = vcmp.lt.s32.totalorder %v21833_v40, 16 }
 0x18e   : > { %v21917_v16 = vsel %vm21915_vm12, %v21916_v37, 0.0  ;;  %v21921_v4 = vld [vmem:[#allocation119_spill] sm:$0xff]  ;;  %21922 = vst [vmem:[#allocation227_spill] sm:$0xff] %v15941_v26  ;;  %vm21931_vm14 = vnez %v21930_v2  ;;  %v11139_v35 = vld [vmem:[%s13060_s26 + $0x6c] sm:$0xff]  ;;  %v21952_v51 = vld [vmem:[#allocation250_spill] sm:$0xff] }
 0x18f   : > { %v15929_v41 = vpack.c.bf16 %v21917_v16, %v21913_v57  ;;  %v21923_v57 = vld [vmem:[#allocation75_spill] sm:$0xff]  ;;  %v21926_v16 = vsel %vm21727_vm6, %v21925_v25, 0.0  ;;  %v4352_v28 = vsel %vm21931_vm14, %v11079_v19, 0.0  ;;  %v11143_v30 = vld [vmem:[%s13060_s26 + $0x8c] sm:$0xff]  ;;  %vm21934_vm6 = vcmp.ge.s32.totalorder %v21784_v49, 0  ;;  %v22032_v9 = vld [vmem:[#allocation122_spill] sm:$0xff] }
 0x190   : > { %v21924_v37 = vsel %vm21723_vm5, %v21923_v57, 0.0  ;;  %v21932_v26 = vld [vmem:[#allocation131_spill] sm:$0xff]  ;;  %vm15966_vm11 = vmand %vm21934_vm6, %vm21933_vm9  ;;  %v21943_v19 = vld [vmem:[#allocation212_spill] sm:$0xff]  ;;  %vm21953_vm9 = vnez %v21952_v51  ;;  %vm21957_vm5 = vcmp.ge.s32.totalorder %v21791_v55, 0 }
 0x191   : > { %21918 = vst [vmem:[#allocation177_spill] sm:$0xff] %v15929_v41  ;;  %v15951_v23 = vpack.c.bf16 %v21926_v16, %v21924_v37  ;;  %v21928_v41 = vld [vmem:[#allocation248_spill] sm:$0xff]  ;;  %v21936_v33 = vsel %vm15966_vm11, 4294967295, %v21935_v33  ;;  %vm21944_vm14 = vnez %v21943_v19  ;;  %v21945_v57 = vld [vmem:[#allocation215_spill] sm:$0xff]  ;;  %v21949_v49 = vld [vmem:[#allocation201_spill] sm:$0xff]  ;;  %v4355_v14 = vsel %vm21953_vm9, %v11082_v20, 0.0 }
 0x192   : > { %vm21929_vm0 = vnez %v21928_v41  ;;  %21937 = vst [vmem:[#allocation56_spill] sm:$0xff] %v21936_v33  ;;  %v21946_v37 = vsel %vm21944_vm14, %v21945_v57, 0.0  ;;  %v21947_v25 = vld [vmem:[#allocation200_spill] sm:$0xff]  ;;  %v21962_v51 = vld [vmem:[#allocation213_spill] sm:$0xff]  ;;  %vm21963_vm9 = vcmask 31744  }
 0x193   : > { %21927 = vst [vmem:[#allocation224_spill] sm:$0xff] %v15951_v23  ;;  %v4351_v1 = vsel %vm21929_vm0, %v11078_v43, 0.0  ;;  %v21939_v43 = vld [vmem:[#allocation152_spill] sm:$0xff]  ;;  %vm21941_vm0 = vcmask 31744   ;;  %vm21948_vm4 = vnez %v21947_v25 }
 0x194   : > { %v21940_v41 = vpack.c.bf16 %v21938_v29, %v21939_v43  ;;  %v15974_v2 = vpack.c.bf16 %v4352_v28, %v4351_v1  ;;  %v21950_v16 = vsel %vm21948_vm4, %v21949_v49, 0.0  ;;  %v21954_v29 = vld [vmem:[#allocation55_spill] sm:$0xff]  ;;  %v11147_v58 = vld [vmem:[%s13060_s26 + $0xac] sm:$0xff]  ;;  %v21958_v1 = vmov 0 }
 0x195   : > { %v15984_v23 = vpack.c.bf16 %v21950_v16, %v21946_v37  ;;  %vm21955_vm6 = vnez %v21954_v29  ;;  %v21961_v28 = vld [vmem:[#allocation113_spill] sm:$0xff]  ;;  %v21967_v19 = vld [vmem:[#allocation184_spill] sm:$0xff]  ;;  %v4359_v16 = vsel %vm15915_vm7, %v11086_v61, 0.0  ;;  %v4360_v29 = vsel %vm15885_vm10, %v11087_v6, 0.0 }
 0x196   : > { %12073 = vmatmul.mubr.msk.bf16.gmra.mxu0 %vm21941_vm0, %v21940_v41  ;;  %21942 = vst [vmem:[#allocation59_spill] sm:$0xff] %v15974_v2  ;;  %v4356_v43 = vsel %vm21955_vm6, %v11083_v39, 0.0  ;;  %v11144_v41 = vld [vmem:[%s13060_s26 + $0x94] sm:$0xff]  ;;  %vm21956_vm0 = vcmp.lt.s32.totalorder %v21791_v55, 16  ;;  %v21965_v39 = vld [vmem:[#allocation172_spill] sm:$0xff]  ;;  %v16032_v61 = vpack.c.bf16 %v4360_v29, %v4359_v16  ;;  %vm21981_vm10 = vnez %v21801_v12  ;;  %v21994_v29 = vld [vmem:[#allocation27_spill] sm:$0xff] }
 0x197   : > { %21951 = vst [vmem:[#allocation72_spill] sm:$0xff] %v15984_v23  ;;  %vm15996_vm3 = vmand %vm21957_vm5, %vm21956_vm0  ;;  %12112 = vmatprep.mubr.msk.bf16.mxu0 %vm21963_vm9, %v21962_v51  ;;  %v16004_v20 = vpack.c.bf16 %v4356_v43, %v4355_v14  ;;  %vm21966_vm6 = vnez %v21965_v39  ;;  %v21969_v55 = vld [vmem:[#allocation226_spill] sm:$0xff]  ;;  %v21971_v37 = vld [vmem:[#allocation228_spill] sm:$0xff]  ;;  %vm21974_vm0 = vcmp.lt.s32.totalorder %v21806_v13, 16  ;;  %vm21975_vm9 = vcmp.ge.s32.totalorder %v21806_v13, 0 }
 0x198   : > { %v21959_v1 = vsel %vm15996_vm3, 4294967295, %v21958_v1  ;;  %v21968_v57 = vsel %vm21966_vm6, %v21967_v19, 0.0  ;;  %vm21970_vm5 = vnez %v21969_v55  ;;  %v11148_v23 = vld [vmem:[%s13060_s26 + $0xb4] sm:$0xff]  ;;  %v11151_v51 = vld [vmem:[%s13060_s26 + $0xcc] sm:$0xff]  ;;  %vm16026_vm4 = vmand %vm21975_vm9, %vm21974_vm0  ;;  %v21976_v14 = vmov 0  ;;  %21980 = vst [vmem:[#allocation85_spill] sm:$0xff] %v16032_v61 }
 0x199   : > { %21960 = vst [vmem:[#allocation223_spill] sm:$0xff] %v21959_v1  ;;  %21964 = vst [vmem:[#allocation65_spill] sm:$0xff] %v16004_v20  ;;  %v21972_v25 = vsel %vm21970_vm5, %v21971_v37, 0.0  ;;  %v21977_v14 = vsel %vm16026_vm4, 4294967295, %v21976_v14  ;;  %v21979_v43 = vld [vmem:[#allocation235_spill] sm:$0xff]  ;;  %v5449_v6 = vsel %vm21981_vm10, %v11139_v35, 0.0  ;;  %vm21982_vm7 = vnez %v21805_v31 }
 0x19a   : > { %v16014_v49 = vpack.c.bf16 %v21972_v25, %v21968_v57  ;;  %21978 = vst [vmem:[#allocation186_spill] sm:$0xff] %v21977_v14  ;;  %v5450_v19 = vsel %vm21982_vm7, %v11140_v47, 0.0  ;;  %vm21983_vm5 = vnez %v21820_v34  ;;  %v11152_v57 = vld [vmem:[%s13060_s26 + $0xd4] sm:$0xff]  ;;  %v11155_v37 = vld [vmem:[%s13060_s26 + $0xec] sm:$0xff]  ;;  %vm21984_vm0 = vcmp.lt.s32.totalorder %v21821_v15, 16 }
 0x19b   : > { %v5453_v13 = vsel %vm21983_vm5, %v11143_v30, 0.0  ;;  %vm21985_vm9 = vcmp.ge.s32.totalorder %v21821_v15, 0  ;;  %v21986_v25 = vmov 0  ;;  %v21989_v16 = vld [vmem:[#allocation161_spill] sm:$0xff]  ;;  %v16051_v35 = vpack.c.bf16 %v5450_v19, %v5449_v6  ;;  %v21992_v30 = vld [vmem:[#allocation86_spill] sm:$0xff]  ;;  %v22002_v6 = vld [vmem:[#allocation148_spill] sm:$0xff] }
 0x19c   : > { %21973 = vst [vmem:[#allocation99_spill] sm:$0xff] %v16014_v49  ;;  %vm16046_vm14 = vmand %vm21985_vm9, %vm21984_vm0  ;;  %1010 = vmatmul.mubr.bf16.gmra.mxu1 %v21989_v16  ;;  %vm21991_vm6 = vnez %v21815_v8  ;;  %vm21993_vm12 = vnez %v21992_v30  ;;  %v21996_v49 = vld [vmem:[#allocation78_spill] sm:$0xff]  ;;  %v21998_v15 = vld [vmem:[#allocation77_spill] sm:$0xff]  ;;  %vm22001_vm0 = vnez %v21849_v54  ;;  %v5461_v39 = vsel %vm15854_vm8, %v11151_v51, 0.0 }
 0x19d   : > { %v21987_v25 = vsel %vm16046_vm14, 4294967295, %v21986_v25  ;;  %21990 = vst [vmem:[#allocation102_spill] sm:$0xff] %v16051_v35  ;;  %v5454_v47 = vsel %vm21991_vm6, %v11144_v41, 0.0  ;;  %v21995_v61 = vsel %vm21993_vm12, %v21994_v29, 0.0  ;;  %vm21997_vm2 = vnez %v21996_v49  ;;  %v11156_v16 = vld [vmem:[%s13060_s26 + $0xf4] sm:$0xff]  ;;  %v11159_v24 = vld [vmem:[%s13060_s26 + $0x10c] sm:$0xff]  ;;  %1019 = vmatprep.mubr.bf16.mxu1 %v21536_v60 }
 0x19e   : > { %21988 = vst [vmem:[#allocation239_spill] sm:$0xff] %v21987_v25  ;;  %v21999_v20 = vsel %vm21997_vm2, %v21998_v15, 0.0  ;;  %v5457_v3 = vsel %vm22001_vm0, %v11147_v58, 0.0  ;;  %vm22004_vm6 = vcmp.ge.s32.totalorder %v21833_v40, 0  ;;  %v22005_v41 = vmov 0  ;;  %v22012_v19 = vld [vmem:[#allocation39_spill] sm:$0xff] }
 0x19f   : > { %v16063_v2 = vpack.c.bf16 %v21999_v20, %v21995_v61  ;;  %vm16075_vm12 = vmand %vm22004_vm6, %vm22003_vm13  ;;  %v16080_v20 = vpack.c.bf16 %v5454_v47, %v5453_v13  ;;  %vm22009_vm0 = vnez %v21832_v11  ;;  %v22010_v61 = vld [vmem:[#allocation112_spill] sm:$0xff]  ;;  %v22014_v15 = vld [vmem:[#allocation98_spill] sm:$0xff]  ;;  %v5462_v51 = vsel %vm15826_vm15, %v11152_v57, 0.0 }
 0x1a0   : > { %v22006_v41 = vsel %vm16075_vm12, 4294967295, %v22005_v41  ;;  %v5458_v58 = vsel %vm22009_vm0, %v11148_v23, 0.0  ;;  %vm22011_vm9 = vnez %v22010_v61  ;;  %vm22015_vm1 = vnez %v22014_v15  ;;  %v11160_v55 = vld [vmem:[%s13060_s26 + $0x114] sm:$0xff]  ;;  %v11163_v13 = vld [vmem:[%s13060_s26 + $0x12c] sm:$0xff]  ;;  %v22019_v47 = vld [vmem:[#allocation159_spill] sm:$0xff] }
 0x1a1   : > { %22000 = vst [vmem:[#allocation136_spill] sm:$0xff] %v16063_v2  ;;  %22007 = vst [vmem:[#allocation121_spill] sm:$0xff] %v22006_v41  ;;  %v22013_v29 = vsel %vm22011_vm9, %v22012_v19, 0.0  ;;  %v22016_v2 = vld [vmem:[#allocation97_spill] sm:$0xff]  ;;  %vm22020_vm0 = vcmp.lt.s32.totalorder %v21850_v17, 16  ;;  %vm22021_vm9 = vcmp.ge.s32.totalorder %v21850_v17, 0 }
 0x1a2   : > { %22008 = vst [vmem:[#allocation242_spill] sm:$0xff] %v16080_v20  ;;  %v22017_v40 = vsel %vm22015_vm1, %v22016_v2, 0.0  ;;  %vm16104_vm2 = vmand %vm22021_vm9, %vm22020_vm0  ;;  %v22022_v23 = vmov 0  ;;  %v16108_v2 = vpack.c.bf16 %v5458_v58, %v5457_v3  ;;  %v22030_v20 = vld [vmem:[#allocation123_spill] sm:$0xff]  ;;  %v5465_v17 = vsel %vm15996_vm3, %v11155_v37, 0.0  ;;  %v11167_v19 = vld [vmem:[%s13060_s26 + $0x14c] sm:$0xff] }
 0x1a3   : > { %v16092_v35 = vpack.c.bf16 %v22017_v40, %v22013_v29  ;;  %v22023_v23 = vsel %vm16104_vm2, 4294967295, %v22022_v23  ;;  %v22026_v29 = vld [vmem:[#allocation137_spill] sm:$0xff]  ;;  %vm22031_vm13 = vnez %v22030_v20  ;;  %vm22035_vm0 = vcmp.lt.s32.totalorder %v21855_v5, 16  ;;  %v16152_v57 = vld [vmem:[%s13060_s26 + $0x1e2] sm:$0xff] }
 0x1a4   : > { %22024 = vst [vmem:[#allocation119_spill] sm:$0xff] %v22023_v23  ;;  %22025 = vst [vmem:[#allocation75_spill] sm:$0xff] %v16108_v2  ;;  %vm22027_vm8 = vnez %v22026_v29  ;;  %v22028_v40 = vld [vmem:[#allocation45_spill] sm:$0xff]  ;;  %v22033_v10 = vsel %vm22031_vm13, %v22032_v9, 0.0  ;;  %vm22036_vm9 = vcmp.ge.s32.totalorder %v21855_v5, 0  ;;  %v22037_v3 = vmov 0  ;;  %1020 = vmatmul.mubr.bf16.gmra.mxu1 %v15759_v46 }
 0x1a5   : > { %22018 = vst [vmem:[#allocation244_spill] sm:$0xff] %v16092_v35  ;;  %v22029_v35 = vsel %vm22027_vm8, %v22028_v40, 0.0  ;;  %vm16129_vm6 = vmand %vm22036_vm9, %vm22035_vm0  ;;  %vm22039_vm8 = vcmp.lt.s32.totalorder %v21856_v52, 16  ;;  %vm22040_vm15 = vcmp.ge.s32.totalorder %v21856_v52, 0  ;;  %vm22043_vm1 = vcmp.lt.s32.totalorder %v21857_v22, 16  ;;  %v22047_v5 = vld [vmem:[#allocation202_spill] sm:$0xff]  ;;  %1029 = vmatprep.mubr.bf16.mxu1 %v21536_v60 }
 0x1a6   : > { %v16120_v45 = vpack.c.bf16 %v22033_v10, %v22029_v35  ;;  %v22038_v3 = vsel %vm16129_vm6, 4294967295, %v22037_v3  ;;  %vm16137_vm13 = vmand %vm22040_vm15, %vm22039_vm8  ;;  %v22041_v10 = vmov 0  ;;  %vm22044_vm3 = vcmp.ge.s32.totalorder %v21857_v22, 0  ;;  %v22049_v35 = vld [vmem:[#allocation163_spill] sm:$0xff]  ;;  %v22055_v2 = vld [vmem:[#allocation150_spill] sm:$0xff] }
 0x1a7   : > { %v22042_v10 = vsel %vm16137_vm13, 4294967295, %v22041_v10  ;;  %vm16145_vm5 = vmand %vm22044_vm3, %vm22043_vm1  ;;  %v22045_v9 = vmov 0  ;;  %v16154_v52 = vpack.c.bf16 %v5462_v51, %v5461_v39  ;;  %v5466_v37 = vsel %vm15966_vm11, %v11156_v16, 0.0  ;;  %v22051_v22 = vld [vmem:[#allocation51_spill] sm:$0xff]  ;;  %v16181_v51 = vld [vmem:[%s13060_s26 + $0x1ea] sm:$0xff] }
 0x1a8   : > { %22034 = vst [vmem:[#allocation62_spill] sm:$0xff] %v16120_v45  ;;  %v22046_v9 = vsel %vm16145_vm5, 4294967295, %v22045_v9  ;;  %vm22050_vm15 = vnez %v22049_v35  ;;  %v22053_v45 = vld [vmem:[#allocation143_spill] sm:$0xff]  ;;  %v5469_v53 = vsel %vm16046_vm14, %v11159_v24, 0.0  ;;  %vm22058_vm1 = vcmp.lt.s32.totalorder %v21870_v7, 16  ;;  %v16299_v46 = vld [vmem:[%s13060_s26 + $0x1cc] sm:$0xff] }
 0x1a9   : > { %22048 = vst [vmem:[#allocation248_spill] sm:$0xff] %v16154_v52  ;;  %v22052_v58 = vsel %vm22050_vm15, %v22051_v22, 0.0  ;;  %vm22054_vm8 = vnez %v22053_v45  ;;  %vm22059_vm3 = vcmp.ge.s32.totalorder %v21870_v7, 0  ;;  %v22060_v39 = vmov 0  ;;  %v22062_v16 = vld [vmem:[#allocation207_spill] sm:$0xff]  ;;  %v22070_v52 = vld [vmem:[#allocation204_spill] sm:$0xff] }
 0x1aa   : > { %v22056_v48 = vsel %vm22054_vm8, %v22055_v2, 0.0  ;;  %vm16174_vm0 = vmand %vm22059_vm3, %vm22058_vm1  ;;  %v5470_v24 = vsel %vm16026_vm4, %v11160_v55, 0.0  ;;  %v22064_v2 = vld [vmem:[#allocation216_spill] sm:$0xff]  ;;  %v22066_v7 = vld [vmem:[#allocation67_spill] sm:$0xff]  ;;  %v5473_v18 = vsel %vm16075_vm12, %v11163_v13, 0.0  ;;  %vm22073_vm3 = vcmp.lt.s32.totalorder %v21886_v63, 16 }
 0x1ab   : > { %v16166_v59 = vpack.c.bf16 %v22056_v48, %v22052_v58  ;;  %v22061_v39 = vsel %vm16174_vm0, 4294967295, %v22060_v39  ;;  %v16183_v48 = vpack.c.bf16 %v5466_v37, %v5465_v17  ;;  %vm22065_vm13 = vnez %v22064_v2  ;;  %v22077_v17 = vld [vmem:[#allocation57_spill] sm:$0xff] }
 0x1ac   : > { %v22067_v58 = vsel %vm22065_vm13, %v22066_v7, 0.0  ;;  %vm22074_vm9 = vcmp.ge.s32.totalorder %v21886_v63, 0  ;;  %v22075_v55 = vmov 0  ;;  %v16217_v63 = vpack.c.bf16 %v5470_v24, %v5469_v53  ;;  %v16222_v7 = vld [vmem:[%s13060_s26 + $0x16c] sm:$0xff]  ;;  %1030 = vmatmul.mubr.bf16.gmra.mxu1 %v15730_v0 }
 0x1ad   : > { %22057 = vst [vmem:[#allocation246_spill] sm:$0xff] %v16166_v59  ;;  %22063 = vst [vmem:[#allocation131_spill] sm:$0xff] %v16183_v48  ;;  %v22068_v59 = vld [vmem:[#allocation205_spill] sm:$0xff]  ;;  %v5474_v48 = vsel %vm16104_vm2, %v11164_v32, 0.0  ;;  %vm22090_vm12 = vcmask 31744   ;;  %v6657_v21 = vsel %vm21982_vm7, %v11164_v32, 0.0  ;;  %vm22101_vm6 = vnez %v21820_v34  ;;  %1039 = vmatprep.mubr.bf16.mxu1 %v21536_v60 }
 0x1ae   : > { %vm22069_vm1 = vnez %v22068_v59  ;;  %vm16205_vm5 = vmand %vm22074_vm9, %vm22073_vm3  ;;  %22083 = vst [vmem:[#allocation152_spill] sm:$0xff] %v16217_v63  ;;  %vm22084_vm9 = vcmp.lt.s32.totalorder %v21903_v27, 16  ;;  %v22088_v37 = vld [vmem:[#allocation225_spill] sm:$0xff]  ;;  %v6656_v63 = vsel %vm21981_vm10, %v11163_v13, 0.0  ;;  %v6660_v32 = vsel %vm22101_vm6, %v11167_v19, 0.0 }
 0x1af   : > { %v22071_v22 = vsel %vm22069_vm1, %v22070_v52, 0.0  ;;  %v22076_v55 = vsel %vm16205_vm5, 4294967295, %v22075_v55  ;;  %v22078_v52 = vld [vmem:[#allocation23_spill] sm:$0xff]  ;;  %vm22079_vm1 = vcmask 31744   ;;  %v22089_v53 = vld [vmem:[#allocation245_spill] sm:$0xff]  ;;  %v16262_v13 = vpack.c.bf16 %v6657_v21, %v6656_v63 }
 0x1b0   : > { %v16195_v40 = vpack.c.bf16 %v22071_v22, %v22067_v58  ;;  %12113 = vmatmul.mubr.msk.bf16.vlgmr.msra.gmra.mxu0 %vm22079_vm1, %v22078_v52  ;;  %vm22085_vm1 = vcmp.ge.s32.totalorder %v21903_v27, 0  ;;  %v22086_v52 = vmov 0  ;;  %v22091_v24 = vld [vmem:[#allocation145_spill] sm:$0xff]  ;;  %v16241_v27 = vpack.c.bf16 %v5474_v48, %v5473_v18  ;;  %v22098_v18 = vld [vmem:[#allocation151_spill] sm:$0xff] }
 0x1b1   : > { %vm16229_vm3 = vmand %vm22085_vm1, %vm22084_vm9  ;;  %12116 = vmatprep.mubr.msk.bf16.mxu0 %vm22090_vm12, %v22089_v53  ;;  %12179 = vmatpush3.bf16.msra.mxu0 %v15832_v38  ;;  %v16248_v22 = vld [vmem:[%s13060_s26 + $0x18c] sm:$0xff]  ;;  %v11298_v58 = vld [vmem:[%s13060_s26 + $0x194] sm:$0xff]  ;;  %vm22094_vm12 = vcmp.lt.s32.totalorder %v21921_v4, 16  ;;  %vm22095_vm9 = vcmp.ge.s32.totalorder %v21921_v4, 0  ;;  %v22096_v53 = vmov 0  ;;  %22100 = vst [vmem:[#allocation215_spill] sm:$0xff] %v16262_v13  ;;  %vm22102_vm7 = vnez %v21815_v8 }
 0x1b2   : > { %22072 = vst [vmem:[#allocation237_spill] sm:$0xff] %v16195_v40  ;;  %v22087_v52 = vsel %vm16229_vm3, 4294967295, %v22086_v52  ;;  %22093 = vst [vmem:[#allocation212_spill] sm:$0xff] %v16241_v27  ;;  %v6661_v48 = vsel %vm22102_vm7, %v11168_v56, 0.0  ;;  %v16269_v40 = vld [vmem:[%s13060_s26 + $0x1ac] sm:$0xff]  ;;  %v11302_v4 = vld [vmem:[%s13060_s26 + $0x1b4] sm:$0xff]  ;;  %vm22108_vm6 = vnez %v21992_v30  ;;  %vm22111_vm7 = vnez %v21996_v49 }
 0x1b3   : > { %vm16255_vm1 = vmand %vm22095_vm9, %vm22094_vm12  ;;  %vm22103_vm12 = vcmp.lt.s32.totalorder %v21932_v26, 16  ;;  %vm22104_vm9 = vcmp.ge.s32.totalorder %v21932_v26, 0  ;;  %v22105_v27 = vmov 0  ;;  %v16281_v21 = vpack.c.bf16 %v6661_v48, %v6660_v32  ;;  %v22109_v56 = vld [vmem:[#allocation28_spill] sm:$0xff]  ;;  %v22112_v63 = vld [vmem:[#allocation79_spill] sm:$0xff] }
 0x1b4   : > { %v22097_v53 = vsel %vm16255_vm1, 4294967295, %v22096_v53  ;;  %vm16276_vm10 = vmand %vm22104_vm9, %vm22103_vm12  ;;  %v22110_v19 = vsel %vm22108_vm6, %v22109_v56, 0.0  ;;  %v22113_v38 = vsel %vm22111_vm7, %v22112_v63, 0.0  ;;  %vm22115_vm12 = vnez %v21849_v54  ;;  %v11306_v32 = vld [vmem:[%s13060_s26 + $0x1d4] sm:$0xff] }
 0x1b5   : > { %v22106_v27 = vsel %vm16276_vm10, 4294967295, %v22105_v27  ;;  %22107 = vst [vmem:[#allocation200_spill] sm:$0xff] %v16281_v21  ;;  %v16291_v13 = vpack.c.bf16 %v22113_v38, %v22110_v19  ;;  %v6664_v26 = vsel %vm22115_vm12, %v16222_v7, 0.0  ;;  %vm22116_vm9 = vnez %v21832_v11  ;;  %v22127_v19 = vld [vmem:[#allocation103_spill] sm:$0xff] }
 0x1b6   : > { %v6665_v8 = vsel %vm22116_vm9, %v11294_v62, 0.0  ;;  %vm22117_vm6 = vcmp.lt.s32.totalorder %v21961_v28, 16  ;;  %vm22118_vm0 = vcmp.ge.s32.totalorder %v21961_v28, 0  ;;  %v22119_v48 = vmov 0  ;;  %v22124_v62 = vld [vmem:[#allocation81_spill] sm:$0xff] }
 0x1b7   : > { %22114 = vst [vmem:[#allocation201_spill] sm:$0xff] %v16291_v13  ;;  %vm16306_vm5 = vmand %vm22118_vm0, %vm22117_vm6  ;;  %v16311_v38 = vpack.c.bf16 %v6665_v8, %v6664_v26  ;;  %vm22123_vm12 = vnez %v22010_v61  ;;  %vm22126_vm9 = vnez %v22014_v15  ;;  %vm22130_vm6 = vnez %v21874_v36  ;;  %v16329_v26 = vld [vmem:[%s13060_s26 + $0x1ec] sm:$0xff]  ;;  %v11371_v15 = vld [vmem:[%s13060_s26 + $0x1e4] sm:$0xff] }
 0x1b8   : > { %v22120_v48 = vsel %vm16306_vm5, 4294967295, %v22119_v48  ;;  %v22125_v56 = vsel %vm22123_vm12, %v22124_v62, 0.0  ;;  %v22128_v63 = vsel %vm22126_vm9, %v22127_v19, 0.0  ;;  %v6668_v28 = vsel %vm22130_vm6, %v16248_v22, 0.0 }
 0x1b9   : > { %22121 = vst [vmem:[#allocation250_spill] sm:$0xff] %v22120_v48  ;;  %22122 = vst [vmem:[#allocation55_spill] sm:$0xff] %v16311_v38  ;;  %v16321_v13 = vpack.c.bf16 %v22128_v63, %v22125_v56  ;;  %vm22131_vm0 = vnez %v21861_v44  ;;  %v16332_v38 = vld [vmem:[%s13060_s26 + $0x1f4] sm:$0xff]  ;;  %vm22132_vm12 = vcmp.lt.s32.totalorder %v21979_v43, 16  ;;  %vm22133_vm9 = vcmp.ge.s32.totalorder %v21979_v43, 0  ;;  %v22139_v63 = vld [vmem:[#allocation104_spill] sm:$0xff] }
 0x1ba   : > { %v6669_v8 = vsel %vm22131_vm0, %v11298_v58, 0.0  ;;  %vm16338_vm7 = vmand %vm22133_vm9, %vm22132_vm12  ;;  %v22134_v56 = vmov 0  ;;  %vm22138_vm6 = vnez %v22026_v29  ;;  %vm22141_vm0 = vnez %v22030_v20  ;;  %v22142_v58 = vld [vmem:[#allocation125_spill] sm:$0xff]  ;;  %v22147_v20 = vld [vmem:[#allocation132_spill] sm:$0xff] }
 0x1bb   : > { %22129 = vst [vmem:[#allocation113_spill] sm:$0xff] %v16321_v13  ;;  %v22135_v56 = vsel %vm16338_vm7, 4294967295, %v22134_v56  ;;  %v16342_v19 = vpack.c.bf16 %v6669_v8, %v6668_v28  ;;  %v22140_v13 = vsel %vm22138_vm6, %v22139_v63, 0.0  ;;  %v22143_v21 = vsel %vm22141_vm0, %v22142_v58, 0.0  ;;  %v16360_v28 = vld [vmem:[%s13060_s26 + $0x20c] sm:$0xff]  ;;  %v16363_v8 = vld [vmem:[%s13060_s26 + $0x214] sm:$0xff] }
 0x1bc   : > { %22136 = vst [vmem:[#allocation213_spill] sm:$0xff] %v22135_v56  ;;  %v16352_v44 = vpack.c.bf16 %v22143_v21, %v22140_v13  ;;  %vm22145_vm1 = vnez %v21959_v1  ;;  %v6673_v36 = vsel %vm15966_vm11, %v11302_v4, 0.0  ;;  %v22148_v58 = vsel %vm22050_vm15, %v22147_v20, 0.0  ;;  %v22149_v13 = vld [vmem:[#allocation154_spill] sm:$0xff]  ;;  %v16383_v1 = vld [vmem:[%s13060_s26 + $0x144] sm:$0xff]  ;;  %v22200_v56 = vld [vmem:[#allocation93_spill] sm:$0xff] }
 0x1bd   : > { %22137 = vst [vmem:[#allocation184_spill] sm:$0xff] %v16342_v19  ;;  %v6672_v43 = vsel %vm22145_vm1, %v16269_v40, 0.0  ;;  %v22150_v21 = vsel %vm22054_vm8, %v22149_v13, 0.0  ;;  %v6676_v4 = vsel %vm16046_vm14, %v16299_v46, 0.0  ;;  %v6677_v33 = vsel %vm16026_vm4, %v11306_v32, 0.0  ;;  %v22157_v32 = vld [vmem:[#allocation157_spill] sm:$0xff] }
 0x1be   : > { %22144 = vst [vmem:[#allocation228_spill] sm:$0xff] %v16352_v44  ;;  %v16365_v19 = vpack.c.bf16 %v6673_v36, %v6672_v43  ;;  %v16375_v44 = vpack.c.bf16 %v22150_v21, %v22148_v58  ;;  %v16386_v36 = vld [vmem:[%s13060_s26 + $0x14c] sm:$0xff]  ;;  %v16389_v43 = vld [vmem:[%s13060_s26 + $0x164] sm:$0xff]  ;;  %vm22152_vm12 = vcmp.lt.s32.totalorder %v22002_v6, 16  ;;  %vm22153_vm9 = vcmp.ge.s32.totalorder %v22002_v6, 0 }
 0x1bf   : > { %vm16395_vm8 = vmand %vm22153_vm9, %vm22152_vm12  ;;  %v22154_v58 = vmov 0  ;;  %v16399_v13 = vpack.c.bf16 %v6677_v33, %v6676_v4  ;;  %v22158_v21 = vsel %vm22065_vm13, %v22157_v32, 0.0  ;;  %vm22159_vm4 = vnez %v22068_v59  ;;  %v11359_v33 = vld [vmem:[%s13060_s26 + $0x184] sm:$0xff] }
 0x1c0   : > { %22146 = vst [vmem:[#allocation235_spill] sm:$0xff] %v16365_v19  ;;  %22151 = vst [vmem:[#allocation161_spill] sm:$0xff] %v16375_v44  ;;  %v22155_v58 = vsel %vm16395_vm8, 4294967295, %v22154_v58  ;;  %v22160_v44 = vld [vmem:[#allocation206_spill] sm:$0xff]  ;;  %vm22163_vm14 = vnez %v22006_v41  ;;  %v6681_v25 = vsel %vm16104_vm2, %v16332_v38, 0.0  ;;  %vm22164_vm12 = vcmp.lt.s32.totalorder %v22019_v47, 16 }
 0x1c1   : > { %22156 = vst [vmem:[#allocation86_spill] sm:$0xff] %v16399_v13  ;;  %v22161_v19 = vsel %vm22159_vm4, %v22160_v44, 0.0  ;;  %v6680_v6 = vsel %vm22163_vm14, %v16329_v26, 0.0  ;;  %vm22165_vm9 = vcmp.ge.s32.totalorder %v22019_v47, 0  ;;  %v22168_v44 = vld [vmem:[#allocation234_spill] sm:$0xff]  ;;  %vm22170_vm14 = vcmask 31744  }
 0x1c2   : > { %v16409_v14 = vpack.c.bf16 %v22161_v19, %v22158_v21  ;;  %vm16422_vm13 = vmand %vm22165_vm9, %vm22164_vm12  ;;  %v22169_v19 = vld [vmem:[#allocation218_spill] sm:$0xff]  ;;  %v16430_v21 = vpack.c.bf16 %v6681_v25, %v6680_v6  ;;  %v22174_v13 = vld [vmem:[#allocation208_spill] sm:$0xff]  ;;  %v6684_v45 = vsel %vm16338_vm7, %v16360_v28, 0.0  ;;  %vm22182_vm12 = vcmp.ge.s32.totalorder %v22047_v5, 0 }
 0x1c3   : > { %12117 = vmatmul.mubr.msk.bf16.gmra.mxu0 %vm22170_vm14, %v22169_v19  ;;  %v22176_v41 = vld [vmem:[#allocation230_spill] sm:$0xff]  ;;  %v22178_v47 = vld [vmem:[#allocation231_spill] sm:$0xff]  ;;  %v6685_v19 = vsel %vm16306_vm5, %v16363_v8, 0.0  ;;  %vm22181_vm14 = vcmp.lt.s32.totalorder %v22047_v5, 16  ;;  %v22183_v6 = vmov 0  ;;  %vm22187_vm7 = vcmask 31744  }
 0x1c4   : > { %22162 = vst [vmem:[#allocation27_spill] sm:$0xff] %v16409_v14  ;;  %22171 = vst [vmem:[#allocation78_spill] sm:$0xff] %v16430_v21  ;;  %v22172_v14 = vld [vmem:[#allocation147_spill] sm:$0xff]  ;;  %vm22177_vm11 = vnez %v22176_v41  ;;  %vm22189_vm5 = vnez %v22038_v3  ;;  %vm22197_vm15 = vnez %v22061_v39  ;;  %vm22211_vm6 = vnez %v22076_v55 }
 0x1c5   : > { %vm22173_vm2 = vnez %v22172_v14  ;;  %v22179_v59 = vsel %vm22177_vm11, %v22178_v47, 0.0  ;;  %v11363_v25 = vld [vmem:[%s13060_s26 + $0x1a4] sm:$0xff]  ;;  %vm16453_vm9 = vmand %vm22182_vm12, %vm22181_vm14  ;;  %v16461_v47 = vpack.c.bf16 %v6685_v19, %v6684_v45  ;;  %vm22190_vm11 = vnez %v22042_v10  ;;  %v22447_v10 = vld [vmem:[#allocation94_spill] sm:$0xff] }
 0x1c6   : > { %v22175_v23 = vsel %vm22173_vm2, %v22174_v13, 0.0  ;;  %v22184_v6 = vsel %vm16453_vm9, 4294967295, %v22183_v6  ;;  %v7311_v5 = vsel %vm22190_vm11, %v16386_v36, 0.0  ;;  %vm22191_vm14 = vnez %v22046_v9  ;;  %v11367_v48 = vld [vmem:[%s13060_s26 + $0x1c4] sm:$0xff] }
 0x1c7   : > { %v16440_v2 = vpack.c.bf16 %v22179_v59, %v22175_v23  ;;  %v22185_v59 = vld [vmem:[#allocation236_spill] sm:$0xff]  ;;  %22188 = vst [vmem:[#allocation148_spill] sm:$0xff] %v16461_v47  ;;  %v7314_v21 = vsel %vm22191_vm14, %v16389_v43, 0.0  ;;  %vm22192_vm12 = vcmp.lt.s32.totalorder %v22062_v16, 16  ;;  %v22194_v45 = vmov 0 }
 0x1c8   : > { %v22186_v23 = vld [vmem:[#allocation60_spill] sm:$0xff]  ;;  %v7322_v0 = vsel %vm16276_vm10, %v11363_v25, 0.0  ;;  %vm22226_vm10 = vnez %v22097_v53  ;;  %v22227_v25 = vld [vmem:[#allocation139_spill] sm:$0xff] }
 0x1c9   : > { %22180 = vst [vmem:[#allocation77_spill] sm:$0xff] %v16440_v2  ;;  %12120 = vmatprep.mubr.msk.bf16.mxu0 %vm22187_vm7, %v22186_v23  ;;  %v7310_v2 = vsel %vm22189_vm5, %v16383_v1, 0.0  ;;  %vm22193_vm7 = vcmp.ge.s32.totalorder %v22062_v16, 0  ;;  %v7315_v23 = vsel %vm22197_vm15, %v16222_v7, 0.0  ;;  %v22198_v47 = vld [vmem:[#allocation92_spill] sm:$0xff]  ;;  %v7318_v16 = vsel %vm16229_vm3, %v11359_v33, 0.0 }
 0x1ca   : > { %vm16477_vm4 = vmand %vm22193_vm7, %vm22192_vm12  ;;  %v16481_v19 = vpack.c.bf16 %v7311_v5, %v7310_v2  ;;  %vm22199_vm2 = vnez %v22198_v47  ;;  %v22202_v14 = vld [vmem:[#allocation40_spill] sm:$0xff]  ;;  %vm22206_vm12 = vcmp.lt.s32.totalorder %v22077_v17, 16  ;;  %vm22207_vm7 = vcmp.ge.s32.totalorder %v22077_v17, 0  ;;  %v22216_v5 = vld [vmem:[#allocation46_spill] sm:$0xff] }
 0x1cb   : > { %v22195_v45 = vsel %vm16477_vm4, 4294967295, %v22194_v45  ;;  %v22201_v41 = vsel %vm22199_vm2, %v22200_v56, 0.0  ;;  %vm22203_vm1 = vnez %v22202_v14  ;;  %vm16503_vm0 = vmand %vm22207_vm7, %vm22206_vm12  ;;  %v22208_v2 = vmov 0 }
 0x1cc   : > { %22196 = vst [vmem:[#allocation97_spill] sm:$0xff] %v16481_v19  ;;  %v22204_v35 = vsel %vm22203_vm1, %v22124_v62, 0.0  ;;  %v22209_v2 = vsel %vm16503_vm0, 4294967295, %v22208_v2  ;;  %v16508_v56 = vpack.c.bf16 %v7315_v23, %v7314_v21  ;;  %v22214_v62 = vld [vmem:[#allocation116_spill] sm:$0xff]  ;;  %vm22217_vm1 = vnez %v22216_v5 }
 0x1cd   : > { %v16494_v29 = vpack.c.bf16 %v22204_v35, %v22201_v41  ;;  %v7319_v41 = vsel %vm22211_vm6, %v16248_v22, 0.0  ;;  %v22212_v35 = vld [vmem:[#allocation115_spill] sm:$0xff]  ;;  %v22218_v17 = vsel %vm22217_vm1, %v22139_v63, 0.0  ;;  %vm22221_vm12 = vcmp.lt.s32.totalorder %v22088_v37, 16  ;;  %v22229_v23 = vld [vmem:[#allocation140_spill] sm:$0xff] }
 0x1ce   : > { %22210 = vst [vmem:[#allocation122_spill] sm:$0xff] %v16508_v56  ;;  %vm22213_vm3 = vnez %v22212_v35  ;;  %v16526_v19 = vld [vmem:[%s13060_s26 + $0x204] sm:$0xff]  ;;  %vm22222_vm7 = vcmp.ge.s32.totalorder %v22088_v37, 0  ;;  %v22223_v22 = vmov 0  ;;  %v16537_v63 = vpack.c.bf16 %v7319_v41, %v7318_v16  ;;  %v22236_v16 = vld [vmem:[#allocation166_spill] sm:$0xff] }
 0x1cf   : > { %22205 = vst [vmem:[#allocation159_spill] sm:$0xff] %v16494_v29  ;;  %v22215_v33 = vsel %vm22213_vm3, %v22214_v62, 0.0  ;;  %22220 = vst [vmem:[#allocation150_spill] sm:$0xff] %v16526_v19  ;;  %v7323_v21 = vsel %vm22226_vm10, %v16269_v40, 0.0  ;;  %vm22228_vm1 = vnez %v22227_v25  ;;  %v22231_v37 = vld [vmem:[#allocation52_spill] sm:$0xff]  ;;  %v7327_v40 = vsel %vm16395_vm8, %v16299_v46, 0.0 }
 0x1d0   : > { %v16521_v29 = vpack.c.bf16 %v22218_v17, %v22215_v33  ;;  %vm16532_vm6 = vmand %vm22222_vm7, %vm22221_vm12  ;;  %22225 = vst [vmem:[#allocation207_spill] sm:$0xff] %v16537_v63  ;;  %v22230_v62 = vsel %vm22228_vm1, %v22229_v23, 0.0  ;;  %vm22232_vm3 = vnez %v22231_v37  ;;  %v16554_v56 = vpack.c.bf16 %v7323_v21, %v7322_v0  ;;  %v22238_v41 = vld [vmem:[#allocation167_spill] sm:$0xff]  ;;  %v22240_v63 = vld [vmem:[#allocation74_spill] sm:$0xff] }
 0x1d1   : > { %v22224_v22 = vsel %vm16532_vm6, 4294967295, %v22223_v22  ;;  %v22233_v33 = vsel %vm22232_vm3, %v22147_v20, 0.0  ;;  %vm22237_vm12 = vnez %v22236_v16  ;;  %vm22241_vm7 = vnez %v22240_v63  ;;  %v11236_v0 = vld [vmem:[%s13060_s26 + $0x84] sm:$0xff] }
 0x1d2   : > { %22219 = vst [vmem:[#allocation202_spill] sm:$0xff] %v16521_v29  ;;  %v16550_v17 = vpack.c.bf16 %v22233_v33, %v22230_v62  ;;  %v7326_v29 = vsel %vm16422_vm13, %v11367_v48, 0.0  ;;  %22235 = vst [vmem:[#allocation57_spill] sm:$0xff] %v16554_v56  ;;  %v22239_v23 = vsel %vm22237_vm12, %v22238_v41, 0.0  ;;  %v22242_v20 = vsel %vm22241_vm7, %v22157_v32, 0.0  ;;  %v22245_v33 = vld [vmem:[#allocation220_spill] sm:$0xff] }
 0x1d3   : > { %v16567_v62 = vpack.c.bf16 %v22242_v20, %v22239_v23  ;;  %v7330_v48 = vsel %vm16477_vm4, %v11371_v15, 0.0  ;;  %v16572_v21 = vpack.c.bf16 %v7327_v40, %v7326_v29  ;;  %v7331_v46 = vsel %vm16453_vm9, %v16329_v26, 0.0  ;;  %v22249_v56 = vld [vmem:[#allocation111_spill] sm:$0xff]  ;;  %v11237_v29 = vld [vmem:[%s13060_s26 + $0x8c] sm:$0xff] }
 0x1d4   : > { %22234 = vst [vmem:[#allocation204_spill] sm:$0xff] %v16550_v17  ;;  %vm22246_vm8 = vnez %v22245_v33  ;;  %v22247_v17 = vld [vmem:[#allocation221_spill] sm:$0xff]  ;;  %vm22250_vm12 = vnez %v22249_v56  ;;  %v7334_v15 = vsel %vm16503_vm0, %v16526_v19, 0.0  ;;  %v11240_v40 = vld [vmem:[%s13060_s26 + $0xa4] sm:$0xff]  ;;  %vm22253_vm9 = vnez %v21851_v50  ;;  %v22275_v50 = vld [vmem:[#allocation178_spill] sm:$0xff] }
 0x1d5   : > { %22243 = vst [vmem:[#allocation23_spill] sm:$0xff] %v16567_v62  ;;  %22244 = vst [vmem:[#allocation225_spill] sm:$0xff] %v16572_v21  ;;  %v22248_v41 = vsel %vm22246_vm8, %v22247_v17, 0.0  ;;  %v22251_v32 = vsel %vm22250_vm12, %v22174_v13, 0.0  ;;  %v11241_v20 = vld [vmem:[%s13060_s26 + $0xac] sm:$0xff]  ;;  %v22254_v17 = vsel %vm22253_vm9, %v15613_v42, 0.0  ;;  %vm22259_vm12 = vnez %v22091_v24 }
 0x1d6   : > { %v16585_v23 = vpack.c.bf16 %v22251_v32, %v22248_v41  ;;  %v22255_v62 = vld [vmem:[#allocation126_spill] sm:$0xff]  ;;  %v22257_v21 = vld [vmem:[#allocation149_spill] sm:$0xff]  ;;  %v22260_v32 = vsel %vm22259_vm12, %v16152_v57, 0.0  ;;  %vm22261_vm0 = vnez %v22098_v18  ;;  %v16613_v61 = vpack.c.bf16 %v7331_v46, %v7330_v48  ;;  %v22276_v57 = vld [vmem:[#allocation199_spill] sm:$0xff] }
 0x1d7   : > { %vm22256_vm8 = vnez %v22255_v62  ;;  %v7335_v42 = vsel %vm16532_vm6, %v16360_v28, 0.0  ;;  %v6264_v46 = vsel %vm22189_vm5, %v11236_v0, 0.0  ;;  %v22278_v62 = vld [vmem:[#allocation144_spill] sm:$0xff]  ;;  %v6269_v0 = vsel %vm22197_vm15, %v11241_v20, 0.0 }
 0x1d8   : > { %22252 = vst [vmem:[#allocation245_spill] sm:$0xff] %v16585_v23  ;;  %v22258_v13 = vsel %vm22256_vm8, %v22257_v21, 0.0  ;;  %v22262_v23 = vsel %vm22261_vm0, %v16181_v51, 0.0  ;;  %22264 = vst [vmem:[#allocation79_spill] sm:$0xff] %v16613_v61  ;;  %v11244_v21 = vld [vmem:[%s13060_s26 + $0xc4] sm:$0xff]  ;;  %vm22266_vm8 = vcmask 31744   ;;  %v16629_v48 = vpack.c.bf16 %v7335_v42, %v7334_v15 }
 0x1d9   : > { %v16601_v41 = vpack.c.bf16 %v22258_v13, %v22254_v17  ;;  %v16611_v19 = vpack.c.bf16 %v22262_v23, %v22260_v32  ;;  %v22265_v17 = vld [vmem:[#allocation156_spill] sm:$0xff]  ;;  %v16627_v23 = vpop.f32.mrf.mxu0  ;;  %v22279_v51 = vmax.f32 %v22278_v62, 0.0  ;;  %v6265_v15 = vsel %vm22190_vm11, %v11237_v29, 0.0 }
 0x1da   : > { %12121 = vmatmul.mubr.msk.bf16.gmra.mxu0 %vm22266_vm8, %v22265_v17  ;;  %22273 = vst [vmem:[#allocation81_spill] sm:$0xff] %v16627_v23  ;;  %22274 = vst [vmem:[#allocation103_spill] sm:$0xff] %v16629_v48  ;;  %v11245_v32 = vld [vmem:[%s13060_s26 + $0xcc] sm:$0xff]  ;;  %v11248_v17 = vld [vmem:[%s13060_s26 + $0xe4] sm:$0xff]  ;;  %v6268_v42 = vsel %vm22191_vm14, %v11240_v40, 0.0  ;;  %v16651_v23 = vpack.c.bf16 %v6265_v15, %v6264_v46  ;;  %vm22288_vm9 = vnez %v22087_v52  ;;  %vm22289_vm0 = vcmp.lt.s32.totalorder %v22168_v44, 16 }
 0x1db   : > { %22263 = vst [vmem:[#allocation28_spill] sm:$0xff] %v16611_v19  ;;  %v11249_v61 = vld [vmem:[%s13060_s26 + $0xec] sm:$0xff]  ;;  %12124 = vmatprep.mubr.msk.bf16.mxu0 %vm22266_vm8, %v22275_v50  ;;  %v22277_v19 = vmax.f32 %v22276_v57, 0.0  ;;  %v11252_v48 = vld [vmem:[%s13060_s26 + $0x104] sm:$0xff]  ;;  %v16653_v13 = vpack.c.bf16 %v6269_v0, %v6268_v42  ;;  %vm22284_vm8 = vnez %v22202_v14  ;;  %v6272_v40 = vsel %vm22288_vm9, %v11244_v21, 0.0  ;;  %v22297_v0 = vld [vmem:[#allocation114_spill] sm:$0xff] }
 0x1dc   : > { %22280 = vst [vmem:[#allocation104_spill] sm:$0xff] %v16651_v23  ;;  %v22282_v50 = vld [vmem:[#allocation91_spill] sm:$0xff]  ;;  %v11257_v24 = vld [vmem:[%s13060_s26 + $0x12c] sm:$0xff]  ;;  %vm22290_vm12 = vcmp.ge.s32.totalorder %v22168_v44, 0  ;;  %v22291_v46 = vmov 0  ;;  %vm22299_vm9 = vnez %v22216_v5 }
 0x1dd   : > { %v16642_v18 = vpack.c.bf16 %v22279_v51, %v22277_v19  ;;  %22281 = vst [vmem:[#allocation125_spill] sm:$0xff] %v16653_v13  ;;  %v22283_v62 = vsel %vm22199_vm2, %v22282_v50, 0.0  ;;  %v22285_v19 = vld [vmem:[#allocation39_spill] sm:$0xff]  ;;  %v11253_v51 = vld [vmem:[%s13060_s26 + $0x10c] sm:$0xff]  ;;  %vm16674_vm15 = vmand %vm22290_vm12, %vm22289_vm0  ;;  %vm22296_vm2 = vnez %v22212_v35  ;;  %vm22303_vm0 = vnez %v22106_v27 }
 0x1de   : > { %v22286_v57 = vsel %vm22284_vm8, %v22285_v19, 0.0  ;;  %v11256_v20 = vld [vmem:[%s13060_s26 + $0x124] sm:$0xff]  ;;  %v22292_v46 = vsel %vm16674_vm15, 4294967295, %v22291_v46  ;;  %v22294_v15 = vld [vmem:[#allocation73_spill] sm:$0xff]  ;;  %vm22295_vm8 = vnez %v22076_v55  ;;  %v22298_v21 = vsel %vm22296_vm2, %v22297_v0, 0.0 }
 0x1df   : > { %v16663_v29 = vpack.c.bf16 %v22286_v57, %v22283_v62  ;;  %22293 = vst [vmem:[#allocation154_spill] sm:$0xff] %v22292_v46  ;;  %1040 = vmatmul.mubr.bf16.gmra.mxu1 %v22294_v15  ;;  %v6273_v42 = vsel %vm22295_vm8, %v11245_v32, 0.0  ;;  %v22300_v50 = vld [vmem:[#allocation45_spill] sm:$0xff]  ;;  %v6276_v44 = vsel %vm22303_vm0, %v11248_v17, 0.0  ;;  %v6277_v57 = vsel %vm22226_vm10, %v11249_v61, 0.0  ;;  %v16704_v15 = vpop.f32.mrf.mxu0  ;;  %v22311_v61 = vld [vmem:[#allocation138_spill] sm:$0xff] }
 0x1e0   : > { %v22301_v62 = vsel %vm22299_vm9, %v22300_v50, 0.0  ;;  %vm22304_vm12 = vcmp.lt.s32.totalorder %v22185_v59, 16  ;;  %vm22305_vm8 = vcmp.ge.s32.totalorder %v22185_v59, 0  ;;  %v22306_v32 = vmov 0  ;;  %1049 = vmatprep.mubr.bf16.mxu1 %v21536_v60  ;;  %v22313_v59 = vld [vmem:[#allocation51_spill] sm:$0xff]  ;;  %v11499_v13 = vld [vmem:[%s13060_s26 + $0x20c] sm:$0xff] }
 0x1e1   : > { %22287 = vst [vmem:[#allocation132_spill] sm:$0xff] %v16663_v29  ;;  %v16689_v19 = vpack.c.bf16 %v22301_v62, %v22298_v21  ;;  %vm16699_vm14 = vmand %vm22305_vm8, %vm22304_vm12  ;;  %v16706_v0 = vpack.c.bf16 %v6273_v42, %v6272_v40  ;;  %v16708_v21 = vpack.c.bf16 %v6277_v57, %v6276_v44  ;;  %v22312_v17 = vsel %vm22228_vm1, %v22311_v61, 0.0  ;;  %v22318_v42 = vld [vmem:[#allocation165_spill] sm:$0xff]  ;;  %v22320_v57 = vld [vmem:[#allocation67_spill] sm:$0xff] }
 0x1e2   : > { %v22307_v32 = vsel %vm16699_vm14, 4294967295, %v22306_v32  ;;  %v22314_v50 = vsel %vm22232_vm3, %v22313_v59, 0.0  ;;  %vm22316_vm8 = vnez %v22155_v58  ;;  %vm22317_vm12 = vnez %v22236_v16  ;;  %v22425_v23 = vld [vmem:[#allocation211_spill] sm:$0xff]  ;;  %v22460_v5 = vld [vmem:[#allocation141_spill] sm:$0xff] }
 0x1e3   : > { %22302 = vst [vmem:[#allocation157_spill] sm:$0xff] %v16689_v19  ;;  %22308 = vst [vmem:[#allocation206_spill] sm:$0xff] %v22307_v32  ;;  %v16718_v62 = vpack.c.bf16 %v22314_v50, %v22312_v17  ;;  %v6280_v19 = vsel %vm16422_vm13, %v11252_v48, 0.0  ;;  %v6281_v40 = vsel %vm22316_vm8, %v11253_v51, 0.0  ;;  %v22319_v44 = vsel %vm22317_vm12, %v22318_v42, 0.0  ;;  %v22327_v50 = vld [vmem:[#allocation219_spill] sm:$0xff] }
 0x1e4   : > { %22309 = vst [vmem:[#allocation234_spill] sm:$0xff] %v16706_v0  ;;  %22310 = vst [vmem:[#allocation218_spill] sm:$0xff] %v16708_v21  ;;  %v22321_v61 = vsel %vm22241_vm7, %v22320_v57, 0.0  ;;  %v6284_v17 = vsel %vm16477_vm4, %v11256_v20, 0.0  ;;  %vm22323_vm3 = vnez %v22184_v6  ;;  %v16738_v48 = vpack.c.bf16 %v6281_v40, %v6280_v19  ;;  %v22330_v57 = vld [vmem:[#allocation109_spill] sm:$0xff]  ;;  %v22334_v40 = vld [vmem:[#allocation70_spill] sm:$0xff] }
 0x1e5   : > { %22315 = vst [vmem:[#allocation208_spill] sm:$0xff] %v16718_v62  ;;  %v16732_v21 = vpack.c.bf16 %v22321_v61, %v22319_v44  ;;  %v6285_v59 = vsel %vm22323_vm3, %v11257_v24, 0.0  ;;  %vm22326_vm8 = vnez %v22245_v33  ;;  %vm22329_vm12 = vnez %v22249_v56  ;;  %v16756_v20 = vld [vmem:[%s13060_s26 + $0x22c] sm:$0xff]  ;;  %v22407_v62 = vld [vmem:[#allocation186_spill] sm:$0xff] }
 0x1e6   : > { %22324 = vst [vmem:[#allocation236_spill] sm:$0xff] %v16738_v48  ;;  %v16740_v51 = vpack.c.bf16 %v6285_v59, %v6284_v17  ;;  %v22328_v42 = vsel %vm22326_vm8, %v22327_v50, 0.0  ;;  %v22331_v44 = vsel %vm22329_vm12, %v22330_v57, 0.0  ;;  %vm22333_vm4 = vnez %v22209_v2  ;;  %v22336_v17 = vld [vmem:[#allocation171_spill] sm:$0xff]  ;;  %v22340_v57 = vld [vmem:[#allocation146_spill] sm:$0xff]  ;;  %v22409_v0 = vld [vmem:[#allocation216_spill] sm:$0xff] }
 0x1e7   : > { %22322 = vst [vmem:[#allocation231_spill] sm:$0xff] %v16732_v21  ;;  %v16750_v61 = vpack.c.bf16 %v22331_v44, %v22328_v42  ;;  %v6288_v24 = vsel %vm22333_vm4, %v16383_v1, 0.0  ;;  %v6289_v19 = vsel %vm16532_vm6, %v16386_v36, 0.0  ;;  %vm22335_vm3 = vnez %v22334_v40  ;;  %v22338_v50 = vld [vmem:[#allocation155_spill] sm:$0xff]  ;;  %v11409_v36 = vld [vmem:[%s13060_s26 + $0x234] sm:$0xff] }
 0x1e8   : > { %22325 = vst [vmem:[#allocation60_spill] sm:$0xff] %v16740_v51  ;;  %v22337_v59 = vsel %vm22335_vm3, %v22336_v17, 0.0  ;;  %vm22339_vm8 = vnez %v22338_v50  ;;  %v6292_v1 = vsel %vm16699_vm14, %v16389_v43, 0.0  ;;  %v6293_v44 = vsel %vm16674_vm15, %v16222_v7, 0.0  ;;  %v16780_v17 = vpop.f32.mrf.mxu0 }
 0x1e9   : > { %22332 = vst [vmem:[#allocation92_spill] sm:$0xff] %v16750_v61  ;;  %v22341_v51 = vsel %vm22339_vm8, %v22340_v57, 0.0  ;;  %v22343_v61 = vld [vmem:[#allocation88_spill] sm:$0xff]  ;;  %vm22344_vm6 = vcmask 31744   ;;  %22345 = vst [vmem:[#allocation40_spill] sm:$0xff] %v16780_v17  ;;  %v16782_v21 = vpack.c.bf16 %v6289_v19, %v6288_v24  ;;  %vm22348_vm8 = vnez %v21801_v12  ;;  %v11413_v57 = vld [vmem:[%s13060_s26 + $0x254] sm:$0xff] }
 0x1ea   : > { %v16769_v42 = vpack.c.bf16 %v22341_v51, %v22337_v59  ;;  %12125 = vmatmul.mubr.msk.bf16.gmra.mxu0 %vm22344_vm6, %v22343_v61  ;;  %v16784_v51 = vpack.c.bf16 %v6293_v44, %v6292_v1  ;;  %v7702_v43 = vsel %vm22348_vm8, %v16329_v26, 0.0  ;;  %vm22349_vm14 = vnez %v21805_v31  ;;  %v16793_v59 = vld [vmem:[%s13060_s26 + $0x24c] sm:$0xff]  ;;  %v22356_v31 = vld [vmem:[#allocation31_spill] sm:$0xff]  ;;  %v22359_v1 = vld [vmem:[#allocation82_spill] sm:$0xff] }
 0x1eb   : > { %22346 = vst [vmem:[#allocation115_spill] sm:$0xff] %v16782_v21  ;;  %v7703_v7 = vsel %vm22349_vm14, %v16332_v38, 0.0  ;;  %v22350_v61 = vld [vmem:[#allocation100_spill] sm:$0xff]  ;;  %vm22352_vm15 = vnez %v21820_v34  ;;  %vm22355_vm3 = vnez %v21992_v30  ;;  %vm22358_vm14 = vnez %v21996_v49  ;;  %v11417_v34 = vld [vmem:[%s13060_s26 + $0x274] sm:$0xff] }
 0x1ec   : > { %22342 = vst [vmem:[#allocation93_spill] sm:$0xff] %v16769_v42  ;;  %22347 = vst [vmem:[#allocation116_spill] sm:$0xff] %v16784_v51  ;;  %12128 = vmatprep.mubr.msk.bf16.mxu0 %vm22344_vm6, %v22350_v61  ;;  %v16798_v24 = vpack.c.bf16 %v7703_v7, %v7702_v43  ;;  %v7706_v19 = vsel %vm22352_vm15, %v16360_v28, 0.0  ;;  %v22353_v12 = vld [vmem:[#allocation68_spill] sm:$0xff]  ;;  %v22357_v38 = vsel %vm22355_vm3, %v22356_v31, 0.0  ;;  %v22360_v44 = vsel %vm22358_vm14, %v22359_v1, 0.0  ;;  %v16820_v28 = vpop.f32.mrf.mxu1 }
 0x1ed   : > { %vm22354_vm8 = vnez %v22353_v12  ;;  %v16814_v61 = vpack.c.bf16 %v22360_v44, %v22357_v38  ;;  %v16817_v43 = vld [vmem:[%s13060_s26 + $0x26c] sm:$0xff]  ;;  %vm22363_vm15 = vnez %v21849_v54  ;;  %vm22364_vm3 = vnez %v21832_v11  ;;  %v22367_v12 = vld [vmem:[#allocation83_spill] sm:$0xff]  ;;  %v22369_v38 = vld [vmem:[#allocation98_spill] sm:$0xff] }
 0x1ee   : > { %22351 = vst [vmem:[#allocation46_spill] sm:$0xff] %v16798_v24  ;;  %v7707_v26 = vsel %vm22354_vm8, %v16363_v8, 0.0  ;;  %v7710_v30 = vsel %vm22363_vm15, %v16756_v20, 0.0  ;;  %v7711_v49 = vsel %vm22364_vm3, %v11409_v36, 0.0  ;;  %v22365_v8 = vld [vmem:[#allocation112_spill] sm:$0xff]  ;;  %vm22370_vm8 = vnez %v22369_v38  ;;  %v22371_v1 = vld [vmem:[#allocation107_spill] sm:$0xff] }
 0x1ef   : > { %22361 = vst [vmem:[#allocation139_spill] sm:$0xff] %v16814_v61  ;;  %v16822_v7 = vpack.c.bf16 %v7707_v26, %v7706_v19  ;;  %vm22366_vm6 = vnez %v22365_v8  ;;  %v22372_v44 = vsel %vm22370_vm8, %v22371_v1, 0.0  ;;  %v16840_v19 = vld [vmem:[%s13060_s26 + $0x28c] sm:$0xff]  ;;  %v11421_v26 = vld [vmem:[%s13060_s26 + $0x294] sm:$0xff]  ;;  %v16844_v11 = vpack.c.bf16 %v7711_v49, %v7710_v30  ;;  %v11510_v17 = vld [vmem:[%s13060_s26 + $0x264] sm:$0xff] }
 0x1f0   : > { %v22368_v31 = vsel %vm22366_vm6, %v22367_v12, 0.0  ;;  %v22374_v54 = vld [vmem:[#allocation38_spill] sm:$0xff]  ;;  %v22380_v1 = vld [vmem:[#allocation137_spill] sm:$0xff]  ;;  %v22478_v63 = vsel %vm22329_vm12, %v22425_v23, 0.0  ;;  %vm22488_vm12 = vnez %v22307_v32 }
 0x1f1   : > { %22362 = vst [vmem:[#allocation140_spill] sm:$0xff] %v16822_v7  ;;  %v16837_v61 = vpack.c.bf16 %v22372_v44, %v22368_v31  ;;  %1050 = vmatmul.mubr.bf16.gmra.mxu1 %v22374_v54  ;;  %22375 = vst [vmem:[#allocation166_spill] sm:$0xff] %v16844_v11  ;;  %v22376_v36 = vld [vmem:[#allocation198_spill] sm:$0xff]  ;;  %v22378_v7 = vld [vmem:[#allocation53_spill] sm:$0xff]  ;;  %vm22381_vm3 = vnez %v22380_v1  ;;  %v16864_v54 = vpop.f32.mrf.mxu0 }
 0x1f2   : > { %vm22377_vm14 = vnez %v22376_v36  ;;  %vm22379_vm15 = vnez %v22378_v7  ;;  %v22382_v31 = vld [vmem:[#allocation108_spill] sm:$0xff]  ;;  %v22386_v24 = vld [vmem:[#allocation133_spill] sm:$0xff]  ;;  %1059 = vmatprep.mubr.bf16.mxu1 %v21536_v60  ;;  %22389 = vst [vmem:[#allocation74_spill] sm:$0xff] %v16864_v54  ;;  %v22401_v11 = vld [vmem:[#allocation158_spill] sm:$0xff] }
 0x1f3   : > { %22373 = vst [vmem:[#allocation52_spill] sm:$0xff] %v16837_v61  ;;  %v7714_v8 = vsel %vm22377_vm14, %v16793_v59, 0.0  ;;  %v7715_v38 = vsel %vm22379_vm15, %v11413_v57, 0.0  ;;  %v22383_v44 = vsel %vm22381_vm3, %v22382_v31, 0.0  ;;  %v22384_v61 = vld [vmem:[#allocation123_spill] sm:$0xff]  ;;  %v11424_v30 = vld [vmem:[%s13060_s26 + $0x2ac] sm:$0xff] }
 0x1f4   : > { %vm22385_vm6 = vnez %v22384_v61  ;;  %v11425_v49 = vld [vmem:[%s13060_s26 + $0x2b4] sm:$0xff]  ;;  %v16866_v36 = vpack.c.bf16 %v7715_v38, %v7714_v8  ;;  %v22391_v57 = vld [vmem:[#allocation223_spill] sm:$0xff]  ;;  %v22393_v1 = vld [vmem:[#allocation56_spill] sm:$0xff] }
 0x1f5   : > { %v22387_v51 = vsel %vm22385_vm6, %v22386_v24, 0.0  ;;  %vm22392_vm8 = vnez %v22391_v57  ;;  %vm22394_vm14 = vnez %v22393_v1  ;;  %v22395_v24 = vld [vmem:[#allocation163_spill] sm:$0xff]  ;;  %v11428_v8 = vld [vmem:[%s13060_s26 + $0x2cc] sm:$0xff]  ;;  %v11429_v38 = vld [vmem:[%s13060_s26 + $0x2d4] sm:$0xff] }
 0x1f6   : > { %v16859_v42 = vpack.c.bf16 %v22387_v51, %v22383_v44  ;;  %22390 = vst [vmem:[#allocation220_spill] sm:$0xff] %v16866_v36  ;;  %v7718_v7 = vsel %vm22392_vm8, %v16817_v43, 0.0  ;;  %v7719_v61 = vsel %vm22394_vm14, %v11417_v34, 0.0  ;;  %vm22396_vm15 = vnez %v22395_v24  ;;  %v22397_v51 = vld [vmem:[#allocation134_spill] sm:$0xff]  ;;  %v11379_v36 = vld [vmem:[%s13060_s26 + $0x224] sm:$0xff]  ;;  %v11028_v32 = vld [vmem:[%s13060_s26 + $0x230] sm:$0xff] }
 0x1f7   : > { %v22398_v44 = vsel %vm22396_vm15, %v22397_v51, 0.0  ;;  %v16886_v57 = vpack.c.bf16 %v7719_v61, %v7718_v7  ;;  %v22405_v1 = vld [vmem:[#allocation239_spill] sm:$0xff]  ;;  %vm22408_vm8 = vnez %v22407_v62  ;;  %vm22410_vm14 = vnez %v22409_v0  ;;  %v748_v7 = vpop.f32.mrf.mxu1 }
 0x1f8   : > { %22388 = vst [vmem:[#allocation167_spill] sm:$0xff] %v16859_v42  ;;  %v22399_v42 = vld [vmem:[#allocation143_spill] sm:$0xff]  ;;  %vm22406_vm6 = vnez %v22405_v1  ;;  %v7723_v24 = vsel %vm22408_vm8, %v11421_v26, 0.0 }
 0x1f9   : > { %vm22400_vm3 = vnez %v22399_v42  ;;  %22404 = vst [vmem:[#allocation111_spill] sm:$0xff] %v16886_v57  ;;  %v7722_v34 = vsel %vm22406_vm6, %v16840_v19, 0.0  ;;  %v22411_v42 = vld [vmem:[#allocation160_spill] sm:$0xff]  ;;  %v22419_v57 = vld [vmem:[#allocation121_spill] sm:$0xff]  ;;  %v22421_v62 = vld [vmem:[#allocation119_spill] sm:$0xff]  ;;  %1060 = vmatmul.mubr.bf16.gmra.mxu1 %v16642_v18 }
 0x1fa   : > { %v22402_v21 = vsel %vm22400_vm3, %v22401_v11, 0.0  ;;  %v22412_v29 = vsel %vm22410_vm14, %v22411_v42, 0.0  ;;  %v22413_v11 = vld [vmem:[#allocation205_spill] sm:$0xff]  ;;  %v16904_v61 = vpack.c.bf16 %v7723_v24, %v7722_v34  ;;  %vm22420_vm3 = vnez %v22419_v57  ;;  %v22423_v0 = vld [vmem:[#allocation147_spill] sm:$0xff]  ;;  %1069 = vmatprep.mubr.bf16.mxu1 %v21536_v60 }
 0x1fb   : > { %v16881_v48 = vpack.c.bf16 %v22402_v21, %v22398_v44  ;;  %vm22414_vm15 = vnez %v22413_v11  ;;  %v22415_v21 = vld [vmem:[#allocation209_spill] sm:$0xff]  ;;  %v7726_v1 = vsel %vm22420_vm3, %v11424_v30, 0.0  ;;  %vm22422_vm6 = vnez %v22421_v62  ;;  %v22427_v11 = vld [vmem:[#allocation230_spill] sm:$0xff] }
 0x1fc   : > { %v22416_v44 = vsel %vm22414_vm15, %v22415_v21, 0.0  ;;  %22418 = vst [vmem:[#allocation156_spill] sm:$0xff] %v16904_v61  ;;  %v7727_v26 = vsel %vm22422_vm6, %v11425_v49, 0.0  ;;  %vm22424_vm8 = vnez %v22423_v0  ;;  %vm22428_vm14 = vnez %v22427_v11  ;;  %v22429_v21 = vld [vmem:[#allocation129_spill] sm:$0xff]  ;;  %v22435_v61 = vld [vmem:[#allocation250_spill] sm:$0xff] }
 0x1fd   : > { %22403 = vst [vmem:[#allocation221_spill] sm:$0xff] %v16881_v48  ;;  %v16901_v48 = vpack.c.bf16 %v22416_v44, %v22412_v29  ;;  %v22426_v54 = vsel %vm22424_vm8, %v22425_v23, 0.0  ;;  %v22430_v29 = vsel %vm22428_vm14, %v22429_v21, 0.0  ;;  %v16921_v34 = vpack.c.bf16 %v7727_v26, %v7726_v1  ;;  %v22433_v24 = vld [vmem:[#allocation213_spill] sm:$0xff]  ;;  %v22437_v62 = vld [vmem:[#allocation150_spill] sm:$0xff] }
 0x1fe   : > { %v16918_v44 = vpack.c.bf16 %v22430_v29, %v22426_v54  ;;  %vm22434_vm15 = vnez %v22433_v24  ;;  %vm22436_vm3 = vnez %v22435_v61  ;;  %v8454_v0 = vsel %vm22189_vm5, %v22437_v62, 0.0  ;;  %v22438_v11 = vld [vmem:[#allocation233_spill] sm:$0xff]  ;;  %v16933_v54 = vpop.f32.mrf.mxu0 }
 0x1ff   : > { %22417 = vst [vmem:[#allocation149_spill] sm:$0xff] %v16901_v48  ;;  %v11506_v48 = vld [vmem:[%s13060_s26 + $0x244] sm:$0xff]  ;;  %22432 = vst [vmem:[#allocation199_spill] sm:$0xff] %v16921_v34  ;;  %v7730_v57 = vsel %vm22434_vm15, %v11428_v8, 0.0  ;;  %v7731_v49 = vsel %vm22436_vm3, %v11429_v38, 0.0  ;;  %vm22439_vm6 = vcmask 31744   ;;  %vm22441_vm15 = vnez %v22046_v9 }
 0x200   : > { %22431 = vst [vmem:[#allocation178_spill] sm:$0xff] %v16918_v44  ;;  %12129 = vmatmul.mubr.msk.bf16.gmra.mxu0 %vm22439_vm6, %v22438_v11  ;;  %v16935_v21 = vpack.c.bf16 %v7731_v49, %v7730_v57  ;;  %v8455_v1 = vsel %vm22190_vm11, %v11499_v13, 0.0  ;;  %v8458_v26 = vsel %vm22441_vm15, %v11379_v36, 0.0  ;;  %vm22442_vm3 = vnez %v22061_v39  ;;  %v11514_v38 = vld [vmem:[%s13060_s26 + $0x284] sm:$0xff]  ;;  %vm22443_vm5 = vmmov %vm22439_vm6  ;;  %v12007_v36 = vpop.f32.mrf.mxu1  ;;  %v17003_v18 = vpop.f32.mrf.mxu0  ;;  %v11032_v24 = vld [vmem:[%s13060_s26 + $0x250] sm:$0xff] }
 0x201   : > { %v8459_v3 = vsel %vm22442_vm3, %v16756_v20, 0.0  ;;  %12132 = vmatprep.mubr.msk.bf16.mxu0 %vm22443_vm5, %v16601_v41  ;;  %v16947_v11 = vpack.c.bf16 %v8455_v1, %v8454_v0  ;;  %vm22446_vm6 = vnez %v22198_v47  ;;  %vm22449_vm11 = vnez %v22202_v14  ;;  %v11518_v41 = vld [vmem:[%s13060_s26 + $0x2a4] sm:$0xff]  ;;  %v22454_v47 = vld [vmem:[#allocation117_spill] sm:$0xff] }
 0x202   : > { %22440 = vst [vmem:[#allocation144_spill] sm:$0xff] %v16935_v21  ;;  %v16949_v29 = vpack.c.bf16 %v8459_v3, %v8458_v26  ;;  %v22448_v13 = vsel %vm22446_vm6, %v22447_v10, 0.0  ;;  %v22450_v9 = vsel %vm22449_vm11, %v22367_v12, 0.0  ;;  %vm22452_vm15 = vnez %v22087_v52  ;;  %v11522_v49 = vld [vmem:[%s13060_s26 + $0x2c4] sm:$0xff] }
 0x203   : > { %22444 = vst [vmem:[#allocation91_spill] sm:$0xff] %v16947_v11  ;;  %v16959_v39 = vpack.c.bf16 %v22450_v9, %v22448_v13  ;;  %v8462_v20 = vsel %vm22452_vm15, %v11506_v48, 0.0  ;;  %vm22453_vm3 = vnez %v22076_v55  ;;  %v22455_v57 = vsel %vm22296_vm2, %v22454_v47, 0.0  ;;  %v22490_v9 = vld [vmem:[#allocation170_spill] sm:$0xff] }
 0x204   : > { %22445 = vst [vmem:[#allocation39_spill] sm:$0xff] %v16949_v29  ;;  %v8463_v0 = vsel %vm22453_vm3, %v16793_v59, 0.0  ;;  %v22456_v14 = vsel %vm22299_vm9, %v22382_v31, 0.0  ;;  %v8466_v52 = vsel %vm22303_vm0, %v11510_v17, 0.0  ;;  %v8467_v48 = vsel %vm22226_vm10, %v16817_v43, 0.0  ;;  %v11526_v43 = vld [vmem:[%s13060_s26 + $0x2e4] sm:$0xff] }
 0x205   : > { %22451 = vst [vmem:[#allocation73_spill] sm:$0xff] %v16959_v39  ;;  %v16975_v12 = vpack.c.bf16 %v22456_v14, %v22455_v57  ;;  %v16984_v55 = vpack.c.bf16 %v8463_v0, %v8462_v20  ;;  %v16986_v35 = vpack.c.bf16 %v8467_v48, %v8466_v52  ;;  %v22461_v59 = vsel %vm22228_vm1, %v22460_v5, 0.0  ;;  %v11527_v31 = vld [vmem:[%s13060_s26 + $0x2ec] sm:$0xff]  ;;  %v22494_v20 = vld [vmem:[#allocation174_spill] sm:$0xff]  ;;  %v17068_v48 = vpop.f32.mrf.mxu0 }
 0x206   : > { %vm22462_vm2 = vnez %v22231_v37  ;;  %v8470_v53 = vsel %vm16422_vm13, %v11514_v38, 0.0  ;;  %vm22465_vm10 = vnez %v22155_v58  ;;  %vm22466_vm1 = vnez %v22236_v16  ;;  %v22467_v37 = vld [vmem:[#allocation169_spill] sm:$0xff]  ;;  %v22476_v16 = vld [vmem:[#allocation222_spill] sm:$0xff]  ;;  %v751_v38 = vpop.f32.mrf.mxu1  ;;  %v22500_v52 = vld [vmem:[#allocation28_spill] sm:$0xff] }
 0x207   : > { %22457 = vst [vmem:[#allocation114_spill] sm:$0xff] %v16975_v12  ;;  %22458 = vst [vmem:[#allocation45_spill] sm:$0xff] %v16984_v55  ;;  %v22463_v27 = vsel %vm22462_vm2, %v22397_v51, 0.0  ;;  %v8471_v25 = vsel %vm22465_vm10, %v16840_v19, 0.0  ;;  %v22468_v62 = vsel %vm22466_vm1, %v22467_v37, 0.0  ;;  %v22469_v51 = vsel %vm22241_vm7, %v22411_v42, 0.0 }
 0x208   : > { %22459 = vst [vmem:[#allocation138_spill] sm:$0xff] %v16986_v35  ;;  %v16996_v17 = vpack.c.bf16 %v22463_v27, %v22461_v59  ;;  %v17016_v4 = vpack.c.bf16 %v22469_v51, %v22468_v62  ;;  %vm22471_vm13 = vnez %v22195_v45  ;;  %vm22472_vm9 = vnez %v22184_v6  ;;  %v22504_v59 = vld [vmem:[#allocation124_spill] sm:$0xff]  ;;  %v22508_v37 = vld [vmem:[#allocation179_spill] sm:$0xff]  ;;  %v22509_v62 = vld [vmem:[#allocation181_spill] sm:$0xff] }
 0x209   : > { %v8474_v1 = vsel %vm22471_vm13, %v11518_v41, 0.0  ;;  %v8475_v26 = vsel %vm22472_vm9, %v11424_v30, 0.0  ;;  %v17022_v3 = vpack.c.bf16 %v8471_v25, %v8470_v53  ;;  %vm22475_vm0 = vnez %v22245_v33  ;;  %v22482_v30 = vld [vmem:[#allocation175_spill] sm:$0xff]  ;;  %v22496_v41 = vld [vmem:[#allocation182_spill] sm:$0xff]  ;;  %v11019_v39 = vld [vmem:[%s13060_s26 + $0x1e8] sm:$0xff] }
 0x20a   : > { %22464 = vst [vmem:[#allocation51_spill] sm:$0xff] %v16996_v17  ;;  %22470 = vst [vmem:[#allocation165_spill] sm:$0xff] %v17016_v4  ;;  %v17024_v58 = vpack.c.bf16 %v8475_v26, %v8474_v1  ;;  %v22477_v19 = vsel %vm22475_vm0, %v22476_v16, 0.0  ;;  %v8478_v45 = vsel %vm22333_vm4, %v11522_v49, 0.0  ;;  %vm22480_vm7 = vnez %v22224_v22  ;;  %v22485_v33 = vld [vmem:[#allocation187_spill] sm:$0xff]  ;;  %v22492_v22 = vld [vmem:[#allocation118_spill] sm:$0xff] }
 0x20b   : > { %22473 = vst [vmem:[#allocation67_spill] sm:$0xff] %v17022_v3  ;;  %v17034_v42 = vpack.c.bf16 %v22478_v63, %v22477_v19  ;;  %v8479_v6 = vsel %vm22480_vm7, %v11428_v8, 0.0  ;;  %vm22481_vm5 = vnez %v22334_v40  ;;  %vm22484_vm6 = vnez %v22338_v50  ;;  %v22502_v49 = vld [vmem:[#allocation214_spill] sm:$0xff]  ;;  %v22511_v1 = vld [vmem:[#allocation164_spill] sm:$0xff]  ;;  %v22512_v26 = vld [vmem:[#allocation183_spill] sm:$0xff]  ;;  %v17084_v19 = vpop.f32.mrf.mxu0 }
 0x20c   : > { %22474 = vst [vmem:[#allocation219_spill] sm:$0xff] %v17024_v58  ;;  %v22483_v10 = vsel %vm22481_vm5, %v22482_v30, 0.0  ;;  %v22486_v13 = vsel %vm22484_vm6, %v22485_v33, 0.0  ;;  %v8482_v23 = vsel %vm22488_vm12, %v11526_v43, 0.0  ;;  %vm22489_vm11 = vnez %v22292_v46  ;;  %v22507_v43 = vld [vmem:[#allocation217_spill] sm:$0xff]  ;;  %v22514_v30 = vld [vmem:[#allocation142_spill] sm:$0xff] }
 0x20d   : > { %22479 = vst [vmem:[#allocation109_spill] sm:$0xff] %v17034_v42  ;;  %v17048_v56 = vpack.c.bf16 %v22486_v13, %v22483_v10  ;;  %v8483_v2 = vsel %vm22489_vm11, %v11527_v31, 0.0  ;;  %vm22491_vm4 = vnez %v22490_v9  ;;  %vm22495_vm15 = vnez %v22494_v20  ;;  %v12836_v42 = vld [vmem:[%s13060_s26 + $0x1be] sm:$0xff]  ;;  %v12837_v58 = vld [vmem:[%s13060_s26 + $0x1c6] sm:$0xff]  ;;  %v10988_v9 = vld [vmem:[%s13060_s26 + $0x272] sm:$0xff] }
 0x20e   : > { %v22493_v8 = vsel %vm22491_vm4, %v22492_v22, 0.0  ;;  %v22497_v0 = vsel %vm22495_vm15, %v22496_v41, 0.0  ;;  %v17062_v57 = vpack.c.bf16 %v8479_v6, %v8478_v45  ;;  %v17064_v14 = vpack.c.bf16 %v8483_v2, %v8482_v23  ;;  %v22517_v22 = vld [vmem:[#allocation173_spill] sm:$0xff]  ;;  %v22614_v29 = vld [vmem:[#allocation10_spill] sm:$0xff] }
 0x20f   : > { %22487 = vst [vmem:[#allocation171_spill] sm:$0xff] %v17048_v56  ;;  %v2577_v47 = vpack.c.bf16 %v22497_v0, %v22493_v8  ;;  %vm22501_vm3 = vcmask 31744   ;;  %v22503_v5 = vmax.f32 %v22502_v49, 0.0  ;;  %v22505_v27 = vmax.f32 %v22504_v59, 0.0  ;;  %v22519_v41 = vld [vmem:[#allocation185_spill] sm:$0xff]  ;;  %v22525_v59 = vld [vmem:[#allocation238_spill] sm:$0xff] }
 0x210   : > { %22498 = vst [vmem:[#allocation146_spill] sm:$0xff] %v17062_v57  ;;  %22499 = vst [vmem:[#allocation88_spill] sm:$0xff] %v17064_v14  ;;  %12133 = vmatmul.mubr.msk.bf16.gmra.mxu0 %vm22501_vm3, %v22500_v52  ;;  %v749_v31 = vadd.f32 %v748_v7, %v22507_v43  ;;  %v752_v25 = vadd.f32 %v751_v38, %v22507_v43  ;;  %vm22510_vm10 = vnez %v22509_v62  ;;  %vm22513_vm1 = vnez %v22512_v26  ;;  %v17088_v7 = vpop.f32.mrf.mxu0  ;;  %v10917_v52 = vld [vmem:[%s13060_s26 + $0x16e] sm:$0xff]  ;;  %v10918_v49 = vld [vmem:[%s13060_s26 + $0x176] sm:$0xff] }
 0x211   : > { %v808_v53 = vpack.c.bf16 %v22505_v27, %v22503_v5  ;;  %vm22506_vm2 = vmmov %vm22501_vm3  ;;  %v2561_v51 = vsel %vm22510_vm10, %v22508_v37, 0.0  ;;  %v2562_v16 = vsel %vm22513_vm1, %v22511_v1, 0.0  ;;  %v757_v38 = vadd.f32 %v16820_v28, %v22507_v43  ;;  %v12833_v27 = vld [vmem:[%s20486_s3 + $0x8] sm:$0x3]  ;;  %v22530_v37 = vld [vmem:[#allocation61_spill] sm:$0xff] }
 0x212   : > { %12136 = vmatprep.mubr.msk.bf16.mxu0 %vm22506_vm2, %v2577_v47  ;;  %v791_v63 = vmax.f32 %v749_v31, 0.0  ;;  %v792_v45 = vmax.f32 %v752_v25, 0.0  ;;  %v2579_v6 = vpack.c.bf16 %v2562_v16, %v2561_v51  ;;  %vm22515_vm13 = vmmov %vm22506_vm2  ;;  %v760_v10 = vadd.f32 %v12007_v36, %v22507_v43  ;;  %v17095_v13 = vpop.f32.mrf.mxu0  ;;  %v22521_v36 = vld [vmem:[#allocation240_spill] sm:$0xff]  ;;  %v22523_v47 = vld [vmem:[#allocation26_spill] sm:$0xff] }
 0x213   : > { %1070 = vmatmul.mubr.bf16.gmra.mxu1 %v808_v53  ;;  %vm22516_vm9 = vmmov %vm22506_vm2  ;;  %v793_v23 = vmax.f32 %v757_v38, 0.0  ;;  %v17122_v43 = vld [vmem:[%s20486_s3 + $0xc] sm:$0x3]  ;;  %v22532_v1 = vld [vmem:[#allocation25_spill] sm:$0xff] }
 0x214   : > { %1079 = vmatprep.mubr.bf16.mxu1 %v21536_v60  ;;  %v809_v33 = vpack.c.bf16 %v792_v45, %v791_v63  ;;  %v794_v2 = vmax.f32 %v760_v10, 0.0  ;;  %vm22518_vm0 = vmmov %vm22506_vm2  ;;  %v17099_v8 = vpop.f32.mrf.mxu0  ;;  %v22528_v31 = vld [vmem:[#allocation84_spill] sm:$0xff]  ;;  %v10803_v63 = vld [vmem:[%s13060_s26 + $0x116] sm:$0xff] }
 0x215   : > { %vm22520_vm7 = vmmov %vm22518_vm0  ;;  %v10802_v16 = vld [vmem:[%s13060_s26 + $0x10e] sm:$0xff]  ;;  %v22534_v45 = vld [vmem:[#allocation243_spill] sm:$0xff] }
 0x216   : > { %v810_v28 = vpack.c.bf16 %v794_v2, %v793_v23  ;;  %vm22522_vm3 = vmmov %vm22518_vm0  ;;  %v17105_v0 = vpop.f32.mrf.mxu0  ;;  %v10922_v23 = vld [vmem:[%s13060_s26 + $0x196] sm:$0xff]  ;;  %v22586_v56 = vld [vmem:[#allocation127_spill] sm:$0xff] }
 0x217   : > { %vm22524_vm2 = vmmov %vm22518_vm0 }
 0x218   : > { %12137 = vmatmul.mubr.msk.bf16.gmra.mxu0 %vm22515_vm13, %v22514_v30  ;;  %v17111_v5 = vpop.f32.mrf.mxu0  ;;  %vm22526_vm13 = vmmov %vm22518_vm0 }
 0x219   : > { %12140 = vmatprep.mubr.msk.bf16.mxu0 %vm22516_vm9, %v2579_v6  ;;  %vm22527_vm9 = vcmask 1041408  }
 0x21a   : > { %v2894_v53 = vsel %vm22527_vm9, %v12833_v27, 0  ;;  %v17134_v6 = vpop.f32.mrf.mxu0  ;;  %v10807_v27 = vld [vmem:[%s13060_s26 + $0x136] sm:$0xff] }
 0x21b   : > { %1080 = vmatmul.mubr.bf16.gmra.mxu1 %v809_v33  ;;  %v10921_v33 = vld [vmem:[%s13060_s26 + $0x18e] sm:$0xff] }
 0x21c   : > { %1089 = vmatprep.mubr.bf16.mxu1 %v21536_v60  ;;  %v17145_v2 = vpop.f32.mrf.mxu0 }
 0x220   : > { %12141 = vmatmul.mubr.msk.bf16.gmra.mxu0 %vm22518_vm0, %v22517_v22  ;;  %vm22529_vm0 = vnez %v22528_v31  ;;  %v22537_v22 = vld [vmem:[#allocation241_spill] sm:$0xff]  ;;  %v17162_v31 = vpop.f32.mrf.mxu0 }
 0x221   : > { %12180 = vmatprep.mubr.msk.bf16.mxu0 %vm22520_vm7, %v22519_v41  ;;  %v3193_v25 = vsel %vm22529_vm0, %v10917_v52, 0.0  ;;  %vm22531_vm7 = vnez %v22530_v37  ;;  %v2147_v38 = vsel %vm22529_vm0, %v10802_v16, 0.0  ;;  %v11041_v41 = vld [vmem:[%s20486_s3 + $0xe] sm:$0x3]  ;;  %v22541_v52 = vld [vmem:[#allocation95_spill] sm:$0xff] }
 0x222   : > { %v3194_v51 = vsel %vm22531_vm7, %v10918_v49, 0.0  ;;  %v2148_v10 = vsel %vm22531_vm7, %v10803_v63, 0.0  ;;  %vm22542_vm7 = vnez %v22541_v52  ;;  %v10925_v16 = vld [vmem:[%s13060_s26 + $0x1ae] sm:$0xff]  ;;  %v10926_v63 = vld [vmem:[%s13060_s26 + $0x1b6] sm:$0xff] }
 0x223   : > { %1090 = vmatmul.mubr.bf16.gmra.mxu1 %v810_v28  ;;  %v3222_v30 = vpack.c.bf16 %v3194_v51, %v3193_v25  ;;  %v2176_v28 = vpack.c.bf16 %v2148_v10, %v2147_v38  ;;  %v3198_v49 = vsel %vm22542_vm7, %v10922_v23, 0.0  ;;  %v22548_v10 = vld [vmem:[#allocation135_spill] sm:$0xff]  ;;  %v22550_v23 = vld [vmem:[#allocation120_spill] sm:$0xff] }
 0x224   : > { %12078 = vmatprep.mubr.msk.bf16.mxu1 %vm22522_vm3, %v22521_v36  ;;  %vm22533_vm3 = vmmov %vm22524_vm2  ;;  %v22539_v36 = vld [vmem:[#allocation110_spill] sm:$0xff] }
 0x225   : > { %vm22540_vm0 = vnez %v22539_v36  ;;  %v22553_v36 = vld [vmem:[#allocation58_spill] sm:$0xff] }
 0x228   : > { %12181 = vmatmul.mubr.msk.bf16.vlgmr.msra.gmra.mxu0 %vm22524_vm2, %v22523_v47  ;;  %v3197_v47 = vsel %vm22540_vm0, %v10921_v33, 0.0 }
 0x229   : > { %12184 = vmatprep.mubr.msk.bf16.mxu0 %vm22526_vm13, %v22525_v59  ;;  %vm22535_vm13 = vmmov %vm22527_vm9  ;;  %v10806_v59 = vld [vmem:[%s13060_s26 + $0x12e] sm:$0xff]  ;;  %v3224_v37 = vpack.c.bf16 %v3198_v49, %v3197_v47 }
 0x22a   : > { %vm22536_vm9 = vmmov %vm22524_vm2  ;;  %12662 = vmatprep.subr.msk.bf16.mxu0 %vm22535_vm13, %v11041_v41  ;;  %v2151_v51 = vsel %vm22540_vm0, %v10806_v59, 0.0 }
 0x22b   : > { %12079 = vmatmul.mubr.msk.bf16.vlgmr.msra.gmra.mxu1 %vm22533_vm3, %v22532_v1  ;;  %vm22538_vm3 = vmmov %vm22524_vm2  ;;  %v2152_v1 = vsel %vm22542_vm7, %v10807_v27, 0.0 }
 0x22c   : > { %12145 = vmatpush3.bf16.msra.mxu1 %v2894_v53  ;;  %12082 = vmatprep.mubr.msk.bf16.mxu1 %vm22524_vm2, %v22534_v45  ;;  %v22543_v53 = vld [vmem:[#allocation249_spill] sm:$0xff]  ;;  %v17172_v45 = vpop.f32.mrf.mxu0  ;;  %v2178_v38 = vpack.c.bf16 %v2152_v1, %v2151_v51  ;;  %vm22552_vm0 = vmmov %vm22524_vm2  ;;  %v22559_v51 = vld [vmem:[#allocation63_spill] sm:$0xff] }
 0x22d   : > { %12661 = vmatprep.subr.msk.bf16.mxu1 %vm22535_vm13, %v17122_v43  ;;  %vm22554_vm7 = vmmov %vm22552_vm0  ;;  %v22561_v1 = vld [vmem:[#allocation80_spill] sm:$0xff] }
 0x22e   : > { %v17185_v47 = vpop.f32.mrf.mxu0 }
 0x230   : > { %12185 = vmatmul.mubr.msk.bf16.gmra.mxu0 %vm22536_vm9, %v3222_v30  ;;  %vm22544_vm9 = vmmov %vm22524_vm2  ;;  %v22546_v30 = vld [vmem:[#allocation247_spill] sm:$0xff]  ;;  %v17192_v27 = vpop.f32.mrf.mxu0 }
 0x231   : > { %12188 = vmatprep.mubr.msk.bf16.mxu0 %vm22538_vm3, %v22537_v22  ;;  %vm22545_vm3 = vmmov %vm22535_vm13 }
 0x232   : > { %v4038_v25 = vsel %vm22545_vm3, %v11041_v41, 0  ;;  %vm22547_vm13 = vmmov %vm22524_vm2  ;;  %vm22551_vm3 = vnez %v22550_v23  ;;  %v10811_v41 = vld [vmem:[%s13060_s26 + $0x156] sm:$0xff] }
 0x233   : > { %12083 = vmatmul.mubr.msk.bf16.gmra.mxu1 %vm22524_vm2, %v2176_v28  ;;  %12247 = vmatpush3.bf16.msra.mxu0 %v4038_v25  ;;  %v3202_v22 = vsel %vm22551_vm3, %v10926_v63, 0.0  ;;  %v10810_v28 = vld [vmem:[%s13060_s26 + $0x14e] sm:$0xff]  ;;  %v2156_v59 = vsel %vm22551_vm3, %v10811_v41, 0.0  ;;  %vm22562_vm3 = vmmov %vm22552_vm0  ;;  %v22563_v63 = vld [vmem:[#allocation66_spill] sm:$0xff] }
 0x234   : > { %12086 = vmatprep.mubr.msk.bf16.mxu1 %vm22544_vm9, %v22543_v53  ;;  %vm22549_vm9 = vnez %v22548_v10  ;;  %v22556_v53 = vld [vmem:[#allocation251_spill] sm:$0xff]  ;;  %v22567_v10 = vld [vmem:[#allocation96_spill] sm:$0xff]  ;;  %v12834_v41 = vld [vmem:[%s13060_s26 + $0x216] sm:$0xff] }
 0x235   : > { %v3201_v33 = vsel %vm22549_vm9, %v10925_v16, 0.0  ;;  %v2155_v49 = vsel %vm22549_vm9, %v10810_v28, 0.0  ;;  %vm22560_vm9 = vmmov %vm22552_vm0  ;;  %v10823_v28 = vld [vmem:[%s13060_s26 + $0x1b6] sm:$0xff] }
 0x236   : > { %v3226_v52 = vpack.c.bf16 %v3202_v22, %v3201_v33  ;;  %v2180_v25 = vpack.c.bf16 %v2156_v59, %v2155_v49  ;;  %v22569_v33 = vld [vmem:[#allocation76_spill] sm:$0xff]  ;;  %v22571_v22 = vld [vmem:[#allocation89_spill] sm:$0xff] }
 0x237   : > { %v10822_v49 = vld [vmem:[%s13060_s26 + $0x1ae] sm:$0xff] }
 0x238   : > { %12189 = vmatmul.mubr.msk.bf16.gmra.mxu0 %vm22524_vm2, %v3224_v37  ;;  %vm22555_vm2 = vmmov %vm22552_vm0  ;;  %v17197_v37 = vpop.f32.mrf.mxu0  ;;  %v12835_v59 = vld [vmem:[%s13060_s26 + $0x20e] sm:$0xff] }
 0x239   : > { %12192 = vmatprep.mubr.msk.bf16.mxu0 %vm22547_vm13, %v22546_v30  ;;  %vm22557_vm13 = vmmov %vm22552_vm0  ;;  %22558 = vst [vmem:[#allocation100_spill] sm:$0xff] %v17197_v37  ;;  %v22565_v30 = vld [vmem:[#allocation71_spill] sm:$0xff] }
 0x23a   : > { %v17203_v16 = vpop.f32.mrf.mxu0 }
 0x23b   : > { %12087 = vmatmul.mubr.msk.bf16.gmra.mxu1 %vm22552_vm0, %v2178_v38 }
 0x23c   : > { %12090 = vmatprep.mubr.msk.bf16.mxu1 %vm22554_vm7, %v22553_v36  ;;  %vm22564_vm7 = vmmov %vm22552_vm0  ;;  %v17209_v38 = vpop.f32.mrf.mxu0  ;;  %v22573_v36 = vld [vmem:[#allocation226_spill] sm:$0xff] }
 0x23e   : > { %v17215_v23 = vpop.f32.mrf.mxu0 }
 0x23f   : > { %22570 = vst [vmem:[#allocation68_spill] sm:$0xff] %v17215_v23 }
 0x240   : > { %12193 = vmatmul.mubr.msk.bf16.gmra.mxu0 %vm22555_vm2, %v3226_v52  ;;  %vm22566_vm2 = vmmov %vm22552_vm0 }
 0x241   : > { %12196 = vmatprep.mubr.msk.bf16.mxu0 %vm22557_vm13, %v22556_v53  ;;  %vm22568_vm13 = vmmov %vm22552_vm0  ;;  %v22575_v53 = vld [vmem:[#allocation172_spill] sm:$0xff] }
 0x243   : > { %12091 = vmatmul.mubr.msk.bf16.gmra.mxu1 %vm22552_vm0, %v2180_v25 }
 0x244   : > { %12094 = vmatprep.mubr.msk.bf16.mxu1 %vm22560_vm9, %v22559_v51  ;;  %vm22572_vm9 = vmmov %vm22552_vm0  ;;  %v22577_v51 = vld [vmem:[#allocation101_spill] sm:$0xff] }
 0x248   : > { %12197 = vmatmul.mubr.msk.bf16.gmra.mxu0 %vm22562_vm3, %v22561_v1  ;;  %vm22574_vm3 = vnez %v22573_v36  ;;  %v17229_v1 = vpop.f32.mrf.mxu0  ;;  %v11009_v36 = vld [vmem:[%s13060_s26 + $0x198] sm:$0xff] }
 0x249   : > { %12200 = vmatprep.mubr.msk.bf16.mxu0 %vm22564_vm7, %v22563_v63  ;;  %v3214_v52 = vsel %vm22574_vm3, %v12834_v41, 0.0  ;;  %vm22576_vm7 = vnez %v22575_v53  ;;  %22579 = vst [vmem:[#allocation31_spill] sm:$0xff] %v17229_v1  ;;  %v22580_v63 = vld [vmem:[#allocation153_spill] sm:$0xff]  ;;  %v2168_v41 = vsel %vm22574_vm3, %v10823_v28, 0.0 }
 0x24a   : > { %v3213_v25 = vsel %vm22576_vm7, %v12835_v59, 0.0  ;;  %v2167_v59 = vsel %vm22576_vm7, %v10822_v49, 0.0  ;;  %v17249_v4 = vpop.f32.mrf.mxu0  ;;  %v11036_v1 = vld [vmem:[%s13060_s26 + $0x270] sm:$0xff] }
 0x24b   : > { %12095 = vmatmul.mubr.msk.bf16.gmra.mxu1 %vm22566_vm2, %v22565_v30  ;;  %vm22578_vm2 = vmmov %vm22552_vm0  ;;  %v22581_v30 = vld [vmem:[#allocation180_spill] sm:$0xff] }
 0x24c   : > { %12098 = vmatprep.mubr.msk.bf16.mxu1 %vm22568_vm13, %v22567_v10  ;;  %vm22582_vm13 = vnez %v22581_v30  ;;  %v17253_v28 = vpop.f32.mrf.mxu0  ;;  %vm22589_vm3 = vmmov %vm22578_vm2  ;;  %v11012_v30 = vld [vmem:[%s13060_s26 + $0x1b0] sm:$0xff] }
 0x24d   : > { %v3215_v10 = vsel %vm22582_vm13, %v22580_v63, 0.0  ;;  %v2169_v63 = vsel %vm22582_vm13, %v12836_v42, 0.0  ;;  %v11010_v42 = vld [vmem:[%s13060_s26 + $0x1a0] sm:$0xff]  ;;  %vm22590_vm7 = vmmov %vm22578_vm2 }
 0x24e   : > { %vm22593_vm13 = vmmov %vm22578_vm2 }
 0x250   : > { %12201 = vmatmul.mubr.msk.bf16.gmra.mxu0 %vm22552_vm0, %v22569_v33  ;;  %v22583_v33 = vld [vmem:[#allocation54_spill] sm:$0xff] }
 0x251   : > { %12204 = vmatprep.mubr.msk.bf16.mxu0 %vm22572_vm9, %v22571_v22  ;;  %v22584_v22 = vld [vmem:[#allocation232_spill] sm:$0xff]  ;;  %vm22587_vm9 = vmmov %vm22578_vm2 }
 0x252   : > { %vm22585_vm0 = vnez %v22584_v22  ;;  %v11013_v22 = vld [vmem:[%s13060_s26 + $0x1b8] sm:$0xff] }
 0x253   : > { %12099 = vmatmul.mubr.msk.bf16.gmra.mxu1 %vm22578_vm2, %v22577_v51  ;;  %v3216_v14 = vsel %vm22585_vm0, %v22583_v33, 0.0  ;;  %v3232_v51 = vpack.c.bf16 %v3214_v52, %v3213_v25  ;;  %v2170_v33 = vsel %vm22585_vm0, %v12837_v58, 0.0  ;;  %v17258_v52 = vpop.f32.mrf.mxu0  ;;  %v3971_v58 = vpack.c.bf16 %v11010_v42, %v11009_v36  ;;  %vm22594_vm0 = vmmov %vm22578_vm2  ;;  %v11011_v25 = vld [vmem:[%s13060_s26 + $0x1a8] sm:$0xff] }
 0x254   : > { %12102 = vmatprep.mubr.msk.bf16.mxu1 %vm22587_vm9, %v22586_v56  ;;  %v3233_v57 = vpack.c.bf16 %v3216_v14, %v3215_v10  ;;  %vm22588_vm9 = vmmov %vm22578_vm2  ;;  %v2186_v56 = vpack.c.bf16 %v2168_v41, %v2167_v59  ;;  %v2187_v14 = vpack.c.bf16 %v2170_v33, %v2169_v63  ;;  %v11014_v41 = vld [vmem:[%s13060_s26 + $0x1c0] sm:$0xff]  ;;  %v22595_v59 = vld [vmem:[#allocation189_spill] sm:$0xff]  ;;  %v3972_v33 = vpack.c.bf16 %v11012_v30, %v11011_v25 }
 0x255   : > { %v17261_v49 = vpop.f32.mrf.mxu0  ;;  %v22597_v63 = vld [vmem:[#allocation7_spill] sm:$0xff]  ;;  %v17295_v25 = vld [vmem:[%s20486_s3 + $0x10] sm:$0x3]  ;;  %v11017_v30 = vld [vmem:[%s13060_s26 + $0x1d8] sm:$0xff] }
 0x256   : > { %22591 = vst [vmem:[#allocation82_spill] sm:$0xff] %v17261_v49 }
 0x257   : > { %v17263_v53 = vpop.f32.mrf.mxu0 }
 0x258   : > { %12205 = vmatmul.mubr.msk.bf16.gmra.mxu0 %vm22578_vm2, %v3232_v51  ;;  %vm22596_vm2 = vmmov %vm22594_vm0 }
 0x259   : > { %12208 = vmatprep.mubr.msk.bf16.mxu0 %vm22588_vm9, %v3233_v57  ;;  %v22592_v57 = vld [vmem:[#allocation190_spill] sm:$0xff]  ;;  %v17270_v10 = vpop.f32.mrf.mxu0  ;;  %vm22598_vm9 = vmmov %vm22594_vm0 }
 0x25b   : > { %12103 = vmatmul.mubr.msk.bf16.gmra.mxu1 %vm22589_vm3, %v2186_v56  ;;  %v17276_v51 = vpop.f32.mrf.mxu0  ;;  %v3973_v56 = vpack.c.bf16 %v11014_v41, %v11013_v22  ;;  %vm22600_vm3 = vmmov %vm22594_vm0  ;;  %v11018_v22 = vld [vmem:[%s13060_s26 + $0x1e0] sm:$0xff]  ;;  %v17299_v41 = vpop.f32.mrf.mxu1 }
 0x25c   : > { %12106 = vmatprep.mubr.msk.bf16.mxu1 %vm22590_vm7, %v2187_v14  ;;  %vm22601_vm7 = vcmask 1041408   ;;  %22603 = vst [vmem:[#allocation83_spill] sm:$0xff] %v17299_v41  ;;  %v3975_v35 = vpack.c.bf16 %v11018_v22, %v11017_v30  ;;  %v11022_v30 = vld [vmem:[%s13060_s26 + $0x200] sm:$0xff] }
 0x25d   : > { %v17280_v14 = vpop.f32.mrf.mxu0  ;;  %v3678_v42 = vsel %vm22601_vm7, %v17122_v43, 0  ;;  %v17307_v17 = vpop.f32.mrf.mxu1 }
 0x25e   : > { %22599 = vst [vmem:[#allocation112_spill] sm:$0xff] %v17280_v14  ;;  %22607 = vst [vmem:[#allocation98_spill] sm:$0xff] %v17307_v17  ;;  %v11021_v17 = vld [vmem:[%s13060_s26 + $0x1f8] sm:$0xff] }
 0x25f   : > { %v17282_v36 = vpop.f32.mrf.mxu0  ;;  %v17313_v12 = vpop.f32.mrf.mxu1  ;;  %v3977_v11 = vpack.c.bf16 %v11022_v30, %v11021_v17  ;;  %v11026_v17 = vld [vmem:[%s13060_s26 + $0x220] sm:$0xff]  ;;  %v22623_v30 = vld [vmem:[#allocation12_spill] sm:$0xff] }
 0x260   : > { %12209 = vmatmul.mubr.msk.bf16.gmra.mxu0 %vm22593_vm13, %v22592_v57  ;;  %vm22602_vm13 = vmmov %vm22594_vm0  ;;  %v11016_v57 = vld [vmem:[%s13060_s26 + $0x1d0] sm:$0xff]  ;;  %22609 = vst [vmem:[#allocation107_spill] sm:$0xff] %v17313_v12 }
 0x261   : > { %12248 = vmatprep.mubr.msk.bf16.mxu0 %vm22594_vm0, %v3971_v58  ;;  %v11015_v58 = vld [vmem:[%s13060_s26 + $0x1c8] sm:$0xff] }
 0x262   : > { %v3974_v3 = vpack.c.bf16 %v11016_v57, %v11015_v58  ;;  %v11020_v58 = vld [vmem:[%s13060_s26 + $0x1f0] sm:$0xff] }
 0x263   : > { %12107 = vmatmul.mubr.msk.bf16.gmra.mxu1 %vm22596_vm2, %v22595_v59  ;;  %v17290_v59 = vpop.f32.mrf.mxu0  ;;  %vm22606_vm2 = vmmov %vm22594_vm0 }
 0x264   : > { %12146 = vmatprep.mubr.msk.bf16.mxu1 %vm22598_vm9, %v22597_v63  ;;  %vm22608_vm9 = vmmov %vm22601_vm7 }
 0x265   : > { %v17303_v43 = vpop.f32.mrf.mxu0  ;;  %vm22612_vm7 = vmmov %vm22594_vm0 }
 0x267   : > { %v17311_v41 = vpop.f32.mrf.mxu0 }
 0x268   : > { %12249 = vmatmul.mubr.msk.bf16.vlgmr.msra.gmra.mxu0 %vm22600_vm3, %v3972_v33  ;;  %v22604_v33 = vld [vmem:[#allocation8_spill] sm:$0xff]  ;;  %vm22610_vm3 = vmmov %vm22594_vm0 }
 0x269   : > { %12252 = vmatprep.mubr.msk.bf16.mxu0 %vm22602_vm13, %v3973_v56  ;;  %v22605_v56 = vld [vmem:[#allocation9_spill] sm:$0xff]  ;;  %v17315_v55 = vpop.f32.mrf.mxu0  ;;  %vm22615_vm13 = vmmov %vm22594_vm0 }
 0x26b   : > { %12147 = vmatmul.mubr.msk.bf16.vlgmr.msra.gmra.mxu1 %vm22594_vm0, %v22604_v33  ;;  %v17323_v57 = vpop.f32.mrf.mxu0 }
 0x26c   : > { %12213 = vmatpush3.bf16.msra.mxu1 %v3678_v42  ;;  %12150 = vmatprep.mubr.msk.bf16.mxu1 %vm22606_vm2, %v22605_v56  ;;  %v17318_v42 = vpop.f32.mrf.mxu1  ;;  %vm22619_vm2 = vmmov %vm22594_vm0  ;;  %v11024_v56 = vld [vmem:[%s13060_s26 + $0x210] sm:$0xff] }
 0x26d   : > { %12663 = vmatprep.subr.msk.bf16.mxu1 %vm22608_vm9, %v17295_v25  ;;  %22611 = vst [vmem:[#allocation38_spill] sm:$0xff] %v17318_v42  ;;  %v22616_v42 = vld [vmem:[#allocation11_spill] sm:$0xff]  ;;  %vm22621_vm9 = vmmov %vm22594_vm0 }
 0x26e   : > { %v17327_v22 = vpop.f32.mrf.mxu1 }
 0x26f   : > { %22613 = vst [vmem:[#allocation198_spill] sm:$0xff] %v17327_v22 }
 0x270   : > { %12253 = vmatmul.mubr.msk.bf16.gmra.mxu0 %vm22610_vm3, %v3974_v3  ;;  %v17331_v3 = vpop.f32.mrf.mxu0  ;;  %v17335_v12 = vpop.f32.mrf.mxu1  ;;  %vm22624_vm3 = vmmov %vm22594_vm0 }
 0x271   : > { %12256 = vmatprep.mubr.msk.bf16.mxu0 %vm22612_vm7, %v3975_v35  ;;  %v3976_v35 = vpack.c.bf16 %v11020_v58, %v11019_v39  ;;  %22617 = vst [vmem:[#allocation53_spill] sm:$0xff] %v17335_v12  ;;  %v11025_v39 = vld [vmem:[%s13060_s26 + $0x218] sm:$0xff]  ;;  %vm22626_vm7 = vmmov %vm22594_vm0 }
 0x272   : > { %v17337_v21 = vpop.f32.mrf.mxu0  ;;  %v17339_v44 = vpop.f32.mrf.mxu1  ;;  %v3979_v12 = vpack.c.bf16 %v11026_v17, %v11025_v39  ;;  %v22632_v17 = vld [vmem:[#allocation14_spill] sm:$0xff] }
 0x273   : > { %12151 = vmatmul.mubr.msk.bf16.gmra.mxu1 %vm22615_vm13, %v22614_v29  ;;  %22618 = vst [vmem:[#allocation137_spill] sm:$0xff] %v17339_v44  ;;  %v11023_v29 = vld [vmem:[%s13060_s26 + $0x208] sm:$0xff]  ;;  %vm22629_vm13 = vmmov %vm22594_vm0 }
 0x274   : > { %12154 = vmatprep.mubr.msk.bf16.mxu1 %vm22594_vm0, %v22616_v42  ;;  %v17341_v34 = vpop.f32.mrf.mxu0  ;;  %v17344_v22 = vpop.f32.mrf.mxu1 }
 0x275   : > { %22620 = vst [vmem:[#allocation108_spill] sm:$0xff] %v17344_v22  ;;  %v22625_v22 = vld [vmem:[#allocation13_spill] sm:$0xff] }
 0x276   : > { %v17349_v33 = vpop.f32.mrf.mxu0  ;;  %v17353_v58 = vpop.f32.mrf.mxu1 }
 0x277   : > { %22622 = vst [vmem:[#allocation123_spill] sm:$0xff] %v17353_v58 }
 0x278   : > { %12257 = vmatmul.mubr.msk.bf16.gmra.mxu0 %vm22619_vm2, %v3976_v35  ;;  %v17357_v35 = vpop.f32.mrf.mxu0  ;;  %v17361_v44 = vpop.f32.mrf.mxu1  ;;  %vm22633_vm2 = vmmov %vm22594_vm0 }
 0x279   : > { %12260 = vmatprep.mubr.msk.bf16.mxu0 %vm22621_vm9, %v3977_v11  ;;  %v3978_v11 = vpack.c.bf16 %v11024_v56, %v11023_v29  ;;  %22627 = vst [vmem:[#allocation133_spill] sm:$0xff] %v17361_v44  ;;  %v11029_v29 = vld [vmem:[%s13060_s26 + $0x238] sm:$0xff]  ;;  %v11030_v56 = vld [vmem:[%s13060_s26 + $0x240] sm:$0xff]  ;;  %vm22635_vm9 = vmmov %vm22594_vm0 }
 0x27a   : > { %v17363_v42 = vpop.f32.mrf.mxu0  ;;  %v17365_v63 = vpop.f32.mrf.mxu1  ;;  %v3981_v44 = vpack.c.bf16 %v11030_v56, %v11029_v29  ;;  %v22642_v56 = vld [vmem:[#allocation16_spill] sm:$0xff] }
 0x27b   : > { %12155 = vmatmul.mubr.msk.bf16.gmra.mxu1 %vm22624_vm3, %v22623_v30  ;;  %22628 = vst [vmem:[#allocation223_spill] sm:$0xff] %v17365_v63  ;;  %v11027_v30 = vld [vmem:[%s13060_s26 + $0x228] sm:$0xff]  ;;  %vm22638_vm3 = vmmov %vm22594_vm0 }
 0x27c   : > { %12158 = vmatprep.mubr.msk.bf16.mxu1 %vm22626_vm7, %v22625_v22  ;;  %v17367_v46 = vpop.f32.mrf.mxu0  ;;  %v17370_v58 = vpop.f32.mrf.mxu1  ;;  %vm22640_vm7 = vmmov %vm22594_vm0 }
 0x27d   : > { %22630 = vst [vmem:[#allocation56_spill] sm:$0xff] %v17370_v58  ;;  %v22634_v58 = vld [vmem:[#allocation15_spill] sm:$0xff] }
 0x27e   : > { %v17375_v40 = vpop.f32.mrf.mxu0  ;;  %v17379_v39 = vpop.f32.mrf.mxu1 }
 0x27f   : > { %22631 = vst [vmem:[#allocation163_spill] sm:$0xff] %v17379_v39 }
 0x280   : > { %12261 = vmatmul.mubr.msk.bf16.gmra.mxu0 %vm22629_vm13, %v3978_v11  ;;  %v17383_v11 = vpop.f32.mrf.mxu0  ;;  %v17387_v63 = vpop.f32.mrf.mxu1  ;;  %vm22643_vm13 = vmmov %vm22594_vm0 }
 0x281   : > { %12264 = vmatprep.mubr.msk.bf16.mxu0 %vm22594_vm0, %v3979_v12  ;;  %v3980_v12 = vpack.c.bf16 %v11028_v32, %v11027_v30  ;;  %22636 = vst [vmem:[#allocation134_spill] sm:$0xff] %v17387_v63  ;;  %v11033_v32 = vld [vmem:[%s13060_s26 + $0x258] sm:$0xff]  ;;  %v11034_v30 = vld [vmem:[%s13060_s26 + $0x260] sm:$0xff] }
 0x282   : > { %v17389_v22 = vpop.f32.mrf.mxu0  ;;  %v17391_v50 = vpop.f32.mrf.mxu1  ;;  %v3983_v63 = vpack.c.bf16 %v11034_v30, %v11033_v32  ;;  %v22653_v30 = vld [vmem:[#allocation18_spill] sm:$0xff] }
 0x283   : > { %12159 = vmatmul.mubr.msk.bf16.gmra.mxu1 %vm22633_vm2, %v22632_v17  ;;  %22637 = vst [vmem:[#allocation143_spill] sm:$0xff] %v17391_v50  ;;  %v11031_v17 = vld [vmem:[%s13060_s26 + $0x248] sm:$0xff]  ;;  %vm22648_vm2 = vmmov %vm22594_vm0 }
 0x284   : > { %12162 = vmatprep.mubr.msk.bf16.mxu1 %vm22635_vm9, %v22634_v58  ;;  %v17393_v61 = vpop.f32.mrf.mxu0  ;;  %v17396_v39 = vpop.f32.mrf.mxu1  ;;  %vm22650_vm9 = vmmov %vm22594_vm0 }
 0x285   : > { %22639 = vst [vmem:[#allocation158_spill] sm:$0xff] %v17396_v39  ;;  %v22644_v39 = vld [vmem:[#allocation17_spill] sm:$0xff] }
 0x286   : > { %v17401_v37 = vpop.f32.mrf.mxu0  ;;  %v17405_v29 = vpop.f32.mrf.mxu1 }
 0x287   : > { %22641 = vst [vmem:[#allocation239_spill] sm:$0xff] %v17405_v29 }
 0x288   : > { %12265 = vmatmul.mubr.msk.bf16.gmra.mxu0 %vm22638_vm3, %v3980_v12  ;;  %v17409_v12 = vpop.f32.mrf.mxu0  ;;  %v17413_v50 = vpop.f32.mrf.mxu1  ;;  %vm22654_vm3 = vmmov %vm22594_vm0 }
 0x289   : > { %12268 = vmatprep.mubr.msk.bf16.mxu0 %vm22640_vm7, %v3981_v44  ;;  %v3982_v44 = vpack.c.bf16 %v11032_v24, %v11031_v17  ;;  %22645 = vst [vmem:[#allocation186_spill] sm:$0xff] %v17413_v50  ;;  %v11037_v24 = vld [vmem:[%s13060_s26 + $0x278] sm:$0xff]  ;;  %v11038_v17 = vld [vmem:[%s13060_s26 + $0x280] sm:$0xff]  ;;  %vm22657_vm7 = vmmov %vm22594_vm0 }
 0x28a   : > { %v17415_v58 = vpop.f32.mrf.mxu0  ;;  %v17417_v14 = vpop.f32.mrf.mxu1  ;;  %v3985_v50 = vpack.c.bf16 %v11038_v17, %v11037_v24  ;;  %v22663_v17 = vld [vmem:[#allocation20_spill] sm:$0xff] }
 0x28b   : > { %12163 = vmatmul.mubr.msk.bf16.gmra.mxu1 %vm22643_vm13, %v22642_v56  ;;  %22646 = vst [vmem:[#allocation216_spill] sm:$0xff] %v17415_v58  ;;  %22647 = vst [vmem:[#allocation160_spill] sm:$0xff] %v17417_v14  ;;  %v11035_v56 = vld [vmem:[%s13060_s26 + $0x268] sm:$0xff] }
 0x28c   : > { %12166 = vmatprep.mubr.msk.bf16.mxu1 %vm22594_vm0, %v22644_v39  ;;  %v17419_v49 = vpop.f32.mrf.mxu0  ;;  %v17422_v29 = vpop.f32.mrf.mxu1  ;;  %vm22660_vm13 = vmmov %vm22594_vm0 }
 0x28d   : > { %22649 = vst [vmem:[#allocation205_spill] sm:$0xff] %v17422_v29  ;;  %v3984_v29 = vpack.c.bf16 %v11036_v1, %v11035_v56 }
 0x28e   : > { %v17427_v23 = vpop.f32.mrf.mxu0  ;;  %v17431_v32 = vpop.f32.mrf.mxu1 }
 0x28f   : > { %22651 = vst [vmem:[#allocation209_spill] sm:$0xff] %v17427_v23  ;;  %22652 = vst [vmem:[#allocation121_spill] sm:$0xff] %v17431_v32 }
 0x290   : > { %12269 = vmatmul.mubr.msk.bf16.gmra.mxu0 %vm22648_vm2, %v3982_v44  ;;  %v17435_v14 = vpop.f32.mrf.mxu0  ;;  %v22656_v44 = vld [vmem:[#allocation19_spill] sm:$0xff]  ;;  %vm22664_vm2 = vmmov %vm22594_vm0 }
 0x291   : > { %12272 = vmatprep.mubr.msk.bf16.mxu0 %vm22650_vm9, %v3983_v63  ;;  %22655 = vst [vmem:[#allocation119_spill] sm:$0xff] %v17435_v14  ;;  %v17439_v63 = vpop.f32.mrf.mxu1  ;;  %v11039_v14 = vld [vmem:[%s13060_s26 + $0x288] sm:$0xff]  ;;  %vm22666_vm9 = vmmov %vm22594_vm0 }
 0x292   : > { %22658 = vst [vmem:[#allocation211_spill] sm:$0xff] %v17439_v63  ;;  %v17441_v39 = vpop.f32.mrf.mxu0 }
 0x293   : > { %12167 = vmatmul.mubr.msk.bf16.gmra.mxu1 %vm22654_vm3, %v22653_v30  ;;  %v17443_v58 = vpop.f32.mrf.mxu1  ;;  %vm22670_vm3 = vmmov %vm22594_vm0 }
 0x294   : > { %12170 = vmatprep.mubr.msk.bf16.mxu1 %vm22657_vm7, %v22656_v44  ;;  %22659 = vst [vmem:[#allocation129_spill] sm:$0xff] %v17443_v58  ;;  %v12070_v23 = vpop.f32.mrf.mxu0  ;;  %v11040_v44 = vld [vmem:[%s13060_s26 + $0x290] sm:$0xff]  ;;  %vm22676_vm7 = vmmov %vm22594_vm0 }
 0x295   : > { %v17447_v32 = vadd.f32 %v12070_v23, %v17249_v4  ;;  %v17449_v30 = vpop.f32.mrf.mxu1  ;;  %v3986_v4 = vpack.c.bf16 %v11040_v44, %v11039_v14  ;;  %v22675_v44 = vld [vmem:[#allocation22_spill] sm:$0xff] }
 0x296   : > { %22661 = vst [vmem:[#allocation150_spill] sm:$0xff] %v17449_v30  ;;  %v1852_v1 = vpop.f32.mrf.mxu0 }
 0x297   : > { %v17455_v56 = vadd.f32 %v1852_v1, %v17253_v28  ;;  %v17457_v24 = vpop.f32.mrf.mxu1 }
 0x298   : > { %12273 = vmatmul.mubr.msk.bf16.gmra.mxu0 %vm22660_vm13, %v3984_v29  ;;  %22662 = vst [vmem:[#allocation233_spill] sm:$0xff] %v17457_v24  ;;  %v12071_v58 = vpop.f32.mrf.mxu0  ;;  %v22665_v29 = vld [vmem:[#allocation21_spill] sm:$0xff]  ;;  %vm22678_vm13 = vmmov %vm22594_vm0 }
 0x299   : > { %12276 = vmatprep.mubr.msk.bf16.mxu0 %vm22594_vm0, %v3985_v50  ;;  %v17464_v23 = vadd.f32 %v12071_v58, %v17258_v52  ;;  %v17466_v50 = vpop.f32.mrf.mxu1 }
 0x29a   : > { %22668 = vst [vmem:[#allocation117_spill] sm:$0xff] %v17466_v50  ;;  %v17468_v30 = vpop.f32.mrf.mxu0  ;;  %v22677_v50 = vld [vmem:[#allocation176_spill] sm:$0xff] }
 0x29b   : > { %12171 = vmatmul.mubr.msk.bf16.gmra.mxu1 %vm22664_vm2, %v22663_v17  ;;  %22667 = vst [vmem:[#allocation94_spill] sm:$0xff] %v17464_v23  ;;  %v17470_v28 = vpop.f32.mrf.mxu1  ;;  %v10982_v23 = vld [vmem:[%s13060_s26 + $0x242] sm:$0xff] }
 0x29c   : > { %12174 = vmatprep.mubr.msk.bf16.mxu1 %vm22666_vm9, %v22665_v29  ;;  %22669 = vst [vmem:[#allocation141_spill] sm:$0xff] %v17470_v28  ;;  %v12074_v1 = vpop.f32.mrf.mxu0  ;;  %v22685_v29 = vld [vmem:[#allocation41_spill] sm:$0xff]  ;;  %vm22689_vm9 = vcmask 1041408  }
 0x29d   : > { %v17474_v24 = vadd.f32 %v12074_v1, %v17263_v53  ;;  %v17476_v63 = vpop.f32.mrf.mxu1  ;;  %v10964_v53 = vld [vmem:[%s13060_s26 + $0x1b2] sm:$0xff]  ;;  %vm22686_vm2 = vnez %v22685_v29 }
 0x29e   : > { %22672 = vst [vmem:[#allocation222_spill] sm:$0xff] %v17476_v63  ;;  %v1868_v14 = vpop.f32.mrf.mxu0 }
 0x29f   : > { %22671 = vst [vmem:[#allocation169_spill] sm:$0xff] %v17474_v24  ;;  %v17480_v52 = vadd.f32 %v1868_v14, %v17270_v10  ;;  %v17482_v58 = vpop.f32.mrf.mxu1 }
 0x2a0   : > { %12277 = vmatmul.mubr.msk.bf16.gmra.mxu0 %vm22670_vm3, %v3986_v4  ;;  %22674 = vst [vmem:[#allocation187_spill] sm:$0xff] %v17482_v58  ;;  %v12075_v28 = vpop.f32.mrf.mxu0  ;;  %v10965_v4 = vld [vmem:[%s13060_s26 + $0x1ba] sm:$0xff] }
 0x2a1   : > { %4998 = vmatprep.mubr.bf16.mxu0 %v21536_v60  ;;  %22673 = vst [vmem:[#allocation175_spill] sm:$0xff] %v17480_v52  ;;  %v17491_v1 = vadd.f32 %v12075_v28, %v17276_v51  ;;  %v17493_v63 = vpop.f32.mrf.mxu1  ;;  %v22683_v58 = vld [vmem:[#allocation42_spill] sm:$0xff]  ;;  %v3584_v17 = vsel %vm22686_vm2, %v10965_v4, 0.0  ;;  %v4430_v51 = vsel %vm22689_vm9, %v17295_v25, 0  ;;  %v22692_v4 = vld [vmem:[#allocation24_spill] sm:$0xff] }
 0x2a2   : > { %22680 = vst [vmem:[#allocation118_spill] sm:$0xff] %v17493_v63  ;;  %v17495_v10 = vpop.f32.mrf.mxu0  ;;  %vm22684_vm0 = vnez %v22683_v58  ;;  %v10967_v58 = vld [vmem:[%s13060_s26 + $0x1ca] sm:$0xff] }
 0x2a3   : > { %12175 = vmatmul.mubr.msk.bf16.gmra.mxu1 %vm22676_vm7, %v22675_v44  ;;  %22679 = vst [vmem:[#allocation170_spill] sm:$0xff] %v17491_v1  ;;  %22681 = vst [vmem:[#allocation174_spill] sm:$0xff] %v17495_v10  ;;  %v17497_v14 = vpop.f32.mrf.mxu1  ;;  %v3583_v44 = vsel %vm22684_vm0, %v10964_v53, 0.0  ;;  %v10966_v53 = vld [vmem:[%s13060_s26 + $0x1c2] sm:$0xff] }
 0x2a4   : > { %12214 = vmatprep.mubr.msk.bf16.mxu1 %vm22678_vm13, %v22677_v50  ;;  %22682 = vst [vmem:[#allocation182_spill] sm:$0xff] %v17497_v14  ;;  %v17503_v60 = vpop.f32.mrf.mxu0  ;;  %v3613_v63 = vpack.c.bf16 %v3584_v17, %v3583_v44  ;;  %v17514_v14 = vld [vmem:[%s20487_s4] sm:$0x3]  ;;  %vm22694_vm7 = vmmov %vm22670_vm3  ;;  %v22697_v17 = vld [vmem:[#allocation44_spill] sm:$0xff] }
 0x2a5   : > { %22687 = vst [vmem:[#allocation28_spill] sm:$0xff] %v17503_v60  ;;  %v17505_v50 = vpop.f32.mrf.mxu1  ;;  %vm22696_vm13 = vmmov %vm22689_vm9  ;;  %vm22698_vm0 = vnez %v22697_v17  ;;  %v10970_v10 = vld [vmem:[%s13060_s26 + $0x1e2] sm:$0xff] }
 0x2a6   : > { %22688 = vst [vmem:[#allocation214_spill] sm:$0xff] %v17505_v50  ;;  %v17509_v28 = vpop.f32.mrf.mxu0  ;;  %v3586_v44 = vsel %vm22698_vm0, %v10967_v58, 0.0  ;;  %vm22707_vm9 = vmmov %vm22670_vm3  ;;  %v22709_v58 = vld [vmem:[#allocation168_spill] sm:$0xff] }
 0x2a7   : > { %22690 = vst [vmem:[#allocation124_spill] sm:$0xff] %v17509_v28  ;;  %v17518_v29 = vpop.f32.mrf.mxu1  ;;  %v22699_v28 = vld [vmem:[#allocation43_spill] sm:$0xff]  ;;  %vm22721_vm0 = vmmov %vm22670_vm3 }
 0x2a8   : > { %22691 = vst [vmem:[#allocation217_spill] sm:$0xff] %v17518_v29  ;;  %v17522_v50 = vpop.f32.mrf.mxu0  ;;  %vm22700_vm2 = vnez %v22699_v28 }
 0x2a9   : > { %22693 = vst [vmem:[#allocation179_spill] sm:$0xff] %v17522_v50  ;;  %v17525_v25 = vpop.f32.mrf.mxu1  ;;  %v3585_v29 = vsel %vm22700_vm2, %v10966_v53, 0.0  ;;  %vm22724_vm2 = vmmov %vm22721_vm0 }
 0x2aa   : > { %22695 = vst [vmem:[#allocation181_spill] sm:$0xff] %v17525_v25  ;;  %v17533_v60 = vpop.f32.mrf.mxu0  ;;  %v10971_v25 = vld [vmem:[%s13060_s26 + $0x1ea] sm:$0xff] }
 0x2ab   : > { %12215 = vmatmul.mubr.msk.bf16.vlgmr.msra.gmra.mxu1 %vm22670_vm3, %v22692_v4  ;;  %22701 = vst [vmem:[#allocation164_spill] sm:$0xff] %v17533_v60  ;;  %v17535_v1 = vpop.f32.mrf.mxu1 }
 0x2ac   : > { %12281 = vmatpush3.bf16.msra.mxu1 %v4430_v51  ;;  %12218 = vmatprep.mubr.msk.bf16.mxu1 %vm22694_vm7, %v3613_v63  ;;  %22702 = vst [vmem:[#allocation183_spill] sm:$0xff] %v17535_v1  ;;  %v17537_v4 = vpop.f32.mrf.mxu0  ;;  %v3614_v63 = vpack.c.bf16 %v3586_v44, %v3585_v29  ;;  %v22711_v1 = vld [vmem:[#allocation49_spill] sm:$0xff]  ;;  %v22713_v44 = vld [vmem:[#allocation50_spill] sm:$0xff] }
 0x2ad   : > { %12664 = vmatprep.subr.msk.bf16.mxu1 %vm22696_vm13, %v17514_v14  ;;  %22703 = vst [vmem:[#allocation142_spill] sm:$0xff] %v17537_v4  ;;  %v17539_v51 = vpop.f32.mrf.mxu1  ;;  %vm22712_vm7 = vnez %v22711_v1  ;;  %vm22714_vm13 = vnez %v22713_v44 }
 0x2ae   : > { %22704 = vst [vmem:[#allocation173_spill] sm:$0xff] %v17539_v51  ;;  %v17541_v50 = vpop.f32.mrf.mxu0  ;;  %v3590_v29 = vsel %vm22712_vm7, %v10971_v25, 0.0  ;;  %v3589_v51 = vsel %vm22714_vm13, %v10970_v10, 0.0  ;;  %v22723_v25 = vld [vmem:[#allocation37_spill] sm:$0xff]  ;;  %vm22736_vm7 = vmmov %vm22721_vm0 }
 0x2af   : > { %22705 = vst [vmem:[#allocation185_spill] sm:$0xff] %v17541_v50  ;;  %v17545_v17 = vpop.f32.mrf.mxu1  ;;  %vm22739_vm13 = vmmov %vm22721_vm0 }
 0x2b0   : > { %22706 = vst [vmem:[#allocation240_spill] sm:$0xff] %v17545_v17  ;;  %v17548_v28 = vpop.f32.mrf.mxu0 }
 0x2b1   : > { %22708 = vst [vmem:[#allocation26_spill] sm:$0xff] %v17548_v28  ;;  %v17552_v53 = vpop.f32.mrf.mxu1  ;;  %v3616_v28 = vpack.c.bf16 %v3590_v29, %v3589_v51  ;;  %v22728_v29 = vld [vmem:[#allocation69_spill] sm:$0xff] }
 0x2b2   : > { %22710 = vst [vmem:[#allocation238_spill] sm:$0xff] %v17552_v53  ;;  %v17558_v50 = vpop.f32.mrf.mxu0  ;;  %v10974_v53 = vld [vmem:[%s13060_s26 + $0x202] sm:$0xff] }
 0x2b3   : > { %12219 = vmatmul.mubr.msk.bf16.gmra.mxu1 %vm22707_vm9, %v3614_v63  ;;  %22715 = vst [vmem:[#allocation84_spill] sm:$0xff] %v17558_v50  ;;  %v17560_v4 = vpop.f32.mrf.mxu1  ;;  %v10979_v50 = vld [vmem:[%s13060_s26 + $0x22a] sm:$0xff] }
 0x2b4   : > { %12222 = vmatprep.mubr.msk.bf16.mxu1 %vm22670_vm3, %v22709_v58  ;;  %22716 = vst [vmem:[#allocation61_spill] sm:$0xff] %v17560_v4  ;;  %v17562_v17 = vpop.f32.mrf.mxu0  ;;  %v10975_v58 = vld [vmem:[%s13060_s26 + $0x20a] sm:$0xff]  ;;  %vm22729_vm3 = vnez %v22728_v29  ;;  %v10981_v29 = vld [vmem:[%s13060_s26 + $0x23a] sm:$0xff] }
 0x2b5   : > { %22717 = vst [vmem:[#allocation25_spill] sm:$0xff] %v17562_v17  ;;  %v17564_v63 = vpop.f32.mrf.mxu1  ;;  %v3593_v4 = vsel %vm22729_vm3, %v10974_v53, 0.0  ;;  %v22738_v53 = vld [vmem:[#allocation47_spill] sm:$0xff] }
 0x2b6   : > { %22718 = vst [vmem:[#allocation243_spill] sm:$0xff] %v17564_v63  ;;  %v17566_v60 = vpop.f32.mrf.mxu0  ;;  %v22726_v63 = vld [vmem:[#allocation64_spill] sm:$0xff] }
 0x2b7   : > { %22719 = vst [vmem:[#allocation241_spill] sm:$0xff] %v17566_v60  ;;  %v17570_v1 = vpop.f32.mrf.mxu1  ;;  %vm22727_vm9 = vnez %v22726_v63 }
 0x2b8   : > { %22720 = vst [vmem:[#allocation110_spill] sm:$0xff] %v17570_v1  ;;  %v17573_v10 = vpop.f32.mrf.mxu0  ;;  %v3594_v51 = vsel %vm22727_vm9, %v10975_v58, 0.0  ;;  %v10980_v58 = vld [vmem:[%s13060_s26 + $0x232] sm:$0xff] }
 0x2b9   : > { %22722 = vst [vmem:[#allocation95_spill] sm:$0xff] %v17573_v10  ;;  %v17577_v44 = vpop.f32.mrf.mxu1  ;;  %v3618_v17 = vpack.c.bf16 %v3594_v51, %v3593_v4  ;;  %v22741_v4 = vld [vmem:[#allocation105_spill] sm:$0xff] }
 0x2ba   : > { %22725 = vst [vmem:[#allocation249_spill] sm:$0xff] %v17577_v44  ;;  %v17583_v60 = vpop.f32.mrf.mxu0  ;;  %v10978_v44 = vld [vmem:[%s13060_s26 + $0x222] sm:$0xff] }
 0x2bb   : > { %12223 = vmatmul.mubr.msk.bf16.gmra.mxu1 %vm22721_vm0, %v3616_v28  ;;  %22730 = vst [vmem:[#allocation247_spill] sm:$0xff] %v17583_v60  ;;  %v17585_v1 = vpop.f32.mrf.mxu1  ;;  %vm22742_vm0 = vnez %v22741_v4 }
 0x2bc   : > { %12226 = vmatprep.mubr.msk.bf16.mxu1 %vm22724_vm2, %v22723_v25  ;;  %22731 = vst [vmem:[#allocation135_spill] sm:$0xff] %v17585_v1  ;;  %v17587_v28 = vpop.f32.mrf.mxu0  ;;  %v3598_v51 = vsel %vm22742_vm0, %v10979_v50, 0.0 }
 0x2bd   : > { %22732 = vst [vmem:[#allocation120_spill] sm:$0xff] %v17587_v28  ;;  %v17589_v10 = vpop.f32.mrf.mxu1  ;;  %v22749_v28 = vld [vmem:[#allocation126_spill] sm:$0xff] }
 0x2be   : > { %22733 = vst [vmem:[#allocation58_spill] sm:$0xff] %v17589_v10  ;;  %v17591_v25 = vpop.f32.mrf.mxu0  ;;  %v22743_v10 = vld [vmem:[#allocation106_spill] sm:$0xff]  ;;  %vm22750_vm3 = vnez %v22749_v28 }
 0x2bf   : > { %22734 = vst [vmem:[#allocation251_spill] sm:$0xff] %v17591_v25  ;;  %v17595_v52 = vpop.f32.mrf.mxu1  ;;  %vm22744_vm2 = vnez %v22743_v10  ;;  %v3600_v60 = vsel %vm22750_vm3, %v10981_v29, 0.0  ;;  %v10984_v28 = vld [vmem:[%s13060_s26 + $0x252] sm:$0xff]  ;;  %v22756_v29 = vld [vmem:[#allocation151_spill] sm:$0xff]  ;;  %vm22764_vm3 = vmmov %vm22736_vm7 }
 0x2c0   : > { %22735 = vst [vmem:[#allocation63_spill] sm:$0xff] %v17595_v52  ;;  %v17598_v63 = vpop.f32.mrf.mxu0  ;;  %v3597_v25 = vsel %vm22744_vm2, %v10978_v44, 0.0  ;;  %v10983_v44 = vld [vmem:[%s13060_s26 + $0x24a] sm:$0xff]  ;;  %vm22757_vm0 = vnez %v22756_v29 }
 0x2c1   : > { %22737 = vst [vmem:[#allocation80_spill] sm:$0xff] %v17598_v63  ;;  %v17604_v1 = vpop.f32.mrf.mxu1  ;;  %v22747_v63 = vld [vmem:[#allocation128_spill] sm:$0xff]  ;;  %v3620_v50 = vpack.c.bf16 %v3598_v51, %v3597_v25  ;;  %v3602_v25 = vsel %vm22757_vm0, %v10983_v44, 0.0  ;;  %v22758_v51 = vld [vmem:[#allocation145_spill] sm:$0xff] }
 0x2c2   : > { %22740 = vst [vmem:[#allocation66_spill] sm:$0xff] %v17604_v1  ;;  %v17610_v52 = vpop.f32.mrf.mxu0  ;;  %vm22748_vm9 = vnez %v22747_v63  ;;  %v10985_v63 = vld [vmem:[%s13060_s26 + $0x25a] sm:$0xff]  ;;  %vm22759_vm2 = vnez %v22758_v51 }
 0x2c3   : > { %12227 = vmatmul.mubr.msk.bf16.gmra.mxu1 %vm22736_vm7, %v3618_v17  ;;  %22745 = vst [vmem:[#allocation71_spill] sm:$0xff] %v17610_v52  ;;  %v17612_v17 = vpop.f32.mrf.mxu1 }
 0x2c4   : > { %12230 = vmatprep.mubr.msk.bf16.mxu1 %vm22739_vm13, %v22738_v53  ;;  %22746 = vst [vmem:[#allocation96_spill] sm:$0xff] %v17612_v17  ;;  %v3599_v53 = vsel %vm22748_vm9, %v10980_v58, 0.0  ;;  %v17618_v24 = vpop.f32.mrf.mxu0  ;;  %vm22754_vm13 = vmmov %vm22736_vm7 }
 0x2c5   : > { %v17620_v1 = vpop.f32.mrf.mxu1  ;;  %v3621_v10 = vpack.c.bf16 %v3600_v60, %v3599_v53  ;;  %v3601_v60 = vsel %vm22759_vm2, %v10982_v23, 0.0  ;;  %vm22763_vm9 = vmmov %vm22736_vm7 }
 0x2c6   : > { %22751 = vst [vmem:[#allocation76_spill] sm:$0xff] %v17620_v1  ;;  %v17622_v4 = vpop.f32.mrf.mxu0  ;;  %v3622_v29 = vpack.c.bf16 %v3602_v25, %v3601_v60  ;;  %v3607_v25 = vsel %vm22510_vm10, %v10988_v9, 0.0  ;;  %vm22782_vm10 = vmmov %vm22764_vm3 }
 0x2c7   : > { %v17626_v52 = vpop.f32.mrf.mxu1 }
 0x2c8   : > { %22752 = vst [vmem:[#allocation89_spill] sm:$0xff] %v17626_v52  ;;  %v17629_v17 = vpop.f32.mrf.mxu0 }
 0x2c9   : > { %22753 = vst [vmem:[#allocation226_spill] sm:$0xff] %v17629_v17  ;;  %v17634_v58 = vpop.f32.mrf.mxu1 }
 0x2ca   : > { %22755 = vst [vmem:[#allocation172_spill] sm:$0xff] %v17634_v58  ;;  %v17640_v53 = vpop.f32.mrf.mxu0 }
 0x2cb   : > { %12231 = vmatmul.mubr.msk.bf16.gmra.mxu1 %vm22736_vm7, %v3620_v50  ;;  %v17642_v52 = vpop.f32.mrf.mxu1  ;;  %v3603_v50 = vsel %vm22491_vm4, %v10984_v28, 0.0  ;;  %v10989_v28 = vld [vmem:[%s13060_s26 + $0x27a] sm:$0xff]  ;;  %vm22771_vm4 = vmmov %vm22764_vm3  ;;  %vm22790_vm7 = vcmask 1041408  }
 0x2cc   : > { %12234 = vmatprep.mubr.msk.bf16.mxu1 %vm22754_vm13, %v3621_v10  ;;  %22760 = vst [vmem:[#allocation101_spill] sm:$0xff] %v17642_v52  ;;  %v3604_v10 = vsel %vm22495_vm15, %v10985_v63, 0.0  ;;  %v3608_v60 = vsel %vm22513_vm1, %v10989_v28, 0.0  ;;  %vm22773_vm15 = vmmov %vm22764_vm3 }
 0x2cd   : > { %v17650_v58 = vpop.f32.mrf.mxu1  ;;  %v3623_v51 = vpack.c.bf16 %v3604_v10, %v3603_v50  ;;  %vm22785_vm1 = vmmov %vm22764_vm3 }
 0x2ce   : > { %22761 = vst [vmem:[#allocation153_spill] sm:$0xff] %v17650_v58  ;;  %vm22794_vm13 = vmmov %vm22785_vm1 }
 0x2cf   : > { %vm22796_vm0 = vmmov %vm22785_vm1 }
 0x2d0   : > { %v17648_v1 = vpop.f32.mrf.mxu0  ;;  %vm22797_vm2 = vmmov %vm22790_vm7 }
 0x2d2   : > { %v17652_v44 = vpop.f32.mrf.mxu0 }
 0x2d3   : > { %v17654_v17 = vpop.f32.mrf.mxu1  ;;  %12235 = vmatmul.mubr.msk.bf16.gmra.mxu1 %vm22763_vm9, %v3622_v29  ;;  %vm22801_vm9 = vmmov %vm22796_vm0 }
 0x2d4   : > { %22762 = vst [vmem:[#allocation180_spill] sm:$0xff] %v17654_v17  ;;  %v17657_v23 = vpop.f32.mrf.mxu0  ;;  %12238 = vmatprep.mubr.msk.bf16.mxu1 %vm22764_vm3, %v3623_v51  ;;  %v3625_v51 = vpack.c.bf16 %v3608_v60, %v3607_v25  ;;  %vm22803_vm3 = vmmov %vm22796_vm0 }
 0x2d5   : > { %v17662_v20 = vpop.f32.mrf.mxu1 }
 0x2d6   : > { %22765 = vst [vmem:[#allocation54_spill] sm:$0xff] %v17662_v20  ;;  %v17664_v63 = vpop.f32.mrf.mxu0  ;;  %v22770_v20 = vld [vmem:[#allocation48_spill] sm:$0xff] }
 0x2d7   : > { %v17666_v52 = vpop.f32.mrf.mxu1 }
 0x2d8   : > { %22766 = vst [vmem:[#allocation232_spill] sm:$0xff] %v17666_v52  ;;  %v17672_v50 = vpop.f32.mrf.mxu0 }
 0x2d9   : > { %v17674_v10 = vpop.f32.mrf.mxu1 }
 0x2da   : > { %22767 = vst [vmem:[#allocation127_spill] sm:$0xff] %v17674_v10  ;;  %v17676_v29 = vpop.f32.mrf.mxu0 }
 0x2db   : > { %22768 = vst [vmem:[#allocation190_spill] sm:$0xff] %v17676_v29  ;;  %v17678_v17 = vpop.f32.mrf.mxu1  ;;  %12239 = vmatmul.mubr.msk.bf16.gmra.mxu1 %vm22771_vm4, %v22770_v20  ;;  %vm22806_vm4 = vmmov %vm22796_vm0 }
 0x2dc   : > { %22769 = vst [vmem:[#allocation189_spill] sm:$0xff] %v17678_v17  ;;  %v17682_v58 = vpop.f32.mrf.mxu0  ;;  %12242 = vmatprep.mubr.msk.bf16.mxu1 %vm22773_vm15, %v3625_v51  ;;  %v22781_v17 = vld [vmem:[#allocation188_spill] sm:$0xff]  ;;  %v22784_v51 = vld [vmem:[#allocation87_spill] sm:$0xff]  ;;  %vm22808_vm15 = vmmov %vm22796_vm0 }
 0x2dd   : > { %22772 = vst [vmem:[#allocation176_spill] sm:$0xff] %v17682_v58  ;;  %v17685_v62 = vpop.f32.mrf.mxu1  ;;  %v22799_v58 = vld [vmem:[#allocation74_spill] sm:$0xff] }
 0x2de   : > { %22774 = vst [vmem:[#allocation42_spill] sm:$0xff] %v17685_v62  ;;  %v17687_v26 = vpop.f32.mrf.mxu0 }
 0x2df   : > { %22775 = vst [vmem:[#allocation41_spill] sm:$0xff] %v17687_v26  ;;  %v17689_v9 = vpop.f32.mrf.mxu1 }
 0x2e0   : > { %22776 = vst [vmem:[#allocation24_spill] sm:$0xff] %v17689_v9  ;;  %v17691_v28 = vpop.f32.mrf.mxu0 }
 0x2e1   : > { %22777 = vst [vmem:[#allocation44_spill] sm:$0xff] %v17691_v28  ;;  %v17693_v10 = vpop.f32.mrf.mxu1 }
 0x2e2   : > { %22778 = vst [vmem:[#allocation43_spill] sm:$0xff] %v17693_v10  ;;  %v17695_v25 = vpop.f32.mrf.mxu0  ;;  %v5547_v10 = vsel %vm22790_vm7, %v17514_v14, 0  ;;  %v22795_v14 = vld [vmem:[#allocation90_spill] sm:$0xff]  ;;  %vm22814_vm7 = vmmov %vm22796_vm0 }
 0x2e3   : > { %22779 = vst [vmem:[#allocation168_spill] sm:$0xff] %v17695_v25  ;;  %v17697_v60 = vpop.f32.mrf.mxu1  ;;  %12243 = vmatmul.mubr.msk.bf16.gmra.mxu1 %vm22782_vm10, %v22781_v17  ;;  %v17720_v17 = vld [vmem:[%s20487_s4 + $0x2] sm:$0x3]  ;;  %vm22810_vm10 = vmmov %vm22796_vm0 }
 0x2e4   : > { %22780 = vst [vmem:[#allocation49_spill] sm:$0xff] %v17697_v60  ;;  %v17701_v20 = vpop.f32.mrf.mxu0  ;;  %12282 = vmatprep.mubr.msk.bf16.mxu1 %vm22785_vm1, %v22784_v51  ;;  %v22791_v60 = vld [vmem:[#allocation81_spill] sm:$0xff]  ;;  %vm22812_vm1 = vmmov %vm22796_vm0 }
 0x2e5   : > { %22783 = vst [vmem:[#allocation50_spill] sm:$0xff] %v17701_v20  ;;  %v17705_v62 = vpop.f32.mrf.mxu1  ;;  %v1917_v25 = vadd.f32 %v17282_v36, %v22791_v60  ;;  %v22793_v20 = vld [vmem:[#allocation29_spill] sm:$0xff]  ;;  %v22798_v60 = vld [vmem:[#allocation40_spill] sm:$0xff] }
 0x2e6   : > { %22786 = vst [vmem:[#allocation37_spill] sm:$0xff] %v17705_v62  ;;  %v17707_v52 = vpop.f32.mrf.mxu0 }
 0x2e7   : > { %22787 = vst [vmem:[#allocation64_spill] sm:$0xff] %v17707_v52  ;;  %v17709_v9 = vpop.f32.mrf.mxu1 }
 0x2e8   : > { %22788 = vst [vmem:[#allocation69_spill] sm:$0xff] %v17709_v9  ;;  %v17722_v51 = vpop.f32.mrf.mxu0 }
 0x2e9   : > { %v17711_v28 = vpop.f32.mrf.mxu1  ;;  %22792 = vst [vmem:[#allocation105_spill] sm:$0xff] %v17722_v51  ;;  %v1918_v51 = vadd.f32 %v17303_v43, %v22798_v60  ;;  %v22800_v43 = vld [vmem:[#allocation203_spill] sm:$0xff] }
 0x2ea   : > { %22789 = vst [vmem:[#allocation47_spill] sm:$0xff] %v17711_v28  ;;  %v1915_v28 = vadd.f32 %v17290_v59, %v16704_v15  ;;  %v17738_v26 = vpop.f32.mrf.mxu0  ;;  %v1916_v15 = vadd.f32 %v17311_v41, %v22799_v58  ;;  %v22802_v41 = vld [vmem:[#allocation162_spill] sm:$0xff] }
 0x2eb   : > { %v12080_v62 = vpop.f32.mrf.mxu1  ;;  %12283 = vmatmul.mubr.msk.bf16.vlgmr.msra.gmra.mxu1 %vm22794_vm13, %v22793_v20  ;;  %vm22816_vm13 = vmmov %vm22796_vm0 }
 0x2ec   : > { %v17728_v9 = vadd.f32 %v12080_v62, %v1917_v25  ;;  %12286 = vmatprep.mubr.msk.bf16.mxu1 %vm22796_vm0, %v22795_v14  ;;  %12315 = vmatpush3.bf16.msra.mxu1 %v5547_v10  ;;  %v1921_v10 = vadd.f32 %v17315_v55, %v16933_v54  ;;  %v17748_v14 = vpop.f32.mrf.mxu0  ;;  %v1922_v54 = vadd.f32 %v17331_v3, %v17068_v48  ;;  %v12759_v48 = vld [vmem:[%s20490_s7 + $0xf0] ss:$8 sps:$4 sm:$0xff]   ;;  %v12761_v3 = vld [vmem:[%s20490_s7 + $0xf4] ss:$8 sps:$4 sm:$0xff]  }
 0x2ed   : > { %v2276_v36 = vpop.f32.mrf.mxu1  ;;  %12665 = vmatprep.subr.msk.bf16.mxu1 %vm22797_vm2, %v17720_v17  ;;  %4966 = vmatprep.subr.bf16.mxu0 %v12761_v3  ;;  %vm22820_vm2 = vmmov %vm22796_vm0 }
 0x2ee   : > { %v17736_v52 = vadd.f32 %v2276_v36, %v1915_v28  ;;  %v1919_v28 = vadd.f32 %v17323_v57, %v17003_v18  ;;  %v1925_v57 = vadd.f32 %v17341_v34, %v17088_v7  ;;  %v22807_v7 = vld [vmem:[#allocation130_spill] sm:$0xff]  ;;  %4967 = vmatpush1.bf16.msra.mxu0 %v12759_v48 }
 0x2ef   : > { %v12081_v20 = vpop.f32.mrf.mxu1 }
 0x2f0   : > { %v17742_v59 = vadd.f32 %v12081_v20, %v1918_v51  ;;  %v17762_v51 = vpop.f32.mrf.mxu0  ;;  %v1920_v20 = vadd.f32 %v17337_v21, %v17084_v19  ;;  %v22805_v21 = vld [vmem:[#allocation229_spill] sm:$0xff]  ;;  %v1923_v19 = vadd.f32 %v17349_v33, %v17095_v13 }
 0x2f1   : > { %v2279_v62 = vpop.f32.mrf.mxu1  ;;  %22804 = vst [vmem:[#allocation106_spill] sm:$0xff] %v17762_v51  ;;  %v22842_v51 = vld [vmem:[#allocation174_spill] sm:$0xff] }
 0x2f2   : > { %v17746_v25 = vadd.f32 %v2279_v62, %v1916_v15  ;;  %v17778_v62 = vpop.f32.mrf.mxu0 }
 0x2f3   : > { %v12084_v29 = vpop.f32.mrf.mxu1  ;;  %12287 = vmatmul.mubr.msk.bf16.gmra.mxu1 %vm22801_vm9, %v22800_v43  ;;  %vm22827_vm9 = vmmov %vm22796_vm0 }
 0x2f4   : > { %v17754_v36 = vadd.f32 %v12084_v29, %v1921_v10  ;;  %12290 = vmatprep.mubr.msk.bf16.mxu1 %vm22803_vm3, %v22802_v41  ;;  %vm22829_vm3 = vmmov %vm22796_vm0 }
 0x2f5   : > { %v2292_v58 = vpop.f32.mrf.mxu1 }
 0x2f6   : > { %v17760_v55 = vadd.f32 %v2292_v58, %v1919_v28  ;;  %v1926_v28 = vadd.f32 %v17357_v35, %v17099_v8  ;;  %v17792_v58 = vpop.f32.mrf.mxu0  ;;  %v12762_v8 = vld [vmem:[%s20490_s7 + $0xe0] ss:$8 sps:$4 sm:$0xff]   ;;  %v12764_v35 = vld [vmem:[%s20490_s7 + $0xe4] ss:$8 sps:$4 sm:$0xff]  }
 0x2f7   : > { %v12085_v60 = vpop.f32.mrf.mxu1  ;;  %4968 = vmatprep.subr.bf16.mxu0 %v12764_v35 }
 0x2f8   : > { %v17766_v15 = vadd.f32 %v12085_v60, %v1922_v54  ;;  %v1924_v60 = vadd.f32 %v17363_v42, %v17105_v0  ;;  %v22809_v0 = vld [vmem:[#allocation177_spill] sm:$0xff]  ;;  %v1927_v42 = vadd.f32 %v17375_v40, %v17134_v6  ;;  %4969 = vmatpush1.bf16.msra.mxu0 %v12762_v8  ;;  %v1934_v8 = vadd.f32 %v17409_v12, %v17192_v27  ;;  %v12770_v27 = vld [vmem:[%s20490_s7 + $0xc4] ss:$8 sps:$4 sm:$0xff]  }
 0x2f9   : > { %v2295_v18 = vpop.f32.mrf.mxu1 }
 0x2fa   : > { %v17770_v29 = vadd.f32 %v2295_v18, %v1920_v20  ;;  %v1929_v20 = vadd.f32 %v17367_v46, %v17111_v5  ;;  %v22811_v5 = vld [vmem:[#allocation227_spill] sm:$0xff] }
 0x2fb   : > { %v12088_v10 = vpop.f32.mrf.mxu1  ;;  %12291 = vmatmul.mubr.msk.bf16.gmra.mxu1 %vm22806_vm4, %v22805_v21  ;;  %vm22835_vm4 = vmmov %vm22796_vm0 }
 0x2fc   : > { %v17784_v34 = vadd.f32 %v12088_v10, %v1925_v57  ;;  %12294 = vmatprep.mubr.msk.bf16.mxu1 %vm22808_vm15, %v22807_v7  ;;  %v17808_v57 = vpop.f32.mrf.mxu0  ;;  %v1930_v10 = vadd.f32 %v17383_v11, %v17145_v2  ;;  %v12765_v2 = vld [vmem:[%s20490_s7 + $0xd0] ss:$8 sps:$4 sm:$0xff]   ;;  %v12767_v11 = vld [vmem:[%s20490_s7 + $0xd4] ss:$8 sps:$4 sm:$0xff]   ;;  %vm22838_vm15 = vmmov %vm22796_vm0 }
 0x2fd   : > { %v2308_v43 = vpop.f32.mrf.mxu1  ;;  %4970 = vmatprep.subr.bf16.mxu0 %v12767_v11 }
 0x2fe   : > { %v17790_v41 = vadd.f32 %v2308_v43, %v1923_v19  ;;  %v17822_v19 = vpop.f32.mrf.mxu0  ;;  %v1928_v43 = vadd.f32 %v17389_v22, %v17162_v31  ;;  %v22813_v31 = vld [vmem:[#allocation224_spill] sm:$0xff]  ;;  %v1931_v22 = vadd.f32 %v17401_v37, %v17185_v47  ;;  %4971 = vmatpush1.bf16.msra.mxu0 %v12765_v2  ;;  %v1937_v47 = vadd.f32 %v17419_v49, %v17203_v16  ;;  %v22819_v16 = vld [vmem:[#allocation65_spill] sm:$0xff]  ;;  %v22822_v2 = vld [vmem:[#allocation119_spill] sm:$0xff] }
 0x2ff   : > { %v12089_v54 = vpop.f32.mrf.mxu1  ;;  %v12768_v37 = vld [vmem:[%s20490_s7 + $0xc0] ss:$8 sps:$4 sm:$0xff]   ;;  %4972 = vmatprep.subr.bf16.mxu0 %v12770_v27 }
 0x300   : > { %v17796_v13 = vadd.f32 %v12089_v54, %v1926_v28  ;;  %v1933_v28 = vadd.f32 %v17393_v61, %v17172_v45  ;;  %v22815_v45 = vld [vmem:[#allocation59_spill] sm:$0xff] }
 0x301   : > { %v2311_v33 = vpop.f32.mrf.mxu1 }
 0x302   : > { %v17800_v18 = vadd.f32 %v2311_v33, %v1924_v60  ;;  %v17838_v60 = vpop.f32.mrf.mxu0  ;;  %4973 = vmatpush1.bf16.msra.mxu0 %v12768_v37  ;;  %v12773_v37 = vld [vmem:[%s20490_s7 + $0xb4] ss:$8 sps:$4 sm:$0xff]  }
 0x303   : > { %v12092_v48 = vpop.f32.mrf.mxu1  ;;  %12295 = vmatmul.mubr.msk.bf16.gmra.mxu1 %vm22810_vm10, %v22809_v0  ;;  %4974 = vmatprep.subr.bf16.mxu0 %v12773_v37  ;;  %vm22844_vm10 = vcmask 1041408  }
 0x304   : > { %v17814_v46 = vadd.f32 %v12092_v48, %v1929_v20  ;;  %12298 = vmatprep.mubr.msk.bf16.mxu1 %vm22812_vm1, %v22811_v5  ;;  %v17852_v48 = vpop.f32.mrf.mxu0  ;;  %vm22848_vm1 = vmmov %vm22796_vm0 }
 0x305   : > { %v2324_v3 = vpop.f32.mrf.mxu1 }
 0x306   : > { %v17820_v21 = vadd.f32 %v2324_v3, %v1927_v42  ;;  %v17866_v12 = vpop.f32.mrf.mxu0 }
 0x307   : > { %v12093_v7 = vpop.f32.mrf.mxu1 }
 0x308   : > { %v17826_v40 = vadd.f32 %v12093_v7, %v1930_v10  ;;  %v22817_v10 = vld [vmem:[#allocation72_spill] sm:$0xff]  ;;  %v22818_v7 = vld [vmem:[#allocation209_spill] sm:$0xff] }
 0x309   : > { %v2327_v6 = vpop.f32.mrf.mxu1 }
 0x30a   : > { %v17830_v54 = vadd.f32 %v2327_v6, %v1928_v43  ;;  %v1935_v43 = vadd.f32 %v22818_v7, %v17209_v38  ;;  %v22828_v7 = vld [vmem:[#allocation85_spill] sm:$0xff] }
 0x30b   : > { %v12096_v33 = vpop.f32.mrf.mxu1  ;;  %12299 = vmatmul.mubr.msk.bf16.gmra.mxu1 %vm22814_vm7, %v22813_v31  ;;  %v17880_v31 = vpop.f32.mrf.mxu0  ;;  %vm22850_vm7 = vmmov %vm22796_vm0 }
 0x30c   : > { %v17844_v61 = vadd.f32 %v12096_v33, %v1933_v28  ;;  %12302 = vmatprep.mubr.msk.bf16.mxu1 %vm22816_vm13, %v22815_v45  ;;  %v22821_v28 = vld [vmem:[#allocation68_spill] sm:$0xff]  ;;  %22823 = vst [vmem:[#allocation128_spill] sm:$0xff] %v17880_v31  ;;  %v22824_v45 = vld [vmem:[#allocation31_spill] sm:$0xff]  ;;  %vm22852_vm13 = vmmov %vm22844_vm10 }
 0x30d   : > { %v2340_v20 = vpop.f32.mrf.mxu1  ;;  %v1938_v11 = vadd.f32 %v22822_v2, %v22821_v28  ;;  %v17894_v27 = vpop.f32.mrf.mxu0  ;;  %v22831_v2 = vld [vmem:[#allocation82_spill] sm:$0xff] }
 0x30e   : > { %v17850_v35 = vadd.f32 %v2340_v20, %v1931_v22  ;;  %v1936_v20 = vadd.f32 %v17441_v39, %v22824_v45  ;;  %22825 = vst [vmem:[#allocation126_spill] sm:$0xff] %v17894_v27 }
 0x30f   : > { %v12097_v0 = vpop.f32.mrf.mxu1 }
 0x310   : > { %v17854_v42 = vadd.f32 %v12097_v0, %v1934_v8 }
 0x311   : > { %v17856_v5 = vpop.f32.mrf.mxu1 }
 0x313   : > { %v12100_v3 = vpop.f32.mrf.mxu1  ;;  %12303 = vmatmul.mubr.msk.bf16.gmra.mxu1 %vm22796_vm0, %v22817_v10  ;;  %v22826_v10 = vld [vmem:[#allocation99_spill] sm:$0xff] }
 0x314   : > { %v17872_v6 = vadd.f32 %v12100_v3, %v1937_v47  ;;  %12306 = vmatprep.mubr.msk.bf16.mxu1 %vm22820_vm2, %v22819_v16  ;;  %v12771_v47 = vld [vmem:[%s20490_s7 + $0xb0] ss:$8 sps:$4 sm:$0xff]   ;;  %vm22861_vm2 = vmmov %vm22796_vm0 }
 0x315   : > { %v2356_v49 = vpop.f32.mrf.mxu1  ;;  %4975 = vmatpush1.bf16.msra.mxu0 %v12771_v47 }
 0x316   : > { %v17878_v33 = vadd.f32 %v2356_v49, %v1935_v43  ;;  %v17906_v49 = vpop.f32.mrf.mxu0 }
 0x317   : > { %v12101_v22 = vpop.f32.mrf.mxu1  ;;  %22830 = vst [vmem:[#allocation151_spill] sm:$0xff] %v17906_v49  ;;  %v22843_v49 = vld [vmem:[#allocation170_spill] sm:$0xff] }
 0x318   : > { %v17884_v38 = vadd.f32 %v12101_v22, %v1938_v11  ;;  %v1940_v11 = vadd.f32 %v17468_v30, %v22831_v2  ;;  %v22832_v22 = vld [vmem:[#allocation94_spill] sm:$0xff]  ;;  %v17921_v47 = vpop.f32.mrf.mxu0  ;;  %v22836_v30 = vld [vmem:[#allocation169_spill] sm:$0xff] }
 0x319   : > { %v2359_v8 = vpop.f32.mrf.mxu1  ;;  %22833 = vst [vmem:[#allocation145_spill] sm:$0xff] %v17921_v47 }
 0x31a   : > { %v17886_v0 = vadd.f32 %v2359_v8, %v1936_v20  ;;  %v12774_v8 = vld [vmem:[%s20490_s7 + $0xa0] ss:$8 sps:$4 sm:$0xff]  }
 0x31b   : > { %v12104_v3 = vpop.f32.mrf.mxu1  ;;  %12307 = vmatmul.mubr.msk.bf16.gmra.mxu1 %vm22827_vm9, %v22826_v10  ;;  %vm22869_vm9 = vmmov %vm22796_vm0 }
 0x31c   : > { %v17899_v39 = vadd.f32 %v12104_v3, %v17447_v32  ;;  %12310 = vmatprep.mubr.msk.bf16.mxu1 %vm22829_vm3, %v22828_v7  ;;  %v22834_v3 = vld [vmem:[#allocation191_spill] sm:$0xff]  ;;  %v22837_v7 = vld [vmem:[#allocation102_spill] sm:$0xff]  ;;  %vm22871_vm3 = vmmov %vm22796_vm0 }
 0x31d   : > { %v2372_v43 = vpop.f32.mrf.mxu1 }
 0x31e   : > { %v17904_v16 = vadd.f32 %v2372_v43, %v17455_v56  ;;  %v12776_v56 = vld [vmem:[%s20490_s7 + $0xa4] ss:$8 sps:$4 sm:$0xff]  }
 0x31f   : > { %v12105_v28 = vpop.f32.mrf.mxu1  ;;  %4976 = vmatprep.subr.bf16.mxu0 %v12776_v56 }
 0x320   : > { %v17911_v45 = vadd.f32 %v12105_v28, %v22832_v22  ;;  %4977 = vmatpush1.bf16.msra.mxu0 %v12774_v8  ;;  %v22839_v28 = vld [vmem:[#allocation175_spill] sm:$0xff]  ;;  %v22845_v8 = vld [vmem:[#allocation28_spill] sm:$0xff] }
 0x321   : > { %v2375_v32 = vpop.f32.mrf.mxu1  ;;  %v2829_v56 = vadd.f32 %v22845_v8, %v17728_v9 }
 0x322   : > { %v17913_v20 = vadd.f32 %v2375_v32, %v1940_v11  ;;  %v17933_v11 = vpop.f32.mrf.mxu0  ;;  %v22841_v32 = vld [vmem:[#allocation112_spill] sm:$0xff] }
 0x323   : > { %v12108_v37 = vpop.f32.mrf.mxu1  ;;  %12311 = vmatmul.mubr.msk.bf16.gmra.mxu1 %vm22835_vm4, %v22834_v3  ;;  %22840 = vst [vmem:[#allocation48_spill] sm:$0xff] %v17933_v11  ;;  %v1944_v47 = vadd.f32 %v22842_v51, %v22841_v32  ;;  %v12777_v51 = vld [vmem:[%s20490_s7 + $0x90] ss:$8 sps:$4 sm:$0xff]   ;;  %v22851_v32 = vld [vmem:[#allocation124_spill] sm:$0xff]  ;;  %vm22877_vm4 = vmmov %vm22844_vm10 }
 0x324   : > { %v17926_v10 = vadd.f32 %v12108_v37, %v22836_v30  ;;  %12316 = vmatprep.mubr.msk.bf16.mxu1 %vm22838_vm15, %v22837_v7  ;;  %v5843_v30 = vsel %vm22844_vm10, %v17720_v17, 0  ;;  %vm22881_vm15 = vmmov %vm22796_vm0 }
 0x325   : > { %v2388_v43 = vpop.f32.mrf.mxu1  ;;  %vm22883_vm10 = vmmov %vm22796_vm0 }
 0x326   : > { %v17931_v2 = vadd.f32 %v2388_v43, %v22839_v28  ;;  %v17949_v43 = vld [vmem:[%s20487_s4 + $0x6] sm:$0x3]  ;;  %v17957_v28 = vpop.f32.mrf.mxu0 }
 0x327   : > { %v12109_v22 = vpop.f32.mrf.mxu1  ;;  %22846 = vst [vmem:[#allocation188_spill] sm:$0xff] %v17957_v28  ;;  %v22853_v28 = vld [vmem:[#allocation179_spill] sm:$0xff] }
 0x328   : > { %v17938_v3 = vadd.f32 %v12109_v22, %v22843_v49  ;;  %v12779_v49 = vld [vmem:[%s20490_s7 + $0x94] ss:$8 sps:$4 sm:$0xff]   ;;  %v2830_v27 = vadd.f32 %v22853_v28, %v17742_v59  ;;  %v22860_v28 = vld [vmem:[#allocation75_spill] sm:$0xff] }
 0x329   : > { %v2391_v37 = vpop.f32.mrf.mxu1  ;;  %v22849_v22 = vld [vmem:[#allocation242_spill] sm:$0xff]  ;;  %4978 = vmatprep.subr.bf16.mxu0 %v12779_v49 }
 0x32a   : > { %v17942_v7 = vadd.f32 %v2391_v37, %v1944_v47  ;;  %v22847_v47 = vld [vmem:[#allocation30_spill] sm:$0xff]  ;;  %v2827_v37 = vadd.f32 %v22851_v32, %v17736_v52  ;;  %4979 = vmatpush1.bf16.msra.mxu0 %v12777_v51  ;;  %v22859_v51 = vld [vmem:[#allocation136_spill] sm:$0xff] }
 0x32b   : > { %v12148_v17 = vpop.f32.mrf.mxu1  ;;  %12317 = vmatmul.mubr.msk.bf16.vlgmr.msra.gmra.mxu1 %vm22848_vm1, %v22847_v47  ;;  %v17971_v47 = vpop.f32.mrf.mxu0  ;;  %v22857_v49 = vld [vmem:[#allocation142_spill] sm:$0xff]  ;;  %vm22890_vm1 = vmmov %vm22796_vm0 }
 0x32c   : > { %v17961_v9 = vadd.f32 %v12148_v17, %v2829_v56  ;;  %12320 = vmatprep.mubr.msk.bf16.mxu1 %vm22850_vm7, %v22849_v22  ;;  %12349 = vmatpush3.bf16.msra.mxu1 %v5843_v30  ;;  %22854 = vst [vmem:[#allocation87_spill] sm:$0xff] %v17971_v47  ;;  %v22855_v22 = vld [vmem:[#allocation164_spill] sm:$0xff]  ;;  %vm22892_vm7 = vmmov %vm22796_vm0 }
 0x32d   : > { %v2930_v8 = vpop.f32.mrf.mxu1  ;;  %12667 = vmatprep.subr.msk.bf16.mxu1 %vm22852_vm13, %v17949_v43  ;;  %v2828_v31 = vadd.f32 %v22855_v22, %v17746_v25  ;;  %vm22895_vm13 = vmmov %vm22796_vm0 }
 0x32e   : > { %v3089_v11 = vadd.f32 %v2930_v8, %v2827_v37  ;;  %v2833_v37 = vadd.f32 %v22857_v49, %v17754_v36  ;;  %v17984_v8 = vpop.f32.mrf.mxu0 }
 0x32f   : > { %v12149_v56 = vpop.f32.mrf.mxu1  ;;  %22858 = vst [vmem:[#allocation29_spill] sm:$0xff] %v17984_v8 }
 0x330   : > { %v17973_v17 = vadd.f32 %v12149_v56, %v2830_v27  ;;  %v17978_v52 = vadd.f32 %v17738_v26, %v3089_v11  ;;  %v22862_v26 = vld [vmem:[#allocation185_spill] sm:$0xff]  ;;  %v22863_v56 = vld [vmem:[#allocation26_spill] sm:$0xff]  ;;  %v17998_v22 = vpop.f32.mrf.mxu0 }
 0x331   : > { %v2933_v30 = vpop.f32.mrf.mxu1  ;;  %v2831_v25 = vadd.f32 %v22862_v26, %v17760_v55  ;;  %v2834_v36 = vadd.f32 %v22863_v56, %v17766_v15  ;;  %22864 = vst [vmem:[#allocation90_spill] sm:$0xff] %v17998_v22  ;;  %v12782_v55 = vld [vmem:[%s20490_s7 + $0x84] ss:$8 sps:$4 sm:$0xff]   ;;  %v22866_v15 = vld [vmem:[#allocation25_spill] sm:$0xff] }
 0x332   : > { %v17980_v32 = vadd.f32 %v2933_v30, %v2828_v31  ;;  %4980 = vmatprep.subr.bf16.mxu0 %v12782_v55 }
 0x333   : > { %v12152_v59 = vpop.f32.mrf.mxu1  ;;  %12321 = vmatmul.mubr.msk.bf16.gmra.mxu1 %vm22796_vm0, %v22859_v51  ;;  %v12780_v51 = vld [vmem:[%s20490_s7 + $0x80] ss:$8 sps:$4 sm:$0xff]  }
 0x334   : > { %22856 = vst [vmem:[#allocation81_spill] sm:$0xff] %v17980_v32  ;;  %v17988_v27 = vadd.f32 %v12152_v59, %v2833_v37  ;;  %12324 = vmatprep.mubr.msk.bf16.mxu1 %vm22861_vm2, %v22860_v28  ;;  %v22865_v37 = vld [vmem:[#allocation84_spill] sm:$0xff]  ;;  %4981 = vmatpush1.bf16.msra.mxu0 %v12780_v51  ;;  %v22875_v51 = vld [vmem:[#allocation247_spill] sm:$0xff] }
 0x335   : > { %v2946_v11 = vpop.f32.mrf.mxu1  ;;  %v2832_v59 = vadd.f32 %v22865_v37, %v17770_v29  ;;  %v22872_v37 = vld [vmem:[#allocation241_spill] sm:$0xff] }
 0x336   : > { %v17994_v31 = vadd.f32 %v2946_v11, %v2831_v25  ;;  %v2837_v25 = vadd.f32 %v22866_v15, %v17784_v34  ;;  %v18014_v11 = vpop.f32.mrf.mxu0  ;;  %v22873_v34 = vld [vmem:[#allocation95_spill] sm:$0xff] }
 0x337   : > { %v12153_v30 = vpop.f32.mrf.mxu1  ;;  %22867 = vst [vmem:[#allocation40_spill] sm:$0xff] %v18014_v11  ;;  %v2838_v55 = vadd.f32 %v22873_v34, %v17796_v13  ;;  %v22878_v13 = vld [vmem:[#allocation120_spill] sm:$0xff]  ;;  %v22884_v34 = vld [vmem:[#allocation251_spill] sm:$0xff] }
 0x338   : > { %v18000_v49 = vadd.f32 %v12153_v30, %v2834_v36  ;;  %v22868_v36 = vld [vmem:[#allocation244_spill] sm:$0xff]  ;;  %v18028_v15 = vpop.f32.mrf.mxu0 }
 0x339   : > { %v2949_v28 = vpop.f32.mrf.mxu1  ;;  %v22870_v30 = vld [vmem:[#allocation248_spill] sm:$0xff]  ;;  %22874 = vst [vmem:[#allocation74_spill] sm:$0xff] %v18028_v15 }
 0x33a   : > { %v18010_v26 = vadd.f32 %v2949_v28, %v2832_v59  ;;  %v2835_v59 = vadd.f32 %v22872_v37, %v17790_v41  ;;  %v18045_v37 = vpop.f32.mrf.mxu0  ;;  %v22887_v15 = vld [vmem:[#allocation100_spill] sm:$0xff] }
 0x33b   : > { %v12156_v56 = vpop.f32.mrf.mxu1  ;;  %12325 = vmatmul.mubr.msk.bf16.gmra.mxu1 %vm22869_vm9, %v22868_v36  ;;  %22879 = vst [vmem:[#allocation162_spill] sm:$0xff] %v18045_v37 }
 0x33c   : > { %v18018_v29 = vadd.f32 %v12156_v56, %v2837_v25  ;;  %12328 = vmatprep.mubr.msk.bf16.mxu1 %vm22871_vm3, %v22870_v30  ;;  %v2836_v25 = vadd.f32 %v22875_v51, %v17800_v18  ;;  %v18037_v56 = vld [vmem:[%s20487_s4 + $0x4] sm:$0x3]  ;;  %v2841_v30 = vadd.f32 %v22878_v13, %v17814_v46  ;;  %v18059_v13 = vpop.f32.mrf.mxu0  ;;  %vm22910_vm3 = vmmov %vm22796_vm0 }
 0x33d   : > { %v2962_v28 = vpop.f32.mrf.mxu1  ;;  %22876 = vst [vmem:[#allocation203_spill] sm:$0xff] %v18037_v56  ;;  %12666 = vmatprep.subr.msk.bf16.mxu0 %vm22877_vm4, %v18037_v56  ;;  %vm22912_vm4 = vmmov %vm22796_vm0 }
 0x33e   : > { %v18024_v32 = vadd.f32 %v2962_v28, %v2835_v59  ;;  %v22880_v59 = vld [vmem:[#allocation62_spill] sm:$0xff]  ;;  %v22882_v28 = vld [vmem:[#allocation131_spill] sm:$0xff] }
 0x33f   : > { %v12157_v11 = vpop.f32.mrf.mxu1 }
 0x340   : > { %v18030_v22 = vadd.f32 %v12157_v11, %v2838_v55  ;;  %v2839_v55 = vadd.f32 %v22884_v34, %v17820_v21  ;;  %v2845_v21 = vadd.f32 %v17618_v24, %v17844_v61  ;;  %v18071_v34 = vpop.f32.mrf.mxu0  ;;  %v22893_v24 = vld [vmem:[#allocation226_spill] sm:$0xff] }
 0x341   : > { %v2965_v41 = vpop.f32.mrf.mxu1  ;;  %v2846_v61 = vadd.f32 %v22893_v24, %v17854_v42 }
 0x342   : > { %v18041_v36 = vadd.f32 %v2965_v41, %v2836_v25  ;;  %v22885_v41 = vld [vmem:[#allocation80_spill] sm:$0xff] }
 0x343   : > { %v12160_v11 = vpop.f32.mrf.mxu1  ;;  %12329 = vmatmul.mubr.msk.bf16.gmra.mxu1 %vm22881_vm15, %v22880_v59  ;;  %v2842_v46 = vadd.f32 %v22885_v41, %v17826_v40  ;;  %vm22916_vm15 = vcmask 1041408  }
 0x344   : > { %v18049_v18 = vadd.f32 %v12160_v11, %v2841_v30  ;;  %12332 = vmatprep.mubr.msk.bf16.mxu1 %vm22883_vm10, %v22882_v28  ;;  %v22886_v30 = vld [vmem:[#allocation71_spill] sm:$0xff]  ;;  %v22888_v28 = vld [vmem:[#allocation216_spill] sm:$0xff]  ;;  %vm22918_vm10 = vmmov %vm22796_vm0 }
 0x345   : > { %v2978_v51 = vpop.f32.mrf.mxu1  ;;  %v2840_v11 = vadd.f32 %v22886_v30, %v17830_v54  ;;  %v1932_v8 = vadd.f32 %v22888_v28, %v22887_v15  ;;  %v22891_v54 = vld [vmem:[#allocation152_spill] sm:$0xff]  ;;  %v2843_v15 = vadd.f32 %v17622_v4, %v17850_v35  ;;  %v18086_v30 = vpop.f32.mrf.mxu0  ;;  %v2849_v4 = vadd.f32 %v17648_v1, %v17872_v6  ;;  %v12838_v6 = vld [vmem:[%s13060_s26 + $0x13c] sm:$0xff] }
 0x346   : > { %v18055_v25 = vadd.f32 %v2978_v51, %v2839_v55  ;;  %v22889_v55 = vld [vmem:[#allocation246_spill] sm:$0xff]  ;;  %v11166_v35 = vld [vmem:[%s13060_s26 + $0x144] sm:$0xff]  ;;  %v5475_v24 = vsel %vm22424_vm8, %v12838_v6, 0.0  ;;  %vm22903_vm8 = vmmov %vm22796_vm0 }
 0x347   : > { %v12161_v56 = vpop.f32.mrf.mxu1  ;;  %v5476_v1 = vsel %vm22428_vm14, %v11166_v35, 0.0  ;;  %vm22904_vm14 = vmmov %vm22796_vm0 }
 0x348   : > { %v18061_v37 = vadd.f32 %v12161_v56, %v2842_v46  ;;  %v2452_v56 = vadd.f32 %v17856_v5, %v1932_v8 }
 0x349   : > { %v2981_v59 = vpop.f32.mrf.mxu1 }
 0x34a   : > { %v18067_v47 = vadd.f32 %v2981_v59, %v2840_v11  ;;  %v2844_v5 = vadd.f32 %v17640_v53, %v2452_v56  ;;  %v2847_v53 = vadd.f32 %v17652_v44, %v17878_v33  ;;  %v12840_v33 = vld [vmem:[%s13060_s26 + $0x154] sm:$0xff] }
 0x34b   : > { %v12164_v40 = vpop.f32.mrf.mxu1  ;;  %12333 = vmatmul.mubr.msk.bf16.gmra.mxu1 %vm22890_vm1, %v22889_v55  ;;  %vm22919_vm1 = vmmov %vm22796_vm0 }
 0x34c   : > { %v18076_v51 = vadd.f32 %v12164_v40, %v2845_v21  ;;  %12336 = vmatprep.mubr.msk.bf16.mxu1 %vm22892_vm7, %v22891_v54  ;;  %v18096_v21 = vpop.f32.mrf.mxu0  ;;  %v22894_v40 = vld [vmem:[#allocation237_spill] sm:$0xff]  ;;  %v22896_v54 = vld [vmem:[#allocation212_spill] sm:$0xff]  ;;  %vm22920_vm7 = vmmov %vm22916_vm15 }
 0x34d   : > { %v2994_v41 = vpop.f32.mrf.mxu1 }
 0x34e   : > { %v18082_v46 = vadd.f32 %v2994_v41, %v2843_v15  ;;  %v2853_v15 = vadd.f32 %v17672_v50, %v17899_v39  ;;  %v22906_v50 = vld [vmem:[#allocation176_spill] sm:$0xff] }
 0x34f   : > { %v12165_v11 = vpop.f32.mrf.mxu1  ;;  %v2854_v39 = vadd.f32 %v22906_v50, %v17911_v45 }
 0x350   : > { %v18088_v59 = vadd.f32 %v12165_v11, %v2846_v61  ;;  %v2850_v11 = vadd.f32 %v17657_v23, %v17884_v38  ;;  %v5494_v23 = vpack.c.bf16 %v5476_v1, %v5475_v24  ;;  %v11187_v1 = vld [vmem:[%s13060_s26 + $0x78] sm:$0xff]  ;;  %v11188_v24 = vld [vmem:[%s13060_s26 + $0x80] sm:$0xff] }
 0x351   : > { %v2997_v8 = vpop.f32.mrf.mxu1 }
 0x352   : > { %v18091_v28 = vadd.f32 %v2997_v8, %v2844_v5  ;;  %v18115_v5 = vpop.f32.mrf.mxu0 }
 0x353   : > { %v12168_v42 = vpop.f32.mrf.mxu1  ;;  %12337 = vmatmul.mubr.msk.bf16.gmra.mxu1 %vm22895_vm13, %v22894_v40  ;;  %v22901_v40 = vld [vmem:[#allocation250_spill] sm:$0xff]  ;;  %vm22921_vm13 = vmmov %vm22796_vm0 }
 0x354   : > { %v18100_v55 = vadd.f32 %v12168_v42, %v2849_v4  ;;  %12340 = vmatprep.mubr.msk.bf16.mxu1 %vm22796_vm0, %v22896_v54  ;;  %v12839_v4 = vld [vmem:[%s13060_s26 + $0x14c] sm:$0xff]  ;;  %vm22902_vm9 = vnez %v22901_v40  ;;  %v18131_v41 = vpop.f32.mrf.mxu0 }
 0x355   : > { %v3010_v56 = vpop.f32.mrf.mxu1  ;;  %v22899_v42 = vld [vmem:[#allocation213_spill] sm:$0xff]  ;;  %v5478_v35 = vsel %vm22902_vm9, %v12840_v33, 0.0  ;;  %vm22923_vm9 = vmmov %vm22796_vm0 }
 0x356   : > { %v18111_v61 = vadd.f32 %v3010_v56, %v2847_v53  ;;  %vm22900_vm2 = vnez %v22899_v42  ;;  %v2848_v53 = vadd.f32 %v17664_v63, %v17886_v0 }
 0x357   : > { %v12169_v8 = vpop.f32.mrf.mxu1  ;;  %v5477_v44 = vsel %vm22900_vm2, %v12839_v4, 0.0  ;;  %vm22922_vm2 = vmmov %vm22796_vm0 }
 0x358   : > { %v18123_v54 = vadd.f32 %v12169_v8, %v2850_v11  ;;  %v5495_v6 = vpack.c.bf16 %v5478_v35, %v5477_v44  ;;  %v22905_v11 = vld [vmem:[#allocation190_spill] sm:$0xff]  ;;  %v18145_v44 = vpop.f32.mrf.mxu0  ;;  %v22907_v35 = vld [vmem:[#allocation41_spill] sm:$0xff] }
 0x359   : > { %v3013_v56 = vpop.f32.mrf.mxu1  ;;  %v2851_v63 = vadd.f32 %v22905_v11, %v17904_v16  ;;  %v2852_v16 = vadd.f32 %v22907_v35, %v17913_v20  ;;  %v22909_v11 = vld [vmem:[#allocation192_spill] sm:$0xff] }
 0x35a   : > { %v18127_v38 = vadd.f32 %v3013_v56, %v2848_v53  ;;  %v5776_v53 = vpack.c.bf16 %v11188_v24, %v11187_v1  ;;  %v11189_v20 = vld [vmem:[%s13060_s26 + $0x88] sm:$0xff]  ;;  %v11190_v1 = vld [vmem:[%s13060_s26 + $0x90] sm:$0xff] }
 0x35b   : > { %v12172_v4 = vpop.f32.mrf.mxu1  ;;  %12341 = vmatmul.mubr.msk.bf16.gmra.mxu1 %vm22903_vm8, %v5494_v23  ;;  %vm22926_vm8 = vmmov %vm22796_vm0 }
 0x35c   : > { %v18134_v42 = vadd.f32 %v12172_v4, %v2853_v15  ;;  %12344 = vmatprep.mubr.msk.bf16.mxu1 %vm22904_vm14, %v5495_v6  ;;  %v22908_v15 = vld [vmem:[#allocation44_spill] sm:$0xff]  ;;  %v18155_v4 = vpop.f32.mrf.mxu0  ;;  %vm22929_vm14 = vmmov %vm22796_vm0 }
 0x35d   : > { %v3026_v0 = vpop.f32.mrf.mxu1  ;;  %v2857_v6 = vadd.f32 %v22908_v15, %v17926_v10  ;;  %v22913_v10 = vld [vmem:[#allocation50_spill] sm:$0xff] }
 0x35e   : > { %v18141_v8 = vadd.f32 %v3026_v0, %v2851_v63  ;;  %v22911_v0 = vld [vmem:[#allocation168_spill] sm:$0xff] }
 0x35f   : > { %v12173_v33 = vpop.f32.mrf.mxu1  ;;  %v2855_v50 = vadd.f32 %v22911_v0, %v17931_v2  ;;  %v22915_v2 = vld [vmem:[#allocation64_spill] sm:$0xff] }
 0x360   : > { %v18147_v40 = vadd.f32 %v12173_v33, %v2854_v39  ;;  %v11191_v39 = vld [vmem:[%s13060_s26 + $0x98] sm:$0xff]  ;;  %v11192_v33 = vld [vmem:[%s13060_s26 + $0xa0] sm:$0xff] }
 0x361   : > { %v3029_v56 = vpop.f32.mrf.mxu1 }
 0x362   : > { %v18151_v23 = vadd.f32 %v3029_v56, %v2852_v16  ;;  %v2858_v16 = vadd.f32 %v22913_v10, %v17938_v3  ;;  %v18172_v56 = vpop.f32.mrf.mxu0  ;;  %v6755_v3 = vsel %vm22916_vm15, %v17949_v43, 0  ;;  %v22917_v10 = vld [vmem:[#allocation105_spill] sm:$0xff]  ;;  %v11196_v43 = vld [vmem:[%s13060_s26 + $0xc0] sm:$0xff]  ;;  %vm22942_vm15 = vmmov %vm22796_vm0 }
 0x363   : > { %v12176_v45 = vpop.f32.mrf.mxu1  ;;  %12345 = vmatmul.mubr.msk.bf16.gmra.mxu1 %vm22910_vm3, %v22909_v11  ;;  %22914 = vst [vmem:[#allocation229_spill] sm:$0xff] %v18172_v56  ;;  %v5778_v11 = vpack.c.bf16 %v11192_v33, %v11191_v39  ;;  %v3483_v56 = vadd.f32 %v22917_v10, %v17961_v9  ;;  %v11194_v39 = vld [vmem:[%s13060_s26 + $0xb0] sm:$0xff]  ;;  %v3484_v9 = vadd.f32 %v17748_v14, %v17973_v17  ;;  %vm22934_vm3 = vmmov %vm22796_vm0 }
 0x364   : > { %v18159_v63 = vadd.f32 %v12176_v45, %v2857_v6  ;;  %12350 = vmatprep.mubr.msk.bf16.mxu1 %vm22912_vm4, %v5776_v53  ;;  %v5777_v6 = vpack.c.bf16 %v11190_v1, %v11189_v20  ;;  %v2856_v53 = vadd.f32 %v22915_v2, %v17942_v7  ;;  %v11193_v7 = vld [vmem:[%s13060_s26 + $0xa8] sm:$0xff]  ;;  %v3487_v14 = vadd.f32 %v17778_v62, %v17988_v27  ;;  %vm22937_vm4 = vmmov %vm22796_vm0 }
 0x365   : > { %v3042_v24 = vpop.f32.mrf.mxu1  ;;  %v3488_v62 = vadd.f32 %v17808_v57, %v18000_v49 }
 0x366   : > { %v18168_v35 = vadd.f32 %v3042_v24, %v2855_v50  ;;  %v18178_v50 = vpop.f32.mrf.mxu0 }
 0x367   : > { %v12177_v15 = vpop.f32.mrf.mxu1 }
 0x368   : > { %v18174_v45 = vadd.f32 %v12177_v15, %v2858_v16  ;;  %v18192_v16 = vpop.f32.mrf.mxu0  ;;  %v11195_v15 = vld [vmem:[%s13060_s26 + $0xb8] sm:$0xff] }
 0x369   : > { %v3045_v0 = vpop.f32.mrf.mxu1 }
 0x36a   : > { %v18182_v24 = vadd.f32 %v3045_v0, %v2856_v53  ;;  %v5779_v53 = vpack.c.bf16 %v11194_v39, %v11193_v7  ;;  %v11197_v7 = vld [vmem:[%s13060_s26 + $0xc8] sm:$0xff]  ;;  %v11198_v39 = vld [vmem:[%s13060_s26 + $0xd0] sm:$0xff] }
 0x36b   : > { %v12216_v20 = vpop.f32.mrf.mxu1  ;;  %12351 = vmatmul.mubr.msk.bf16.vlgmr.msra.gmra.mxu1 %vm22918_vm10, %v5777_v6  ;;  %vm22945_vm10 = vmmov %vm22796_vm0 }
 0x36c   : > { %v18187_v1 = vadd.f32 %v12216_v20, %v3483_v56  ;;  %12354 = vmatprep.mubr.msk.bf16.mxu1 %vm22919_vm1, %v5778_v11  ;;  %12417 = vmatpush3.bf16.msra.mxu1 %v6755_v3  ;;  %v18204_v56 = vld [vmem:[%s20487_s4 + $0xa] sm:$0x3]  ;;  %v18212_v3 = vpop.f32.mrf.mxu0  ;;  %v3485_v20 = vadd.f32 %v17792_v58, %v17994_v31  ;;  %v3486_v58 = vadd.f32 %v17822_v19, %v18010_v26  ;;  %v11202_v26 = vld [vmem:[%s13060_s26 + $0xf0] sm:$0xff]  ;;  %vm22947_vm1 = vmmov %vm22796_vm0 }
 0x36d   : > { %v3714_v33 = vpop.f32.mrf.mxu1  ;;  %12669 = vmatprep.subr.msk.bf16.mxu1 %vm22920_vm7, %v18204_v56  ;;  %v11201_v19 = vld [vmem:[%s13060_s26 + $0xe8] sm:$0xff]  ;;  %vm22948_vm7 = vmmov %vm22796_vm0 }
 0x36e   : > { %v18197_v2 = vadd.f32 %v3714_v33, %v17978_v52  ;;  %v5780_v52 = vpack.c.bf16 %v11196_v43, %v11195_v15  ;;  %v18224_v33 = vpop.f32.mrf.mxu0  ;;  %v11199_v43 = vld [vmem:[%s13060_s26 + $0xd8] sm:$0xff] }
 0x36f   : > { %v12217_v6 = vpop.f32.mrf.mxu1 }
 0x370   : > { %v18208_v11 = vadd.f32 %v12217_v6, %v3484_v9  ;;  %v11200_v9 = vld [vmem:[%s13060_s26 + $0xe0] sm:$0xff] }
 0x371   : > { %v18210_v0 = vpop.f32.mrf.mxu1  ;;  %v5782_v31 = vpack.c.bf16 %v11200_v9, %v11199_v43  ;;  %v11203_v9 = vld [vmem:[%s13060_s26 + $0xf8] sm:$0xff] }
 0x373   : > { %v12220_v17 = vpop.f32.mrf.mxu1  ;;  %12355 = vmatmul.mubr.msk.bf16.gmra.mxu1 %vm22921_vm13, %v5779_v53  ;;  %v5781_v53 = vpack.c.bf16 %v11198_v39, %v11197_v7  ;;  %v3489_v7 = vadd.f32 %v17852_v48, %v18024_v32  ;;  %v22924_v48 = vld [vmem:[#allocation128_spill] sm:$0xff]  ;;  %vm22949_vm13 = vmmov %vm22796_vm0 }
 0x374   : > { %v18217_v10 = vadd.f32 %v12220_v17, %v3487_v14  ;;  %12358 = vmatprep.mubr.msk.bf16.mxu1 %vm22796_vm0, %v5780_v52  ;;  %v18236_v52 = vpop.f32.mrf.mxu0  ;;  %v3490_v32 = vadd.f32 %v22924_v48, %v18041_v36  ;;  %v11205_v36 = vld [vmem:[%s13060_s26 + $0x108] sm:$0xff]  ;;  %v11208_v48 = vld [vmem:[%s13060_s26 + $0x120] sm:$0xff] }
 0x375   : > { %v3730_v15 = vpop.f32.mrf.mxu1 }
 0x376   : > { %v18228_v6 = vadd.f32 %v3730_v15, %v3485_v20  ;;  %v3491_v15 = vadd.f32 %v17838_v60, %v18018_v29  ;;  %v18250_v39 = vpop.f32.mrf.mxu0  ;;  %v3492_v60 = vadd.f32 %v17866_v12, %v18030_v22 }
 0x377   : > { %v12221_v27 = vpop.f32.mrf.mxu1 }
 0x378   : > { %v18232_v14 = vadd.f32 %v12221_v27, %v3488_v62  ;;  %v11204_v62 = vld [vmem:[%s13060_s26 + $0x100] sm:$0xff] }
 0x379   : > { %v3733_v17 = vpop.f32.mrf.mxu1 }
 0x37a   : > { %v18238_v20 = vadd.f32 %v3733_v17, %v3486_v58  ;;  %v18262_v17 = vpop.f32.mrf.mxu0 }
 0x37b   : > { %v12224_v57 = vpop.f32.mrf.mxu1  ;;  %12359 = vmatmul.mubr.msk.bf16.gmra.mxu1 %vm22922_vm2, %v5781_v53  ;;  %v5783_v53 = vpack.c.bf16 %v11202_v26, %v11201_v19  ;;  %v22928_v19 = vld [vmem:[#allocation151_spill] sm:$0xff]  ;;  %vm22953_vm2 = vcmask 1041408  }
 0x37c   : > { %v18243_v49 = vadd.f32 %v12224_v57, %v3491_v15  ;;  %12362 = vmatprep.mubr.msk.bf16.mxu1 %vm22923_vm9, %v5782_v31  ;;  %v5784_v31 = vpack.c.bf16 %v11204_v62, %v11203_v9  ;;  %v3493_v26 = vadd.f32 %v22928_v19, %v18055_v25  ;;  %v11206_v9 = vld [vmem:[%s13060_s26 + $0x110] sm:$0xff]  ;;  %v18276_v62 = vpop.f32.mrf.mxu0  ;;  %v22932_v25 = vld [vmem:[#allocation48_spill] sm:$0xff]  ;;  %vm22957_vm9 = vmmov %vm22796_vm0 }
 0x37d   : > { %v3746_v43 = vpop.f32.mrf.mxu1 }
 0x37e   : > { %v18254_v27 = vadd.f32 %v3746_v43, %v3489_v7  ;;  %v22925_v7 = vld [vmem:[#allocation126_spill] sm:$0xff]  ;;  %v18288_v19 = vpop.f32.mrf.mxu0 }
 0x37f   : > { %v12225_v29 = vpop.f32.mrf.mxu1  ;;  %v3495_v43 = vadd.f32 %v22925_v7, %v18049_v18  ;;  %v22931_v18 = vld [vmem:[#allocation145_spill] sm:$0xff]  ;;  %v5785_v7 = vpack.c.bf16 %v11206_v9, %v11205_v36  ;;  %v22936_v9 = vld [vmem:[#allocation87_spill] sm:$0xff] }
 0x380   : > { %v18258_v58 = vadd.f32 %v12225_v29, %v3492_v60  ;;  %v11207_v29 = vld [vmem:[%s13060_s26 + $0x118] sm:$0xff] }
 0x381   : > { %v3749_v15 = vpop.f32.mrf.mxu1 }
 0x382   : > { %v18264_v57 = vadd.f32 %v3749_v15, %v3490_v32 }
 0x383   : > { %v12228_v12 = vpop.f32.mrf.mxu1  ;;  %12363 = vmatmul.mubr.msk.bf16.gmra.mxu1 %vm22926_vm8, %v5783_v53  ;;  %v3496_v53 = vadd.f32 %v22931_v18, %v18061_v37  ;;  %v3497_v18 = vadd.f32 %v22936_v9, %v18082_v46  ;;  %v22940_v46 = vld [vmem:[#allocation90_spill] sm:$0xff]  ;;  %vm22959_vm8 = vmmov %vm22796_vm0 }
 0x384   : > { %v18269_v22 = vadd.f32 %v12228_v12, %v3495_v43  ;;  %12366 = vmatprep.mubr.msk.bf16.mxu1 %vm22929_vm14, %v5784_v31  ;;  %v3494_v31 = vadd.f32 %v22932_v25, %v18067_v47  ;;  %v5786_v12 = vpack.c.bf16 %v11208_v48, %v11207_v29  ;;  %v11209_v47 = vld [vmem:[%s13060_s26 + $0x128] sm:$0xff]  ;;  %v11210_v29 = vld [vmem:[%s13060_s26 + $0x130] sm:$0xff]  ;;  %v18302_v48 = vpop.f32.mrf.mxu0  ;;  %vm22961_vm14 = vmmov %vm22796_vm0 }
 0x385   : > { %v3762_v60 = vpop.f32.mrf.mxu1 }
 0x386   : > { %22927 = vst [vmem:[#allocation130_spill] sm:$0xff] %v18269_v22  ;;  %v18280_v32 = vadd.f32 %v3762_v60, %v3493_v26  ;;  %v22933_v60 = vld [vmem:[#allocation188_spill] sm:$0xff]  ;;  %v18314_v9 = vpop.f32.mrf.mxu0 }
 0x387   : > { %v12229_v15 = vpop.f32.mrf.mxu1 }
 0x388   : > { %22930 = vst [vmem:[#allocation177_spill] sm:$0xff] %v18280_v32  ;;  %v18284_v43 = vadd.f32 %v12229_v15, %v3496_v53  ;;  %v3499_v32 = vadd.f32 %v22933_v60, %v18076_v51  ;;  %v11212_v15 = vld [vmem:[%s13060_s26 + $0x140] sm:$0xff]  ;;  %v22939_v51 = vld [vmem:[#allocation29_spill] sm:$0xff] }
 0x389   : > { %v3765_v22 = vpop.f32.mrf.mxu1 }
 0x38a   : > { %v18290_v26 = vadd.f32 %v3765_v22, %v3494_v31  ;;  %v11211_v22 = vld [vmem:[%s13060_s26 + $0x138] sm:$0xff]  ;;  %v5787_v31 = vpack.c.bf16 %v11210_v29, %v11209_v47 }
 0x38b   : > { %v12232_v37 = vpop.f32.mrf.mxu1  ;;  %12367 = vmatmul.mubr.msk.bf16.gmra.mxu1 %vm22934_vm3, %v5785_v7  ;;  %v3500_v7 = vadd.f32 %v22939_v51, %v18088_v59  ;;  %v22944_v29 = vld [vmem:[#allocation74_spill] sm:$0xff]  ;;  %vm22963_vm3 = vmmov %vm22796_vm0 }
 0x38c   : > { %v18295_v36 = vadd.f32 %v12232_v37, %v3499_v32  ;;  %12370 = vmatprep.mubr.msk.bf16.mxu1 %vm22937_vm4, %v5786_v12  ;;  %v3498_v12 = vadd.f32 %v22940_v46, %v18091_v28  ;;  %v5788_v37 = vpack.c.bf16 %v11212_v15, %v11211_v22  ;;  %v3501_v51 = vadd.f32 %v22944_v29, %v18111_v61  ;;  %v11213_v28 = vld [vmem:[%s13060_s26 + $0x148] sm:$0xff]  ;;  %v11214_v22 = vld [vmem:[%s13060_s26 + $0x150] sm:$0xff]  ;;  %v18328_v15 = vpop.f32.mrf.mxu0  ;;  %vm22965_vm4 = vmmov %vm22953_vm2 }
 0x38d   : > { %v3778_v53 = vpop.f32.mrf.mxu1  ;;  %v3502_v61 = vadd.f32 %v18059_v13, %v18127_v38  ;;  %v11217_v13 = vld [vmem:[%s13060_s26 + $0x168] sm:$0xff]  ;;  %v11218_v38 = vld [vmem:[%s13060_s26 + $0x170] sm:$0xff] }
 0x38e   : > { %22935 = vst [vmem:[#allocation227_spill] sm:$0xff] %v18295_v36  ;;  %v18306_v25 = vadd.f32 %v3778_v53, %v3497_v18  ;;  %v22941_v53 = vld [vmem:[#allocation40_spill] sm:$0xff] }
 0x38f   : > { %v12233_v32 = vpop.f32.mrf.mxu1 }
 0x390   : > { %22938 = vst [vmem:[#allocation224_spill] sm:$0xff] %v18306_v25  ;;  %v18310_v60 = vadd.f32 %v12233_v32, %v3500_v7  ;;  %v3503_v25 = vadd.f32 %v22941_v53, %v18100_v55  ;;  %v11216_v32 = vld [vmem:[%s13060_s26 + $0x160] sm:$0xff]  ;;  %v22946_v55 = vld [vmem:[#allocation162_spill] sm:$0xff] }
 0x391   : > { %v3781_v36 = vpop.f32.mrf.mxu1 }
 0x392   : > { %v18316_v18 = vadd.f32 %v3781_v36, %v3498_v12  ;;  %v11215_v36 = vld [vmem:[%s13060_s26 + $0x158] sm:$0xff]  ;;  %v5789_v12 = vpack.c.bf16 %v11214_v22, %v11213_v28  ;;  %v3505_v28 = vadd.f32 %v18086_v30, %v18141_v8 }
 0x393   : > { %v12236_v59 = vpop.f32.mrf.mxu1  ;;  %12371 = vmatmul.mubr.msk.bf16.gmra.mxu1 %vm22942_vm15, %v5787_v31  ;;  %v3504_v31 = vadd.f32 %v22946_v55, %v18123_v54  ;;  %v5791_v55 = vpack.c.bf16 %v11218_v38, %v11217_v13  ;;  %v22952_v38 = vld [vmem:[#allocation229_spill] sm:$0xff]  ;;  %vm22967_vm15 = vmmov %vm22796_vm0 }
 0x394   : > { %v18321_v47 = vadd.f32 %v12236_v59, %v3503_v25  ;;  %12374 = vmatprep.mubr.msk.bf16.mxu1 %vm22945_vm10, %v5788_v37  ;;  %v5790_v37 = vpack.c.bf16 %v11216_v32, %v11215_v36  ;;  %v18340_v59 = vpop.f32.mrf.mxu0  ;;  %vm22969_vm10 = vmmov %vm22796_vm0 }
 0x395   : > { %v3794_v7 = vpop.f32.mrf.mxu1 }
 0x396   : > { %22943 = vst [vmem:[#allocation59_spill] sm:$0xff] %v18321_v47  ;;  %v18332_v46 = vadd.f32 %v3794_v7, %v3501_v51  ;;  %v3507_v51 = vadd.f32 %v18071_v34, %v18134_v42  ;;  %v18354_v22 = vpop.f32.mrf.mxu0  ;;  %v3508_v34 = vadd.f32 %v18096_v21, %v18147_v40  ;;  %v22950_v21 = vld [vmem:[#allocation215_spill] sm:$0xff]  ;;  %v3509_v40 = vadd.f32 %v18145_v44, %v18168_v35 }
 0x397   : > { %v12237_v25 = vpop.f32.mrf.mxu1  ;;  %v7409_v44 = vsel %vm22953_vm2, %v18204_v56, 0  ;;  %v4235_v35 = vadd.f32 %v18178_v50, %v18187_v1  ;;  %v4233_v50 = vadd.f32 %v18192_v16, %v18197_v2 }
 0x398   : > { %v18336_v53 = vadd.f32 %v12237_v25, %v3504_v31  ;;  %v3506_v25 = vadd.f32 %v18115_v5, %v18151_v23  ;;  %v18364_v30 = vpop.f32.mrf.mxu0 }
 0x399   : > { %v3797_v29 = vpop.f32.mrf.mxu1 }
 0x39a   : > { %v18342_v47 = vadd.f32 %v3797_v29, %v3502_v61  ;;  %v3511_v61 = vadd.f32 %v18131_v41, %v18159_v63  ;;  %v18377_v5 = vpop.f32.mrf.mxu0  ;;  %v22951_v63 = vld [vmem:[#allocation210_spill] sm:$0xff] }
 0x39b   : > { %v12240_v7 = vpop.f32.mrf.mxu1  ;;  %12375 = vmatmul.mubr.msk.bf16.gmra.mxu1 %vm22947_vm1, %v5789_v12  ;;  %vm22971_vm1 = vmmov %vm22953_vm2 }
 0x39c   : > { %v18347_v54 = vadd.f32 %v12240_v7, %v3507_v51  ;;  %12378 = vmatprep.mubr.msk.bf16.mxu1 %vm22948_vm7, %v5790_v37  ;;  %v3512_v7 = vadd.f32 %v18155_v4, %v18174_v45  ;;  %vm22975_vm7 = vmmov %vm22796_vm0 }
 0x39d   : > { %v3810_v36 = vpop.f32.mrf.mxu1  ;;  %vm22982_vm2 = vmmov %vm22796_vm0 }
 0x39e   : > { %v18356_v32 = vadd.f32 %v3810_v36, %v3505_v28  ;;  %v21065_v28 = vsub.s32 1, %v22951_v63  ;;  %v3510_v36 = vadd.f32 %v22952_v38, %v18182_v24 }
 0x39f   : > { %v12241_v42 = vpop.f32.mrf.mxu1 }
 0x3a0   : > { %v18360_v31 = vadd.f32 %v12241_v42, %v3508_v34  ;;  %v18388_v34 = vpop.f32.mrf.mxu0 }
 0x3a1   : > { %v3813_v8 = vpop.f32.mrf.mxu1 }
 0x3a2   : > { %v18366_v12 = vadd.f32 %v3813_v8, %v3506_v25  ;;  %v22955_v25 = vld [vmem:[#allocation106_spill] sm:$0xff] }
 0x3a3   : > { %v12244_v37 = vpop.f32.mrf.mxu1  ;;  %12379 = vmatmul.mubr.msk.bf16.gmra.mxu1 %vm22949_vm13, %v5791_v55  ;;  %v22954_v55 = vld [vmem:[#allocation81_spill] sm:$0xff]  ;;  %vm22977_vm13 = vmmov %vm22796_vm0 }
 0x3a4   : > { %v18371_v29 = vadd.f32 %v12244_v37, %v3511_v61  ;;  %12418 = vmatprep.mubr.msk.bf16.mxu1 %vm22796_vm0, %v22950_v21  ;;  %v3482_v4 = vadd.f32 %v22955_v25, %v22954_v55  ;;  %v12841_v61 = vld [vmem:[%s20489_s6] sm:$0xf]  ;;  %v22956_v37 = vld [vmem:[#allocation32_spill] sm:$0xff] }
 0x3a5   : > { %v3826_v23 = vpop.f32.mrf.mxu1  ;;  %v18403_v24 = vrot.slane %v12841_v61, %v21065_v28  ;;  %v22958_v21 = vld [vmem:[#allocation200_spill] sm:$0xff] }
 0x3a6   : > { %v18379_v51 = vadd.f32 %v3826_v23, %v3509_v40  ;;  %v3874_v1 = vadd.f32 %v18210_v0, %v3482_v4  ;;  %v18412_v40 = vpop.f32.mrf.mxu0  ;;  %v22960_v4 = vld [vmem:[#allocation201_spill] sm:$0xff] }
 0x3a7   : > { %v12245_v41 = vpop.f32.mrf.mxu1 }
 0x3a8   : > { %v18384_v13 = vadd.f32 %v12245_v41, %v3512_v7  ;;  %v4236_v7 = vadd.f32 %v18212_v3, %v18208_v11  ;;  %v18418_v2 = vpop.f32.mrf.mxu0  ;;  %v4237_v11 = vadd.f32 %v18250_v39, %v18228_v6 }
 0x3a9   : > { %v3829_v42 = vpop.f32.mrf.mxu1 }
 0x3aa   : > { %v18396_v45 = vadd.f32 %v3829_v42, %v3510_v36  ;;  %v4234_v36 = vadd.f32 %v18224_v33, %v3874_v1 }
 0x3ab   : > { %v12284_v8 = vpop.f32.mrf.mxu1  ;;  %12419 = vmatmul.mubr.msk.bf16.vlgmr.msra.gmra.mxu1 %vm22957_vm9, %v22956_v37  ;;  %vm22985_vm9 = vmmov %vm22796_vm0 }
 0x3ac   : > { %v4627_v56 = vadd.f32 %v12284_v8, %v4235_v35  ;;  %12422 = vmatprep.mubr.msk.bf16.mxu1 %vm22959_vm8, %v22958_v21  ;;  %12485 = vmatpush3.bf16.msra.mxu1 %v7409_v44  ;;  %v4239_v35 = vadd.f32 %v18236_v52, %v18217_v10  ;;  %v4240_v10 = vadd.f32 %v18262_v17, %v18232_v14  ;;  %v18433_v52 = vpop.f32.mrf.mxu0  ;;  %vm22987_vm8 = vmmov %vm22796_vm0 }
 0x3ad   : > { %v4466_v23 = vpop.f32.mrf.mxu1  ;;  %v4243_v17 = vadd.f32 %v18288_v19, %v18243_v49 }
 0x3ae   : > { %v4625_v41 = vadd.f32 %v4466_v23, %v4233_v50  ;;  %v4727_v42 = vadd.f32 %v18403_v24, %v4627_v56  ;;  %v22962_v50 = vld [vmem:[#allocation55_spill] sm:$0xff] }
 0x3af   : > { %v12285_v38 = vpop.f32.mrf.mxu1 }
 0x3b0   : > { %v4628_v16 = vadd.f32 %v12285_v38, %v4236_v7  ;;  %v4725_v44 = vadd.f32 %v18403_v24, %v4625_v41  ;;  %v4759_v33 = vmax.f32 %v4727_v42, 0.0  ;;  %v22964_v7 = vld [vmem:[#allocation203_spill] sm:$0xff]  ;;  %v4238_v38 = vadd.f32 %v18276_v62, %v18238_v20  ;;  %v18449_v20 = vld [vmem:[%s20487_s4 + $0x8] sm:$0x3] }
 0x3b1   : > { %v4469_v0 = vpop.f32.mrf.mxu1  ;;  %v6363_v41 = vsel %vm22965_vm4, %v22964_v7, 0  ;;  %v4241_v62 = vadd.f32 %v18302_v48, %v18254_v27  ;;  %vm22993_vm4 = vmmov %vm22796_vm0 }
 0x3b2   : > { %v4728_v55 = vadd.f32 %v18403_v24, %v4628_v16  ;;  %v4626_v25 = vadd.f32 %v4469_v0, %v4234_v36  ;;  %v4757_v56 = vmax.f32 %v4725_v44, 0.0  ;;  %v18440_v0 = vpop.f32.mrf.mxu0 }
 0x3b3   : > { %v12288_v3 = vpop.f32.mrf.mxu1  ;;  %12423 = vmatmul.mubr.msk.bf16.gmra.mxu1 %vm22961_vm14, %v22960_v4  ;;  %vm22989_vm14 = vmmov %vm22796_vm0 }
 0x3b4   : > { %v4760_v8 = vmax.f32 %v4728_v55, 0.0  ;;  %v4726_v61 = vadd.f32 %v18403_v24, %v4626_v25  ;;  %v4631_v37 = vadd.f32 %v12288_v3, %v4239_v35  ;;  %12426 = vmatprep.mubr.msk.bf16.mxu1 %vm22963_vm3, %v22962_v50  ;;  %vm22991_vm3 = vmmov %vm22796_vm0 }
 0x3b5   : > { %v4482_v1 = vpop.f32.mrf.mxu1 }
 0x3b6   : > { %v4854_v6 = vpack.c.bf16 %v4760_v8, %v4759_v33  ;;  %v4758_v39 = vmax.f32 %v4726_v61, 0.0  ;;  %v4629_v21 = vadd.f32 %v4482_v1, %v4237_v11  ;;  %v4731_v42 = vadd.f32 %v18403_v24, %v4631_v37  ;;  %v22966_v11 = vld [vmem:[#allocation113_spill] sm:$0xff]  ;;  %v22968_v33 = vld [vmem:[#allocation184_spill] sm:$0xff]  ;;  %v18461_v37 = vpop.f32.mrf.mxu0 }
 0x3b7   : > { %v12289_v23 = vpop.f32.mrf.mxu1  ;;  %v22970_v8 = vmov 0   ;;  %v4244_v61 = vadd.f32 %v18314_v9, %v18258_v58 }
 0x3b8   : > { %v4853_v36 = vpack.c.bf16 %v4758_v39, %v4757_v56  ;;  %v4632_v16 = vadd.f32 %v12289_v23, %v4240_v10  ;;  %v4729_v35 = vadd.f32 %v18403_v24, %v4629_v21  ;;  %v4763_v49 = vmax.f32 %v4731_v42, 0.0  ;;  %v18470_v58 = vpop.f32.mrf.mxu0 }
 0x3b9   : > { %v4485_v14 = vpop.f32.mrf.mxu1  ;;  %v4242_v39 = vadd.f32 %v18328_v15, %v18264_v57  ;;  %v22974_v15 = vld [vmem:[#allocation228_spill] sm:$0xff] }
 0x3ba   : > { %v4732_v44 = vadd.f32 %v18403_v24, %v4632_v16  ;;  %v4630_v55 = vadd.f32 %v4485_v14, %v4238_v38  ;;  %4999 = vmatmul.mubr.bf16.vlgmr.msra.gmra.mxu0 %v4853_v36  ;;  %v4761_v48 = vmax.f32 %v4729_v35, 0.0  ;;  %v22973_v14 = vld [vmem:[#allocation177_spill] sm:$0xff] }
 0x3bb   : > { %12383 = vmatpush3.bf16.msra.mxu0 %v6363_v41  ;;  %v12292_v25 = vpop.f32.mrf.mxu1  ;;  %12427 = vmatmul.mubr.msk.bf16.gmra.mxu1 %vm22967_vm15, %v22966_v11  ;;  %v22972_v41 = vld [vmem:[#allocation130_spill] sm:$0xff]  ;;  %vm22995_vm15 = vmmov %vm22796_vm0 }
 0x3bc   : > { %v4764_v19 = vmax.f32 %v4732_v44, 0.0  ;;  %v4730_v3 = vadd.f32 %v18403_v24, %v4630_v55  ;;  %v4635_v4 = vadd.f32 %v12292_v25, %v4243_v17  ;;  %12430 = vmatprep.mubr.msk.bf16.mxu1 %vm22969_vm10, %v22968_v33  ;;  %5008 = vmatprep.mubr.bf16.mxu0 %v22970_v8  ;;  %v4247_v38 = vadd.f32 %v18340_v59, %v22972_v41  ;;  %v18486_v25 = vpop.f32.mrf.mxu0  ;;  %vm22997_vm10 = vmmov %vm22796_vm0 }
 0x3bd   : > { %v4498_v27 = vpop.f32.mrf.mxu1  ;;  %12668 = vmatprep.subr.msk.bf16.mxu0 %vm22971_vm1, %v18449_v20  ;;  %v4245_v17 = vadd.f32 %v18354_v22, %v22973_v14  ;;  %v4246_v33 = vadd.f32 %v18377_v5, %v18290_v26  ;;  %v22980_v5 = vld [vmem:[#allocation161_spill] sm:$0xff]  ;;  %vm22999_vm1 = vmmov %vm22796_vm0 }
 0x3be   : > { %v18465_v50 = vpack.c.bf16 %v4764_v19, %v4763_v49  ;;  %v4762_v10 = vmax.f32 %v4730_v3, 0.0  ;;  %v4633_v1 = vadd.f32 %v4498_v27, %v4241_v62  ;;  %v4735_v23 = vadd.f32 %v18403_v24, %v4635_v4  ;;  %v22976_v62 = vld [vmem:[#allocation235_spill] sm:$0xff] }
 0x3bf   : > { %v12293_v56 = vpop.f32.mrf.mxu1 }
 0x3c0   : > { %v4855_v21 = vpack.c.bf16 %v4762_v10, %v4761_v48  ;;  %v4636_v7 = vadd.f32 %v12293_v56, %v4244_v61  ;;  %v4733_v36 = vadd.f32 %v18403_v24, %v4633_v1  ;;  %v4767_v35 = vmax.f32 %v4735_v23, 0.0  ;;  %v12274_v10 = vpop.f32.mrf.mxu0  ;;  %v22978_v1 = vld [vmem:[#allocation227_spill] sm:$0xff] }
 0x3c1   : > { %v4501_v9 = vpop.f32.mrf.mxu1  ;;  %v4251_v56 = vadd.f32 %v18388_v34, %v22978_v1  ;;  %v4252_v34 = vadd.f32 %v18418_v2, %v18310_v60  ;;  %v22983_v2 = vld [vmem:[#allocation59_spill] sm:$0xff] }
 0x3c2   : > { %v4736_v42 = vadd.f32 %v18403_v24, %v4636_v7  ;;  %v4634_v16 = vadd.f32 %v4501_v9, %v4242_v39  ;;  %5009 = vmatmul.mubr.bf16.gmra.mxu0 %v4854_v6  ;;  %v4248_v6 = vadd.f32 %v18364_v30, %v18284_v43  ;;  %v4765_v11 = vmax.f32 %v4733_v36, 0.0  ;;  %v22979_v7 = vld [vmem:[#allocation224_spill] sm:$0xff] }
 0x3c3   : > { %v12296_v57 = vpop.f32.mrf.mxu1  ;;  %12431 = vmatmul.mubr.msk.bf16.gmra.mxu1 %vm22975_vm7, %v22974_v15  ;;  %5018 = vmatprep.mubr.bf16.mxu0 %v22970_v8  ;;  %v4249_v9 = vadd.f32 %v18412_v40, %v22979_v7  ;;  %vm23001_vm7 = vmmov %vm22796_vm0 }
 0x3c4   : > { %v4768_v44 = vmax.f32 %v4736_v42, 0.0  ;;  %v4734_v55 = vadd.f32 %v18403_v24, %v4634_v16  ;;  %v4639_v59 = vadd.f32 %v12296_v57, %v4247_v38  ;;  %12434 = vmatprep.mubr.msk.bf16.mxu1 %vm22977_vm13, %v22976_v62  ;;  %v22981_v16 = vld [vmem:[#allocation86_spill] sm:$0xff]  ;;  %vm23003_vm13 = vmmov %vm22796_vm0 }
 0x3c5   : > { %v4514_v22 = vpop.f32.mrf.mxu1 }
 0x3c6   : > { %v18488_v49 = vpack.c.bf16 %v4768_v44, %v4767_v35  ;;  %v4766_v19 = vmax.f32 %v4734_v55, 0.0  ;;  %v4637_v3 = vadd.f32 %v4514_v22, %v4245_v17  ;;  %v4739_v27 = vadd.f32 %v18403_v24, %v4639_v59 }
 0x3c7   : > { %v12297_v4 = vpop.f32.mrf.mxu1  ;;  %v4250_v55 = vadd.f32 %v18433_v52, %v18316_v18  ;;  %v22984_v18 = vld [vmem:[#allocation27_spill] sm:$0xff] }
 0x3c8   : > { %v18492_v61 = vpack.c.bf16 %v4766_v19, %v4765_v11  ;;  %v4640_v48 = vadd.f32 %v12297_v4, %v4248_v6  ;;  %v4737_v43 = vadd.f32 %v18403_v24, %v4637_v3  ;;  %v4771_v41 = vmax.f32 %v4739_v27, 0.0 }
 0x3c9   : > { %v4517_v30 = vpop.f32.mrf.mxu1  ;;  %v4255_v11 = vadd.f32 %v18440_v0, %v22983_v2  ;;  %v4253_v4 = vadd.f32 %v18461_v37, %v18332_v46  ;;  %v22986_v0 = vld [vmem:[#allocation78_spill] sm:$0xff] }
 0x3ca   : > { %v4740_v39 = vadd.f32 %v18403_v24, %v4640_v48  ;;  %v4638_v23 = vadd.f32 %v4517_v30, %v4246_v33  ;;  %5019 = vmatmul.mubr.bf16.gmra.mxu0 %v4855_v21  ;;  %v4170_v21 = vpop.f32.mrf.mxu0  ;;  %v4769_v14 = vmax.f32 %v4737_v43, 0.0 }
 0x3cb   : > { %v12300_v26 = vpop.f32.mrf.mxu1  ;;  %12435 = vmatmul.mubr.msk.bf16.gmra.mxu1 %vm22796_vm0, %v22980_v5  ;;  %5028 = vmatprep.mubr.bf16.mxu0 %v22970_v8 }
 0x3cc   : > { %v4772_v38 = vmax.f32 %v4740_v39, 0.0  ;;  %v4738_v36 = vadd.f32 %v18403_v24, %v4638_v23  ;;  %v4643_v42 = vadd.f32 %v12300_v26, %v4251_v56  ;;  %12438 = vmatprep.mubr.msk.bf16.mxu1 %vm22982_vm2, %v22981_v16  ;;  %v12275_v22 = vpop.f32.mrf.mxu0  ;;  %v4257_v16 = vadd.f32 %v4170_v21, %v18356_v32  ;;  %vm23006_vm2 = vmmov %vm22796_vm0 }
 0x3cd   : > { %v4530_v40 = vpop.f32.mrf.mxu1 }
 0x3ce   : > { %v18509_v17 = vpack.c.bf16 %v4772_v38, %v4771_v41  ;;  %v4770_v57 = vmax.f32 %v4738_v36, 0.0  ;;  %v4743_v15 = vadd.f32 %v18403_v24, %v4643_v42  ;;  %v4641_v35 = vadd.f32 %v4530_v40, %v4249_v9  ;;  %v4173_v30 = vpop.f32.mrf.mxu0 }
 0x3cf   : > { %v12301_v44 = vpop.f32.mrf.mxu1  ;;  %v4254_v9 = vadd.f32 %v18486_v25, %v18342_v47 }
 0x3d0   : > { %v18514_v59 = vpack.c.bf16 %v4770_v57, %v4769_v14  ;;  %v4741_v62 = vadd.f32 %v18403_v24, %v4641_v35  ;;  %v4644_v6 = vadd.f32 %v12301_v44, %v4252_v34  ;;  %v4775_v52 = vmax.f32 %v4743_v15, 0.0  ;;  %v12278_v38 = vpop.f32.mrf.mxu0  ;;  %v22988_v14 = vld [vmem:[#allocation77_spill] sm:$0xff]  ;;  %v22990_v15 = vld [vmem:[#allocation148_spill] sm:$0xff] }
 0x3d1   : > { %v4533_v60 = vpop.f32.mrf.mxu1 }
 0x3d2   : > { %v4744_v19 = vadd.f32 %v18403_v24, %v4644_v6  ;;  %v4642_v3 = vadd.f32 %v4533_v60, %v4250_v55  ;;  %5029 = vmatmul.mubr.bf16.gmra.mxu0 %v18465_v50  ;;  %v4256_v50 = vadd.f32 %v18470_v58, %v18336_v53  ;;  %v4773_v1 = vmax.f32 %v4741_v62, 0.0 }
 0x3d3   : > { %v12304_v33 = vpop.f32.mrf.mxu1  ;;  %12439 = vmatmul.mubr.msk.bf16.gmra.mxu1 %vm22985_vm9, %v22984_v18  ;;  %5038 = vmatprep.mubr.bf16.mxu0 %v22970_v8  ;;  %v4259_v58 = vadd.f32 %v12274_v10, %v18347_v54  ;;  %v4260_v54 = vadd.f32 %v12275_v22, %v18360_v31  ;;  %v4186_v10 = vpop.f32.mrf.mxu0  ;;  %v4258_v6 = vadd.f32 %v4173_v30, %v18366_v12  ;;  %vm23008_vm9 = vmmov %vm22796_vm0 }
 0x3d4   : > { %v4776_v27 = vmax.f32 %v4744_v19, 0.0  ;;  %v4742_v48 = vadd.f32 %v18403_v24, %v4642_v3  ;;  %v4647_v43 = vadd.f32 %v12304_v33, %v4255_v11  ;;  %12442 = vmatprep.mubr.msk.bf16.mxu1 %vm22987_vm8, %v22986_v0  ;;  %v4263_v31 = vadd.f32 %v12278_v38, %v18371_v29  ;;  %v22994_v0 = vld [vmem:[#allocation97_spill] sm:$0xff]  ;;  %vm23010_vm8 = vmmov %vm22796_vm0 }
 0x3d5   : > { %v4546_v46 = vpop.f32.mrf.mxu1  ;;  %v12279_v19 = vpop.f32.mrf.mxu0  ;;  %v4261_v33 = vadd.f32 %v4186_v10, %v18379_v51 }
 0x3d6   : > { %v18531_v37 = vpack.c.bf16 %v4776_v27, %v4775_v52  ;;  %v4774_v56 = vmax.f32 %v4742_v48, 0.0  ;;  %v4747_v39 = vadd.f32 %v18403_v24, %v4647_v43  ;;  %v4645_v23 = vadd.f32 %v4546_v46, %v4253_v4  ;;  %v22992_v52 = vld [vmem:[#allocation194_spill] sm:$0xff] }
 0x3d7   : > { %v12305_v7 = vpop.f32.mrf.mxu1  ;;  %v4264_v29 = vadd.f32 %v12279_v19, %v18384_v13 }
 0x3d8   : > { %v18536_v26 = vpack.c.bf16 %v4774_v56, %v4773_v1  ;;  %v4745_v5 = vadd.f32 %v18403_v24, %v4645_v23  ;;  %v4648_v41 = vadd.f32 %v12305_v7, %v4256_v50  ;;  %v4779_v47 = vmax.f32 %v4747_v39, 0.0  ;;  %v4189_v50 = vpop.f32.mrf.mxu0 }
 0x3d9   : > { %v4549_v53 = vpop.f32.mrf.mxu1  ;;  %v4262_v23 = vadd.f32 %v4189_v50, %v18396_v45 }
 0x3da   : > { %v4748_v36 = vadd.f32 %v18403_v24, %v4648_v41  ;;  %v4646_v42 = vadd.f32 %v4549_v53, %v4254_v9  ;;  %5039 = vmatmul.mubr.bf16.gmra.mxu0 %v18492_v61  ;;  %v4777_v61 = vmax.f32 %v4745_v5, 0.0 }
 0x3db   : > { %v12308_v34 = vpop.f32.mrf.mxu1  ;;  %12443 = vmatmul.mubr.msk.bf16.gmra.mxu1 %vm22989_vm14, %v22988_v14  ;;  %5048 = vmatprep.mubr.bf16.mxu0 %v22970_v8  ;;  %vm23012_vm14 = vmmov %vm22796_vm0 }
 0x3dc   : > { %v4780_v25 = vmax.f32 %v4748_v36, 0.0  ;;  %v4746_v40 = vadd.f32 %v18403_v24, %v4646_v42  ;;  %v4651_v57 = vadd.f32 %v12308_v34, %v4259_v58  ;;  %12446 = vmatprep.mubr.msk.bf16.mxu1 %vm22991_vm3, %v22990_v15  ;;  %v22996_v58 = vld [vmem:[#allocation35_spill] sm:$0xff]  ;;  %vm23014_vm3 = vmmov %vm22796_vm0 }
 0x3dd   : > { %v4562_v35 = vpop.f32.mrf.mxu1 }
 0x3de   : > { %v18550_v32 = vpack.c.bf16 %v4780_v25, %v4779_v47  ;;  %v4778_v21 = vmax.f32 %v4746_v40, 0.0  ;;  %v4751_v44 = vadd.f32 %v18403_v24, %v4651_v57  ;;  %v4649_v55 = vadd.f32 %v4562_v35, %v4257_v16  ;;  %v22998_v16 = vld [vmem:[#allocation122_spill] sm:$0xff] }
 0x3df   : > { %v12309_v62 = vpop.f32.mrf.mxu1 }
 0x3e0   : > { %v18554_v60 = vpack.c.bf16 %v4778_v21, %v4777_v61  ;;  %v4749_v2 = vadd.f32 %v18403_v24, %v4649_v55  ;;  %v4652_v11 = vadd.f32 %v12309_v62, %v4260_v54  ;;  %v4783_v12 = vmax.f32 %v4751_v44, 0.0  ;;  %v23002_v54 = vld [vmem:[#allocation207_spill] sm:$0xff]  ;;  %v23005_v44 = vld [vmem:[#allocation57_spill] sm:$0xff] }
 0x3e1   : > { %v4565_v3 = vpop.f32.mrf.mxu1 }
 0x3e2   : > { %v4752_v22 = vadd.f32 %v18403_v24, %v4652_v11  ;;  %v4650_v4 = vadd.f32 %v4565_v3, %v4258_v6  ;;  %5049 = vmatmul.mubr.bf16.gmra.mxu0 %v18488_v49  ;;  %v4781_v49 = vmax.f32 %v4749_v2, 0.0  ;;  %v23009_v11 = vld [vmem:[#allocation225_spill] sm:$0xff] }
 0x3e3   : > { %v12312_v18 = vpop.f32.mrf.mxu1  ;;  %12447 = vmatmul.mubr.msk.bf16.gmra.mxu1 %vm22993_vm4, %v22992_v52  ;;  %5058 = vmatprep.mubr.bf16.mxu0 %v22970_v8  ;;  %vm23016_vm4 = vmmov %vm22796_vm0 }
 0x3e4   : > { %v4784_v27 = vmax.f32 %v4752_v22, 0.0  ;;  %v4750_v48 = vadd.f32 %v18403_v24, %v4650_v4  ;;  %v4655_v43 = vadd.f32 %v12312_v18, %v4263_v31  ;;  %12486 = vmatprep.mubr.msk.bf16.mxu1 %vm22995_vm15, %v22994_v0  ;;  %v23011_v22 = vld [vmem:[#allocation23_spill] sm:$0xff]  ;;  %vm23018_vm15 = vmmov %vm22796_vm0 }
 0x3e5   : > { %v4578_v30 = vpop.f32.mrf.mxu1  ;;  %v23013_v4 = vld [vmem:[#allocation79_spill] sm:$0xff] }
 0x3e6   : > { %v18568_v51 = vpack.c.bf16 %v4784_v27, %v4783_v12  ;;  %v4782_v1 = vmax.f32 %v4750_v48, 0.0  ;;  %v4755_v46 = vadd.f32 %v18403_v24, %v4655_v43  ;;  %v4653_v56 = vadd.f32 %v4578_v30, %v4261_v33  ;;  %v23015_v27 = vld [vmem:[#allocation245_spill] sm:$0xff]  ;;  %v23017_v48 = vld [vmem:[#allocation103_spill] sm:$0xff] }
 0x3e7   : > { %v12313_v39 = vpop.f32.mrf.mxu1  ;;  %v12842_v0 = vld [vmem:[%s13060_s26 + $0x21c] sm:$0xff] }
 0x3e8   : > { %v18572_v7 = vpack.c.bf16 %v4782_v1, %v4781_v49  ;;  %v4753_v9 = vadd.f32 %v18403_v24, %v4653_v56  ;;  %v4656_v5 = vadd.f32 %v12313_v39, %v4264_v29  ;;  %v4787_v36 = vmax.f32 %v4755_v46, 0.0  ;;  %v12843_v1 = vld [vmem:[%s13060_s26 + $0x224] sm:$0xff]  ;;  %v12844_v39 = vld [vmem:[%s13060_s26 + $0x22c] sm:$0xff] }
 0x3e9   : > { %v4581_v41 = vpop.f32.mrf.mxu1  ;;  %v7337_v50 = vsel %vm22484_vm6, %v12842_v0, 0.0  ;;  %v7338_v56 = vsel %vm22488_vm12, %v12843_v1, 0.0  ;;  %vm23023_vm6 = vmmov %vm22796_vm0  ;;  %v23034_v29 = vld [vmem:[#allocation125_spill] sm:$0xff]  ;;  %v11450_v49 = vld [vmem:[%s13060_s26 + $0x200] sm:$0xff] }
 0x3ea   : > { %v4756_v13 = vadd.f32 %v18403_v24, %v4656_v5  ;;  %v4654_v38 = vadd.f32 %v4581_v41, %v4262_v23  ;;  %5059 = vmatmul.mubr.bf16.gmra.mxu0 %v18514_v59  ;;  %v4785_v14 = vmax.f32 %v4753_v9, 0.0  ;;  %v7339_v9 = vsel %vm22489_vm11, %v12844_v39, 0.0  ;;  %vm23026_vm12 = vmmov %vm22796_vm0  ;;  %v11451_v46 = vld [vmem:[%s13060_s26 + $0x208] sm:$0xff] }
 0x3eb   : > { %v18577_v53 = vpop.f32.mrf.mxu1  ;;  %12487 = vmatmul.mubr.msk.bf16.vlgmr.msra.gmra.mxu1 %vm22997_vm10, %v22996_v58  ;;  %5068 = vmatprep.mubr.bf16.mxu0 %v22970_v8  ;;  %vm23028_vm11 = vmmov %vm22796_vm0  ;;  %vm23029_vm10 = vcmask 1041408  }
 0x3ec   : > { %v4788_v45 = vmax.f32 %v4756_v13, 0.0  ;;  %v4754_v42 = vadd.f32 %v18403_v24, %v4654_v38  ;;  %12490 = vmatprep.mubr.msk.bf16.mxu1 %vm22999_vm1, %v22998_v16  ;;  %v23000_v24 = vld [vmem:[#allocation159_spill] sm:$0xff]  ;;  %v7356_v13 = vpack.c.bf16 %v7339_v9, %v7338_v56  ;;  %vm23031_vm1 = vmmov %vm22796_vm0  ;;  %v11452_v56 = vld [vmem:[%s13060_s26 + $0x210] sm:$0xff] }
 0x3ed   : > { %v18585_v34 = vpop.f32.mrf.mxu1  ;;  %v8095_v23 = vpack.c.bf16 %v11452_v56, %v11451_v46 }
 0x3ee   : > { %v18587_v47 = vpack.c.bf16 %v4788_v45, %v4787_v36  ;;  %v4786_v59 = vmax.f32 %v4754_v42, 0.0 }
 0x3ef   : > { %v18589_v25 = vpop.f32.mrf.mxu1 }
 0x3f0   : > { %v18591_v40 = vpack.c.bf16 %v4786_v59, %v4785_v14 }
 0x3f1   : > { %v18593_v57 = vpop.f32.mrf.mxu1 }
 0x3f2   : > { %5069 = vmatmul.mubr.bf16.gmra.mxu0 %v18509_v17  ;;  %v23004_v17 = vld [vmem:[#allocation202_spill] sm:$0xff] }
 0x3f3   : > { %v18596_v15 = vpop.f32.mrf.mxu1  ;;  %12491 = vmatmul.mubr.msk.bf16.gmra.mxu1 %vm23001_vm7, %v23000_v24  ;;  %5078 = vmatprep.mubr.bf16.mxu0 %v22970_v8  ;;  %vm23032_vm7 = vmmov %vm23029_vm10 }
 0x3f4   : > { %12494 = vmatprep.mubr.msk.bf16.mxu1 %vm23003_vm13, %v23002_v54  ;;  %vm23033_vm13 = vmmov %vm23032_vm7 }
 0x3f5   : > { %v18603_v10 = vpop.f32.mrf.mxu1 }
 0x3f7   : > { %v18605_v61 = vpop.f32.mrf.mxu1 }
 0x3f9   : > { %v18607_v35 = vpop.f32.mrf.mxu1 }
 0x3fa   : > { %5079 = vmatmul.mubr.bf16.gmra.mxu0 %v18536_v26  ;;  %v23007_v26 = vld [vmem:[#allocation204_spill] sm:$0xff] }
 0x3fb   : > { %v18610_v21 = vpop.f32.mrf.mxu1  ;;  %12495 = vmatmul.mubr.msk.bf16.gmra.mxu1 %vm22796_vm0, %v23004_v17  ;;  %5088 = vmatprep.mubr.bf16.mxu0 %v22970_v8 }
 0x3fc   : > { %12498 = vmatprep.mubr.msk.bf16.mxu1 %vm23006_vm2, %v23005_v44  ;;  %vm23035_vm2 = vmmov %vm23032_vm7 }
 0x3fd   : > { %v18617_v55 = vpop.f32.mrf.mxu1 }
 0x3ff   : > { %v18619_v62 = vpop.f32.mrf.mxu1 }
 0x401   : > { %v18621_v6 = vpop.f32.mrf.mxu1 }
 0x402   : > { %5089 = vmatmul.mubr.bf16.gmra.mxu0 %v18531_v37 }
 0x403   : > { %v18624_v2 = vpop.f32.mrf.mxu1  ;;  %12499 = vmatmul.mubr.msk.bf16.gmra.mxu1 %vm23008_vm9, %v23007_v26  ;;  %5098 = vmatprep.mubr.bf16.mxu0 %v22970_v8  ;;  %vm23036_vm9 = vmmov %vm22796_vm0 }
 0x404   : > { %12502 = vmatprep.mubr.msk.bf16.mxu1 %vm23010_vm8, %v23009_v11  ;;  %vm23037_vm8 = vmmov %vm22796_vm0 }
 0x405   : > { %v18631_v19 = vpop.f32.mrf.mxu1 }
 0x407   : > { %v18633_v3 = vpop.f32.mrf.mxu1 }
 0x409   : > { %v18635_v31 = vpop.f32.mrf.mxu1 }
 0x40a   : > { %5099 = vmatmul.mubr.bf16.gmra.mxu0 %v18554_v60  ;;  %v11377_v60 = vld [vmem:[%s13060_s26 + $0x214] sm:$0xff] }
 0x40b   : > { %v18638_v37 = vpop.f32.mrf.mxu1  ;;  %12503 = vmatmul.mubr.msk.bf16.gmra.mxu1 %vm23012_vm14, %v23011_v22  ;;  %5108 = vmatprep.mubr.bf16.mxu0 %v22970_v8  ;;  %vm23039_vm14 = vmmov %vm22796_vm0 }
 0x40c   : > { %12506 = vmatprep.mubr.msk.bf16.mxu1 %vm23014_vm3, %v23013_v4  ;;  %v23027_v4 = vld [vmem:[#allocation104_spill] sm:$0xff]  ;;  %vm23041_vm3 = vmmov %vm22796_vm0 }
 0x40d   : > { %v18645_v33 = vpop.f32.mrf.mxu1 }
 0x40f   : > { %v18647_v18 = vpop.f32.mrf.mxu1 }
 0x411   : > { %v18649_v52 = vpop.f32.mrf.mxu1 }
 0x412   : > { %5109 = vmatmul.mubr.bf16.gmra.mxu0 %v18550_v32  ;;  %v7336_v32 = vsel %vm22481_vm5, %v11377_v60, 0.0  ;;  %vm23024_vm5 = vmmov %vm22796_vm0 }
 0x413   : > { %v18653_v12 = vpop.f32.mrf.mxu1  ;;  %12507 = vmatmul.mubr.msk.bf16.gmra.mxu1 %vm23016_vm4, %v23015_v27  ;;  %5118 = vmatprep.mubr.bf16.mxu0 %v22970_v8  ;;  %v7355_v41 = vpack.c.bf16 %v7337_v50, %v7336_v32  ;;  %v11449_v50 = vld [vmem:[%s13060_s26 + $0x1f8] sm:$0xff]  ;;  %vm23042_vm4 = vmmov %vm22796_vm0 }
 0x414   : > { %12510 = vmatprep.mubr.msk.bf16.mxu1 %vm23018_vm15, %v23017_v48  ;;  %v18732_v48 = vld [vmem:[%s20487_s4 + $0xc] sm:$0x3]  ;;  %vm23043_vm15 = vmmov %vm22796_vm0 }
 0x415   : > { %v18660_v43 = vpop.f32.mrf.mxu1 }
 0x417   : > { %v18667_v30 = vpop.f32.mrf.mxu1 }
 0x419   : > { %v18675_v5 = vpop.f32.mrf.mxu1 }
 0x41a   : > { %5119 = vmatmul.mubr.bf16.gmra.mxu0 %v18572_v7  ;;  %v23025_v7 = vld [vmem:[#allocation195_spill] sm:$0xff] }
 0x41b   : > { %v18678_v38 = vpop.f32.mrf.mxu1  ;;  %12511 = vmatmul.mubr.msk.bf16.gmra.mxu1 %vm23023_vm6, %v7355_v41  ;;  %5128 = vmatprep.mubr.bf16.mxu0 %v22970_v8  ;;  %vm23045_vm6 = vmmov %vm22796_vm0 }
 0x41c   : > { %12514 = vmatprep.mubr.msk.bf16.mxu1 %vm23024_vm5, %v7356_v13  ;;  %vm23047_vm5 = vmmov %vm22796_vm0 }
 0x41d   : > { %v18683_v58 = vpop.f32.mrf.mxu1 }
 0x41f   : > { %v18685_v36 = vpop.f32.mrf.mxu1 }
 0x421   : > { %v18687_v45 = vpop.f32.mrf.mxu1 }
 0x422   : > { %5129 = vmatmul.mubr.bf16.gmra.mxu0 %v18568_v51 }
 0x423   : > { %v18690_v42 = vpop.f32.mrf.mxu1  ;;  %12515 = vmatmul.mubr.msk.bf16.gmra.mxu1 %vm23026_vm12, %v23025_v7  ;;  %5138 = vmatprep.mubr.bf16.mxu0 %v22970_v8  ;;  %v23038_v7 = vld [vmem:[#allocation132_spill] sm:$0xff]  ;;  %vm23048_vm12 = vmmov %vm22796_vm0 }
 0x425   : > { %v18695_v16 = vpop.f32.mrf.mxu1 }
 0x427   : > { %v18697_v14 = vpop.f32.mrf.mxu1 }
 0x429   : > { %v18699_v59 = vpop.f32.mrf.mxu1 }
 0x42a   : > { %5139 = vmatmul.mubr.bf16.gmra.mxu0 %v18591_v40 }
 0x42b   : > { %v12352_v24 = vpop.f32.mrf.mxu1  ;;  %5148 = vmatprep.mubr.bf16.mxu0 %v22970_v8 }
 0x42c   : > { %v18704_v51 = vadd.f32 %v12352_v24, %v18577_v53  ;;  %v23040_v24 = vld [vmem:[#allocation234_spill] sm:$0xff] }
 0x42d   : > { %v5879_v54 = vpop.f32.mrf.mxu1 }
 0x42e   : > { %v18707_v17 = vadd.f32 %v5879_v54, %v18585_v34  ;;  %v11453_v54 = vld [vmem:[%s13060_s26 + $0x218] sm:$0xff] }
 0x42f   : > { %v12353_v44 = vpop.f32.mrf.mxu1 }
 0x430   : > { %v18710_v26 = vadd.f32 %v12353_v44, %v18589_v25  ;;  %v11454_v44 = vld [vmem:[%s13060_s26 + $0x220] sm:$0xff] }
 0x431   : > { %v5882_v11 = vpop.f32.mrf.mxu1 }
 0x432   : > { %v18713_v22 = vadd.f32 %v5882_v11, %v18593_v57  ;;  %5149 = vmatmul.mubr.bf16.gmra.mxu0 %v18587_v47  ;;  %v7017_v47 = vsel %vm23029_vm10, %v18449_v20, 0  ;;  %vm23051_vm10 = vmmov %vm22796_vm0 }
 0x433   : > { %v12356_v40 = vpop.f32.mrf.mxu1  ;;  %12384 = vmatprep.mubr.msk.bf16.mxu0 %vm23028_vm11, %v23027_v4  ;;  %v11455_v4 = vld [vmem:[%s13060_s26 + $0x228] sm:$0xff]  ;;  %vm23049_vm11 = vmmov %vm22796_vm0 }
 0x434   : > { %v18719_v53 = vadd.f32 %v12356_v40, %v18596_v15  ;;  %v11481_v15 = vld [vmem:[%s20487_s4 + $0xe] sm:$0x3] }
 0x435   : > { %v5895_v34 = vpop.f32.mrf.mxu1  ;;  %12671 = vmatprep.subr.msk.bf16.mxu1 %vm23032_vm7, %v11481_v15  ;;  %v8161_v20 = vsel %vm23033_vm13, %v11481_v15, 0  ;;  %vm23054_vm7 = vmmov %vm22796_vm0 }
 0x436   : > { %v18722_v60 = vadd.f32 %v5895_v34, %v18603_v10  ;;  %12553 = vmatpush3.bf16.msra.mxu1 %v8161_v20  ;;  %v11456_v34 = vld [vmem:[%s13060_s26 + $0x230] sm:$0xff]  ;;  %v23046_v20 = vld [vmem:[#allocation218_spill] sm:$0xff]  ;;  %vm23055_vm13 = vmmov %vm22796_vm0 }
 0x437   : > { %v12357_v25 = vpop.f32.mrf.mxu1 }
 0x438   : > { %v18725_v27 = vadd.f32 %v12357_v25, %v18605_v61  ;;  %v23030_v61 = vld [vmem:[#allocation34_spill] sm:$0xff]  ;;  %v8097_v25 = vpack.c.bf16 %v11456_v34, %v11455_v4 }
 0x439   : > { %v5898_v57 = vpop.f32.mrf.mxu1 }
 0x43a   : > { %v18738_v10 = vadd.f32 %v5898_v57, %v18607_v35  ;;  %12385 = vmatmul.mubr.msk.bf16.vlgmr.msra.gmra.mxu0 %vm23031_vm1, %v23030_v61  ;;  %v8094_v35 = vpack.c.bf16 %v11450_v49, %v11449_v50  ;;  %v23044_v61 = vld [vmem:[#allocation157_spill] sm:$0xff]  ;;  %vm23053_vm1 = vmmov %vm22796_vm0 }
 0x43b   : > { %12451 = vmatpush3.bf16.msra.mxu0 %v7017_v47  ;;  %v12360_v0 = vpop.f32.mrf.mxu1  ;;  %12388 = vmatprep.mubr.msk.bf16.mxu0 %vm22796_vm0, %v23034_v29  ;;  %v11458_v29 = vld [vmem:[%s13060_s26 + $0x240] sm:$0xff] }
 0x43c   : > { %v18749_v32 = vadd.f32 %v12360_v0, %v18610_v21  ;;  %12670 = vmatprep.subr.msk.bf16.mxu0 %vm23035_vm2, %v18732_v48  ;;  %12554 = vmatprep.mubr.msk.bf16.mxu1 %vm23036_vm9, %v8094_v35  ;;  %v11457_v0 = vld [vmem:[%s13060_s26 + $0x238] sm:$0xff]  ;;  %v11459_v35 = vld [vmem:[%s13060_s26 + $0x248] sm:$0xff]  ;;  %vm23058_vm2 = vmmov %vm22796_vm0 }
 0x43d   : > { %v5911_v1 = vpop.f32.mrf.mxu1  ;;  %12555 = vmatmul.mubr.msk.bf16.vlgmr.msra.gmra.mxu1 %vm23037_vm8, %v8095_v23  ;;  %vm23059_vm9 = vmmov %vm22796_vm0 }
 0x43e   : > { %v18756_v39 = vadd.f32 %v5911_v1, %v18617_v55  ;;  %v11460_v1 = vld [vmem:[%s13060_s26 + $0x250] sm:$0xff]  ;;  %vm23060_vm8 = vmmov %vm22796_vm0 }
 0x43f   : > { %v12361_v21 = vpop.f32.mrf.mxu1  ;;  %v8099_v46 = vpack.c.bf16 %v11460_v1, %v11459_v35 }
 0x440   : > { %v18760_v9 = vadd.f32 %v12361_v21, %v18619_v62  ;;  %v8096_v62 = vpack.c.bf16 %v11454_v44, %v11453_v54  ;;  %v23050_v21 = vld [vmem:[#allocation208_spill] sm:$0xff] }
 0x441   : > { %v5914_v41 = vpop.f32.mrf.mxu1  ;;  %v11463_v44 = vld [vmem:[%s13060_s26 + $0x268] sm:$0xff] }
 0x442   : > { %v18764_v13 = vadd.f32 %v5914_v41, %v18621_v6  ;;  %12389 = vmatmul.mubr.msk.bf16.gmra.mxu0 %vm23039_vm14, %v23038_v7  ;;  %12558 = vmatprep.mubr.msk.bf16.mxu1 %vm23042_vm4, %v8096_v62  ;;  %v23052_v7 = vld [vmem:[#allocation236_spill] sm:$0xff]  ;;  %v11464_v62 = vld [vmem:[%s13060_s26 + $0x270] sm:$0xff]  ;;  %vm23062_vm14 = vmmov %vm22796_vm0 }
 0x443   : > { %v12364_v55 = vpop.f32.mrf.mxu1  ;;  %12392 = vmatprep.mubr.msk.bf16.mxu0 %vm23041_vm3, %v23040_v24  ;;  %v8101_v4 = vpack.c.bf16 %v11464_v62, %v11463_v44  ;;  %vm23064_vm3 = vmmov %vm22796_vm0 }
 0x444   : > { %v18773_v11 = vadd.f32 %v12364_v55, %v18624_v2  ;;  %v11462_v55 = vld [vmem:[%s13060_s26 + $0x260] sm:$0xff]  ;;  %vm23065_vm4 = vmmov %vm22796_vm0 }
 0x445   : > { %v5927_v40 = vpop.f32.mrf.mxu1  ;;  %12559 = vmatmul.mubr.msk.bf16.gmra.mxu1 %vm23043_vm15, %v8097_v25  ;;  %vm23066_vm15 = vmmov %vm22796_vm0 }
 0x446   : > { %v18778_v6 = vadd.f32 %v5927_v40, %v18631_v19 }
 0x447   : > { %v12365_v47 = vpop.f32.mrf.mxu1 }
 0x448   : > { %v18782_v57 = vadd.f32 %v12365_v47, %v18633_v3  ;;  %v8098_v3 = vpack.c.bf16 %v11458_v29, %v11457_v0  ;;  %v23056_v47 = vld [vmem:[#allocation231_spill] sm:$0xff]  ;;  %v11467_v29 = vld [vmem:[%s13060_s26 + $0x288] sm:$0xff] }
 0x449   : > { %v5930_v2 = vpop.f32.mrf.mxu1 }
 0x44a   : > { %v18786_v15 = vadd.f32 %v5930_v2, %v18635_v31  ;;  %12393 = vmatmul.mubr.msk.bf16.gmra.mxu0 %vm23045_vm6, %v23044_v61  ;;  %12562 = vmatprep.mubr.msk.bf16.mxu1 %vm23048_vm12, %v8098_v3  ;;  %v23057_v61 = vld [vmem:[#allocation60_spill] sm:$0xff]  ;;  %v11468_v3 = vld [vmem:[%s13060_s26 + $0x290] sm:$0xff]  ;;  %vm23068_vm6 = vmmov %vm22796_vm0 }
 0x44b   : > { %v12368_v19 = vpop.f32.mrf.mxu1  ;;  %12396 = vmatprep.mubr.msk.bf16.mxu0 %vm23047_vm5, %v23046_v20  ;;  %v8103_v35 = vpack.c.bf16 %v11468_v3, %v11467_v29  ;;  %vm23070_vm5 = vmmov %vm22796_vm0  ;;  %v11477_v29 = vld [vmem:[%s13060_s26 + $0x2d8] sm:$0xff]  ;;  %v11478_v3 = vld [vmem:[%s13060_s26 + $0x2e0] sm:$0xff] }
 0x44c   : > { %v18795_v50 = vadd.f32 %v12368_v19, %v18638_v37  ;;  %v11466_v19 = vld [vmem:[%s13060_s26 + $0x280] sm:$0xff]  ;;  %vm23071_vm12 = vmmov %vm22796_vm0 }
 0x44d   : > { %v5943_v49 = vpop.f32.mrf.mxu1  ;;  %12563 = vmatmul.mubr.msk.bf16.gmra.mxu1 %vm23049_vm11, %v8099_v46  ;;  %vm23072_vm11 = vmmov %vm22796_vm0 }
 0x44e   : > { %v18800_v31 = vadd.f32 %v5943_v49, %v18645_v33  ;;  %v11461_v33 = vld [vmem:[%s13060_s26 + $0x258] sm:$0xff] }
 0x44f   : > { %v12369_v56 = vpop.f32.mrf.mxu1 }
 0x450   : > { %v18804_v23 = vadd.f32 %v12369_v56, %v18647_v18  ;;  %v8100_v18 = vpack.c.bf16 %v11462_v55, %v11461_v33  ;;  %v23061_v56 = vld [vmem:[#allocation92_spill] sm:$0xff] }
 0x451   : > { %v18807_v37 = vpop.f32.mrf.mxu1 }
 0x452   : > { %12397 = vmatmul.mubr.msk.bf16.gmra.mxu0 %vm23051_vm10, %v23050_v21  ;;  %12566 = vmatprep.mubr.msk.bf16.mxu1 %vm23054_vm7, %v8100_v18  ;;  %v11471_v18 = vld [vmem:[%s13060_s26 + $0x2a8] sm:$0xff]  ;;  %vm23074_vm10 = vmmov %vm22796_vm0 }
 0x453   : > { %v12372_v41 = vpop.f32.mrf.mxu1  ;;  %12400 = vmatprep.mubr.msk.bf16.mxu0 %vm23053_vm1, %v23052_v7  ;;  %v11470_v7 = vld [vmem:[%s13060_s26 + $0x2a0] sm:$0xff]  ;;  %vm23076_vm1 = vmmov %vm22796_vm0 }
 0x454   : > { %v18816_v24 = vadd.f32 %v12372_v41, %v18653_v12  ;;  %v23063_v41 = vld [vmem:[#allocation115_spill] sm:$0xff]  ;;  %vm23077_vm7 = vmmov %vm22796_vm0 }
 0x455   : > { %v5959_v54 = vpop.f32.mrf.mxu1  ;;  %12567 = vmatmul.mubr.msk.bf16.gmra.mxu1 %vm23055_vm13, %v8101_v4  ;;  %vm23078_vm13 = vcmask 1041408  }
 0x456   : > { %v18821_v40 = vadd.f32 %v5959_v54, %v18660_v43  ;;  %v11465_v43 = vld [vmem:[%s13060_s26 + $0x278] sm:$0xff]  ;;  %v11472_v54 = vld [vmem:[%s13060_s26 + $0x2b0] sm:$0xff] }
 0x457   : > { %v12373_v34 = vpop.f32.mrf.mxu1  ;;  %v8105_v62 = vpack.c.bf16 %v11472_v54, %v11471_v18  ;;  %v23080_v18 = vld [vmem:[#allocation8_spill] sm:$0xff]  ;;  %v23082_v54 = vld [vmem:[#allocation9_spill] sm:$0xff] }
 0x458   : > { %v18825_v25 = vadd.f32 %v12373_v34, %v18667_v30  ;;  %v8102_v30 = vpack.c.bf16 %v11466_v19, %v11465_v43  ;;  %v11475_v43 = vld [vmem:[%s13060_s26 + $0x2c8] sm:$0xff]  ;;  %v11476_v19 = vld [vmem:[%s13060_s26 + $0x2d0] sm:$0xff] }
 0x459   : > { %v18828_v12 = vpop.f32.mrf.mxu1 }
 0x45a   : > { %12401 = vmatmul.mubr.msk.bf16.gmra.mxu0 %vm22796_vm0, %v23056_v47  ;;  %12570 = vmatprep.mubr.msk.bf16.mxu1 %vm23059_vm9, %v8102_v30  ;;  %v23069_v47 = vld [vmem:[#allocation116_spill] sm:$0xff]  ;;  %v8107_v30 = vpack.c.bf16 %v11476_v19, %v11475_v43  ;;  %vm23083_vm9 = vmmov %vm22796_vm0 }
 0x45b   : > { %v12376_v2 = vpop.f32.mrf.mxu1  ;;  %12404 = vmatprep.mubr.msk.bf16.mxu0 %vm23058_vm2, %v23057_v61  ;;  %vm23081_vm2 = vmmov %vm22796_vm0 }
 0x45c   : > { %v18837_v20 = vadd.f32 %v12376_v2, %v18678_v38  ;;  %v11474_v2 = vld [vmem:[%s13060_s26 + $0x2c0] sm:$0xff] }
 0x45d   : > { %v5975_v0 = vpop.f32.mrf.mxu1  ;;  %12571 = vmatmul.mubr.msk.bf16.gmra.mxu1 %vm23060_vm8, %v8103_v35  ;;  %v8108_v35 = vpack.c.bf16 %v11478_v3, %v11477_v29  ;;  %vm23085_vm8 = vmmov %vm23078_vm13 }
 0x45e   : > { %v18842_v49 = vadd.f32 %v5975_v0, %v18683_v58  ;;  %v11469_v58 = vld [vmem:[%s13060_s26 + $0x298] sm:$0xff]  ;;  %v23075_v0 = vld [vmem:[#allocation7_spill] sm:$0xff] }
 0x45f   : > { %v12377_v1 = vpop.f32.mrf.mxu1 }
 0x460   : > { %v18846_v46 = vadd.f32 %v12377_v1, %v18685_v36  ;;  %v8104_v36 = vpack.c.bf16 %v11470_v7, %v11469_v58  ;;  %v11479_v1 = vld [vmem:[%s13060_s26 + $0x2e8] sm:$0xff]  ;;  %v7801_v58 = vsel %vm23078_vm13, %v18732_v48, 0  ;;  %v18897_v7 = vld [vmem:[%s20487_s4 + $0x10] sm:$0x3]  ;;  %vm23135_vm13 = vmmov %vm22796_vm0 }
 0x461   : > { %v18849_v38 = vpop.f32.mrf.mxu1 }
 0x462   : > { %12405 = vmatmul.mubr.msk.bf16.gmra.mxu0 %vm23062_vm14, %v23061_v56  ;;  %12574 = vmatprep.mubr.msk.bf16.mxu1 %vm23065_vm4, %v8104_v36  ;;  %v11480_v56 = vld [vmem:[%s13060_s26 + $0x2f0] sm:$0xff]  ;;  %vm23090_vm14 = vmmov %vm22796_vm0 }
 0x463   : > { %v12380_v21 = vpop.f32.mrf.mxu1  ;;  %12408 = vmatprep.mubr.msk.bf16.mxu0 %vm23064_vm3, %v23063_v41  ;;  %v8109_v41 = vpack.c.bf16 %v11480_v56, %v11479_v1  ;;  %vm23092_vm3 = vmmov %vm22796_vm0  ;;  %v23099_v1 = vld [vmem:[#allocation13_spill] sm:$0xff] }
 0x464   : > { %v18858_v33 = vadd.f32 %v12380_v21, %v18690_v42  ;;  %v23067_v42 = vld [vmem:[#allocation93_spill] sm:$0xff]  ;;  %vm23098_vm4 = vmmov %vm22796_vm0 }
 0x465   : > { %v5991_v55 = vpop.f32.mrf.mxu1  ;;  %12575 = vmatmul.mubr.msk.bf16.gmra.mxu1 %vm23066_vm15, %v8105_v62  ;;  %vm23100_vm15 = vmmov %vm22796_vm0 }
 0x466   : > { %v18863_v44 = vadd.f32 %v5991_v55, %v18695_v16  ;;  %v11473_v16 = vld [vmem:[%s13060_s26 + $0x2b8] sm:$0xff]  ;;  %s12925_s26 = smov [#allocation4]  }
 0x467   : > { %v12381_v4 = vpop.f32.mrf.mxu1  ;;  %v8106_v61 = vpack.c.bf16 %v11474_v2, %v11473_v16  ;;  %v23089_v2 = vld [vmem:[#allocation10_spill] sm:$0xff] }
 0x468   : > { %v18867_v34 = vadd.f32 %v12381_v4, %v18697_v14  ;;  %v23073_v14 = vld [vmem:[#allocation193_spill] sm:$0xff] }
 0x469   : > { %12578 = vmatprep.mubr.msk.bf16.mxu1 %vm23071_vm12, %v8106_v61  ;;  %v18888_v21 = vpop.f32.mrf.mxu1  ;;  %v23091_v61 = vld [vmem:[#allocation11_spill] sm:$0xff]  ;;  %vm23114_vm12 = vmmov %vm22796_vm0 }
 0x46a   : > { %12409 = vmatmul.mubr.msk.bf16.gmra.mxu0 %vm23068_vm6, %v23067_v42  ;;  %vm23106_vm6 = vmmov %vm22796_vm0 }
 0x46b   : > { %12412 = vmatprep.mubr.msk.bf16.mxu0 %vm23070_vm5, %v23069_v47  ;;  %v18900_v36 = vpop.f32.mrf.mxu1  ;;  %vm23108_vm5 = vmmov %vm22796_vm0 }
 0x46d   : > { %12579 = vmatmul.mubr.msk.bf16.gmra.mxu1 %vm23072_vm11, %v8107_v30  ;;  %v18912_v62 = vpop.f32.mrf.mxu1  ;;  %vm23116_vm11 = vmmov %vm22796_vm0 }
 0x46e   : > { %12582 = vmatprep.mubr.msk.bf16.mxu1 %vm23077_vm7, %v8108_v35  ;;  %v23097_v35 = vld [vmem:[#allocation12_spill] sm:$0xff]  ;;  %vm23133_vm7 = vmmov %vm22796_vm0 }
 0x46f   : > { %v18918_v47 = vpop.f32.mrf.mxu1 }
 0x471   : > { %v18928_v19 = vpop.f32.mrf.mxu1 }
 0x472   : > { %12413 = vmatmul.mubr.msk.bf16.gmra.mxu0 %vm23074_vm10, %v23073_v14  ;;  %vm23123_vm10 = vmmov %vm22796_vm0 }
 0x473   : > { %12452 = vmatprep.mubr.msk.bf16.mxu0 %vm23076_vm1, %v23075_v0  ;;  %v18934_v29 = vpop.f32.mrf.mxu1  ;;  %vm23125_vm1 = vmmov %vm22796_vm0 }
 0x475   : > { %12583 = vmatmul.mubr.msk.bf16.gmra.mxu1 %vm22796_vm0, %v8109_v41  ;;  %v18944_v41 = vpop.f32.mrf.mxu1 }
 0x476   : > { %9121 = vmatprep.mubr.bf16.mxu1 %v22970_v8 }
 0x47a   : > { %v18902_v55 = vpop.f32.mrf.mxu0  ;;  %12453 = vmatmul.mubr.msk.bf16.vlgmr.msra.gmra.mxu0 %vm23081_vm2, %v23080_v18  ;;  %vm23144_vm2 = vmmov %vm22796_vm0 }
 0x47b   : > { %23079 = vst [vmem:[#allocation72_spill] sm:$0xff] %v18902_v55  ;;  %12519 = vmatpush3.bf16.msra.mxu0 %v7801_v58  ;;  %12456 = vmatprep.mubr.msk.bf16.mxu0 %vm23083_vm9, %v23082_v54  ;;  %vm23149_vm9 = vmmov %vm23085_vm8 }
 0x47c   : > { %v18908_v48 = vpop.f32.mrf.mxu0  ;;  %12672 = vmatprep.subr.msk.bf16.mxu0 %vm23085_vm8, %v18897_v7  ;;  %vm23153_vm8 = vmmov %vm22796_vm0 }
 0x47d   : > { %23084 = vst [vmem:[#allocation209_spill] sm:$0xff] %v18908_v48  ;;  %v23113_v48 = vld [vmem:[#allocation16_spill] sm:$0xff] }
 0x47e   : > { %v18914_v4 = vpop.f32.mrf.mxu0 }
 0x47f   : > { %23086 = vst [vmem:[#allocation65_spill] sm:$0xff] %v18914_v4 }
 0x480   : > { %v18916_v42 = vpop.f32.mrf.mxu0 }
 0x481   : > { %23087 = vst [vmem:[#allocation68_spill] sm:$0xff] %v18916_v42 }
 0x482   : > { %v18920_v16 = vpop.f32.mrf.mxu0  ;;  %12457 = vmatmul.mubr.msk.bf16.gmra.mxu0 %vm23090_vm14, %v23089_v2  ;;  %vm23155_vm14 = vmmov %vm22796_vm0 }
 0x483   : > { %23088 = vst [vmem:[#allocation119_spill] sm:$0xff] %v18920_v16  ;;  %12460 = vmatprep.mubr.msk.bf16.mxu0 %vm23092_vm3, %v23091_v61  ;;  %vm23157_vm3 = vmmov %vm23149_vm9 }
 0x484   : > { %v18926_v43 = vpop.f32.mrf.mxu0 }
 0x485   : > { %23093 = vst [vmem:[#allocation31_spill] sm:$0xff] %v18926_v43  ;;  %v23105_v43 = vld [vmem:[#allocation14_spill] sm:$0xff] }
 0x486   : > { %v18930_v30 = vpop.f32.mrf.mxu0 }
 0x487   : > { %23094 = vst [vmem:[#allocation99_spill] sm:$0xff] %v18930_v30  ;;  %v18950_v30 = vpop.f32.mrf.mxu1 }
 0x488   : > { %v18932_v14 = vpop.f32.mrf.mxu0 }
 0x489   : > { %23095 = vst [vmem:[#allocation85_spill] sm:$0xff] %v18932_v14  ;;  %v18960_v42 = vpop.f32.mrf.mxu1 }
 0x48a   : > { %v18936_v3 = vpop.f32.mrf.mxu0  ;;  %12461 = vmatmul.mubr.msk.bf16.gmra.mxu0 %vm23098_vm4, %v23097_v35  ;;  %vm23164_vm4 = vmmov %vm22796_vm0 }
 0x48b   : > { %23096 = vst [vmem:[#allocation82_spill] sm:$0xff] %v18936_v3  ;;  %12464 = vmatprep.mubr.msk.bf16.mxu0 %vm23100_vm15, %v23099_v1  ;;  %v23107_v3 = vld [vmem:[#allocation15_spill] sm:$0xff]  ;;  %vm23166_vm15 = vmmov %vm22796_vm0 }
 0x48c   : > { %v18942_v56 = vpop.f32.mrf.mxu0 }
 0x48d   : > { %23101 = vst [vmem:[#allocation94_spill] sm:$0xff] %v18942_v56 }
 0x48e   : > { %v18946_v58 = vpop.f32.mrf.mxu0 }
 0x48f   : > { %23102 = vst [vmem:[#allocation191_spill] sm:$0xff] %v18946_v58  ;;  %v18966_v58 = vpop.f32.mrf.mxu1 }
 0x490   : > { %v18948_v28 = vpop.f32.mrf.mxu0 }
 0x491   : > { %23103 = vst [vmem:[#allocation169_spill] sm:$0xff] %v18948_v28  ;;  %v18976_v63 = vpop.f32.mrf.mxu1 }
 0x492   : > { %v18952_v14 = vpop.f32.mrf.mxu0  ;;  %12465 = vmatmul.mubr.msk.bf16.gmra.mxu0 %vm23106_vm6, %v23105_v43  ;;  %vm23174_vm6 = vmmov %vm22796_vm0 }
 0x493   : > { %23104 = vst [vmem:[#allocation102_spill] sm:$0xff] %v18952_v14  ;;  %12468 = vmatprep.mubr.msk.bf16.mxu0 %vm23108_vm5, %v23107_v3  ;;  %v23115_v14 = vld [vmem:[#allocation17_spill] sm:$0xff]  ;;  %v23122_v3 = vld [vmem:[#allocation18_spill] sm:$0xff]  ;;  %vm23176_vm5 = vmmov %vm22796_vm0 }
 0x494   : > { %v18958_v16 = vpop.f32.mrf.mxu0 }
 0x495   : > { %23109 = vst [vmem:[#allocation175_spill] sm:$0xff] %v18958_v16 }
 0x496   : > { %v18962_v56 = vpop.f32.mrf.mxu0 }
 0x497   : > { %23110 = vst [vmem:[#allocation112_spill] sm:$0xff] %v18962_v56  ;;  %v18982_v56 = vpop.f32.mrf.mxu1 }
 0x498   : > { %v18964_v4 = vpop.f32.mrf.mxu0  ;;  %23120 = vst [vmem:[#allocation124_spill] sm:$0xff] %v18982_v56  ;;  %v23132_v56 = vld [vmem:[#allocation20_spill] sm:$0xff] }
 0x499   : > { %23111 = vst [vmem:[#allocation174_spill] sm:$0xff] %v18964_v4 }
 0x49a   : > { %v18968_v28 = vpop.f32.mrf.mxu0  ;;  %12469 = vmatmul.mubr.msk.bf16.gmra.mxu0 %vm23114_vm12, %v23113_v48  ;;  %vm23184_vm12 = vmmov %vm22796_vm0 }
 0x49b   : > { %23112 = vst [vmem:[#allocation170_spill] sm:$0xff] %v18968_v28  ;;  %12472 = vmatprep.mubr.msk.bf16.mxu0 %vm23116_vm11, %v23115_v14  ;;  %v23124_v28 = vld [vmem:[#allocation19_spill] sm:$0xff]  ;;  %v18992_v14 = vpop.f32.mrf.mxu1  ;;  %vm23186_vm11 = vmmov %vm22796_vm0 }
 0x49c   : > { %v18974_v55 = vpop.f32.mrf.mxu0  ;;  %23127 = vst [vmem:[#allocation142_spill] sm:$0xff] %v18992_v14 }
 0x49d   : > { %23117 = vst [vmem:[#allocation28_spill] sm:$0xff] %v18974_v55 }
 0x49e   : > { %v18978_v16 = vpop.f32.mrf.mxu0 }
 0x49f   : > { %23118 = vst [vmem:[#allocation30_spill] sm:$0xff] %v18978_v16  ;;  %v18998_v16 = vpop.f32.mrf.mxu1 }
 0x4a0   : > { %v18980_v8 = vpop.f32.mrf.mxu0  ;;  %23130 = vst [vmem:[#allocation185_spill] sm:$0xff] %v18998_v16  ;;  %v23142_v16 = vld [vmem:[#allocation22_spill] sm:$0xff] }
 0x4a1   : > { %23119 = vst [vmem:[#allocation242_spill] sm:$0xff] %v18980_v8 }
 0x4a2   : > { %v18984_v4 = vpop.f32.mrf.mxu0  ;;  %12473 = vmatmul.mubr.msk.bf16.gmra.mxu0 %vm23123_vm10, %v23122_v3  ;;  %vm23194_vm10 = vmmov %vm22796_vm0 }
 0x4a3   : > { %23121 = vst [vmem:[#allocation179_spill] sm:$0xff] %v18984_v4  ;;  %12476 = vmatprep.mubr.msk.bf16.mxu0 %vm23125_vm1, %v23124_v28  ;;  %v23134_v4 = vld [vmem:[#allocation21_spill] sm:$0xff]  ;;  %v19008_v28 = vpop.f32.mrf.mxu1  ;;  %vm23196_vm1 = vmmov %vm22796_vm0 }
 0x4a4   : > { %v18990_v48 = vpop.f32.mrf.mxu0  ;;  %23137 = vst [vmem:[#allocation25_spill] sm:$0xff] %v19008_v28 }
 0x4a5   : > { %23126 = vst [vmem:[#allocation164_spill] sm:$0xff] %v18990_v48 }
 0x4a6   : > { %v18994_v55 = vpop.f32.mrf.mxu0 }
 0x4a7   : > { %23128 = vst [vmem:[#allocation136_spill] sm:$0xff] %v18994_v55  ;;  %v19014_v55 = vpop.f32.mrf.mxu1 }
 0x4a8   : > { %v18996_v43 = vpop.f32.mrf.mxu0  ;;  %23140 = vst [vmem:[#allocation241_spill] sm:$0xff] %v19014_v55 }
 0x4a9   : > { %23129 = vst [vmem:[#allocation75_spill] sm:$0xff] %v18996_v43 }
 0x4aa   : > { %v19000_v8 = vpop.f32.mrf.mxu0  ;;  %12477 = vmatmul.mubr.msk.bf16.gmra.mxu0 %vm23133_vm7, %v23132_v56  ;;  %vm23204_vm7 = vmmov %vm22796_vm0 }
 0x4ab   : > { %23131 = vst [vmem:[#allocation26_spill] sm:$0xff] %v19000_v8  ;;  %12480 = vmatprep.mubr.msk.bf16.mxu0 %vm23135_vm13, %v23134_v4  ;;  %v23143_v8 = vld [vmem:[#allocation46_spill] sm:$0xff]  ;;  %v19024_v4 = vpop.f32.mrf.mxu1  ;;  %vm23206_vm13 = vmmov %vm22796_vm0 }
 0x4ac   : > { %v19006_v3 = vpop.f32.mrf.mxu0  ;;  %23146 = vst [vmem:[#allocation120_spill] sm:$0xff] %v19024_v4 }
 0x4ad   : > { %23136 = vst [vmem:[#allocation84_spill] sm:$0xff] %v19006_v3 }
 0x4ae   : > { %v19010_v48 = vpop.f32.mrf.mxu0 }
 0x4af   : > { %23138 = vst [vmem:[#allocation244_spill] sm:$0xff] %v19010_v48  ;;  %v19037_v48 = vpop.f32.mrf.mxu1 }
 0x4b0   : > { %v19012_v14 = vpop.f32.mrf.mxu0  ;;  %23150 = vst [vmem:[#allocation251_spill] sm:$0xff] %v19037_v48 }
 0x4b1   : > { %23139 = vst [vmem:[#allocation248_spill] sm:$0xff] %v19012_v14  ;;  %v8553_v14 = vsel %vm23149_vm9, %v18897_v7, 0  ;;  %v19049_v7 = vpop.f32.mrf.mxu1  ;;  %vm23223_vm9 = vmmov %vm22796_vm0 }
 0x4b2   : > { %v19016_v43 = vpop.f32.mrf.mxu0  ;;  %12481 = vmatmul.mubr.msk.bf16.gmra.mxu0 %vm22796_vm0, %v23142_v16  ;;  %23158 = vst [vmem:[#allocation100_spill] sm:$0xff] %v19049_v7 }
 0x4b3   : > { %23141 = vst [vmem:[#allocation95_spill] sm:$0xff] %v19016_v43  ;;  %12520 = vmatprep.mubr.msk.bf16.mxu0 %vm23144_vm2, %v23143_v8  ;;  %v19035_v43 = vld [vmem:[%s20488_s5 + $0x8] sm:$0x3]  ;;  %v23152_v8 = vld [vmem:[#allocation33_spill] sm:$0xff]  ;;  %v19055_v48 = vpop.f32.mrf.mxu1  ;;  %vm23215_vm2 = vmmov %vm22796_vm0 }
 0x4b4   : > { %v19022_v56 = vpop.f32.mrf.mxu0  ;;  %23161 = vst [vmem:[#allocation152_spill] sm:$0xff] %v19055_v48  ;;  %v23173_v48 = vld [vmem:[#allocation52_spill] sm:$0xff] }
 0x4b5   : > { %23145 = vst [vmem:[#allocation247_spill] sm:$0xff] %v19022_v56  ;;  %v23154_v56 = vld [vmem:[#allocation140_spill] sm:$0xff] }
 0x4b6   : > { %v19026_v3 = vpop.f32.mrf.mxu0 }
 0x4b7   : > { %23147 = vst [vmem:[#allocation62_spill] sm:$0xff] %v19026_v3 }
 0x4b8   : > { %v19028_v28 = vpop.f32.mrf.mxu0 }
 0x4b9   : > { %23148 = vst [vmem:[#allocation131_spill] sm:$0xff] %v19028_v28 }
 0x4ba   : > { %v19039_v16 = vpop.f32.mrf.mxu0  ;;  %12521 = vmatmul.mubr.msk.bf16.vlgmr.msra.gmra.mxu0 %vm23153_vm8, %v23152_v8  ;;  %v23163_v8 = vld [vmem:[#allocation139_spill] sm:$0xff]  ;;  %vm23225_vm8 = vmmov %vm22796_vm0 }
 0x4bb   : > { %23151 = vst [vmem:[#allocation80_spill] sm:$0xff] %v19039_v16  ;;  %12587 = vmatpush3.bf16.msra.mxu0 %v8553_v14  ;;  %12524 = vmatprep.mubr.msk.bf16.mxu0 %vm23155_vm14, %v23154_v56  ;;  %v23165_v14 = vld [vmem:[#allocation166_spill] sm:$0xff]  ;;  %vm23230_vm14 = vmmov %vm23157_vm3 }
 0x4bc   : > { %v19045_v28 = vpop.f32.mrf.mxu0  ;;  %12673 = vmatprep.subr.msk.bf16.mxu0 %vm23157_vm3, %v19035_v43  ;;  %vm23233_vm3 = vmmov %vm22796_vm0 }
 0x4bd   : > { %23156 = vst [vmem:[#allocation71_spill] sm:$0xff] %v19045_v28  ;;  %v19065_v28 = vpop.f32.mrf.mxu1 }
 0x4be   : > { %v19051_v3 = vpop.f32.mrf.mxu0  ;;  %23168 = vst [vmem:[#allocation212_spill] sm:$0xff] %v19065_v28 }
 0x4bf   : > { %23159 = vst [vmem:[#allocation216_spill] sm:$0xff] %v19051_v3  ;;  %v19071_v3 = vpop.f32.mrf.mxu1 }
 0x4c0   : > { %v19053_v4 = vpop.f32.mrf.mxu0  ;;  %23171 = vst [vmem:[#allocation213_spill] sm:$0xff] %v19071_v3  ;;  %v23183_v3 = vld [vmem:[#allocation167_spill] sm:$0xff] }
 0x4c1   : > { %23160 = vst [vmem:[#allocation246_spill] sm:$0xff] %v19053_v4 }
 0x4c2   : > { %v19057_v16 = vpop.f32.mrf.mxu0  ;;  %12525 = vmatmul.mubr.msk.bf16.gmra.mxu0 %vm23164_vm4, %v23163_v8  ;;  %vm23235_vm4 = vmmov %vm22796_vm0 }
 0x4c3   : > { %23162 = vst [vmem:[#allocation226_spill] sm:$0xff] %v19057_v16  ;;  %12528 = vmatprep.mubr.msk.bf16.mxu0 %vm23166_vm15, %v23165_v14  ;;  %v23175_v16 = vld [vmem:[#allocation220_spill] sm:$0xff]  ;;  %v19081_v14 = vpop.f32.mrf.mxu1  ;;  %vm23238_vm15 = vmmov %vm22796_vm0 }
 0x4c4   : > { %v19063_v56 = vpop.f32.mrf.mxu0  ;;  %23178 = vst [vmem:[#allocation176_spill] sm:$0xff] %v19081_v14 }
 0x4c5   : > { %23167 = vst [vmem:[#allocation237_spill] sm:$0xff] %v19063_v56 }
 0x4c6   : > { %v19067_v55 = vpop.f32.mrf.mxu0 }
 0x4c7   : > { %23169 = vst [vmem:[#allocation230_spill] sm:$0xff] %v19067_v55  ;;  %v19087_v55 = vpop.f32.mrf.mxu1 }
 0x4c8   : > { %v19069_v7 = vpop.f32.mrf.mxu0  ;;  %23181 = vst [vmem:[#allocation192_spill] sm:$0xff] %v19087_v55  ;;  %v23193_v55 = vld [vmem:[#allocation221_spill] sm:$0xff] }
 0x4c9   : > { %23170 = vst [vmem:[#allocation147_spill] sm:$0xff] %v19069_v7 }
 0x4ca   : > { %v19073_v4 = vpop.f32.mrf.mxu0  ;;  %12529 = vmatmul.mubr.msk.bf16.gmra.mxu0 %vm23174_vm6, %v23173_v48  ;;  %vm23240_vm6 = vmmov %vm22796_vm0 }
 0x4cb   : > { %23172 = vst [vmem:[#allocation250_spill] sm:$0xff] %v19073_v4  ;;  %12532 = vmatprep.mubr.msk.bf16.mxu0 %vm23176_vm5, %v23175_v16  ;;  %v23185_v4 = vld [vmem:[#allocation111_spill] sm:$0xff]  ;;  %v19097_v16 = vpop.f32.mrf.mxu1  ;;  %vm23244_vm5 = vmmov %vm22796_vm0 }
 0x4cc   : > { %v19079_v8 = vpop.f32.mrf.mxu0  ;;  %23188 = vst [vmem:[#allocation64_spill] sm:$0xff] %v19097_v16 }
 0x4cd   : > { %23177 = vst [vmem:[#allocation190_spill] sm:$0xff] %v19079_v8 }
 0x4ce   : > { %v19083_v56 = vpop.f32.mrf.mxu0 }
 0x4cf   : > { %23179 = vst [vmem:[#allocation41_spill] sm:$0xff] %v19083_v56  ;;  %v19103_v56 = vpop.f32.mrf.mxu1 }
 0x4d0   : > { %v19085_v28 = vpop.f32.mrf.mxu0  ;;  %23191 = vst [vmem:[#allocation126_spill] sm:$0xff] %v19103_v56  ;;  %v23203_v56 = vld [vmem:[#allocation149_spill] sm:$0xff] }
 0x4d1   : > { %23180 = vst [vmem:[#allocation44_spill] sm:$0xff] %v19085_v28 }
 0x4d2   : > { %v19089_v7 = vpop.f32.mrf.mxu0  ;;  %12533 = vmatmul.mubr.msk.bf16.gmra.mxu0 %vm23184_vm12, %v23183_v3  ;;  %vm23246_vm12 = vmmov %vm22796_vm0 }
 0x4d3   : > { %23182 = vst [vmem:[#allocation168_spill] sm:$0xff] %v19089_v7  ;;  %12536 = vmatprep.mubr.msk.bf16.mxu0 %vm23186_vm11, %v23185_v4  ;;  %v23195_v7 = vld [vmem:[#allocation156_spill] sm:$0xff]  ;;  %v19113_v4 = vpop.f32.mrf.mxu1  ;;  %vm23250_vm11 = vmmov %vm22796_vm0 }
 0x4d4   : > { %v19095_v48 = vpop.f32.mrf.mxu0  ;;  %23198 = vst [vmem:[#allocation48_spill] sm:$0xff] %v19113_v4 }
 0x4d5   : > { %23187 = vst [vmem:[#allocation50_spill] sm:$0xff] %v19095_v48 }
 0x4d6   : > { %v19099_v8 = vpop.f32.mrf.mxu0 }
 0x4d7   : > { %23189 = vst [vmem:[#allocation105_spill] sm:$0xff] %v19099_v8  ;;  %v19119_v8 = vpop.f32.mrf.mxu1 }
 0x4d8   : > { %v19101_v14 = vpop.f32.mrf.mxu0  ;;  %23201 = vst [vmem:[#allocation29_spill] sm:$0xff] %v19119_v8  ;;  %v23213_v8 = vld [vmem:[#allocation178_spill] sm:$0xff] }
 0x4d9   : > { %23190 = vst [vmem:[#allocation128_spill] sm:$0xff] %v19101_v14 }
 0x4da   : > { %v19105_v28 = vpop.f32.mrf.mxu0  ;;  %12537 = vmatmul.mubr.msk.bf16.gmra.mxu0 %vm23194_vm10, %v23193_v55  ;;  %vm23252_vm10 = vmmov %vm22796_vm0 }
 0x4db   : > { %23192 = vst [vmem:[#allocation151_spill] sm:$0xff] %v19105_v28  ;;  %12540 = vmatprep.mubr.msk.bf16.mxu0 %vm23196_vm1, %v23195_v7  ;;  %v23205_v28 = vld [vmem:[#allocation199_spill] sm:$0xff]  ;;  %v19129_v7 = vpop.f32.mrf.mxu1  ;;  %vm23256_vm1 = vmmov %vm22796_vm0 }
 0x4dc   : > { %v19111_v3 = vpop.f32.mrf.mxu0  ;;  %23208 = vst [vmem:[#allocation74_spill] sm:$0xff] %v19129_v7 }
 0x4dd   : > { %23197 = vst [vmem:[#allocation145_spill] sm:$0xff] %v19111_v3 }
 0x4de   : > { %v19115_v48 = vpop.f32.mrf.mxu0 }
 0x4df   : > { %23199 = vst [vmem:[#allocation188_spill] sm:$0xff] %v19115_v48  ;;  %v19135_v48 = vpop.f32.mrf.mxu1 }
 0x4e0   : > { %v19117_v16 = vpop.f32.mrf.mxu0  ;;  %23211 = vst [vmem:[#allocation229_spill] sm:$0xff] %v19135_v48  ;;  %v23222_v48 = vld [vmem:[#allocation196_spill] sm:$0xff] }
 0x4e1   : > { %23200 = vst [vmem:[#allocation87_spill] sm:$0xff] %v19117_v16 }
 0x4e2   : > { %v19121_v14 = vpop.f32.mrf.mxu0  ;;  %12541 = vmatmul.mubr.msk.bf16.gmra.mxu0 %vm23204_vm7, %v23203_v56  ;;  %vm23258_vm7 = vmmov %vm22796_vm0 }
 0x4e3   : > { %23202 = vst [vmem:[#allocation90_spill] sm:$0xff] %v19121_v14  ;;  %12544 = vmatprep.mubr.msk.bf16.mxu0 %vm23206_vm13, %v23205_v28  ;;  %v23214_v14 = vld [vmem:[#allocation144_spill] sm:$0xff]  ;;  %v19145_v28 = vpop.f32.mrf.mxu1  ;;  %vm23262_vm13 = vmmov %vm22796_vm0 }
 0x4e4   : > { %v19127_v55 = vpop.f32.mrf.mxu0  ;;  %23217 = vst [vmem:[#allocation32_spill] sm:$0xff] %v19145_v28 }
 0x4e5   : > { %23207 = vst [vmem:[#allocation40_spill] sm:$0xff] %v19127_v55 }
 0x4e6   : > { %v19131_v3 = vpop.f32.mrf.mxu0 }
 0x4e7   : > { %23209 = vst [vmem:[#allocation162_spill] sm:$0xff] %v19131_v3  ;;  %v19151_v3 = vpop.f32.mrf.mxu1 }
 0x4e8   : > { %v19133_v4 = vpop.f32.mrf.mxu0  ;;  %23220 = vst [vmem:[#allocation55_spill] sm:$0xff] %v19151_v3  ;;  %v23232_v3 = vld [vmem:[#allocation36_spill] sm:$0xff] }
 0x4e9   : > { %23210 = vst [vmem:[#allocation215_spill] sm:$0xff] %v19133_v4 }
 0x4ea   : > { %v19137_v16 = vpop.f32.mrf.mxu0  ;;  %12545 = vmatmul.mubr.msk.bf16.gmra.mxu0 %vm22796_vm0, %v23213_v8 }
 0x4eb   : > { %23212 = vst [vmem:[#allocation81_spill] sm:$0xff] %v19137_v16  ;;  %12548 = vmatprep.mubr.msk.bf16.mxu0 %vm23215_vm2, %v23214_v14  ;;  %v23224_v16 = vld [vmem:[#allocation91_spill] sm:$0xff]  ;;  %v19161_v14 = vpop.f32.mrf.mxu1  ;;  %vm23266_vm2 = vmmov %vm22796_vm0 }
 0x4ec   : > { %v19143_v56 = vpop.f32.mrf.mxu0  ;;  %23227 = vst [vmem:[#allocation184_spill] sm:$0xff] %v19161_v14 }
 0x4ed   : > { %23216 = vst [vmem:[#allocation106_spill] sm:$0xff] %v19143_v56 }
 0x4ee   : > { %v19147_v55 = vpop.f32.mrf.mxu0 }
 0x4ef   : > { %23218 = vst [vmem:[#allocation200_spill] sm:$0xff] %v19147_v55  ;;  %v19169_v55 = vpop.f32.mrf.mxu1 }
 0x4f0   : > { %v19149_v7 = vpop.f32.mrf.mxu0  ;;  %23231 = vst [vmem:[#allocation228_spill] sm:$0xff] %v19169_v55 }
 0x4f1   : > { %23219 = vst [vmem:[#allocation201_spill] sm:$0xff] %v19149_v7  ;;  %v9413_v7 = vsel %vm23230_vm14, %v19035_v43, 0  ;;  %vm23272_vm14 = vmmov %vm22796_vm0 }
 0x4f2   : > { %v19153_v4 = vpop.f32.mrf.mxu0  ;;  %12549 = vmatmul.mubr.msk.bf16.gmra.mxu0 %vm23223_vm9, %v23222_v48  ;;  %vm23268_vm9 = vmmov %vm22796_vm0 }
 0x4f3   : > { %23221 = vst [vmem:[#allocation203_spill] sm:$0xff] %v19153_v4  ;;  %12588 = vmatprep.mubr.msk.bf16.mxu0 %vm23225_vm8, %v23224_v16  ;;  %v23234_v16 = vld [vmem:[#allocation39_spill] sm:$0xff]  ;;  %vm23271_vm8 = vmmov %vm22796_vm0 }
 0x4f4   : > { %v19159_v8 = vpop.f32.mrf.mxu0 }
 0x4f5   : > { %23226 = vst [vmem:[#allocation113_spill] sm:$0xff] %v19159_v8 }
 0x4f6   : > { %v19163_v56 = vpop.f32.mrf.mxu0 }
 0x4f7   : > { %23228 = vst [vmem:[#allocation130_spill] sm:$0xff] %v19163_v56 }
 0x4f8   : > { %v19165_v28 = vpop.f32.mrf.mxu0 }
 0x4f9   : > { %23229 = vst [vmem:[#allocation177_spill] sm:$0xff] %v19165_v28  ;;  %v19181_v28 = vpop.f32.mrf.mxu1 }
 0x4fa   : > { %v12386_v4 = vpop.f32.mrf.mxu0  ;;  %12589 = vmatmul.mubr.msk.bf16.vlgmr.msra.gmra.mxu0 %vm23233_vm3, %v23232_v3  ;;  %vm23275_vm3 = vmmov %vm22796_vm0 }
 0x4fb   : > { %v19174_v48 = vadd.f32 %v12386_v4, %v18704_v51  ;;  %12621 = vmatpush3.bf16.msra.mxu0 %v9413_v7  ;;  %12592 = vmatprep.mubr.msk.bf16.mxu0 %vm23235_vm4, %v23234_v16  ;;  %v19189_v51 = vpop.f32.mrf.mxu1  ;;  %v23237_v7 = vld [vmem:[#allocation73_spill] sm:$0xff]  ;;  %vm23276_vm4 = vmmov %vm22796_vm0 }
 0x4fc   : > { %v6399_v8 = vpop.f32.mrf.mxu0  ;;  %23236 = vst [vmem:[#allocation235_spill] sm:$0xff] %v19189_v51 }
 0x4fd   : > { %v19179_v56 = vadd.f32 %v6399_v8, %v18707_v17  ;;  %v23239_v17 = vld [vmem:[#allocation45_spill] sm:$0xff] }
 0x4fe   : > { %v12387_v43 = vpop.f32.mrf.mxu0 }
 0x4ff   : > { %v19184_v14 = vadd.f32 %v12387_v43, %v18710_v26  ;;  %v19201_v43 = vpop.f32.mrf.mxu1 }
 0x500   : > { %v6402_v55 = vpop.f32.mrf.mxu0  ;;  %23241 = vst [vmem:[#allocation227_spill] sm:$0xff] %v19201_v43 }
 0x501   : > { %v19187_v3 = vadd.f32 %v6402_v55, %v18713_v22 }
 0x502   : > { %v12390_v4 = vpop.f32.mrf.mxu0  ;;  %12593 = vmatmul.mubr.msk.bf16.gmra.mxu0 %vm23238_vm15, %v23237_v7  ;;  %v19209_v7 = vpop.f32.mrf.mxu1  ;;  %vm23277_vm15 = vmmov %vm22796_vm0 }
 0x503   : > { %v19194_v16 = vadd.f32 %v12390_v4, %v18719_v53  ;;  %12596 = vmatprep.mubr.msk.bf16.mxu0 %vm23240_vm6, %v23239_v17  ;;  %23242 = vst [vmem:[#allocation224_spill] sm:$0xff] %v19209_v7  ;;  %v23243_v4 = vld [vmem:[#allocation114_spill] sm:$0xff]  ;;  %vm23278_vm6 = vmmov %vm22796_vm0 }
 0x504   : > { %v6415_v8 = vpop.f32.mrf.mxu0 }
 0x505   : > { %v19199_v26 = vadd.f32 %v6415_v8, %v18722_v60  ;;  %v23245_v60 = vld [vmem:[#allocation138_spill] sm:$0xff] }
 0x506   : > { %v12391_v22 = vpop.f32.mrf.mxu0 }
 0x507   : > { %v19204_v55 = vadd.f32 %v12391_v22, %v18725_v27  ;;  %v19221_v22 = vpop.f32.mrf.mxu1 }
 0x508   : > { %v6418_v51 = vpop.f32.mrf.mxu0  ;;  %23247 = vst [vmem:[#allocation161_spill] sm:$0xff] %v19221_v22 }
 0x509   : > { %v19207_v1 = vadd.f32 %v6418_v51, %v18738_v10 }
 0x50a   : > { %v12394_v53 = vpop.f32.mrf.mxu0  ;;  %12597 = vmatmul.mubr.msk.bf16.gmra.mxu0 %vm23244_vm5, %v23243_v4  ;;  %v19229_v4 = vpop.f32.mrf.mxu1  ;;  %vm23280_vm5 = vmmov %vm22796_vm0 }
 0x50b   : > { %v19214_v17 = vadd.f32 %v12394_v53, %v18749_v32  ;;  %12600 = vmatprep.mubr.msk.bf16.mxu0 %vm23246_vm12, %v23245_v60  ;;  %23248 = vst [vmem:[#allocation86_spill] sm:$0xff] %v19229_v4  ;;  %v23249_v53 = vld [vmem:[#allocation51_spill] sm:$0xff]  ;;  %vm23282_vm12 = vmmov %vm22796_vm0 }
 0x50c   : > { %v6431_v8 = vpop.f32.mrf.mxu0 }
 0x50d   : > { %v19219_v27 = vadd.f32 %v6431_v8, %v18756_v39  ;;  %v23251_v39 = vld [vmem:[#allocation67_spill] sm:$0xff] }
 0x50e   : > { %v12395_v10 = vpop.f32.mrf.mxu0 }
 0x50f   : > { %v19224_v51 = vadd.f32 %v12395_v10, %v18760_v9  ;;  %v19241_v10 = vpop.f32.mrf.mxu1 }
 0x510   : > { %v6434_v43 = vpop.f32.mrf.mxu0  ;;  %23253 = vst [vmem:[#allocation59_spill] sm:$0xff] %v19241_v10 }
 0x511   : > { %v19227_v7 = vadd.f32 %v6434_v43, %v18764_v13 }
 0x512   : > { %v12398_v32 = vpop.f32.mrf.mxu0  ;;  %12601 = vmatmul.mubr.msk.bf16.gmra.mxu0 %vm23250_vm11, %v23249_v53  ;;  %v19249_v53 = vpop.f32.mrf.mxu1  ;;  %vm23287_vm11 = vmmov %vm22796_vm0 }
 0x513   : > { %v19234_v60 = vadd.f32 %v12398_v32, %v18773_v11  ;;  %12604 = vmatprep.mubr.msk.bf16.mxu0 %vm23252_vm10, %v23251_v39  ;;  %23254 = vst [vmem:[#allocation27_spill] sm:$0xff] %v19249_v53  ;;  %v23255_v32 = vld [vmem:[#allocation165_spill] sm:$0xff]  ;;  %vm23290_vm10 = vmmov %vm22796_vm0 }
 0x514   : > { %v6447_v8 = vpop.f32.mrf.mxu0 }
 0x515   : > { %v19239_v9 = vadd.f32 %v6447_v8, %v18778_v6  ;;  %v23257_v6 = vld [vmem:[#allocation219_spill] sm:$0xff] }
 0x516   : > { %v12399_v13 = vpop.f32.mrf.mxu0 }
 0x517   : > { %v19244_v43 = vadd.f32 %v12399_v13, %v18782_v57  ;;  %v19261_v13 = vpop.f32.mrf.mxu1 }
 0x518   : > { %v6450_v4 = vpop.f32.mrf.mxu0  ;;  %23259 = vst [vmem:[#allocation78_spill] sm:$0xff] %v19261_v13 }
 0x519   : > { %v19247_v22 = vadd.f32 %v6450_v4, %v18786_v15  ;;  %v6055_v4 = vadd.f32 %v18807_v37, %v18649_v52 }
 0x51a   : > { %v12402_v11 = vpop.f32.mrf.mxu0  ;;  %12605 = vmatmul.mubr.msk.bf16.gmra.mxu0 %vm23256_vm1, %v23255_v32  ;;  %vm23297_vm1 = vmmov %vm22796_vm0 }
 0x51b   : > { %v19254_v39 = vadd.f32 %v12402_v11, %v18795_v50  ;;  %12608 = vmatprep.mubr.msk.bf16.mxu0 %vm23258_vm7, %v23257_v6  ;;  %v19270_v50 = vpop.f32.mrf.mxu1  ;;  %v23261_v6 = vld [vmem:[#allocation109_spill] sm:$0xff]  ;;  %vm23300_vm7 = vmmov %vm22796_vm0 }
 0x51c   : > { %v6463_v8 = vpop.f32.mrf.mxu0 }
 0x51d   : > { %v19259_v57 = vadd.f32 %v6463_v8, %v18800_v31  ;;  %v23263_v8 = vld [vmem:[#allocation146_spill] sm:$0xff] }
 0x51e   : > { %v12403_v15 = vpop.f32.mrf.mxu0 }
 0x51f   : > { %v19266_v10 = vadd.f32 %v12403_v15, %v18804_v23  ;;  %v19282_v23 = vpop.f32.mrf.mxu1  ;;  %v6059_v15 = vadd.f32 %v18828_v12, %v18675_v5 }
 0x520   : > { %v6466_v32 = vpop.f32.mrf.mxu0 }
 0x521   : > { %v19268_v53 = vadd.f32 %v6466_v32, %v6055_v4 }
 0x522   : > { %v12406_v11 = vpop.f32.mrf.mxu0  ;;  %12609 = vmatmul.mubr.msk.bf16.gmra.mxu0 %vm23262_vm13, %v23261_v6  ;;  %vm23305_vm13 = vmmov %vm22796_vm0 }
 0x523   : > { %23260 = vst [vmem:[#allocation77_spill] sm:$0xff] %v19268_v53  ;;  %v19275_v31 = vadd.f32 %v12406_v11, %v18816_v24  ;;  %12612 = vmatprep.mubr.msk.bf16.mxu0 %vm22796_vm0, %v23263_v8  ;;  %v12783_v24 = vld [vmem:[%s20490_s7 + $0x170] ss:$8 sps:$4 sm:$0xff]   ;;  %v23265_v8 = vld [vmem:[#allocation171_spill] sm:$0xff] }
 0x524   : > { %v6479_v13 = vpop.f32.mrf.mxu0 }
 0x525   : > { %v19280_v52 = vadd.f32 %v6479_v13, %v18821_v40  ;;  %v12785_v40 = vld [vmem:[%s20490_s7 + $0x174] ss:$8 sps:$4 sm:$0xff]   ;;  %v19297_v13 = vpop.f32.mrf.mxu1 }
 0x526   : > { %v12407_v37 = vpop.f32.mrf.mxu0  ;;  %9089 = vmatprep.subr.bf16.mxu1 %v12785_v40 }
 0x527   : > { %v19287_v4 = vadd.f32 %v12407_v37, %v18825_v25  ;;  %v23267_v25 = vld [vmem:[#allocation88_spill] sm:$0xff]  ;;  %9090 = vmatpush1.bf16.msra.mxu1 %v12783_v24 }
 0x528   : > { %v6482_v32 = vpop.f32.mrf.mxu0 }
 0x529   : > { %v19289_v6 = vadd.f32 %v6482_v32, %v6059_v15  ;;  %v12786_v15 = vld [vmem:[%s20490_s7 + $0x160] ss:$8 sps:$4 sm:$0xff]   ;;  %v12788_v32 = vld [vmem:[%s20490_s7 + $0x164] ss:$8 sps:$4 sm:$0xff]  }
 0x52a   : > { %v12410_v11 = vpop.f32.mrf.mxu0  ;;  %12613 = vmatmul.mubr.msk.bf16.gmra.mxu0 %vm23266_vm2, %v23265_v8  ;;  %v19315_v8 = vpop.f32.mrf.mxu1  ;;  %9091 = vmatprep.subr.bf16.mxu1 %v12788_v32  ;;  %v12792_v32 = vld [vmem:[%s20490_s7 + $0x140] ss:$8 sps:$4 sm:$0xff]   ;;  %vm23313_vm2 = vmmov %vm22796_vm0 }
 0x52b   : > { %23264 = vst [vmem:[#allocation148_spill] sm:$0xff] %v19289_v6  ;;  %v19302_v5 = vadd.f32 %v12410_v11, %v18837_v20  ;;  %12616 = vmatprep.mubr.msk.bf16.mxu0 %vm23268_vm9, %v23267_v25  ;;  %v6063_v11 = vadd.f32 %v18849_v38, %v18687_v45  ;;  %9092 = vmatpush1.bf16.msra.mxu1 %v12786_v15  ;;  %v12789_v25 = vld [vmem:[%s20490_s7 + $0x150] ss:$8 sps:$4 sm:$0xff]   ;;  %vm23316_vm9 = vmmov %vm22796_vm0 }
 0x52c   : > { %v6495_v12 = vpop.f32.mrf.mxu0  ;;  %v19330_v6 = vpop.f32.mrf.mxu1  ;;  %v23270_v45 = vld [vmem:[#allocation197_spill] sm:$0xff] }
 0x52d   : > { %v19307_v37 = vadd.f32 %v6495_v12, %v18842_v49  ;;  %v12791_v12 = vld [vmem:[%s20490_s7 + $0x154] ss:$8 sps:$4 sm:$0xff]  }
 0x52e   : > { %v12411_v20 = vpop.f32.mrf.mxu0  ;;  %9093 = vmatprep.subr.bf16.mxu1 %v12791_v12  ;;  %v12795_v12 = vld [vmem:[%s20490_s7 + $0x130] ss:$8 sps:$4 sm:$0xff]  }
 0x52f   : > { %v19320_v40 = vadd.f32 %v12411_v20, %v18846_v46  ;;  %9094 = vmatpush1.bf16.msra.mxu1 %v12789_v25  ;;  %v12794_v20 = vld [vmem:[%s20490_s7 + $0x144] ss:$8 sps:$4 sm:$0xff]   ;;  %v6952_v25 = vadd.f32 %v18900_v36, %v19174_v48 }
 0x530   : > { %v6498_v49 = vpop.f32.mrf.mxu0  ;;  %9095 = vmatprep.subr.bf16.mxu1 %v12794_v20 }
 0x531   : > { %v19322_v24 = vadd.f32 %v6498_v49, %v6063_v11  ;;  %v19348_v11 = vpop.f32.mrf.mxu1 }
 0x532   : > { %v12414_v53 = vpop.f32.mrf.mxu0  ;;  %12617 = vmatmul.mubr.msk.bf16.gmra.mxu0 %vm23271_vm8, %v23270_v45  ;;  %23273 = vst [vmem:[#allocation97_spill] sm:$0xff] %v19348_v11  ;;  %v12797_v45 = vld [vmem:[%s20490_s7 + $0x134] ss:$8 sps:$4 sm:$0xff]   ;;  %vm23321_vm8 = vmmov %vm22796_vm0 }
 0x533   : > { %23269 = vst [vmem:[#allocation194_spill] sm:$0xff] %v19322_v24  ;;  %v19335_v46 = vadd.f32 %v12414_v53, %v18858_v33  ;;  %12622 = vmatprep.mubr.msk.bf16.mxu0 %vm23272_vm14, %v23075_v0  ;;  %v6067_v0 = vadd.f32 %v18888_v21, %v18699_v59  ;;  %9096 = vmatpush1.bf16.msra.mxu1 %v12792_v32  ;;  %v19365_v59 = vpop.f32.mrf.mxu1 }
 0x534   : > { %v6511_v38 = vpop.f32.mrf.mxu0  ;;  %9097 = vmatprep.subr.bf16.mxu1 %v12797_v45  ;;  %v6953_v32 = vadd.f32 %v18918_v47, %v19184_v14  ;;  %v12798_v47 = vld [vmem:[%s20490_s7 + $0x120] ss:$8 sps:$4 sm:$0xff]   ;;  %v12800_v14 = vld [vmem:[%s20490_s7 + $0x124] ss:$8 sps:$4 sm:$0xff]  }
 0x535   : > { %v19340_v15 = vadd.f32 %v6511_v38, %v18863_v44  ;;  %v6950_v38 = vadd.f32 %v18912_v62, %v19179_v56  ;;  %v19377_v20 = vpop.f32.mrf.mxu1 }
 0x536   : > { %v12415_v33 = vpop.f32.mrf.mxu0 }
 0x537   : > { %v19353_v53 = vadd.f32 %v12415_v33, %v18867_v34  ;;  %9098 = vmatpush1.bf16.msra.mxu1 %v12795_v12  ;;  %v6957_v12 = vadd.f32 %v18950_v30, %v19204_v55  ;;  %v6960_v30 = vadd.f32 %v18966_v58, %v19214_v17  ;;  %v12806_v55 = vld [vmem:[%s20490_s7 + $0x104] ss:$8 sps:$4 sm:$0xff]   ;;  %v6958_v58 = vadd.f32 %v18976_v63, %v19219_v27  ;;  %v23281_v17 = vld [vmem:[#allocation13_spill] sm:$0xff] }
 0x538   : > { %v6514_v44 = vpop.f32.mrf.mxu0  ;;  %9099 = vmatprep.subr.bf16.mxu1 %v12800_v14 }
 0x539   : > { %v19355_v49 = vadd.f32 %v6514_v44, %v6067_v0  ;;  %v6956_v44 = vadd.f32 %v18934_v29, %v19194_v16 }
 0x53a   : > { %v12454_v34 = vpop.f32.mrf.mxu0  ;;  %12623 = vmatmul.mubr.msk.bf16.vlgmr.msra.gmra.mxu0 %vm23275_vm3, %v23080_v18  ;;  %v6951_v18 = vadd.f32 %v18928_v19, %v19187_v3  ;;  %v6954_v3 = vadd.f32 %v18944_v41, %v19199_v26  ;;  %v12803_v41 = vld [vmem:[%s20490_s7 + $0x114] ss:$8 sps:$4 sm:$0xff]  }
 0x53b   : > { %23274 = vst [vmem:[#allocation35_spill] sm:$0xff] %v19355_v49  ;;  %v19369_v21 = vadd.f32 %v12454_v34, %v6952_v25  ;;  %12626 = vmatprep.mubr.msk.bf16.mxu0 %vm23276_vm4, %v23082_v54  ;;  %v19396_v25 = vpop.f32.mrf.mxu1  ;;  %9100 = vmatpush1.bf16.msra.mxu1 %v12798_v47  ;;  %v12809_v47 = vld [vmem:[%s20490_s7 + $0x1f4] ss:$8 sps:$4 sm:$0xff]  }
 0x53c   : > { %v7053_v36 = vpop.f32.mrf.mxu0  ;;  %9101 = vmatprep.subr.bf16.mxu1 %v12803_v41  ;;  %9885 = vmatprep.subr.bf16.mxu0 %v12809_v47  ;;  %v23286_v41 = vld [vmem:[#allocation14_spill] sm:$0xff] }
 0x53d   : > { %v7212_v48 = vadd.f32 %v7053_v36, %v6950_v38  ;;  %v19410_v45 = vpop.f32.mrf.mxu1  ;;  %v6955_v38 = vadd.f32 %v18960_v42, %v19207_v1 }
 0x53e   : > { %v12455_v33 = vpop.f32.mrf.mxu0  ;;  %23279 = vst [vmem:[#allocation122_spill] sm:$0xff] %v19410_v45  ;;  %v23332_v45 = vld [vmem:[#allocation27_spill] sm:$0xff] }
 0x53f   : > { %v19379_v0 = vadd.f32 %v12455_v33, %v6953_v32  ;;  %v19384_v62 = vadd.f32 %v19181_v28, %v7212_v48  ;;  %v19429_v42 = vpop.f32.mrf.mxu1  ;;  %v12804_v48 = vld [vmem:[%s20490_s7 + $0x100] ss:$8 sps:$4 sm:$0xff]  }
 0x540   : > { %v7056_v56 = vpop.f32.mrf.mxu0 }
 0x541   : > { %v19386_v54 = vadd.f32 %v7056_v56, %v6951_v18  ;;  %v23283_v56 = vld [vmem:[#allocation124_spill] sm:$0xff]  ;;  %v19452_v14 = vpop.f32.mrf.mxu1 }
 0x542   : > { %v12458_v19 = vpop.f32.mrf.mxu0  ;;  %12627 = vmatmul.mubr.msk.bf16.gmra.mxu0 %vm23277_vm15, %v23089_v2 }
 0x543   : > { %v19400_v28 = vadd.f32 %v12458_v19, %v6956_v44  ;;  %12630 = vmatprep.mubr.msk.bf16.mxu0 %vm23278_vm6, %v23091_v61  ;;  %v12801_v61 = vld [vmem:[%s20490_s7 + $0x110] ss:$8 sps:$4 sm:$0xff]  }
 0x544   : > { %v7069_v29 = vpop.f32.mrf.mxu0  ;;  %9102 = vmatpush1.bf16.msra.mxu1 %v12801_v61  ;;  %v12807_v44 = vld [vmem:[%s20490_s7 + $0x1f0] ss:$8 sps:$4 sm:$0xff]  }
 0x545   : > { %v19406_v16 = vadd.f32 %v7069_v29, %v6954_v3  ;;  %9103 = vmatprep.subr.bf16.mxu1 %v12806_v55  ;;  %v23284_v19 = vld [vmem:[#allocation142_spill] sm:$0xff]  ;;  %9886 = vmatpush1.bf16.msra.mxu0 %v12807_v44  ;;  %v23293_v44 = vld [vmem:[#allocation120_spill] sm:$0xff] }
 0x546   : > { %v12459_v34 = vpop.f32.mrf.mxu0  ;;  %v6959_v3 = vadd.f32 %v23284_v19, %v19227_v7  ;;  %v23289_v7 = vld [vmem:[#allocation15_spill] sm:$0xff]  ;;  %v6963_v47 = vadd.f32 %v23293_v44, %v19247_v22  ;;  %v23299_v22 = vld [vmem:[#allocation17_spill] sm:$0xff] }
 0x547   : > { %v19412_v2 = vadd.f32 %v12459_v34, %v6957_v12  ;;  %v23285_v12 = vld [vmem:[#allocation185_spill] sm:$0xff]  ;;  %v23295_v19 = vld [vmem:[#allocation251_spill] sm:$0xff] }
 0x548   : > { %v7072_v26 = vpop.f32.mrf.mxu0  ;;  %9104 = vmatpush1.bf16.msra.mxu1 %v12804_v48  ;;  %v6964_v34 = vadd.f32 %v23285_v12, %v19234_v60  ;;  %v23303_v44 = vld [vmem:[#allocation213_spill] sm:$0xff] }
 0x549   : > { %v19422_v36 = vadd.f32 %v7072_v26, %v6955_v38  ;;  %v19462_v38 = vpop.f32.mrf.mxu1 }
 0x54a   : > { %v12462_v1 = vpop.f32.mrf.mxu0  ;;  %12631 = vmatmul.mubr.msk.bf16.gmra.mxu0 %vm23280_vm5, %v23097_v35  ;;  %v6961_v35 = vadd.f32 %v23283_v56, %v19224_v51 }
 0x54b   : > { %v19436_v32 = vadd.f32 %v12462_v1, %v6960_v30  ;;  %12634 = vmatprep.mubr.msk.bf16.mxu0 %vm23282_vm12, %v23281_v17  ;;  %v23288_v30 = vld [vmem:[#allocation25_spill] sm:$0xff]  ;;  %v12810_v17 = vld [vmem:[%s20490_s7 + $0x1e0] ss:$8 sps:$4 sm:$0xff]   ;;  %v19482_v56 = vpop.f32.mrf.mxu1 }
 0x54c   : > { %v7085_v33 = vpop.f32.mrf.mxu0  ;;  %v6962_v55 = vadd.f32 %v23288_v30, %v19239_v9  ;;  %23292 = vst [vmem:[#allocation159_spill] sm:$0xff] %v19482_v56 }
 0x54d   : > { %v19442_v18 = vadd.f32 %v7085_v33, %v6958_v58  ;;  %v23291_v58 = vld [vmem:[#allocation241_spill] sm:$0xff]  ;;  %v12812_v33 = vld [vmem:[%s20490_s7 + $0x1e4] ss:$8 sps:$4 sm:$0xff]  }
 0x54e   : > { %v12463_v63 = vpop.f32.mrf.mxu0  ;;  %v6965_v60 = vadd.f32 %v23291_v58, %v19244_v43  ;;  %9887 = vmatprep.subr.bf16.mxu0 %v12812_v33  ;;  %v12813_v58 = vld [vmem:[%s20490_s7 + $0x1d0] ss:$8 sps:$4 sm:$0xff]  }
 0x54f   : > { %v19454_v27 = vadd.f32 %v12463_v63, %v6961_v35  ;;  %9888 = vmatpush1.bf16.msra.mxu0 %v12810_v17 }
 0x550   : > { %v7088_v29 = vpop.f32.mrf.mxu0 }
 0x551   : > { %v19458_v51 = vadd.f32 %v7088_v29, %v6959_v3  ;;  %v6968_v3 = vadd.f32 %v23295_v19, %v19254_v39  ;;  %v19492_v29 = vpop.f32.mrf.mxu1  ;;  %v23304_v19 = vld [vmem:[#allocation18_spill] sm:$0xff] }
 0x552   : > { %v12466_v61 = vpop.f32.mrf.mxu0  ;;  %12635 = vmatmul.mubr.msk.bf16.gmra.mxu0 %vm23287_vm11, %v23286_v41  ;;  %v23298_v41 = vld [vmem:[#allocation100_spill] sm:$0xff] }
 0x553   : > { %v19466_v26 = vadd.f32 %v12466_v61, %v6964_v34  ;;  %12638 = vmatprep.mubr.msk.bf16.mxu0 %vm23290_vm10, %v23289_v7  ;;  %v23296_v34 = vld [vmem:[#allocation16_spill] sm:$0xff]  ;;  %v6966_v30 = vadd.f32 %v23298_v41, %v19259_v57  ;;  %v19512_v17 = vpop.f32.mrf.mxu1  ;;  %v23307_v41 = vld [vmem:[#allocation19_spill] sm:$0xff] }
 0x554   : > { %v7101_v1 = vpop.f32.mrf.mxu0 }
 0x555   : > { %v19472_v48 = vadd.f32 %v7101_v1, %v6962_v55  ;;  %v23301_v1 = vld [vmem:[#allocation152_spill] sm:$0xff] }
 0x556   : > { %v12467_v9 = vpop.f32.mrf.mxu0  ;;  %v6969_v39 = vadd.f32 %v23301_v1, %v19266_v10  ;;  %v6972_v10 = vadd.f32 %v23303_v44, %v19275_v31  ;;  %v12816_v1 = vld [vmem:[%s20490_s7 + $0x1c0] ss:$8 sps:$4 sm:$0xff]   ;;  %v23311_v44 = vld [vmem:[#allocation126_spill] sm:$0xff] }
 0x557   : > { %v19484_v35 = vadd.f32 %v12467_v9, %v6965_v60  ;;  %v12815_v60 = vld [vmem:[%s20490_s7 + $0x1d4] ss:$8 sps:$4 sm:$0xff]  }
 0x558   : > { %v7104_v63 = vpop.f32.mrf.mxu0  ;;  %9889 = vmatprep.subr.bf16.mxu0 %v12815_v60 }
 0x559   : > { %v19488_v43 = vadd.f32 %v7104_v63, %v6963_v47  ;;  %9890 = vmatpush1.bf16.msra.mxu0 %v12813_v58  ;;  %v19520_v47 = vpop.f32.mrf.mxu1 }
 0x55a   : > { %v12470_v12 = vpop.f32.mrf.mxu0  ;;  %12639 = vmatmul.mubr.msk.bf16.gmra.mxu0 %vm23297_vm1, %v23296_v34 }
 0x55b   : > { %23294 = vst [vmem:[#allocation207_spill] sm:$0xff] %v19488_v43  ;;  %v19496_v61 = vadd.f32 %v12470_v12, %v6968_v3  ;;  %12642 = vmatprep.mubr.msk.bf16.mxu0 %vm23300_vm7, %v23299_v22  ;;  %v23306_v12 = vld [vmem:[#allocation176_spill] sm:$0xff]  ;;  %v19540_v58 = vpop.f32.mrf.mxu1 }
 0x55c   : > { %v7117_v55 = vpop.f32.mrf.mxu0  ;;  %v6970_v34 = vadd.f32 %v23306_v12, %v19280_v52  ;;  %23309 = vst [vmem:[#allocation57_spill] sm:$0xff] %v19540_v58 }
 0x55d   : > { %v19502_v7 = vadd.f32 %v7117_v55, %v6966_v30  ;;  %v23308_v55 = vld [vmem:[#allocation192_spill] sm:$0xff] }
 0x55e   : > { %v12471_v57 = vpop.f32.mrf.mxu0  ;;  %v6973_v31 = vadd.f32 %v23308_v55, %v19287_v4  ;;  %v6976_v4 = vadd.f32 %v23311_v44, %v19302_v5 }
 0x55f   : > { %v19514_v33 = vadd.f32 %v12471_v57, %v6969_v39  ;;  %v12818_v39 = vld [vmem:[%s20490_s7 + $0x1c4] ss:$8 sps:$4 sm:$0xff]  }
 0x560   : > { %v19516_v9 = vpop.f32.mrf.mxu0  ;;  %9891 = vmatprep.subr.bf16.mxu0 %v12818_v39  ;;  %v12819_v39 = vld [vmem:[%s20490_s7 + $0x1b0] ss:$8 sps:$4 sm:$0xff]  }
 0x561   : > { %23302 = vst [vmem:[#allocation202_spill] sm:$0xff] %v19516_v9  ;;  %9892 = vmatpush1.bf16.msra.mxu0 %v12816_v1  ;;  %v23317_v1 = vld [vmem:[#allocation29_spill] sm:$0xff]  ;;  %v7614_v9 = vadd.f32 %v23332_v45, %v19436_v32 }
 0x562   : > { %v12474_v63 = vpop.f32.mrf.mxu0  ;;  %12643 = vmatmul.mubr.msk.bf16.gmra.mxu0 %vm23305_vm13, %v23304_v19  ;;  %v23312_v19 = vld [vmem:[#allocation20_spill] sm:$0xff]  ;;  %v6977_v5 = vadd.f32 %v23317_v1, %v19320_v40 }
 0x563   : > { %v19524_v3 = vadd.f32 %v12474_v63, %v6972_v10  ;;  %12646 = vmatprep.mubr.msk.bf16.mxu0 %vm22796_vm0, %v23307_v41  ;;  %v19548_v10 = vpop.f32.mrf.mxu1  ;;  %v23322_v1 = vld [vmem:[#allocation32_spill] sm:$0xff] }
 0x564   : > { %v7133_v30 = vpop.f32.mrf.mxu0  ;;  %v6978_v49 = vadd.f32 %v23322_v1, %v19340_v15 }
 0x565   : > { %v19530_v22 = vadd.f32 %v7133_v30, %v6970_v34  ;;  %v23314_v34 = vld [vmem:[#allocation48_spill] sm:$0xff]  ;;  %v23315_v30 = vld [vmem:[#allocation21_spill] sm:$0xff]  ;;  %v19568_v44 = vpop.f32.mrf.mxu1 }
 0x566   : > { %v12475_v52 = vpop.f32.mrf.mxu0  ;;  %v6974_v41 = vadd.f32 %v23314_v34, %v19307_v37 }
 0x567   : > { %v19542_v60 = vadd.f32 %v12475_v52, %v6973_v31  ;;  %v12821_v52 = vld [vmem:[%s20490_s7 + $0x1b4] ss:$8 sps:$4 sm:$0xff]   ;;  %v19576_v34 = vpop.f32.mrf.mxu1 }
 0x568   : > { %v19544_v57 = vpop.f32.mrf.mxu0  ;;  %9893 = vmatprep.subr.bf16.mxu0 %v12821_v52 }
 0x569   : > { %23310 = vst [vmem:[#allocation204_spill] sm:$0xff] %v19544_v57  ;;  %9894 = vmatpush1.bf16.msra.mxu0 %v12819_v39  ;;  %v23324_v39 = vld [vmem:[#allocation55_spill] sm:$0xff] }
 0x56a   : > { %v12478_v63 = vpop.f32.mrf.mxu0  ;;  %12647 = vmatmul.mubr.msk.bf16.gmra.mxu0 %vm23313_vm2, %v23312_v19  ;;  %v23319_v19 = vld [vmem:[#allocation229_spill] sm:$0xff]  ;;  %v6981_v58 = vadd.f32 %v23324_v39, %v19353_v53  ;;  %v23327_v53 = vld [vmem:[#allocation228_spill] sm:$0xff] }
 0x56b   : > { %v19552_v12 = vadd.f32 %v12478_v63, %v6976_v4  ;;  %12650 = vmatprep.mubr.msk.bf16.mxu0 %vm23316_vm9, %v23315_v30  ;;  %v6980_v40 = vadd.f32 %v23319_v19, %v19335_v46  ;;  %v23320_v30 = vld [vmem:[#allocation22_spill] sm:$0xff]  ;;  %v12822_v46 = vld [vmem:[%s20490_s7 + $0x1a0] ss:$8 sps:$4 sm:$0xff]   ;;  %v12824_v19 = vld [vmem:[%s20490_s7 + $0x1a4] ss:$8 sps:$4 sm:$0xff]   ;;  %v7606_v1 = vadd.f32 %v23327_v53, %v19369_v21 }
 0x56c   : > { %v7149_v55 = vpop.f32.mrf.mxu0  ;;  %9895 = vmatprep.subr.bf16.mxu0 %v12824_v19  ;;  %v12827_v21 = vld [vmem:[%s20490_s7 + $0x194] ss:$8 sps:$4 sm:$0xff]  }
 0x56d   : > { %v19558_v31 = vadd.f32 %v7149_v55, %v6974_v41  ;;  %9896 = vmatpush1.bf16.msra.mxu0 %v12822_v46 }
 0x56e   : > { %v12479_v37 = vpop.f32.mrf.mxu0  ;;  %9897 = vmatprep.subr.bf16.mxu0 %v12827_v21  ;;  %v12830_v21 = vld [vmem:[%s20490_s7 + $0x184] ss:$8 sps:$4 sm:$0xff]  }
 0x56f   : > { %v19570_v4 = vadd.f32 %v12479_v37, %v6977_v5  ;;  %v23323_v5 = vmov 0  }
 0x570   : > { %v19572_v63 = vpop.f32.mrf.mxu0 }
 0x571   : > { %23318 = vst [vmem:[#allocation225_spill] sm:$0xff] %v19572_v63 }
 0x572   : > { %v12482_v41 = vpop.f32.mrf.mxu0  ;;  %12651 = vmatmul.mubr.msk.bf16.gmra.mxu0 %vm23321_vm8, %v23320_v30 }
 0x573   : > { %v19580_v55 = vadd.f32 %v12482_v41, %v6980_v40  ;;  %9917 = vmatprep.mubr.bf16.mxu0 %v23323_v5  ;;  %v19595_v40 = vpop.f32.mrf.mxu1 }
 0x574   : > { %v7165_v52 = vpop.f32.mrf.mxu0  ;;  %23325 = vst [vmem:[#allocation23_spill] sm:$0xff] %v19595_v40 }
 0x575   : > { %v19585_v37 = vadd.f32 %v7165_v52, %v6978_v49  ;;  %v19601_v49 = vpop.f32.mrf.mxu1 }
 0x576   : > { %v12483_v41 = vpop.f32.mrf.mxu0 }
 0x577   : > { %v19597_v15 = vadd.f32 %v12483_v41, %v6981_v58  ;;  %v19607_v24 = vpop.f32.mrf.mxu1  ;;  %v23328_v58 = vld [vmem:[#allocation235_spill] sm:$0xff]  ;;  %v12825_v41 = vld [vmem:[%s20490_s7 + $0x190] ss:$8 sps:$4 sm:$0xff]  }
 0x578   : > { %v19599_v30 = vpop.f32.mrf.mxu0  ;;  %v7607_v19 = vadd.f32 %v23328_v58, %v19379_v0  ;;  %9898 = vmatpush1.bf16.msra.mxu0 %v12825_v41 }
 0x579   : > { %23326 = vst [vmem:[#allocation79_spill] sm:$0xff] %v19599_v30  ;;  %v23330_v30 = vld [vmem:[#allocation161_spill] sm:$0xff]  ;;  %9899 = vmatprep.subr.bf16.mxu0 %v12830_v21 }
 0x57a   : > { %v12522_v52 = vpop.f32.mrf.mxu0  ;;  %v7608_v56 = vadd.f32 %v23330_v30, %v19406_v16 }
 0x57b   : > { %v19605_v39 = vadd.f32 %v12522_v52, %v7606_v1  ;;  %v19624_v52 = vpop.f32.mrf.mxu1 }
 0x57c   : > { %v7837_v63 = vpop.f32.mrf.mxu0 }
 0x57d   : > { %v19610_v40 = vadd.f32 %v7837_v63, %v19384_v62  ;;  %v23329_v62 = vld [vmem:[#allocation224_spill] sm:$0xff] }
 0x57e   : > { %v12523_v46 = vpop.f32.mrf.mxu0  ;;  %v7610_v0 = vadd.f32 %v23329_v62, %v19400_v28  ;;  %v23331_v28 = vld [vmem:[#allocation86_spill] sm:$0xff] }
 0x57f   : > { %v19620_v53 = vadd.f32 %v12523_v46, %v7607_v19  ;;  %v12828_v19 = vld [vmem:[%s20490_s7 + $0x180] ss:$8 sps:$4 sm:$0xff]   ;;  %v19638_v46 = vpop.f32.mrf.mxu1  ;;  %v7611_v62 = vadd.f32 %v23331_v28, %v19412_v2 }
 0x580   : > { %v19622_v1 = vpop.f32.mrf.mxu0  ;;  %9900 = vmatpush1.bf16.msra.mxu0 %v12828_v19  ;;  %v7615_v19 = vadd.f32 %v19270_v50, %v19454_v27  ;;  %v7619_v27 = vadd.f32 %v19330_v6, %v19484_v35  ;;  %v7623_v35 = vadd.f32 %v19396_v25, %v19514_v33  ;;  %v7627_v33 = vadd.f32 %v19462_v38, %v19542_v60 }
 0x581   : > { %v19646_v30 = vpop.f32.mrf.mxu1  ;;  %v7631_v60 = vadd.f32 %v19520_v47, %v19570_v4  ;;  %v7635_v4 = vadd.f32 %v19576_v34, %v19597_v15 }
 0x582   : > { %v12526_v63 = vpop.f32.mrf.mxu0 }
 0x583   : > { %v19628_v58 = vadd.f32 %v12526_v63, %v7610_v0  ;;  %v19656_v5 = vpop.f32.mrf.mxu1 }
 0x584   : > { %v7853_v41 = vpop.f32.mrf.mxu0 }
 0x585   : > { %v19640_v57 = vadd.f32 %v7853_v41, %v7608_v56  ;;  %v23333_v56 = vld [vmem:[#allocation78_spill] sm:$0xff] }
 0x586   : > { %v12527_v0 = vpop.f32.mrf.mxu0  ;;  %v7612_v41 = vadd.f32 %v23333_v56, %v19442_v18 }
 0x587   : > { %v19644_v16 = vadd.f32 %v12527_v0, %v7611_v62  ;;  %v19664_v0 = vpop.f32.mrf.mxu1 }
 0x588   : > { %v19648_v63 = vpop.f32.mrf.mxu0 }
 0x589   : > { %v19674_v56 = vpop.f32.mrf.mxu1 }
 0x58a   : > { %v12530_v11 = vpop.f32.mrf.mxu0 }
 0x58b   : > { %v19652_v43 = vadd.f32 %v12530_v11, %v7614_v9  ;;  %v7618_v11 = vadd.f32 %v19297_v13, %v19466_v26  ;;  %v7616_v9 = vadd.f32 %v19315_v8, %v19472_v48  ;;  %v7622_v26 = vadd.f32 %v19365_v59, %v19496_v61 }
 0x58c   : > { %v7869_v2 = vpop.f32.mrf.mxu0  ;;  %v7620_v48 = vadd.f32 %v19377_v20, %v19502_v7  ;;  %v7626_v61 = vadd.f32 %v19429_v42, %v19524_v3  ;;  %v7624_v7 = vadd.f32 %v19452_v14, %v19530_v22  ;;  %v7630_v3 = vadd.f32 %v19492_v29, %v19552_v12 }
 0x58d   : > { %v19658_v21 = vadd.f32 %v7869_v2, %v7612_v41  ;;  %v7628_v22 = vadd.f32 %v19512_v17, %v19558_v31  ;;  %v7634_v12 = vadd.f32 %v19548_v10, %v19580_v55  ;;  %v7632_v31 = vadd.f32 %v19568_v44, %v19585_v37  ;;  %v23336_v37 = vld [vmem:[#allocation227_spill] sm:$0xff] }
 0x58e   : > { %v12531_v28 = vpop.f32.mrf.mxu0  ;;  %v8358_v44 = vadd.f32 %v19601_v49, %v19605_v39 }
 0x58f   : > { %v19662_v62 = vadd.f32 %v12531_v28, %v7615_v19  ;;  %v19682_v28 = vpop.f32.mrf.mxu1 }
 0x590   : > { %v19666_v45 = vpop.f32.mrf.mxu0 }
 0x592   : > { %v12534_v32 = vpop.f32.mrf.mxu0 }
 0x593   : > { %v19670_v18 = vadd.f32 %v12534_v32, %v7618_v11  ;;  %v19692_v32 = vpop.f32.mrf.mxu1 }
 0x594   : > { %v7885_v41 = vpop.f32.mrf.mxu0 }
 0x595   : > { %v19676_v50 = vadd.f32 %v7885_v41, %v7616_v9 }
 0x596   : > { %v12535_v2 = vpop.f32.mrf.mxu0 }
 0x597   : > { %v19680_v19 = vadd.f32 %v12535_v2, %v7619_v27  ;;  %v19700_v2 = vpop.f32.mrf.mxu1 }
 0x598   : > { %v19684_v13 = vpop.f32.mrf.mxu0 }
 0x59a   : > { %v12538_v11 = vpop.f32.mrf.mxu0 }
 0x59b   : > { %v19688_v8 = vadd.f32 %v12538_v11, %v7622_v26  ;;  %v19710_v11 = vpop.f32.mrf.mxu1 }
 0x59c   : > { %v7901_v9 = vpop.f32.mrf.mxu0 }
 0x59d   : > { %v19694_v6 = vadd.f32 %v7901_v9, %v7620_v48 }
 0x59e   : > { %v12539_v41 = vpop.f32.mrf.mxu0 }
 0x59f   : > { %v19698_v27 = vadd.f32 %v12539_v41, %v7623_v35  ;;  %v19718_v41 = vpop.f32.mrf.mxu1 }
 0x5a0   : > { %v19702_v59 = vpop.f32.mrf.mxu0 }
 0x5a2   : > { %v12542_v26 = vpop.f32.mrf.mxu0 }
 0x5a3   : > { %v19706_v20 = vadd.f32 %v12542_v26, %v7626_v61  ;;  %v19728_v26 = vpop.f32.mrf.mxu1 }
 0x5a4   : > { %v7917_v48 = vpop.f32.mrf.mxu0 }
 0x5a5   : > { %v19712_v25 = vadd.f32 %v7917_v48, %v7624_v7 }
 0x5a6   : > { %v12543_v9 = vpop.f32.mrf.mxu0 }
 0x5a7   : > { %v19716_v35 = vadd.f32 %v12543_v9, %v7627_v33  ;;  %v19736_v9 = vpop.f32.mrf.mxu1 }
 0x5a8   : > { %v19720_v42 = vpop.f32.mrf.mxu0 }
 0x5aa   : > { %v12546_v61 = vpop.f32.mrf.mxu0 }
 0x5ab   : > { %v19724_v14 = vadd.f32 %v12546_v61, %v7630_v3  ;;  %v19746_v61 = vpop.f32.mrf.mxu1 }
 0x5ac   : > { %v7933_v7 = vpop.f32.mrf.mxu0 }
 0x5ad   : > { %v19730_v38 = vadd.f32 %v7933_v7, %v7628_v22  ;;  %v19755_v10 = vpop.f32.mrf.mxu1 }
 0x5ae   : > { %v12547_v48 = vpop.f32.mrf.mxu0 }
 0x5af   : > { %v19734_v33 = vadd.f32 %v12547_v48, %v7631_v60  ;;  %v23335_v48 = vld [vmem:[#allocation210_spill] sm:$0xff] }
 0x5b0   : > { %v19738_v29 = vpop.f32.mrf.mxu0 }
 0x5b1   : > { %23334 = vst [vmem:[#allocation245_spill] sm:$0xff] %v19734_v33  ;;  %v8846_v33 = vsub.s32 2, %v23335_v48 }
 0x5b2   : > { %v12550_v3 = vpop.f32.mrf.mxu0 }
 0x5b3   : > { %v19742_v17 = vadd.f32 %v12550_v3, %v7634_v12  ;;  %v7605_v12 = vadd.f32 %v23336_v37, %v19386_v54  ;;  %v8359_v54 = vadd.f32 %v19624_v52, %v19620_v53 }
 0x5b4   : > { %v7949_v22 = vpop.f32.mrf.mxu0 }
 0x5b5   : > { %v19748_v47 = vadd.f32 %v7949_v22, %v7632_v31  ;;  %v8356_v31 = vadd.f32 %v19607_v24, %v19610_v40  ;;  %v7997_v34 = vadd.f32 %v19622_v1, %v7605_v12  ;;  %v19769_v22 = vld [vmem:[%s20489_s6] sm:$0xf] }
 0x5b6   : > { %v12551_v7 = vpop.f32.mrf.mxu0  ;;  %23337 = vst [vmem:[#allocation103_spill] sm:$0xff] %v19769_v22 }
 0x5b7   : > { %v19752_v60 = vadd.f32 %v12551_v7, %v7635_v4  ;;  %v19772_v4 = vrot.slane %v19769_v22, %v8846_v33  ;;  %v19774_v7 = vpop.f32.mrf.mxu1  ;;  %v8357_v24 = vadd.f32 %v19638_v46, %v7997_v34  ;;  %v8362_v22 = vadd.f32 %v19646_v30, %v19628_v58 }
 0x5b8   : > { %v19757_v55 = vpop.f32.mrf.mxu0  ;;  %v8360_v46 = vadd.f32 %v19656_v5, %v19640_v57 }
 0x5ba   : > { %v12590_v3 = vpop.f32.mrf.mxu0 }
 0x5bb   : > { %v8750_v15 = vadd.f32 %v12590_v3, %v8358_v44  ;;  %v23338_v44 = vld [vmem:[#allocation59_spill] sm:$0xff]  ;;  %v19782_v3 = vpop.f32.mrf.mxu1 }
 0x5bc   : > { %v8589_v49 = vpop.f32.mrf.mxu0  ;;  %v7609_v12 = vadd.f32 %v23338_v44, %v19422_v36 }
 0x5bd   : > { %v8748_v39 = vadd.f32 %v8589_v49, %v8356_v31  ;;  %v8850_v40 = vadd.f32 %v19772_v4, %v8750_v15  ;;  %v19794_v58 = vpop.f32.mrf.mxu1 }
 0x5be   : > { %v12591_v37 = vpop.f32.mrf.mxu0  ;;  %v8001_v31 = vadd.f32 %v19648_v63, %v7609_v12 }
 0x5bf   : > { %v8751_v1 = vadd.f32 %v12591_v37, %v8359_v54  ;;  %v8848_v48 = vadd.f32 %v19772_v4, %v8748_v39  ;;  %v8882_v15 = vmax.f32 %v8850_v40, 0.0  ;;  %v8363_v37 = vadd.f32 %v19664_v0, %v19644_v16  ;;  %v19800_v12 = vpop.f32.mrf.mxu1 }
 0x5c0   : > { %v8592_v33 = vpop.f32.mrf.mxu0  ;;  %v8361_v57 = vadd.f32 %v19674_v56, %v8001_v31  ;;  %v8366_v0 = vadd.f32 %v19682_v28, %v19652_v43  ;;  %v8364_v56 = vadd.f32 %v19692_v32, %v19658_v21  ;;  %v8367_v43 = vadd.f32 %v19700_v2, %v19662_v62 }
 0x5c1   : > { %v8851_v53 = vadd.f32 %v19772_v4, %v8751_v1  ;;  %v8749_v52 = vadd.f32 %v8592_v33, %v8357_v24  ;;  %v8880_v39 = vmax.f32 %v8848_v48, 0.0  ;;  %v19813_v28 = vpop.f32.mrf.mxu1  ;;  %v8370_v2 = vadd.f32 %v19718_v41, %v19670_v18 }
 0x5c2   : > { %v12594_v34 = vpop.f32.mrf.mxu0 }
 0x5c3   : > { %v8883_v49 = vmax.f32 %v8851_v53, 0.0  ;;  %v8849_v36 = vadd.f32 %v19772_v4, %v8749_v52  ;;  %v8754_v54 = vadd.f32 %v12594_v34, %v8362_v22  ;;  %v7613_v22 = vadd.f32 %v19282_v23, %v19458_v51 }
 0x5c4   : > { %v8605_v30 = vpop.f32.mrf.mxu0  ;;  %v23339_v34 = vmov 0  }
 0x5c5   : > { %v8977_v1 = vpack.c.bf16 %v8883_v49, %v8882_v15  ;;  %v8881_v24 = vmax.f32 %v8849_v36, 0.0  ;;  %v8752_v44 = vadd.f32 %v8605_v30, %v8360_v46  ;;  %v8854_v63 = vadd.f32 %v19772_v4, %v8754_v54 }
 0x5c6   : > { %v12595_v33 = vpop.f32.mrf.mxu0  ;;  %v8005_v46 = vadd.f32 %v19666_v45, %v7613_v22 }
 0x5c7   : > { %v8976_v5 = vpack.c.bf16 %v8881_v24, %v8880_v39  ;;  %v8755_v40 = vadd.f32 %v12595_v33, %v8363_v37  ;;  %v8852_v48 = vadd.f32 %v19772_v4, %v8752_v44  ;;  %v8886_v23 = vmax.f32 %v8854_v63, 0.0  ;;  %v23340_v33 = vld [vmem:[#allocation207_spill] sm:$0xff]  ;;  %v19821_v63 = vpop.f32.mrf.mxu1 }
 0x5c8   : > { %v8608_v16 = vpop.f32.mrf.mxu0  ;;  %v8365_v30 = vadd.f32 %v19710_v11, %v8005_v46  ;;  %v23342_v11 = vld [vmem:[#allocation77_spill] sm:$0xff] }
 0x5c9   : > { %v8855_v53 = vadd.f32 %v19772_v4, %v8755_v40  ;;  %v8753_v52 = vadd.f32 %v8608_v16, %v8361_v57  ;;  %9122 = vmatmul.mubr.bf16.vlgmr.msra.gmra.mxu1 %v8976_v5  ;;  %v8884_v54 = vmax.f32 %v8852_v48, 0.0  ;;  %v23341_v57 = vld [vmem:[#allocation97_spill] sm:$0xff] }
 0x5ca   : > { %v12598_v31 = vpop.f32.mrf.mxu0  ;;  %9131 = vmatprep.mubr.bf16.mxu1 %v23339_v34  ;;  %v7617_v5 = vadd.f32 %v23341_v57, %v23340_v33  ;;  %v8374_v33 = vadd.f32 %v19755_v10, %v19688_v8  ;;  %v23348_v10 = vld [vmem:[#allocation204_spill] sm:$0xff] }
 0x5cb   : > { %v8887_v51 = vmax.f32 %v8855_v53, 0.0  ;;  %v8853_v15 = vadd.f32 %v19772_v4, %v8753_v52  ;;  %v8758_v49 = vadd.f32 %v12598_v31, %v8366_v0  ;;  %v23343_v0 = vld [vmem:[#allocation212_spill] sm:$0xff]  ;;  %v8368_v53 = vadd.f32 %v19728_v26, %v19676_v50 }
 0x5cc   : > { %v8621_v36 = vpop.f32.mrf.mxu0  ;;  %v6967_v48 = vadd.f32 %v23343_v0, %v23342_v11  ;;  %v8009_v52 = vadd.f32 %v19684_v13, %v7617_v5 }
 0x5cd   : > { %v19815_v37 = vpack.c.bf16 %v8887_v51, %v8886_v23  ;;  %v8885_v21 = vmax.f32 %v8853_v15, 0.0  ;;  %v8756_v32 = vadd.f32 %v8621_v36, %v8364_v56  ;;  %v8858_v24 = vadd.f32 %v19772_v4, %v8758_v49  ;;  %v23344_v23 = vld [vmem:[#allocation202_spill] sm:$0xff]  ;;  %v19837_v15 = vpop.f32.mrf.mxu1 }
 0x5ce   : > { %v12599_v45 = vpop.f32.mrf.mxu0  ;;  %v7229_v51 = vadd.f32 %v23344_v23, %v6967_v48 }
 0x5cf   : > { %v8978_v39 = vpack.c.bf16 %v8885_v21, %v8884_v54  ;;  %v8759_v44 = vadd.f32 %v12599_v45, %v8367_v43  ;;  %v8856_v40 = vadd.f32 %v19772_v4, %v8756_v32  ;;  %v8890_v46 = vmax.f32 %v8858_v24, 0.0 }
 0x5d0   : > { %v8624_v62 = vpop.f32.mrf.mxu0  ;;  %v8369_v54 = vadd.f32 %v19746_v61, %v8009_v52  ;;  %v23346_v61 = vld [vmem:[#allocation148_spill] sm:$0xff] }
 0x5d1   : > { %v8859_v22 = vadd.f32 %v19772_v4, %v8759_v44  ;;  %v8757_v16 = vadd.f32 %v8624_v62, %v8365_v30  ;;  %9132 = vmatmul.mubr.bf16.gmra.mxu1 %v8977_v1  ;;  %v8371_v1 = vadd.f32 %v19736_v9, %v19680_v19  ;;  %v8888_v43 = vmax.f32 %v8856_v40, 0.0  ;;  %v23345_v30 = vld [vmem:[#allocation122_spill] sm:$0xff]  ;;  %v19846_v44 = vpop.f32.mrf.mxu1  ;;  %v23347_v62 = vld [vmem:[#allocation64_spill] sm:$0xff] }
 0x5d2   : > { %v12602_v56 = vpop.f32.mrf.mxu0  ;;  %9141 = vmatprep.mubr.bf16.mxu1 %v23339_v34  ;;  %v7621_v24 = vadd.f32 %v23345_v30, %v7229_v51  ;;  %v8372_v40 = vadd.f32 %v19774_v7, %v19694_v6 }
 0x5d3   : > { %v8891_v31 = vmax.f32 %v8859_v22, 0.0  ;;  %v8857_v18 = vadd.f32 %v19772_v4, %v8757_v16  ;;  %v8762_v41 = vadd.f32 %v12602_v56, %v8370_v2  ;;  %v6971_v2 = vadd.f32 %v23347_v62, %v23346_v61  ;;  %v8293_v52 = vpop.f32.mrf.mxu1 }
 0x5d4   : > { %v8637_v49 = vpop.f32.mrf.mxu0  ;;  %v8013_v22 = vadd.f32 %v19702_v59, %v7621_v24 }
 0x5d5   : > { %v19839_v50 = vpack.c.bf16 %v8891_v31, %v8890_v46  ;;  %v8889_v13 = vmax.f32 %v8857_v18, 0.0  ;;  %v8760_v26 = vadd.f32 %v8637_v49, %v8368_v53  ;;  %v8862_v32 = vadd.f32 %v19772_v4, %v8762_v41  ;;  %v23349_v49 = vld [vmem:[#allocation159_spill] sm:$0xff] }
 0x5d6   : > { %v12603_v36 = vpop.f32.mrf.mxu0  ;;  %v7233_v53 = vadd.f32 %v23348_v10, %v6971_v2  ;;  %v8373_v41 = vadd.f32 %v19794_v58, %v8013_v22  ;;  %v8382_v10 = vadd.f32 %v19846_v44, %v19724_v14  ;;  %v23356_v44 = vld [vmem:[#allocation79_spill] sm:$0xff] }
 0x5d7   : > { %v19842_v21 = vpack.c.bf16 %v8889_v13, %v8888_v43  ;;  %v8763_v45 = vadd.f32 %v12603_v36, %v8371_v1  ;;  %v8860_v19 = vadd.f32 %v19772_v4, %v8760_v26  ;;  %v8894_v11 = vmax.f32 %v8862_v32, 0.0  ;;  %v23351_v32 = vld [vmem:[#allocation74_spill] sm:$0xff] }
 0x5d8   : > { %v8640_v9 = vpop.f32.mrf.mxu0  ;;  %v7625_v43 = vadd.f32 %v23349_v49, %v7233_v53  ;;  %v8378_v13 = vadd.f32 %v19800_v12, %v19706_v20  ;;  %v23357_v49 = vld [vmem:[#allocation245_spill] sm:$0xff] }
 0x5d9   : > { %v8863_v57 = vadd.f32 %v19772_v4, %v8763_v45  ;;  %v8761_v5 = vadd.f32 %v8640_v9, %v8369_v54  ;;  %9142 = vmatmul.mubr.bf16.gmra.mxu1 %v8978_v39  ;;  %v8375_v39 = vadd.f32 %v19782_v3, %v19698_v27  ;;  %v8892_v56 = vmax.f32 %v8860_v19, 0.0  ;;  %v12581_v27 = vpop.f32.mrf.mxu1  ;;  %v23350_v54 = vld [vmem:[#allocation194_spill] sm:$0xff] }
 0x5da   : > { %v12606_v16 = vpop.f32.mrf.mxu0  ;;  %9151 = vmatprep.mubr.bf16.mxu1 %v23339_v34  ;;  %v6975_v58 = vadd.f32 %v23351_v32, %v23350_v54  ;;  %v8376_v45 = vadd.f32 %v19813_v28, %v19712_v25  ;;  %v8017_v30 = vadd.f32 %v19720_v42, %v7625_v43  ;;  %v8383_v43 = vadd.f32 %v12581_v27, %v23357_v49 }
 0x5db   : > { %v8895_v0 = vmax.f32 %v8863_v57, 0.0  ;;  %v8861_v48 = vadd.f32 %v19772_v4, %v8761_v5  ;;  %v8766_v8 = vadd.f32 %v12606_v16, %v8374_v33  ;;  %v23352_v33 = vld [vmem:[#allocation225_spill] sm:$0xff]  ;;  %v8296_v5 = vpop.f32.mrf.mxu1 }
 0x5dc   : > { %v8653_v46 = vpop.f32.mrf.mxu0  ;;  %v7237_v57 = vadd.f32 %v23352_v33, %v6975_v58  ;;  %v8377_v22 = vadd.f32 %v19837_v15, %v8017_v30  ;;  %v23358_v30 = vld [vmem:[#allocation23_spill] sm:$0xff] }
 0x5dd   : > { %v19862_v31 = vpack.c.bf16 %v8895_v0, %v8894_v11  ;;  %v8893_v6 = vmax.f32 %v8861_v48, 0.0  ;;  %v8866_v59 = vadd.f32 %v19772_v4, %v8766_v8  ;;  %v8764_v7 = vadd.f32 %v8653_v46, %v8372_v40  ;;  %v23353_v48 = vld [vmem:[#allocation57_spill] sm:$0xff]  ;;  %v23355_v46 = vld [vmem:[#allocation184_spill] sm:$0xff] }
 0x5de   : > { %v12607_v18 = vpop.f32.mrf.mxu0  ;;  %v7629_v8 = vadd.f32 %v23353_v48, %v7237_v57 }
 0x5df   : > { %v19866_v23 = vpack.c.bf16 %v8893_v6, %v8892_v56  ;;  %v8864_v51 = vadd.f32 %v19772_v4, %v8764_v7  ;;  %v8767_v1 = vadd.f32 %v12607_v18, %v8375_v39  ;;  %v8898_v19 = vmax.f32 %v8866_v59, 0.0  ;;  %v23354_v56 = vld [vmem:[#allocation35_spill] sm:$0xff] }
 0x5e0   : > { %v8656_v3 = vpop.f32.mrf.mxu0  ;;  %v6979_v15 = vadd.f32 %v23355_v46, %v23354_v56  ;;  %v8380_v6 = vadd.f32 %v8293_v52, %v19730_v38  ;;  %v8021_v59 = vadd.f32 %v19738_v29, %v7629_v8 }
 0x5e1   : > { %v8867_v26 = vadd.f32 %v19772_v4, %v8767_v1  ;;  %v8765_v36 = vadd.f32 %v8656_v3, %v8373_v41  ;;  %9152 = vmatmul.mubr.bf16.gmra.mxu1 %v19815_v37  ;;  %v8379_v37 = vadd.f32 %v19821_v63, %v19716_v35  ;;  %v8896_v61 = vmax.f32 %v8864_v51, 0.0  ;;  %v12584_v35 = vpop.f32.mrf.mxu1 }
 0x5e2   : > { %v12610_v24 = vpop.f32.mrf.mxu0  ;;  %9161 = vmatprep.mubr.bf16.mxu1 %v23339_v34  ;;  %v7241_v1 = vadd.f32 %v23356_v44, %v6979_v15  ;;  %v8381_v54 = vadd.f32 %v8296_v5, %v8021_v59 }
 0x5e3   : > { %v8899_v9 = vmax.f32 %v8867_v26, 0.0  ;;  %v8865_v20 = vadd.f32 %v19772_v4, %v8765_v36  ;;  %v8770_v12 = vadd.f32 %v12610_v24, %v8378_v13 }
 0x5e4   : > { %v8669_v62 = vpop.f32.mrf.mxu0  ;;  %v7633_v24 = vadd.f32 %v23358_v30, %v7241_v1 }
 0x5e5   : > { %v19884_v2 = vpack.c.bf16 %v8899_v9, %v8898_v19  ;;  %v8897_v25 = vmax.f32 %v8865_v20, 0.0  ;;  %v8870_v42 = vadd.f32 %v19772_v4, %v8770_v12  ;;  %v8768_v28 = vadd.f32 %v8669_v62, %v8376_v45 }
 0x5e6   : > { %v12611_v40 = vpop.f32.mrf.mxu0  ;;  %v8386_v9 = vadd.f32 %v12584_v35, %v19742_v17  ;;  %v8025_v57 = vadd.f32 %v19757_v55, %v7633_v24 }
 0x5e7   : > { %v19888_v16 = vpack.c.bf16 %v8897_v25, %v8896_v61  ;;  %v8868_v11 = vadd.f32 %v19772_v4, %v8768_v28  ;;  %v8771_v0 = vadd.f32 %v12611_v40, %v8379_v37  ;;  %v8902_v18 = vmax.f32 %v8870_v42, 0.0 }
 0x5e8   : > { %v8672_v63 = vpop.f32.mrf.mxu0 }
 0x5e9   : > { %v8871_v53 = vadd.f32 %v19772_v4, %v8771_v0  ;;  %v8769_v39 = vadd.f32 %v8672_v63, %v8377_v22  ;;  %9162 = vmatmul.mubr.bf16.gmra.mxu1 %v19842_v21  ;;  %v8309_v21 = vpop.f32.mrf.mxu1  ;;  %v8900_v3 = vmax.f32 %v8868_v11, 0.0 }
 0x5ea   : > { %v12614_v7 = vpop.f32.mrf.mxu0  ;;  %9171 = vmatprep.mubr.bf16.mxu1 %v23339_v34  ;;  %v8384_v33 = vadd.f32 %v8309_v21, %v19748_v47 }
 0x5eb   : > { %v8903_v41 = vmax.f32 %v8871_v53, 0.0  ;;  %v8869_v51 = vadd.f32 %v19772_v4, %v8769_v39  ;;  %v8774_v14 = vadd.f32 %v12614_v7, %v8382_v10  ;;  %v12585_v19 = vpop.f32.mrf.mxu1  ;;  %v23359_v53 = vld [vmem:[#allocation210_spill] sm:$0xff] }
 0x5ec   : > { %v8685_v13 = vpop.f32.mrf.mxu0  ;;  %v8387_v42 = vadd.f32 %v12585_v19, %v19752_v60  ;;  %v9642_v39 = vsub.s32 3, %v23359_v53 }
 0x5ed   : > { %v19904_v26 = vpack.c.bf16 %v8903_v41, %v8902_v18  ;;  %v8901_v38 = vmax.f32 %v8869_v51, 0.0  ;;  %v8874_v29 = vadd.f32 %v19772_v4, %v8774_v14  ;;  %v8772_v52 = vadd.f32 %v8685_v13, %v8380_v6  ;;  %v8312_v17 = vpop.f32.mrf.mxu1  ;;  %v23360_v51 = vld [vmem:[#allocation103_spill] sm:$0xff] }
 0x5ee   : > { %v12615_v36 = vpop.f32.mrf.mxu0  ;;  %v8385_v0 = vadd.f32 %v8312_v17, %v8025_v57  ;;  %v19933_v14 = vrot.slane %v23360_v51, %v9642_v39 }
 0x5ef   : > { %v19907_v32 = vpack.c.bf16 %v8901_v38, %v8900_v3  ;;  %v8872_v58 = vadd.f32 %v19772_v4, %v8772_v52  ;;  %v8775_v45 = vadd.f32 %v12615_v36, %v8383_v43  ;;  %v8906_v5 = vmax.f32 %v8874_v29, 0.0 }
 0x5f0   : > { %v8688_v27 = vpop.f32.mrf.mxu0 }
 0x5f1   : > { %v8875_v20 = vadd.f32 %v19772_v4, %v8775_v45  ;;  %v8773_v12 = vadd.f32 %v8688_v27, %v8381_v54  ;;  %9172 = vmatmul.mubr.bf16.gmra.mxu1 %v19839_v50  ;;  %v8904_v28 = vmax.f32 %v8872_v58, 0.0 }
 0x5f2   : > { %v12618_v37 = vpop.f32.mrf.mxu0  ;;  %9181 = vmatprep.mubr.bf16.mxu1 %v23339_v34 }
 0x5f3   : > { %v8907_v61 = vmax.f32 %v8875_v20, 0.0  ;;  %v8873_v62 = vadd.f32 %v19772_v4, %v8773_v12  ;;  %v8778_v25 = vadd.f32 %v12618_v37, %v8386_v9 }
 0x5f4   : > { %v8701_v40 = vpop.f32.mrf.mxu0 }
 0x5f5   : > { %v19919_v22 = vpack.c.bf16 %v8907_v61, %v8906_v5  ;;  %v8905_v50 = vmax.f32 %v8873_v62, 0.0  ;;  %v8878_v47 = vadd.f32 %v19772_v4, %v8778_v25  ;;  %v8776_v11 = vadd.f32 %v8701_v40, %v8384_v33 }
 0x5f6   : > { %v12619_v55 = vpop.f32.mrf.mxu0 }
 0x5f7   : > { %v19922_v48 = vpack.c.bf16 %v8905_v50, %v8904_v28  ;;  %v8876_v8 = vadd.f32 %v19772_v4, %v8776_v11  ;;  %v8779_v35 = vadd.f32 %v12619_v55, %v8387_v42  ;;  %v8910_v46 = vmax.f32 %v8878_v47, 0.0 }
 0x5f8   : > { %v8704_v63 = vpop.f32.mrf.mxu0 }
 0x5f9   : > { %v8879_v10 = vadd.f32 %v19772_v4, %v8779_v35  ;;  %v8777_v60 = vadd.f32 %v8704_v63, %v8385_v0  ;;  %9182 = vmatmul.mubr.bf16.gmra.mxu1 %v19866_v23  ;;  %v8908_v7 = vmax.f32 %v8876_v8, 0.0 }
 0x5fa   : > { %v12624_v56 = vpop.f32.mrf.mxu0  ;;  %9191 = vmatprep.mubr.bf16.mxu1 %v23339_v34 }
 0x5fb   : > { %v8911_v15 = vmax.f32 %v8879_v10, 0.0  ;;  %v8877_v6 = vadd.f32 %v19772_v4, %v8777_v60  ;;  %v9646_v36 = vadd.f32 %v12624_v56, %v19933_v14 }
 0x5fc   : > { %v9449_v59 = vpop.f32.mrf.mxu0 }
 0x5fd   : > { %v19930_v18 = vpack.c.bf16 %v8911_v15, %v8910_v46  ;;  %v8909_v41 = vmax.f32 %v8877_v6, 0.0  ;;  %v9644_v23 = vadd.f32 %v19933_v14, %v9449_v59 }
 0x5fe   : > { %v12625_v44 = vpop.f32.mrf.mxu0 }
 0x5ff   : > { %v19935_v1 = vpack.c.bf16 %v8909_v41, %v8908_v7  ;;  %v9676_v4 = vmax.f32 %v9644_v23, 0.0  ;;  %v9647_v38 = vadd.f32 %v12625_v44, %v19933_v14 }
 0x600   : > { %v9452_v49 = vpop.f32.mrf.mxu0 }
 0x601   : > { %v9645_v43 = vadd.f32 %v19933_v14, %v9452_v49  ;;  %9192 = vmatmul.mubr.bf16.gmra.mxu1 %v19862_v31  ;;  %v9679_v54 = vmax.f32 %v9647_v38, 0.0  ;;  %v9678_v31 = vmax.f32 %v9646_v36, 0.0 }
 0x602   : > { %v12628_v21 = vpop.f32.mrf.mxu0  ;;  %9201 = vmatprep.mubr.bf16.mxu1 %v23339_v34 }
 0x603   : > { %v9677_v3 = vmax.f32 %v9645_v43, 0.0  ;;  %v9773_v45 = vpack.c.bf16 %v9679_v54, %v9678_v31 }
 0x604   : > { %v9465_v13 = vpop.f32.mrf.mxu0 }
 0x605   : > { %v9772_v29 = vpack.c.bf16 %v9677_v3, %v9676_v4  ;;  %v9648_v30 = vadd.f32 %v19933_v14, %v9465_v13 }
 0x606   : > { %v12629_v52 = vpop.f32.mrf.mxu0 }
 0x607   : > { %9918 = vmatmul.mubr.bf16.vlgmr.msra.gmra.mxu0 %v9772_v29  ;;  %v9680_v27 = vmax.f32 %v9648_v30, 0.0  ;;  %v9651_v12 = vadd.f32 %v12629_v52, %v19933_v14 }
 0x608   : > { %9927 = vmatprep.mubr.bf16.mxu0 %v23339_v34  ;;  %v9468_v58 = vpop.f32.mrf.mxu0 }
 0x609   : > { %9202 = vmatmul.mubr.bf16.gmra.mxu1 %v19888_v16  ;;  %v9649_v24 = vadd.f32 %v19933_v14, %v9468_v58  ;;  %v9650_v16 = vadd.f32 %v12628_v21, %v19933_v14  ;;  %v9683_v5 = vmax.f32 %v9651_v12, 0.0 }
 0x60a   : > { %9211 = vmatprep.mubr.bf16.mxu1 %v23339_v34  ;;  %v12632_v19 = vpop.f32.mrf.mxu0 }
 0x60b   : > { %v9681_v9 = vmax.f32 %v9649_v24, 0.0  ;;  %v9682_v37 = vmax.f32 %v9650_v16, 0.0 }
 0x60c   : > { %v9481_v20 = vpop.f32.mrf.mxu0 }
 0x60d   : > { %v9774_v33 = vpack.c.bf16 %v9681_v9, %v9680_v27  ;;  %v9652_v62 = vadd.f32 %v19933_v14, %v9481_v20 }
 0x60e   : > { %v12633_v57 = vpop.f32.mrf.mxu0 }
 0x60f   : > { %9928 = vmatmul.mubr.bf16.gmra.mxu0 %v9773_v45  ;;  %v9684_v17 = vmax.f32 %v9652_v62, 0.0  ;;  %v9655_v50 = vadd.f32 %v12633_v57, %v19933_v14 }
 0x610   : > { %9937 = vmatprep.mubr.bf16.mxu0 %v23339_v34  ;;  %v9484_v61 = vpop.f32.mrf.mxu0 }
 0x611   : > { %9212 = vmatmul.mubr.bf16.gmra.mxu1 %v19884_v2  ;;  %v9775_v2 = vpack.c.bf16 %v9683_v5, %v9682_v37  ;;  %v9653_v25 = vadd.f32 %v19933_v14, %v9484_v61  ;;  %v9687_v0 = vmax.f32 %v9655_v50, 0.0 }
 0x612   : > { %9221 = vmatprep.mubr.bf16.mxu1 %v23339_v34  ;;  %v12636_v42 = vpop.f32.mrf.mxu0 }
 0x613   : > { %v9685_v28 = vmax.f32 %v9653_v25, 0.0 }
 0x614   : > { %v9497_v40 = vpop.f32.mrf.mxu0 }
 0x615   : > { %v9776_v47 = vpack.c.bf16 %v9685_v28, %v9684_v17  ;;  %v9656_v35 = vadd.f32 %v19933_v14, %v9497_v40 }
 0x616   : > { %v12637_v11 = vpop.f32.mrf.mxu0 }
 0x617   : > { %9938 = vmatmul.mubr.bf16.gmra.mxu0 %v9774_v33  ;;  %v9688_v60 = vmax.f32 %v9656_v35, 0.0  ;;  %v9659_v46 = vadd.f32 %v12637_v11, %v19933_v14 }
 0x618   : > { %9947 = vmatprep.mubr.bf16.mxu0 %v23339_v34  ;;  %v9500_v8 = vpop.f32.mrf.mxu0 }
 0x619   : > { %9222 = vmatmul.mubr.bf16.gmra.mxu1 %v19907_v32  ;;  %v9654_v32 = vadd.f32 %v12632_v19, %v19933_v14  ;;  %v9657_v63 = vadd.f32 %v19933_v14, %v9500_v8  ;;  %v9691_v7 = vmax.f32 %v9659_v46, 0.0 }
 0x61a   : > { %9231 = vmatprep.mubr.bf16.mxu1 %v23339_v34  ;;  %v12640_v10 = vpop.f32.mrf.mxu0 }
 0x61b   : > { %v9686_v55 = vmax.f32 %v9654_v32, 0.0  ;;  %v9689_v39 = vmax.f32 %v9657_v63, 0.0  ;;  %v9662_v4 = vadd.f32 %v12640_v10, %v19933_v14 }
 0x61c   : > { %v9513_v56 = vpop.f32.mrf.mxu0 }
 0x61d   : > { %v9778_v15 = vpack.c.bf16 %v9689_v39, %v9688_v60  ;;  %v9660_v51 = vadd.f32 %v19933_v14, %v9513_v56  ;;  %v9694_v38 = vmax.f32 %v9662_v4, 0.0 }
 0x61e   : > { %v12641_v6 = vpop.f32.mrf.mxu0 }
 0x61f   : > { %9948 = vmatmul.mubr.bf16.gmra.mxu0 %v9775_v2  ;;  %v9692_v49 = vmax.f32 %v9660_v51, 0.0 }
 0x620   : > { %9957 = vmatprep.mubr.bf16.mxu0 %v23339_v34  ;;  %v9516_v41 = vpop.f32.mrf.mxu0 }
 0x621   : > { %9232 = vmatmul.mubr.bf16.gmra.mxu1 %v19904_v26  ;;  %v9777_v26 = vpack.c.bf16 %v9687_v0, %v9686_v55  ;;  %v9661_v44 = vadd.f32 %v19933_v14, %v9516_v41 }
 0x622   : > { %9241 = vmatprep.mubr.bf16.mxu1 %v23339_v34  ;;  %v12644_v23 = vpop.f32.mrf.mxu0 }
 0x623   : > { %v9693_v43 = vmax.f32 %v9661_v44, 0.0  ;;  %v9666_v24 = vadd.f32 %v12644_v23, %v19933_v14 }
 0x624   : > { %v9529_v21 = vpop.f32.mrf.mxu0 }
 0x625   : > { %v9780_v3 = vpack.c.bf16 %v9693_v43, %v9692_v49  ;;  %v9664_v54 = vadd.f32 %v19933_v14, %v9529_v21  ;;  %v9698_v20 = vmax.f32 %v9666_v24, 0.0  ;;  %v23361_v24 = vld [vmem:[#allocation83_spill] sm:$0xff] }
 0x626   : > { %v12645_v13 = vpop.f32.mrf.mxu0 }
 0x627   : > { %9958 = vmatmul.mubr.bf16.gmra.mxu0 %v9776_v47  ;;  %v9667_v19 = vadd.f32 %v12645_v13, %v19933_v14 }
 0x628   : > { %9967 = vmatprep.mubr.bf16.mxu0 %v23339_v34  ;;  %v9532_v52 = vpop.f32.mrf.mxu0 }
 0x629   : > { %9242 = vmatmul.mubr.bf16.gmra.mxu1 %v19922_v48  ;;  %v9658_v48 = vadd.f32 %v12636_v42, %v19933_v14  ;;  %v9665_v58 = vadd.f32 %v19933_v14, %v9532_v52  ;;  %v9699_v16 = vmax.f32 %v9667_v19, 0.0  ;;  %v23362_v19 = vld [vmem:[#allocation72_spill] sm:$0xff] }
 0x62a   : > { %9251 = vmatprep.mubr.bf16.mxu1 %v23339_v34  ;;  %v12648_v31 = vpop.f32.mrf.mxu0 }
 0x62b   : > { %v9690_v59 = vmax.f32 %v9658_v48, 0.0  ;;  %v9697_v45 = vmax.f32 %v9665_v58, 0.0  ;;  %v9783_v33 = vpack.c.bf16 %v9699_v16, %v9698_v20  ;;  %v9670_v25 = vadd.f32 %v12648_v31, %v19933_v14  ;;  %v23363_v20 = vld [vmem:[#allocation98_spill] sm:$0xff]  ;;  %v23364_v16 = vld [vmem:[#allocation209_spill] sm:$0xff] }
 0x62c   : > { %v9545_v30 = vpop.f32.mrf.mxu0 }
 0x62d   : > { %v9668_v57 = vadd.f32 %v19933_v14, %v9545_v30  ;;  %v9702_v40 = vmax.f32 %v9670_v25, 0.0  ;;  %v10270_v30 = vld [vmem:[%s361_s18] sm:$0x3]  ;;  %s12850_s18 = sshll.u32 %s12925_s26, 4  ;;  %s12851_s18 = int_to_ptr.vmem [resolvable:$false] %s12850_s18 }
 0x62e   : > { %v12649_v9 = vpop.f32.mrf.mxu0  ;;  %s12852_s29 = scalar_lea.vmem %s12851_s18, 16384  ;;  %p12853_p1 = scmp.lt.s32.totalorder %s20432_s25, %s12851_s18 }
 0x62f   : > { %9968 = vmatmul.mubr.bf16.gmra.mxu0 %v9777_v26  ;;  %v9700_v61 = vmax.f32 %v9668_v57, 0.0  ;;  %v9671_v42 = vadd.f32 %v12649_v9, %v19933_v14  ;;  %v23365_v57 = vsub.s32 0, %v23359_v53  ;;  %p12854_p2 = scmp.lt.s32.totalorder %s12852_s29, %s12846_s16 }
 0x630   : > { %9977 = vmatprep.mubr.bf16.mxu0 %v23339_v34  ;;  %v9548_v12 = vpop.f32.mrf.mxu0 }
 0x631   : > { %9252 = vmatmul.mubr.bf16.gmra.mxu1 %v19919_v22  ;;  %v9779_v22 = vpack.c.bf16 %v9691_v7, %v9690_v59  ;;  %v9669_v37 = vadd.f32 %v19933_v14, %v9548_v12  ;;  %v9703_v32 = vmax.f32 %v9671_v42, 0.0  ;;  %v5160_v12 = vadd.f32 %v23364_v16, %v23363_v20  ;;  %p12855_p3 = por %p12854_p2, %p12853_p1 }
 0x632   : > { %9261 = vmatprep.mubr.bf16.mxu1 %v23339_v34  ;;  %v12652_v5 = vpop.f32.mrf.mxu0 }
 0x633   : > { %v9701_v2 = vmax.f32 %v9669_v37, 0.0  ;;  %v9785_v47 = vpack.c.bf16 %v9703_v32, %v9702_v40  ;;  %v9674_v26 = vadd.f32 %v12652_v5, %v19933_v14  ;;  %v20064_v37 = vrot.slane %v10270_v30, %v23365_v57  ;;  %v23375_v57 = vld [vmem:[#allocation137_spill] sm:$0xff]  ;;  %p12856_p5 = pnand %p12855_p3, %p12849_p0 }
 0x634   : > { %v9561_v62 = vpop.f32.mrf.mxu0 }
 0x635   : > { %v9784_v17 = vpack.c.bf16 %v9701_v2, %v9700_v61  ;;  %v9672_v11 = vadd.f32 %v19933_v14, %v9561_v62  ;;  %v9706_v10 = vmax.f32 %v9674_v26, 0.0  ;;  %v23366_v2 = vld [vmem:[#allocation107_spill] sm:$0xff]  ;;  %v23367_v62 = vld [vmem:[#allocation65_spill] sm:$0xff] }
 0x636   : > { %v12653_v28 = vpop.f32.mrf.mxu0  ;;  %v5161_v25 = vadd.f32 %v23367_v62, %v23366_v2 }
 0x637   : > { %9978 = vmatmul.mubr.bf16.gmra.mxu0 %v9778_v15  ;;  %v9704_v0 = vmax.f32 %v9672_v11, 0.0  ;;  %v9675_v35 = vadd.f32 %v12653_v28, %v19933_v14  ;;  %v23368_v28 = vsub.s32 1, %v23359_v53  ;;  %v23370_v11 = vld [vmem:[#allocation68_spill] sm:$0xff] }
 0x638   : > { %9987 = vmatprep.mubr.bf16.mxu0 %v23339_v34  ;;  %v9564_v50 = vpop.f32.mrf.mxu0 }
 0x639   : > { %9262 = vmatmul.mubr.bf16.gmra.mxu1 %v19935_v1  ;;  %v9663_v1 = vadd.f32 %v12641_v6, %v19933_v14  ;;  %v9673_v55 = vadd.f32 %v19933_v14, %v9564_v50  ;;  %v9707_v60 = vmax.f32 %v9675_v35, 0.0  ;;  %v20074_v40 = vrot.slane %v10270_v30, %v23368_v28  ;;  %v23371_v35 = vld [vmem:[#allocation198_spill] sm:$0xff]  ;;  %v23377_v28 = vld [vmem:[#allocation108_spill] sm:$0xff] }
 0x63a   : > { %9271 = vmatprep.mubr.bf16.mxu1 %v23339_v34 }
 0x63b   : > { %v9695_v29 = vmax.f32 %v9663_v1, 0.0  ;;  %v9705_v8 = vmax.f32 %v9673_v55, 0.0  ;;  %v9787_v39 = vpack.c.bf16 %v9707_v60, %v9706_v10 }
 0x63d   : > { %v9781_v36 = vpack.c.bf16 %v9695_v29, %v9694_v38  ;;  %v9786_v63 = vpack.c.bf16 %v9705_v8, %v9704_v0 }
 0x63f   : > { %9988 = vmatmul.mubr.bf16.gmra.mxu0 %v9779_v22 }
 0x640   : > { %9997 = vmatprep.mubr.bf16.mxu0 %v23339_v34 }
 0x641   : > { %9272 = vmatmul.mubr.bf16.gmra.mxu1 %v19930_v18  ;;  %v9696_v18 = vmax.f32 %v9664_v54, 0.0 }
 0x643   : > { %v9782_v27 = vpack.c.bf16 %v9697_v45, %v9696_v18 }
 0x647   : > { %9998 = vmatmul.mubr.bf16.gmra.mxu0 %v9780_v3 }
 0x648   : > { %10007 = vmatprep.mubr.bf16.mxu0 %v23339_v34 }
 0x64f   : > { %10008 = vmatmul.mubr.bf16.gmra.mxu0 %v9781_v36 }
 0x650   : > { %10017 = vmatprep.mubr.bf16.mxu0 %v23339_v34 }
 0x657   : > { %10018 = vmatmul.mubr.bf16.gmra.mxu0 %v9782_v27  ;;  %v5159_v27 = vadd.f32 %v23362_v19, %v23361_v24  ;;  %v23373_v24 = vld [vmem:[#allocation53_spill] sm:$0xff]  ;;  %v23374_v19 = vld [vmem:[#allocation31_spill] sm:$0xff] }
 0x658   : > { %10027 = vmatprep.mubr.bf16.mxu0 %v23339_v34 }
 0x65f   : > { %10028 = vmatmul.mubr.bf16.gmra.mxu0 %v9783_v33 }
 0x660   : > { %10037 = vmatprep.mubr.bf16.mxu0 %v23339_v34 }
 0x667   : > { %10038 = vmatmul.mubr.bf16.gmra.mxu0 %v9784_v17 }
 0x668   : > { %10047 = vmatprep.mubr.bf16.mxu0 %v23339_v34 }
 0x66f   : > { %10048 = vmatmul.mubr.bf16.gmra.mxu0 %v9785_v47  ;;  %v23369_v47 = vld [vmem:[#allocation38_spill] sm:$0xff] }
 0x670   : > { %10057 = vmatprep.mubr.bf16.mxu0 %v23339_v34  ;;  %v5162_v55 = vadd.f32 %v23370_v11, %v23369_v47 }
 0x677   : > { %10058 = vmatmul.mubr.bf16.gmra.mxu0 %v9786_v63  ;;  %v23372_v63 = vld [vmem:[#allocation119_spill] sm:$0xff] }
 0x678   : > { %10067 = vmatprep.mubr.bf16.mxu0 %v23339_v34  ;;  %v5163_v10 = vadd.f32 %v23372_v63, %v23371_v35  ;;  %v23379_v35 = vld [vmem:[#allocation123_spill] sm:$0xff]  ;;  %v23380_v63 = vld [vmem:[#allocation82_spill] sm:$0xff] }
 0x67f   : > { %10068 = vmatmul.mubr.bf16.gmra.mxu0 %v9787_v39 }
 0x689   : > { %v9123_v56 = vpop.f32.mrf.mxu1 }
 0x68a   : > { %v9282_v33 = vadd.f32 %v9123_v56, %v5159_v27  ;;  %v5164_v27 = vadd.f32 %v23374_v19, %v23373_v24  ;;  %v23381_v24 = vld [vmem:[#allocation133_spill] sm:$0xff] }
 0x68b   : > { %v9125_v48 = vpop.f32.mrf.mxu1 }
 0x68c   : > { %v9283_v42 = vadd.f32 %v9125_v48, %v5160_v12 }
 0x68d   : > { %v9127_v46 = vpop.f32.mrf.mxu1 }
 0x68e   : > { %v9284_v0 = vadd.f32 %v9127_v46, %v5161_v25 }
 0x68f   : > { %v9129_v15 = vpop.f32.mrf.mxu1 }
 0x690   : > { %v9285_v56 = vadd.f32 %v9129_v15, %v5162_v55 }
 0x691   : > { %v9133_v6 = vpop.f32.mrf.mxu1 }
 0x692   : > { %v9286_v16 = vadd.f32 %v9133_v6, %v5163_v10  ;;  %v5167_v10 = vadd.f32 %v23380_v63, %v23379_v35 }
 0x693   : > { %v20001_v59 = vpop.f32.mrf.mxu1 }
 0x694   : > { %v9287_v25 = vadd.f32 %v20001_v59, %v5164_v27 }
 0x695   : > { %v20003_v7 = vpop.f32.mrf.mxu1 }
 0x697   : > { %v20005_v41 = vpop.f32.mrf.mxu1 }
 0x699   : > { %v20007_v14 = vpop.f32.mrf.mxu1 }
 0x69b   : > { %v20009_v22 = vpop.f32.mrf.mxu1 }
 0x69d   : > { %v20011_v34 = vpop.f32.mrf.mxu1 }
 0x69f   : > { %v20013_v51 = vpop.f32.mrf.mxu1 }
 0x6a1   : > { %v20015_v44 = vpop.f32.mrf.mxu1 }
 0x6a3   : > { %v20017_v23 = vpop.f32.mrf.mxu1 }
 0x6a5   : > { %v20019_v49 = vpop.f32.mrf.mxu1 }
 0x6a7   : > { %v20021_v43 = vpop.f32.mrf.mxu1 }
 0x6a9   : > { %v20023_v21 = vpop.f32.mrf.mxu1 }
 0x6ab   : > { %v20025_v4 = vpop.f32.mrf.mxu1 }
 0x6ad   : > { %v20027_v1 = vpop.f32.mrf.mxu1 }
 0x6af   : > { %v20029_v3 = vpop.f32.mrf.mxu1 }
 0x6b1   : > { %v20031_v13 = vpop.f32.mrf.mxu1 }
 0x6b3   : > { %v20033_v38 = vpop.f32.mrf.mxu1 }
 0x6b5   : > { %v20035_v29 = vpop.f32.mrf.mxu1 }
 0x6b7   : > { %v20037_v52 = vpop.f32.mrf.mxu1 }
 0x6b9   : > { %v20039_v36 = vpop.f32.mrf.mxu1 }
 0x6bb   : > { %v20041_v54 = vpop.f32.mrf.mxu1 }
 0x6bd   : > { %v20043_v58 = vpop.f32.mrf.mxu1 }
 0x6bf   : > { %v20046_v31 = vpop.f32.mrf.mxu1 }
 0x6c1   : > { %v20051_v18 = vpop.f32.mrf.mxu1 }
 0x6c3   : > { %v20053_v45 = vpop.f32.mrf.mxu1 }
 0x6c5   : > { %v20057_v9 = vpop.f32.mrf.mxu1 }
 0x6c7   : > { %v20066_v5 = vpop.f32.mrf.mxu1  ;;  %v9919_v61 = vpop.f32.mrf.mxu0 }
 0x6c8   : > { %v10078_v17 = vadd.f32 %v9919_v61, %v9282_v33  ;;  %v23376_v61 = vld [vmem:[#allocation99_spill] sm:$0xff] }
 0x6c9   : > { %v20076_v32 = vpop.f32.mrf.mxu1  ;;  %v9921_v50 = vpop.f32.mrf.mxu0  ;;  %v5165_v2 = vadd.f32 %v23376_v61, %v23375_v57  ;;  %v23384_v57 = vld [vmem:[#allocation191_spill] sm:$0xff] }
 0x6ca   : > { %v10282_v8 = vadd.f32 %v20064_v37, %v10078_v17  ;;  %v10079_v26 = vadd.f32 %v9921_v50, %v9283_v42  ;;  %v23378_v50 = vld [vmem:[#allocation85_spill] sm:$0xff] }
 0x6cb   : > { %v20083_v60 = vpop.f32.mrf.mxu1  ;;  %v9923_v39 = vpop.f32.mrf.mxu0  ;;  %v5166_v47 = vadd.f32 %v23378_v50, %v23377_v28 }
 0x6cc   : > { %v10346_v53 = vmax.f32 %v10282_v8, 0.0  ;;  %v10283_v48 = vadd.f32 %v20074_v40, %v10079_v26  ;;  %v10080_v30 = vadd.f32 %v9923_v39, %v9284_v0  ;;  %v9288_v0 = vadd.f32 %v20003_v7, %v5165_v2  ;;  %v23382_v7 = vld [vmem:[#allocation94_spill] sm:$0xff] }
 0x6cd   : > { %v20088_v20 = vpop.f32.mrf.mxu1  ;;  %v9925_v46 = vpop.f32.mrf.mxu0  ;;  %v5168_v19 = vadd.f32 %v23382_v7, %v23381_v24 }
 0x6ce   : > { %10410 = vst [vmem:[%s20090_s23] sm:$0xff] %v10346_v53  ;;  %v10347_v12 = vmax.f32 %v10283_v48, 0.0  ;;  %v10284_v15 = vadd.f32 %v20064_v37, %v10080_v30  ;;  %v10081_v33 = vadd.f32 %v9925_v46, %v9285_v56  ;;  %v9289_v56 = vadd.f32 %v20005_v41, %v5166_v47 }
 0x6cf   : > { %v9929_v62 = vpop.f32.mrf.mxu0  ;;  %v20101_v11 = vpop.f32.mrf.mxu1 }
 0x6d0   : > { %10411 = vst [vmem:[%s20090_s23 + $0x8] sm:$0xff] %v10347_v12  ;;  %v10348_v42 = vmax.f32 %v10284_v15, 0.0  ;;  %v10285_v6 = vadd.f32 %v20074_v40, %v10081_v33  ;;  %v10082_v17 = vadd.f32 %v9929_v62, %v9286_v16  ;;  %v9290_v16 = vadd.f32 %v20007_v14, %v5167_v10  ;;  %v23383_v33 = vld [vmem:[#allocation223_spill] sm:$0xff]  ;;  %v23386_v14 = vld [vmem:[#allocation169_spill] sm:$0xff] }
 0x6d1   : > { %v9931_v55 = vpop.f32.mrf.mxu0  ;;  %v20113_v27 = vpop.f32.mrf.mxu1  ;;  %v5169_v61 = vadd.f32 %v23384_v57, %v23383_v33  ;;  %v9291_v62 = vadd.f32 %v20009_v22, %v5168_v19 }
 0x6d2   : > { %10412 = vst [vmem:[%s20090_s23 + $0x10] sm:$0xff] %v10348_v42  ;;  %v10349_v8 = vmax.f32 %v10285_v6, 0.0  ;;  %v10286_v26 = vadd.f32 %v20064_v37, %v10082_v17  ;;  %v10083_v59 = vadd.f32 %v9931_v55, %v9287_v25  ;;  %v23385_v17 = vld [vmem:[#allocation56_spill] sm:$0xff] }
 0x6d3   : > { %v9933_v39 = vpop.f32.mrf.mxu0  ;;  %v5170_v28 = vadd.f32 %v23386_v14, %v23385_v17  ;;  %v20125_v50 = vpop.f32.mrf.mxu1  ;;  %v9292_v55 = vadd.f32 %v20011_v34, %v5169_v61  ;;  %v23390_v34 = vld [vmem:[#allocation175_spill] sm:$0xff] }
 0x6d4   : > { %10413 = vst [vmem:[%s20090_s23 + $0x18] sm:$0xff] %v10349_v8  ;;  %v10350_v53 = vmax.f32 %v10286_v26, 0.0  ;;  %v10287_v48 = vadd.f32 %v20074_v40, %v10083_v59  ;;  %v10084_v30 = vadd.f32 %v9933_v39, %v9288_v0  ;;  %v23387_v26 = vld [vmem:[#allocation163_spill] sm:$0xff]  ;;  %v23388_v59 = vld [vmem:[#allocation102_spill] sm:$0xff] }
 0x6d5   : > { %v9935_v46 = vpop.f32.mrf.mxu0  ;;  %v5171_v35 = vadd.f32 %v23388_v59, %v23387_v26  ;;  %v9293_v10 = vadd.f32 %v20013_v51, %v5170_v28  ;;  %v20137_v24 = vpop.f32.mrf.mxu1 }
 0x6d6   : > { %10414 = vst [vmem:[%s20090_s23 + $0x20] sm:$0xff] %v10350_v53  ;;  %v10351_v12 = vmax.f32 %v10287_v48, 0.0  ;;  %v10288_v15 = vadd.f32 %v20064_v37, %v10084_v30  ;;  %v10085_v41 = vadd.f32 %v9935_v46, %v9289_v56  ;;  %v23389_v48 = vld [vmem:[#allocation134_spill] sm:$0xff] }
 0x6d7   : > { %v9939_v2 = vpop.f32.mrf.mxu0  ;;  %v5172_v30 = vadd.f32 %v23390_v34, %v23389_v48  ;;  %v9294_v19 = vadd.f32 %v20015_v44, %v5171_v35  ;;  %v23394_v44 = vld [vmem:[#allocation174_spill] sm:$0xff] }
 0x6d8   : > { %10415 = vst [vmem:[%s20090_s23 + $0x28] sm:$0xff] %v10351_v12  ;;  %v10352_v25 = vmax.f32 %v10288_v15, 0.0  ;;  %v10289_v42 = vadd.f32 %v20074_v40, %v10085_v41  ;;  %v10086_v6 = vadd.f32 %v9939_v2, %v9290_v16  ;;  %v23391_v12 = vld [vmem:[#allocation143_spill] sm:$0xff]  ;;  %v23392_v15 = vld [vmem:[#allocation112_spill] sm:$0xff] }
 0x6d9   : > { %v9941_v47 = vpop.f32.mrf.mxu0  ;;  %v5173_v41 = vadd.f32 %v23392_v15, %v23391_v12  ;;  %v9295_v57 = vadd.f32 %v20017_v23, %v5172_v30 }
 0x6da   : > { %10416 = vst [vmem:[%s20090_s23 + $0x30] sm:$0xff] %v10352_v25  ;;  %v10353_v0 = vmax.f32 %v10289_v42, 0.0  ;;  %v10290_v8 = vadd.f32 %v20064_v37, %v10086_v6  ;;  %v10087_v22 = vadd.f32 %v9941_v47, %v9291_v62  ;;  %v23393_v25 = vld [vmem:[#allocation158_spill] sm:$0xff]  ;;  %v20149_v6 = vpop.f32.mrf.mxu1 }
 0x6db   : > { %v9943_v63 = vpop.f32.mrf.mxu0  ;;  %v5174_v42 = vadd.f32 %v23394_v44, %v23393_v25  ;;  %v9296_v14 = vadd.f32 %v20019_v49, %v5173_v41  ;;  %v23398_v49 = vld [vmem:[#allocation28_spill] sm:$0xff] }
 0x6dc   : > { %10417 = vst [vmem:[%s20090_s23 + $0x38] sm:$0xff] %v10353_v0  ;;  %v10354_v39 = vmax.f32 %v10290_v8, 0.0  ;;  %v10291_v56 = vadd.f32 %v20074_v40, %v10087_v22  ;;  %v10088_v53 = vadd.f32 %v9943_v63, %v9292_v55  ;;  %v23395_v55 = vld [vmem:[#allocation239_spill] sm:$0xff]  ;;  %v23396_v0 = vld [vmem:[#allocation170_spill] sm:$0xff] }
 0x6dd   : > { %v9945_v7 = vpop.f32.mrf.mxu0  ;;  %v5175_v8 = vadd.f32 %v23396_v0, %v23395_v55  ;;  %v9297_v26 = vadd.f32 %v20021_v43, %v5174_v42  ;;  %v23403_v42 = vld [vmem:[#allocation121_spill] sm:$0xff] }
 0x6de   : > { %10418 = vst [vmem:[%s20090_s23 + $0x40] sm:$0xff] %v10354_v39  ;;  %v10355_v46 = vmax.f32 %v10291_v56, 0.0  ;;  %v10292_v16 = vadd.f32 %v20064_v37, %v10088_v53  ;;  %v10089_v51 = vadd.f32 %v9945_v7, %v9293_v10  ;;  %v23397_v10 = vld [vmem:[#allocation186_spill] sm:$0xff]  ;;  %v20161_v56 = vpop.f32.mrf.mxu1  ;;  %v23399_v7 = vld [vmem:[#allocation160_spill] sm:$0xff] }
 0x6df   : > { %v9949_v33 = vpop.f32.mrf.mxu0  ;;  %v5176_v39 = vadd.f32 %v23398_v49, %v23397_v10  ;;  %v9298_v48 = vadd.f32 %v20023_v21, %v5175_v8  ;;  %v23402_v21 = vld [vmem:[#allocation242_spill] sm:$0xff]  ;;  %v23405_v8 = vld [vmem:[#allocation211_spill] sm:$0xff]  ;;  %v23407_v49 = vld [vmem:[#allocation129_spill] sm:$0xff] }
 0x6e0   : > { %10419 = vst [vmem:[%s20090_s23 + $0x48] sm:$0xff] %v10355_v46  ;;  %v10356_v61 = vmax.f32 %v10292_v16, 0.0  ;;  %v10293_v2 = vadd.f32 %v20074_v40, %v10089_v51  ;;  %v10090_v62 = vadd.f32 %v9949_v33, %v9294_v19  ;;  %v23400_v19 = vld [vmem:[#allocation30_spill] sm:$0xff]  ;;  %v23401_v33 = vld [vmem:[#allocation205_spill] sm:$0xff] }
 0x6e1   : > { %v9951_v17 = vpop.f32.mrf.mxu0  ;;  %v5177_v46 = vadd.f32 %v23400_v19, %v23399_v7  ;;  %v9299_v51 = vadd.f32 %v20025_v4, %v5176_v39  ;;  %v23408_v39 = vld [vmem:[#allocation136_spill] sm:$0xff]  ;;  %v23409_v19 = vld [vmem:[#allocation150_spill] sm:$0xff] }
 0x6e2   : > { %10420 = vst [vmem:[%s20090_s23 + $0x50] sm:$0xff] %v10356_v61  ;;  %v10357_v28 = vmax.f32 %v10293_v2, 0.0  ;;  %v10294_v47 = vadd.f32 %v20064_v37, %v10090_v62  ;;  %v10091_v23 = vadd.f32 %v9951_v17, %v9295_v57  ;;  %v5178_v57 = vadd.f32 %v23402_v21, %v23401_v33  ;;  %v20173_v61 = vpop.f32.mrf.mxu1  ;;  %v23404_v17 = vld [vmem:[#allocation179_spill] sm:$0xff]  ;;  %v23411_v33 = vld [vmem:[#allocation233_spill] sm:$0xff]  ;;  %v23412_v21 = vld [vmem:[#allocation26_spill] sm:$0xff] }
 0x6e3   : > { %v9953_v22 = vpop.f32.mrf.mxu0  ;;  %v9300_v62 = vadd.f32 %v20027_v1, %v5177_v46  ;;  %v23406_v1 = vld [vmem:[#allocation164_spill] sm:$0xff] }
 0x6e4   : > { %10421 = vst [vmem:[%s20090_s23 + $0x58] sm:$0xff] %v10357_v28  ;;  %v10358_v59 = vmax.f32 %v10294_v47, 0.0  ;;  %v10295_v35 = vadd.f32 %v20074_v40, %v10091_v23  ;;  %v10092_v63 = vadd.f32 %v9953_v22, %v9296_v14  ;;  %v5179_v14 = vadd.f32 %v23404_v17, %v23403_v42  ;;  %v23413_v42 = vld [vmem:[#allocation117_spill] sm:$0xff] }
 0x6e5   : > { %v9955_v53 = vpop.f32.mrf.mxu0  ;;  %v9301_v47 = vadd.f32 %v20029_v3, %v5178_v57  ;;  %v5180_v22 = vadd.f32 %v23406_v1, %v23405_v8  ;;  %v5183_v57 = vadd.f32 %v23412_v21, %v23411_v33  ;;  %v23416_v8 = vld [vmem:[#allocation244_spill] sm:$0xff] }
 0x6e6   : > { %10422 = vst [vmem:[%s20090_s23 + $0x60] sm:$0xff] %v10358_v59  ;;  %v10359_v34 = vmax.f32 %v10295_v35, 0.0  ;;  %v10296_v30 = vadd.f32 %v20064_v37, %v10092_v63  ;;  %v10093_v43 = vadd.f32 %v9955_v53, %v9297_v26  ;;  %v20185_v26 = vpop.f32.mrf.mxu1  ;;  %v9302_v35 = vadd.f32 %v20031_v13, %v5179_v14  ;;  %v23410_v13 = vld [vmem:[#allocation75_spill] sm:$0xff] }
 0x6e7   : > { %v9959_v16 = vpop.f32.mrf.mxu0  ;;  %v5181_v53 = vadd.f32 %v23408_v39, %v23407_v49  ;;  %v5182_v46 = vadd.f32 %v23410_v13, %v23409_v19 }
 0x6e8   : > { %10423 = vst [vmem:[%s20090_s23 + $0x68] sm:$0xff] %v10359_v34  ;;  %v10360_v12 = vmax.f32 %v10296_v30, 0.0  ;;  %v10297_v15 = vadd.f32 %v20074_v40, %v10093_v43  ;;  %v10094_v41 = vadd.f32 %v9959_v16, %v9298_v48  ;;  %v9303_v34 = vadd.f32 %v20033_v38, %v5180_v22  ;;  %v20197_v16 = vpop.f32.mrf.mxu1 }
 0x6e9   : > { %v9961_v2 = vpop.f32.mrf.mxu0 }
 0x6ea   : > { %10424 = vst [vmem:[%s20090_s23 + $0x70] sm:$0xff] %v10360_v12  ;;  %v10361_v25 = vmax.f32 %v10297_v15, 0.0  ;;  %v10298_v44 = vadd.f32 %v20064_v37, %v10094_v41  ;;  %v10095_v4 = vadd.f32 %v9961_v2, %v9299_v51  ;;  %v9304_v12 = vadd.f32 %v20035_v29, %v5181_v53  ;;  %v23414_v29 = vld [vmem:[#allocation84_spill] sm:$0xff]  ;;  %v20209_v14 = vpop.f32.mrf.mxu1 }
 0x6eb   : > { %v9963_v28 = vpop.f32.mrf.mxu0  ;;  %v5184_v17 = vadd.f32 %v23414_v29, %v23413_v42 }
 0x6ec   : > { %10425 = vst [vmem:[%s20090_s23 + $0x78] sm:$0xff] %v10361_v25  ;;  %v10362_v23 = vmax.f32 %v10298_v44, 0.0  ;;  %v10299_v55 = vadd.f32 %v20074_v40, %v10095_v4  ;;  %v10096_v0 = vadd.f32 %v9963_v28, %v9300_v62  ;;  %v9305_v62 = vadd.f32 %v20037_v52, %v5182_v46  ;;  %v20221_v39 = vpop.f32.mrf.mxu1 }
 0x6ed   : > { %v9965_v59 = vpop.f32.mrf.mxu0 }
 0x6ee   : > { %10426 = vst [vmem:[%s20090_s23 + $0x80] sm:$0xff] %v10362_v23  ;;  %v10363_v63 = vmax.f32 %v10299_v55, 0.0  ;;  %v10300_v10 = vadd.f32 %v20064_v37, %v10096_v0  ;;  %v10097_v3 = vadd.f32 %v9965_v59, %v9301_v47  ;;  %v9306_v47 = vadd.f32 %v20039_v36, %v5183_v57  ;;  %v23415_v0 = vld [vmem:[#allocation141_spill] sm:$0xff]  ;;  %v23418_v36 = vld [vmem:[#allocation248_spill] sm:$0xff]  ;;  %v20233_v33 = vpop.f32.mrf.mxu1 }
 0x6ef   : > { %v9969_v48 = vpop.f32.mrf.mxu0  ;;  %v5185_v1 = vadd.f32 %v23416_v8, %v23415_v0  ;;  %v9307_v59 = vadd.f32 %v20041_v54, %v5184_v17 }
 0x6f0   : > { %10427 = vst [vmem:[%s20090_s23 + $0x88] sm:$0xff] %v10363_v63  ;;  %v10364_v30 = vmax.f32 %v10300_v10, 0.0  ;;  %v10301_v43 = vadd.f32 %v20074_v40, %v10097_v3  ;;  %v10098_v7 = vadd.f32 %v9969_v48, %v9302_v35  ;;  %v23417_v3 = vld [vmem:[#allocation222_spill] sm:$0xff] }
 0x6f1   : > { %v9971_v51 = vpop.f32.mrf.mxu0  ;;  %v5186_v49 = vadd.f32 %v23418_v36, %v23417_v3  ;;  %v9308_v48 = vadd.f32 %v20043_v58, %v5185_v1  ;;  %v23422_v58 = vld [vmem:[#allocation247_spill] sm:$0xff] }
 0x6f2   : > { %10428 = vst [vmem:[%s20090_s23 + $0x90] sm:$0xff] %v10364_v30  ;;  %v10365_v15 = vmax.f32 %v10301_v43, 0.0  ;;  %v10302_v41 = vadd.f32 %v20064_v37, %v10098_v7  ;;  %v10099_v38 = vadd.f32 %v9971_v51, %v9303_v34  ;;  %v23419_v43 = vld [vmem:[#allocation187_spill] sm:$0xff] }
 0x6f3   : > { %v9973_v2 = vpop.f32.mrf.mxu0  ;;  %v23420_v7 = vld [vmem:[#allocation95_spill] sm:$0xff]  ;;  %v9309_v46 = vadd.f32 %v20046_v31, %v5186_v49 }
 0x6f4   : > { %10429 = vst [vmem:[%s20090_s23 + $0x98] sm:$0xff] %v10365_v15  ;;  %v10366_v25 = vmax.f32 %v10302_v41, 0.0  ;;  %v10303_v44 = vadd.f32 %v20074_v40, %v10099_v38  ;;  %v10100_v4 = vadd.f32 %v9973_v2, %v9304_v12  ;;  %v5187_v19 = vadd.f32 %v23420_v7, %v23419_v43  ;;  %v23421_v41 = vld [vmem:[#allocation118_spill] sm:$0xff] }
 0x6f5   : > { %v9975_v28 = vpop.f32.mrf.mxu0  ;;  %v5188_v38 = vadd.f32 %v23422_v58, %v23421_v41 }
 0x6f6   : > { %10430 = vst [vmem:[%s20090_s23 + $0xa0] sm:$0xff] %v10366_v25  ;;  %v10367_v23 = vmax.f32 %v10303_v44, 0.0  ;;  %v10304_v55 = vadd.f32 %v20064_v37, %v10100_v4  ;;  %v10101_v52 = vadd.f32 %v9975_v28, %v9305_v62  ;;  %v9310_v57 = vadd.f32 %v20051_v18, %v5187_v19  ;;  %v23423_v25 = vld [vmem:[#allocation182_spill] sm:$0xff]  ;;  %v23426_v18 = vld [vmem:[#allocation131_spill] sm:$0xff] }
 0x6f7   : > { %v9979_v22 = vpop.f32.mrf.mxu0  ;;  %v23424_v44 = vld [vmem:[#allocation62_spill] sm:$0xff]  ;;  %v9311_v29 = vadd.f32 %v20053_v45, %v5188_v38 }
 0x6f8   : > { %10431 = vst [vmem:[%s20090_s23 + $0xa8] sm:$0xff] %v10367_v23  ;;  %v10368_v35 = vmax.f32 %v10304_v55, 0.0  ;;  %v10305_v63 = vadd.f32 %v20074_v40, %v10101_v52  ;;  %v10102_v10 = vadd.f32 %v9979_v22, %v9306_v47  ;;  %v5189_v4 = vadd.f32 %v23424_v44, %v23423_v25  ;;  %v23425_v23 = vld [vmem:[#allocation214_spill] sm:$0xff]  ;;  %v20245_v52 = vpop.f32.mrf.mxu1 }
 0x6f9   : > { %v9981_v53 = vpop.f32.mrf.mxu0  ;;  %v5190_v55 = vadd.f32 %v23426_v18, %v23425_v23 }
 0x6fa   : > { %10432 = vst [vmem:[%s20090_s23 + $0xb0] sm:$0xff] %v10368_v35  ;;  %v10369_v34 = vmax.f32 %v10305_v63, 0.0  ;;  %v10306_v30 = vadd.f32 %v20064_v37, %v10102_v10  ;;  %v10103_v54 = vadd.f32 %v9981_v53, %v9307_v59  ;;  %v9312_v8 = vadd.f32 %v20057_v9, %v5189_v4  ;;  %v23427_v59 = vld [vmem:[#allocation217_spill] sm:$0xff]  ;;  %v23428_v35 = vld [vmem:[#allocation80_spill] sm:$0xff]  ;;  %v23430_v9 = vld [vmem:[#allocation71_spill] sm:$0xff] }
 0x6fb   : > { %v9983_v13 = vpop.f32.mrf.mxu0  ;;  %v5191_v63 = vadd.f32 %v23428_v35, %v23427_v59  ;;  %v9313_v3 = vadd.f32 %v20066_v5, %v5190_v55  ;;  %v23435_v4 = vld [vmem:[#allocation240_spill] sm:$0xff]  ;;  %v23437_v55 = vld [vmem:[#allocation238_spill] sm:$0xff]  ;;  %v23439_v35 = vld [vmem:[#allocation61_spill] sm:$0xff] }
 0x6fc   : > { %10433 = vst [vmem:[%s20090_s23 + $0xb8] sm:$0xff] %v10369_v34  ;;  %v10370_v51 = vmax.f32 %v10306_v30, 0.0  ;;  %v10307_v12 = vadd.f32 %v20074_v40, %v10103_v54  ;;  %v10104_v15 = vadd.f32 %v9983_v13, %v9308_v48  ;;  %v23429_v48 = vld [vmem:[#allocation181_spill] sm:$0xff]  ;;  %v20257_v30 = vpop.f32.mrf.mxu1  ;;  %v23431_v13 = vld [vmem:[#allocation183_spill] sm:$0xff] }
 0x6fd   : > { %v9985_v21 = vpop.f32.mrf.mxu0  ;;  %v5192_v34 = vadd.f32 %v23430_v9, %v23429_v48  ;;  %v9314_v43 = vadd.f32 %v20076_v32, %v5191_v63  ;;  %v23434_v32 = vld [vmem:[#allocation246_spill] sm:$0xff]  ;;  %v23441_v9 = vld [vmem:[#allocation243_spill] sm:$0xff] }
 0x6fe   : > { %10434 = vst [vmem:[%s20090_s23 + $0xc0] sm:$0xff] %v10370_v51  ;;  %v10371_v2 = vmax.f32 %v10307_v12, 0.0  ;;  %v10308_v62 = vadd.f32 %v20064_v37, %v10104_v15  ;;  %v10105_v31 = vadd.f32 %v9985_v21, %v9309_v46  ;;  %v23432_v46 = vld [vmem:[#allocation216_spill] sm:$0xff]  ;;  %v23433_v21 = vld [vmem:[#allocation173_spill] sm:$0xff]  ;;  %v23440_v63 = vld [vmem:[#allocation230_spill] sm:$0xff] }
 0x6ff   : > { %v9989_v42 = vpop.f32.mrf.mxu0  ;;  %v5193_v51 = vadd.f32 %v23432_v46, %v23431_v13  ;;  %v9315_v15 = vadd.f32 %v20083_v60, %v5192_v34  ;;  %v23443_v13 = vld [vmem:[#allocation110_spill] sm:$0xff] }
 0x700   : > { %10435 = vst [vmem:[%s20090_s23 + $0xc8] sm:$0xff] %v10371_v2  ;;  %v10372_v17 = vmax.f32 %v10308_v62, 0.0  ;;  %v10309_v28 = vadd.f32 %v20074_v40, %v10105_v31  ;;  %v10106_v47 = vadd.f32 %v9989_v42, %v9310_v57  ;;  %v5194_v57 = vadd.f32 %v23434_v32, %v23433_v21  ;;  %v20269_v2 = vpop.f32.mrf.mxu1  ;;  %v23436_v42 = vld [vmem:[#allocation226_spill] sm:$0xff]  ;;  %v23445_v21 = vld [vmem:[#allocation249_spill] sm:$0xff] }
 0x701   : > { %v9991_v0 = vpop.f32.mrf.mxu0  ;;  %v9316_v31 = vadd.f32 %v20088_v20, %v5193_v51  ;;  %v23438_v20 = vld [vmem:[#allocation237_spill] sm:$0xff]  ;;  %v23444_v46 = vld [vmem:[#allocation250_spill] sm:$0xff] }
 0x702   : > { %10436 = vst [vmem:[%s20090_s23 + $0xd0] sm:$0xff] %v10372_v17  ;;  %v10373_v1 = vmax.f32 %v10309_v28, 0.0  ;;  %v10310_v22 = vadd.f32 %v20064_v37, %v10106_v47  ;;  %v10107_v45 = vadd.f32 %v9991_v0, %v9311_v29  ;;  %v5195_v29 = vadd.f32 %v23436_v42, %v23435_v4  ;;  %v23448_v4 = vld [vmem:[#allocation41_spill] sm:$0xff] }
 0x703   : > { %v9993_v10 = vpop.f32.mrf.mxu0  ;;  %v9317_v28 = vadd.f32 %v20101_v11, %v5194_v57  ;;  %v5196_v0 = vadd.f32 %v23438_v20, %v23437_v55  ;;  %v5199_v51 = vadd.f32 %v23444_v46, %v23443_v13 }
 0x704   : > { %10437 = vst [vmem:[%s20090_s23 + $0xd8] sm:$0xff] %v10373_v1  ;;  %v10374_v36 = vmax.f32 %v10310_v22, 0.0  ;;  %v10311_v49 = vadd.f32 %v20074_v40, %v10107_v45  ;;  %v10108_v53 = vadd.f32 %v9993_v10, %v9312_v8  ;;  %v20281_v8 = vpop.f32.mrf.mxu1  ;;  %v9318_v22 = vadd.f32 %v20113_v27, %v5195_v29  ;;  %v23442_v27 = vld [vmem:[#allocation147_spill] sm:$0xff] }
 0x705   : > { %v9995_v54 = vpop.f32.mrf.mxu0  ;;  %v5197_v10 = vadd.f32 %v23440_v63, %v23439_v35  ;;  %v5198_v34 = vadd.f32 %v23442_v27, %v23441_v9 }
 0x706   : > { %10438 = vst [vmem:[%s20090_s23 + $0xe0] sm:$0xff] %v10374_v36  ;;  %v10375_v7 = vmax.f32 %v10311_v49, 0.0  ;;  %v10312_v19 = vadd.f32 %v20064_v37, %v10108_v53  ;;  %v10109_v5 = vadd.f32 %v9995_v54, %v9313_v3  ;;  %v9319_v36 = vadd.f32 %v20125_v50, %v5196_v0  ;;  %v20293_v54 = vpop.f32.mrf.mxu1 }
 0x707   : > { %v9999_v12 = vpop.f32.mrf.mxu0 }
 0x708   : > { %10439 = vst [vmem:[%s20090_s23 + $0xe8] sm:$0xff] %v10375_v7  ;;  %v10376_v41 = vmax.f32 %v10312_v19, 0.0  ;;  %v10313_v58 = vadd.f32 %v20074_v40, %v10109_v5  ;;  %v10110_v38 = vadd.f32 %v9999_v12, %v9314_v43  ;;  %v9320_v7 = vadd.f32 %v20137_v24, %v5197_v10  ;;  %v23446_v24 = vld [vmem:[#allocation190_spill] sm:$0xff]  ;;  %v20305_v57 = vpop.f32.mrf.mxu1 }
 0x709   : > { %v10001_v62 = vpop.f32.mrf.mxu0  ;;  %v5200_v32 = vadd.f32 %v23446_v24, %v23445_v21 }
 0x70a   : > { %10440 = vst [vmem:[%s20090_s23 + $0xf0] sm:$0xff] %v10376_v41  ;;  %v10377_v25 = vmax.f32 %v10313_v58, 0.0  ;;  %v10314_v44 = vadd.f32 %v20064_v37, %v10110_v38  ;;  %v10111_v60 = vadd.f32 %v10001_v62, %v9315_v15  ;;  %v9321_v15 = vadd.f32 %v20149_v6, %v5198_v34  ;;  %v20317_v20 = vpop.f32.mrf.mxu1 }
 0x70b   : > { %v10003_v17 = vpop.f32.mrf.mxu0 }
 0x70c   : > { %10441 = vst [vmem:[%s20090_s23 + $0xf8] sm:$0xff] %v10377_v25  ;;  %v10378_v47 = vmax.f32 %v10314_v44, 0.0  ;;  %v10315_v23 = vadd.f32 %v20074_v40, %v10111_v60  ;;  %v10112_v18 = vadd.f32 %v10003_v17, %v9316_v31  ;;  %v9322_v31 = vadd.f32 %v20161_v56, %v5199_v51  ;;  %v23447_v60 = vld [vmem:[#allocation135_spill] sm:$0xff]  ;;  %v23450_v56 = vld [vmem:[#allocation44_spill] sm:$0xff]  ;;  %v20329_v9 = vpop.f32.mrf.mxu1 }
 0x70d   : > { %v10005_v1 = vpop.f32.mrf.mxu0  ;;  %v5201_v42 = vadd.f32 %v23448_v4, %v23447_v60  ;;  %v9323_v17 = vadd.f32 %v20173_v61, %v5200_v32 }
 0x70e   : > { %10442 = vst [vmem:[%s20090_s23 + $0x100] sm:$0xff] %v10378_v47  ;;  %v10379_v45 = vmax.f32 %v10315_v23, 0.0  ;;  %v10316_v59 = vadd.f32 %v20064_v37, %v10112_v18  ;;  %v10113_v11 = vadd.f32 %v10005_v1, %v9317_v28  ;;  %v23449_v18 = vld [vmem:[#allocation58_spill] sm:$0xff] }
 0x70f   : > { %v10009_v3 = vpop.f32.mrf.mxu0  ;;  %v5202_v55 = vadd.f32 %v23450_v56, %v23449_v18  ;;  %v9324_v1 = vadd.f32 %v20185_v26, %v5201_v42  ;;  %v23454_v26 = vld [vmem:[#allocation50_spill] sm:$0xff] }
 0x710   : > { %10443 = vst [vmem:[%s20090_s23 + $0x108] sm:$0xff] %v10379_v45  ;;  %v10380_v49 = vmax.f32 %v10316_v59, 0.0  ;;  %v10317_v53 = vadd.f32 %v20074_v40, %v10113_v11  ;;  %v10114_v48 = vadd.f32 %v10009_v3, %v9318_v22  ;;  %v23451_v59 = vld [vmem:[#allocation63_spill] sm:$0xff]  ;;  %v23452_v11 = vld [vmem:[#allocation168_spill] sm:$0xff] }
 0x711   : > { %v10011_v43 = vpop.f32.mrf.mxu0  ;;  %v5203_v35 = vadd.f32 %v23452_v11, %v23451_v59  ;;  %v9325_v10 = vadd.f32 %v20197_v16, %v5202_v55 }
 0x712   : > { %10444 = vst [vmem:[%s20090_s23 + $0x110] sm:$0xff] %v10380_v49  ;;  %v10381_v19 = vmax.f32 %v10317_v53, 0.0  ;;  %v10318_v5 = vadd.f32 %v20064_v37, %v10114_v48  ;;  %v10115_v50 = vadd.f32 %v10011_v43, %v9319_v36  ;;  %v23453_v53 = vld [vmem:[#allocation66_spill] sm:$0xff] }
 0x713   : > { %v10013_v12 = vpop.f32.mrf.mxu0  ;;  %v5204_v48 = vadd.f32 %v23454_v26, %v23453_v53  ;;  %v9326_v34 = vadd.f32 %v20209_v14, %v5203_v35  ;;  %v23458_v14 = vld [vmem:[#allocation128_spill] sm:$0xff] }
 0x714   : > { %10445 = vst [vmem:[%s20090_s23 + $0x118] sm:$0xff] %v10381_v19  ;;  %v10382_v41 = vmax.f32 %v10318_v5, 0.0  ;;  %v10319_v58 = vadd.f32 %v20074_v40, %v10115_v50  ;;  %v10116_v38 = vadd.f32 %v10013_v12, %v9320_v7  ;;  %v23455_v19 = vld [vmem:[#allocation96_spill] sm:$0xff]  ;;  %v23456_v5 = vld [vmem:[#allocation105_spill] sm:$0xff] }
 0x715   : > { %v10015_v62 = vpop.f32.mrf.mxu0  ;;  %v5205_v50 = vadd.f32 %v23456_v5, %v23455_v19  ;;  %v9327_v46 = vadd.f32 %v20221_v39, %v5204_v48 }
 0x716   : > { %10446 = vst [vmem:[%s20090_s23 + $0x120] sm:$0xff] %v10382_v41  ;;  %v10383_v25 = vmax.f32 %v10319_v58, 0.0  ;;  %v10320_v44 = vadd.f32 %v20064_v37, %v10116_v38  ;;  %v10117_v6 = vadd.f32 %v10015_v62, %v9321_v15  ;;  %v23457_v41 = vld [vmem:[#allocation76_spill] sm:$0xff]  ;;  %v20341_v38 = vpop.f32.mrf.mxu1 }
 0x717   : > { %v10019_v29 = vpop.f32.mrf.mxu0  ;;  %v5206_v58 = vadd.f32 %v23458_v14, %v23457_v41  ;;  %v9328_v24 = vadd.f32 %v20233_v33, %v5205_v50  ;;  %v23462_v33 = vld [vmem:[#allocation145_spill] sm:$0xff]  ;;  %v23469_v50 = vld [vmem:[#allocation54_spill] sm:$0xff] }
 0x718   : > { %10447 = vst [vmem:[%s20090_s23 + $0x128] sm:$0xff] %v10383_v25  ;;  %v10384_v28 = vmax.f32 %v10320_v44, 0.0  ;;  %v10321_v47 = vadd.f32 %v20074_v40, %v10117_v6  ;;  %v10118_v23 = vadd.f32 %v10019_v29, %v9322_v31  ;;  %v23459_v31 = vld [vmem:[#allocation89_spill] sm:$0xff]  ;;  %v23460_v25 = vld [vmem:[#allocation151_spill] sm:$0xff] }
 0x719   : > { %v10021_v0 = vpop.f32.mrf.mxu0  ;;  %v5207_v44 = vadd.f32 %v23460_v25, %v23459_v31  ;;  %v9329_v60 = vadd.f32 %v20245_v52, %v5206_v58  ;;  %v23463_v52 = vld [vmem:[#allocation101_spill] sm:$0xff]  ;;  %v23472_v58 = vld [vmem:[#allocation162_spill] sm:$0xff]  ;;  %v23473_v25 = vld [vmem:[#allocation127_spill] sm:$0xff] }
 0x71a   : > { %10448 = vst [vmem:[%s20090_s23 + $0x130] sm:$0xff] %v10384_v28  ;;  %v10385_v22 = vmax.f32 %v10321_v47, 0.0  ;;  %v10322_v45 = vadd.f32 %v20064_v37, %v10118_v23  ;;  %v10119_v61 = vadd.f32 %v10021_v0, %v9323_v17  ;;  %v23461_v17 = vld [vmem:[#allocation172_spill] sm:$0xff]  ;;  %v9263_v47 = vpop.f32.mrf.mxu1 }
 0x71b   : > { %v10023_v63 = vpop.f32.mrf.mxu0  ;;  %v5208_v28 = vadd.f32 %v23462_v33, %v23461_v17  ;;  %v9330_v18 = vadd.f32 %v20257_v30, %v5207_v44  ;;  %v23466_v30 = vld [vmem:[#allocation87_spill] sm:$0xff]  ;;  %v23476_v33 = vld [vmem:[#allocation81_spill] sm:$0xff] }
 0x71c   : > { %10449 = vst [vmem:[%s20090_s23 + $0x138] sm:$0xff] %v10385_v22  ;;  %v10386_v3 = vmax.f32 %v10322_v45, 0.0  ;;  %v10323_v36 = vadd.f32 %v20074_v40, %v10119_v61  ;;  %v10120_v49 = vadd.f32 %v10023_v63, %v9324_v1  ;;  %v23464_v1 = vld [vmem:[#allocation188_spill] sm:$0xff]  ;;  %v23465_v63 = vld [vmem:[#allocation153_spill] sm:$0xff] }
 0x71d   : > { %v10025_v27 = vpop.f32.mrf.mxu0  ;;  %v5209_v22 = vadd.f32 %v23464_v1, %v23463_v52  ;;  %v9331_v61 = vadd.f32 %v20269_v2, %v5208_v28  ;;  %v23467_v2 = vld [vmem:[#allocation180_spill] sm:$0xff]  ;;  %v23477_v52 = vld [vmem:[#allocation42_spill] sm:$0xff] }
 0x71e   : > { %10450 = vst [vmem:[%s20090_s23 + $0x140] sm:$0xff] %v10386_v3  ;;  %v10387_v43 = vmax.f32 %v10323_v36, 0.0  ;;  %v10324_v7 = vadd.f32 %v20064_v37, %v10120_v49  ;;  %v10121_v16 = vadd.f32 %v10025_v27, %v9325_v10  ;;  %v5210_v10 = vadd.f32 %v23466_v30, %v23465_v63  ;;  %v9265_v3 = vpop.f32.mrf.mxu1  ;;  %v23468_v27 = vld [vmem:[#allocation90_spill] sm:$0xff]  ;;  %v23479_v63 = vld [vmem:[#allocation24_spill] sm:$0xff] }
 0x71f   : > { %v10029_v13 = vpop.f32.mrf.mxu0  ;;  %v9332_v49 = vadd.f32 %v20281_v8, %v5209_v22  ;;  %v23470_v8 = vld [vmem:[#allocation40_spill] sm:$0xff] }
 0x720   : > { %10451 = vst [vmem:[%s20090_s23 + $0x148] sm:$0xff] %v10387_v43  ;;  %v10388_v51 = vmax.f32 %v10324_v7, 0.0  ;;  %v10325_v12 = vadd.f32 %v20074_v40, %v10121_v16  ;;  %v10122_v15 = vadd.f32 %v10029_v13, %v9326_v34  ;;  %v5211_v34 = vadd.f32 %v23468_v27, %v23467_v2  ;;  %v23482_v2 = vld [vmem:[#allocation201_spill] sm:$0xff] }
 0x721   : > { %v10031_v21 = vpop.f32.mrf.mxu0  ;;  %v9333_v7 = vadd.f32 %v20293_v54, %v5210_v10  ;;  %v5212_v13 = vadd.f32 %v23470_v8, %v23469_v50  ;;  %v23471_v54 = vld [vmem:[#allocation232_spill] sm:$0xff] }
 0x722   : > { %10452 = vst [vmem:[%s20090_s23 + $0x150] sm:$0xff] %v10388_v51  ;;  %v10389_v32 = vmax.f32 %v10325_v12, 0.0  ;;  %v10326_v62 = vadd.f32 %v20064_v37, %v10122_v15  ;;  %v10123_v39 = vadd.f32 %v10031_v21, %v9327_v46  ;;  %v9267_v46 = vpop.f32.mrf.mxu1  ;;  %v9334_v12 = vadd.f32 %v20305_v57, %v5211_v34  ;;  %v23474_v57 = vld [vmem:[#allocation215_spill] sm:$0xff] }
 0x723   : > { %v10033_v6 = vpop.f32.mrf.mxu0  ;;  %v5213_v21 = vadd.f32 %v23472_v58, %v23471_v54  ;;  %v5214_v44 = vadd.f32 %v23474_v57, %v23473_v25 }
 0x724   : > { %10453 = vst [vmem:[%s20090_s23 + $0x158] sm:$0xff] %v10389_v32  ;;  %v10390_v4 = vmax.f32 %v10326_v62, 0.0  ;;  %v10327_v42 = vadd.f32 %v20074_v40, %v10123_v39  ;;  %v10124_v29 = vadd.f32 %v10033_v6, %v9328_v24  ;;  %v9335_v32 = vadd.f32 %v20317_v20, %v5212_v13  ;;  %v9269_v6 = vpop.f32.mrf.mxu1  ;;  %v23475_v20 = vld [vmem:[#allocation189_spill] sm:$0xff] }
 0x725   : > { %v10035_v23 = vpop.f32.mrf.mxu0  ;;  %v5215_v28 = vadd.f32 %v23476_v33, %v23475_v20 }
 0x726   : > { %10454 = vst [vmem:[%s20090_s23 + $0x160] sm:$0xff] %v10390_v4  ;;  %v10391_v56 = vmax.f32 %v10327_v42, 0.0  ;;  %v10328_v55 = vadd.f32 %v20064_v37, %v10124_v29  ;;  %v10125_v0 = vadd.f32 %v10035_v23, %v9329_v60  ;;  %v9336_v4 = vadd.f32 %v20329_v9, %v5213_v21  ;;  %v23478_v9 = vld [vmem:[#allocation106_spill] sm:$0xff]  ;;  %v9273_v22 = vpop.f32.mrf.mxu1 }
 0x727   : > { %v10039_v45 = vpop.f32.mrf.mxu0  ;;  %v5216_v1 = vadd.f32 %v23478_v9, %v23477_v52 }
 0x728   : > { %10455 = vst [vmem:[%s20090_s23 + $0x168] sm:$0xff] %v10391_v56  ;;  %v10392_v59 = vmax.f32 %v10328_v55, 0.0  ;;  %v10329_v11 = vadd.f32 %v20074_v40, %v10125_v0  ;;  %v10126_v35 = vadd.f32 %v10039_v45, %v9330_v18  ;;  %v9337_v18 = vadd.f32 %v20341_v38, %v5214_v44  ;;  %v23480_v38 = vld [vmem:[#allocation200_spill] sm:$0xff]  ;;  %v9275_v27 = vpop.f32.mrf.mxu1 }
 0x729   : > { %v10041_v36 = vpop.f32.mrf.mxu0  ;;  %v5217_v30 = vadd.f32 %v23480_v38, %v23479_v63 }
 0x72a   : > { %10456 = vst [vmem:[%s20090_s23 + $0x170] sm:$0xff] %v10392_v59  ;;  %v10393_v53 = vmax.f32 %v10329_v11, 0.0  ;;  %v10330_v26 = vadd.f32 %v20064_v37, %v10126_v35  ;;  %v10127_v48 = vadd.f32 %v10041_v36, %v9331_v61  ;;  %v9338_v61 = vadd.f32 %v9263_v47, %v5215_v28  ;;  %v9277_v54 = vpop.f32.mrf.mxu1 }
 0x72b   : > { %v10043_v43 = vpop.f32.mrf.mxu0  ;;  %v9339_v36 = vadd.f32 %v9265_v3, %v5216_v1  ;;  %v23484_v3 = vld [vmem:[#allocation203_spill] sm:$0xff] }
 0x72c   : > { %10457 = vst [vmem:[%s20090_s23 + $0x178] sm:$0xff] %v10393_v53  ;;  %v10394_v16 = vmax.f32 %v10330_v26, 0.0  ;;  %v10331_v19 = vadd.f32 %v20074_v40, %v10127_v48  ;;  %v10128_v5 = vadd.f32 %v10043_v43, %v9332_v49  ;;  %v23481_v48 = vld [vmem:[#allocation43_spill] sm:$0xff]  ;;  %v9340_v43 = vadd.f32 %v9267_v46, %v5217_v30  ;;  %v9279_v20 = vpop.f32.mrf.mxu1 }
 0x72d   : > { %v10045_v51 = vpop.f32.mrf.mxu0  ;;  %v5218_v47 = vadd.f32 %v23482_v2, %v23481_v48 }
 0x72e   : > { %10458 = vst [vmem:[%s20090_s23 + $0x180] sm:$0xff] %v10394_v16  ;;  %v10395_v15 = vmax.f32 %v10331_v19, 0.0  ;;  %v10332_v41 = vadd.f32 %v20064_v37, %v10128_v5  ;;  %v10129_v14 = vadd.f32 %v10045_v51, %v9333_v7  ;;  %v23483_v5 = vld [vmem:[#allocation49_spill] sm:$0xff] }
 0x72f   : > { %v10049_v24 = vpop.f32.mrf.mxu0  ;;  %v5219_v50 = vadd.f32 %v23484_v3, %v23483_v5  ;;  %v9341_v13 = vadd.f32 %v9269_v6, %v5218_v47 }
 0x730   : > { %10459 = vst [vmem:[%s20090_s23 + $0x188] sm:$0xff] %v10395_v15  ;;  %v10396_v62 = vmax.f32 %v10332_v41, 0.0  ;;  %v10333_v39 = vadd.f32 %v20074_v40, %v10129_v14  ;;  %v10130_v31 = vadd.f32 %v10049_v24, %v9334_v12  ;;  %v23485_v41 = vld [vmem:[#allocation37_spill] sm:$0xff] }
 0x731   : > { %v10051_v60 = vpop.f32.mrf.mxu0  ;;  %v23486_v14 = vld [vmem:[#allocation113_spill] sm:$0xff]  ;;  %v9342_v21 = vadd.f32 %v9273_v22, %v5219_v50 }
 0x732   : > { %10460 = vst [vmem:[%s20090_s23 + $0x190] sm:$0xff] %v10396_v62  ;;  %v10397_v42 = vmax.f32 %v10333_v39, 0.0  ;;  %v10334_v29 = vadd.f32 %v20064_v37, %v10130_v31  ;;  %v10131_v17 = vadd.f32 %v10051_v60, %v9335_v32  ;;  %v5220_v46 = vadd.f32 %v23486_v14, %v23485_v41  ;;  %v23487_v39 = vld [vmem:[#allocation69_spill] sm:$0xff]  ;;  %v23488_v31 = vld [vmem:[#allocation130_spill] sm:$0xff] }
 0x733   : > { %v10053_v23 = vpop.f32.mrf.mxu0  ;;  %v5221_v25 = vadd.f32 %v23488_v31, %v23487_v39 }
 0x734   : > { %10461 = vst [vmem:[%s20090_s23 + $0x198] sm:$0xff] %v10397_v42  ;;  %v10398_v56 = vmax.f32 %v10334_v29, 0.0  ;;  %v10335_v55 = vadd.f32 %v20074_v40, %v10131_v17  ;;  %v10132_v0 = vadd.f32 %v10053_v23, %v9336_v4  ;;  %v9343_v44 = vadd.f32 %v9275_v27, %v5220_v46  ;;  %v23489_v42 = vld [vmem:[#allocation47_spill] sm:$0xff]  ;;  %v23490_v29 = vld [vmem:[#allocation177_spill] sm:$0xff] }
 0x735   : > { %v10055_v45 = vpop.f32.mrf.mxu0  ;;  %v5222_v17 = vadd.f32 %v23490_v29, %v23489_v42  ;;  %v9344_v28 = vadd.f32 %v9277_v54, %v5221_v25 }
 0x736   : > { %10462 = vst [vmem:[%s20090_s23 + $0x1a0] sm:$0xff] %v10398_v56  ;;  %v10399_v59 = vmax.f32 %v10335_v55, 0.0  ;;  %v10336_v11 = vadd.f32 %v20064_v37, %v10132_v0  ;;  %v10133_v35 = vadd.f32 %v10055_v45, %v9337_v18 }
 0x737   : > { %v10059_v10 = vpop.f32.mrf.mxu0  ;;  %v9345_v0 = vadd.f32 %v9279_v20, %v5222_v17 }
 0x738   : > { %10463 = vst [vmem:[%s20090_s23 + $0x1a8] sm:$0xff] %v10399_v59  ;;  %v10400_v49 = vmax.f32 %v10336_v11, 0.0  ;;  %v10337_v53 = vadd.f32 %v20074_v40, %v10133_v35  ;;  %v10134_v26 = vadd.f32 %v10059_v10, %v9338_v61 }
 0x739   : > { %v10061_v34 = vpop.f32.mrf.mxu0 }
 0x73a   : > { %10464 = vst [vmem:[%s20090_s23 + $0x1b0] sm:$0xff] %v10400_v49  ;;  %v10401_v7 = vmax.f32 %v10337_v53, 0.0  ;;  %v10338_v16 = vadd.f32 %v20064_v37, %v10134_v26  ;;  %v10135_v19 = vadd.f32 %v10061_v34, %v9339_v36 }
 0x73b   : > { %v10063_v8 = vpop.f32.mrf.mxu0 }
 0x73c   : > { %10465 = vst [vmem:[%s20090_s23 + $0x1b8] sm:$0xff] %v10401_v7  ;;  %v10402_v51 = vmax.f32 %v10338_v16, 0.0  ;;  %v10339_v12 = vadd.f32 %v20074_v40, %v10135_v19  ;;  %v10136_v15 = vadd.f32 %v10063_v8, %v9340_v43 }
 0x73d   : > { %v10065_v58 = vpop.f32.mrf.mxu0 }
 0x73e   : > { %10466 = vst [vmem:[%s20090_s23 + $0x1c0] sm:$0xff] %v10402_v51  ;;  %v10403_v24 = vmax.f32 %v10339_v12, 0.0  ;;  %v10340_v32 = vadd.f32 %v20064_v37, %v10136_v15  ;;  %v10137_v62 = vadd.f32 %v10065_v58, %v9341_v13 }
 0x73f   : > { %v10069_v57 = vpop.f32.mrf.mxu0 }
 0x740   : > { %10467 = vst [vmem:[%s20090_s23 + $0x1c8] sm:$0xff] %v10403_v24  ;;  %v10404_v6 = vmax.f32 %v10340_v32, 0.0  ;;  %v10341_v60 = vadd.f32 %v20074_v40, %v10137_v62  ;;  %v10138_v4 = vadd.f32 %v10069_v57, %v9342_v21 }
 0x741   : > { %v10071_v33 = vpop.f32.mrf.mxu0 }
 0x742   : > { %10468 = vst [vmem:[%s20090_s23 + $0x1d0] sm:$0xff] %v10404_v6  ;;  %v10405_v23 = vmax.f32 %v10341_v60, 0.0  ;;  %v10342_v18 = vadd.f32 %v20064_v37, %v10138_v4  ;;  %v10139_v56 = vadd.f32 %v10071_v33, %v9343_v44 }
 0x743   : > { %v10073_v55 = vpop.f32.mrf.mxu0 }
 0x744   : > { %10469 = vst [vmem:[%s20090_s23 + $0x1d8] sm:$0xff] %v10405_v23  ;;  %v10406_v52 = vmax.f32 %v10342_v18, 0.0  ;;  %v10343_v9 = vadd.f32 %v20074_v40, %v10139_v56  ;;  %v10140_v1 = vadd.f32 %v10073_v55, %v9344_v28 }
 0x745   : > { %v10075_v22 = vpop.f32.mrf.mxu0 }
 0x746   : > { %10470 = vst [vmem:[%s20090_s23 + $0x1e0] sm:$0xff] %v10406_v52  ;;  %v10407_v45 = vmax.f32 %v10343_v9, 0.0  ;;  %v10344_v61 = vadd.f32 %v20064_v37, %v10140_v1  ;;  %v10141_v59 = vadd.f32 %v10075_v22, %v9345_v0 }
 0x748   : > { %10471 = vst [vmem:[%s20090_s23 + $0x1e8] sm:$0xff] %v10407_v45  ;;  %v10408_v11 = vmax.f32 %v10344_v61, 0.0  ;;  %v10345_v35 = vadd.f32 %v20074_v40, %v10141_v59 }
 0x74a   : > { %10472 = vst [vmem:[%s20090_s23 + $0x1f0] sm:$0xff] %v10408_v11  ;;  %v10409_v63 = vmax.f32 %v10345_v35, 0.0 }
 0x74c   : > { %10473 = vst [vmem:[%s20090_s23 + $0x1f8] sm:$0xff] %v10409_v63 }
 0x74d   : > { %12859 = shalt.err (!%p12856_p5)
}
 0x74e   : > { %s12860_s20 = scalar_lea.hbm %s20430_s15, 8192  ;;  %s12864_s27 = scalar_lea.hbm %s20492_s9, 16384 }
 0x74f   : > { %p12861_p6 = scmp.ne.s32.totalorder %s20430_s15, %s12860_s20  ;;  %p12865_p10 = scmp.lt.s32.totalorder %s20430_s15, %s20492_s9 }
 0x750   : > { %p12866_p11 = scmp.lt.s32.totalorder %s12864_s27, %s12860_s20 }
 0x751   : > { %p12862_p7 = pnand %p12861_p6, %p13018_p4 }
 0x752   : > { %p12867_p12 = por %p12866_p11, %p12865_p10 }
 0x753   : > { %p12863_p9 = pneg %p12862_p7 }
 0x755   : > { %p12868_p13 = pnand %p12867_p12, %p12863_p9 }
 0x757   : > { %12871 = shalt.err (!%p12868_p13)
}
 0x758   : > { %s12926_s16 = smov 256   ;;  %s12927_s18 = smov 16  }
 0x759   : > { %12675 = dma.vmem_to_hbm [thread:$0]  (%p13018_p4), %s20432_s25, 8192, %s20430_s15, %s20438_s12, %s12926_s16, %s12926_s16, %s12927_s18  }
 0x75a PF: > { %p12681_p0 = scmp.ge.s32.totalorder %s12922_s14, 2  ;;  %s10506_s29 = sand.u32 1, %s12902_s30  }
 0x75b   : > { %s10507_s20 = scalar_lea.sflag [#allocation5], %s10506_s29 }
 0x75c   : > { %p12678_p1 = pnand %p12681_p0, %p13025_p8 }
 0x75e   : > { %p12679_p2 = pneg %p12678_p1 }
 0x760   : > { %12897 = dma.done.wait (%p12679_p2), %s10507_s20, 8192  }
 0x761   : > { %12899 = vsyncadd (%p12679_p2), %s10507_s20, 4294959104  ;;  %s22_s14 = sadd.s32 1, %s12922_s14   ;;  %s23491_s30 = smov %s12906_s10 }
 0x762   : > { %p19_p3 = scmp.ge.s32.totalorder %s22_s14, 4   ;;  %s23492_s10 = smov %s12910_s11 }
 0x763   : > { %s23493_s11 = smov %s13031_s22  ;;  %s23494_s12 = smov %s12918_s13 }
 0x764   : > { %s23495_s13 = smov %s23497_s17  ;;  %21 = sbr.rel (!%p19_p3) target bundleno = 4 (0x4), region = 131 }
 0x769   :  { %10512 = vsyncpa [#allocation5], 1 }
 0x76a   :  { %10514 = vsyncpa [#allocation5 + $0x1], 1 }

</bundles_post_ra>
